<compile_context>
chip_gen: v6e
topology: v6e:2x2x1
jax: 0.10.0
libtpu: 0.0.40
codegen_flags: <defaults>
</compile_context>

<pallas_src>
import numpy as np
import jax
import jax.numpy as jnp
from jax import lax
from jax.experimental import pallas as pl
from jax.experimental.pallas import tpu as pltpu

TILE_C = 128          # clusters per output tile
TILE_N = 512          # nodes per DMA'd block (power of two)
LANES = 128
NEG = float(np.finfo(np.float32).min)   # masked fill (finfo min, not -inf)
# TODO(synk): integer feature dtypes would need an iinfo-min fill and exactness care
#             (the kernel reduces in float32).


def _round_up(a, b):
    return ((a + b - 1) // b) * b


def pallas_cluster_pool(cluster, x, pos, num_clusters):
    """Scatter-max of x [N,F] and scatter-mean of pos [N,D] over cluster ids 0..C-1."""
    cluster = np.asarray(cluster, dtype=np.int64)
    n, f = int(x.shape[0]), int(x.shape[1])
    d = int(pos.shape[1])
    c = int(num_clusters)

    w_in = f + 1 + d + 1        # node operand columns: x | key | pos | ones
    key_col = f                 # block-local segment key lane
    cnt_col = f + 1 + d         # ones / count lane
    w = max(LANES, _round_up(w_in, LANES))   # lane-dense output slab width

    # ---- host: sort nodes by cluster, build per-tile node-block offsets --------
    order = np.argsort(cluster, kind="stable")
    cl_sorted = cluster[order]

    c_pad = _round_up(max(c, 1), TILE_C)
    n_ct = c_pad // TILE_C
    n_pad = _round_up(max(n, 1), TILE_N)
    n_blocks = n_pad // TILE_N

    tile_lo = np.arange(n_ct, dtype=np.int64) * TILE_C
    starts = np.searchsorted(cl_sorted, tile_lo, side="left")
    ends = np.searchsorted(cl_sorted, tile_lo + TILE_C, side="left")
    base = (starts // TILE_N).astype(np.int32)
    last = (np.maximum(ends - 1, starts) // TILE_N).astype(np.int32)
    nblk = np.maximum(last - base + 1, 1).astype(np.int32)
    max_nblk = int(nblk.max())

    cl_pad = np.full(n_pad, -1, dtype=np.int32)
    cl_pad[:n] = cl_sorted
    prev = np.empty_like(cl_pad)
    prev[0] = -2
    prev[1:] = cl_pad[:-1]
    # flag = 1 at the first row of each cluster run within every TILE_N block
    flag = ((cl_pad != prev) | ((np.arange(n_pad) % TILE_N) == 0)).astype(np.float32)
    # block-local segment key (small integers, exactly representable in f32)
    block_first = cl_pad[(np.arange(n_pad) // TILE_N) * TILE_N]
    key = (cl_pad - block_first).astype(np.float32)
    key[n:] = -1.0

    # ---- device: one sorted + padded combined node-major operand ---------------
    idx = jnp.asarray(order, dtype=jnp.int32)
    x_s = jnp.take(jnp.asarray(x, jnp.float32), idx, axis=0)
    p_s = jnp.take(jnp.asarray(pos, jnp.float32), idx, axis=0)
    pad_rows = n_pad - n
    xpk = jnp.concatenate([
        jnp.concatenate([x_s, jnp.zeros((pad_rows, f), jnp.float32)], axis=0),
        jnp.asarray(key, jnp.float32).reshape(n_pad, 1),
        jnp.concatenate([p_s, jnp.zeros((pad_rows, d), jnp.float32)], axis=0),
        jnp.concatenate([jnp.ones((n, 1), jnp.float32),
                         jnp.zeros((pad_rows, 1), jnp.float32)], axis=0),
    ], axis=1)                                                   # [n_pad, w_in]
    cl_row = jnp.asarray(cl_pad, jnp.int32).reshape(1, n_pad)
    flag_row = jnp.asarray(flag, jnp.float32).reshape(1, n_pad)

    def kernel(base_ref, nblk_ref, cl_ref, flag_ref, xpk_ref, out_ref):
        i = pl.program_id(0)                 # cluster tile
        j = pl.program_id(1)                 # node block within this tile's segment
        nj = pl.num_programs(1)
        tc = out_ref.shape[0]
        tn = xpk_ref.shape[0]

        lane_out = lax.broadcasted_iota(jnp.int32, (tc, w), 1)
        in_max = lane_out < f                # lanes [0, f) hold the running max

        @pl.when(j == 0)
        def _init():
            out_ref[...] = jnp.where(in_max, NEG, 0.0).astype(jnp.float32)

        @pl.when(j < nblk_ref[i])
        def _accumulate():
            # one-hot membership of this block's nodes in this tile's TILE_C clusters
            tile_ids = i * tc + lax.broadcasted_iota(jnp.int32, (tc, 1), 0)   # [tc,1]
            onehot = (cl_ref[...] == tile_ids).astype(jnp.float32)            # [tc,tn]

            # combined gated log-step pass over the (sorted) node axis:
            #   * lanes [0, f] (x + key)  -> segmented MAX
            #   * lanes (f, w_in)         -> segmented SUM (pos + ones)
            # nodes are sorted by cluster, so every cluster is a contiguous run and
            # the first row of each run ends up holding the full run max / sum / count.
            lane_n = lax.broadcasted_iota(jnp.int32, (tn, w_in), 1)
            is_maxlane = lane_n <= key_col
            fill = jnp.where(is_maxlane, NEG, 0.0).astype(jnp.float32)

            xs = xpk_ref[...]                                                  # [tn,w_in]
            k = 1
            while k < tn:
                xr = jnp.concatenate([xs[k:, :], xs[:k, :]], axis=0)           # row p sees p+k
                same = xr[:, key_col:key_col + 1] == xs[:, key_col:key_col + 1]
                gated = jnp.where(same, xr, fill)
                xs = jnp.where(is_maxlane, jnp.maximum(xs, gated), xs + gated)
                k *= 2

            # exact one-hot selection of each cluster's (host-flagged) first-of-run row:
            # one MXU matmul yields max, pos sums and counts for all TILE_C clusters.
            rep = onehot * flag_ref[...]                                       # [tc,tn]
            sel = jnp.dot(rep, xs, preferred_element_type=jnp.float32)         # [tc,w_in]

            lane_s = lax.broadcasted_iota(jnp.int32, (tc, w_in), 1)
            present = sel[:, cnt_col:cnt_col + 1] > 0.0
            upd = jnp.where(lane_s < f, jnp.where(present, sel, NEG), sel)
            upd = jnp.where(lane_s == key_col, 0.0, upd)                       # scrub key slot
            if w > w_in:
                upd = jnp.concatenate(
                    [upd, jnp.zeros((tc, w - w_in), jnp.float32)], axis=1)     # [tc,w]

            slab = out_ref[...]
            out_ref[...] = jnp.where(in_max, jnp.maximum(slab, upd), slab + upd)

        @pl.when(j == nj - 1)
        def _finalize():
            slab = out_ref[...]
            cnt = slab[:, cnt_col:cnt_col + 1]
            inv = pl.reciprocal(jnp.maximum(cnt, 1.0), approx=False)           # exact mean
            in_mean = (lane_out > f) & (lane_out < cnt_col)
            out_ref[...] = jnp.where(in_mean, slab * inv, slab)

    def _nb(i_, j_, base_ref, nblk_ref):
        # node-block index for this (cluster tile, step), clamped in-bounds
        return jnp.minimum(base_ref[i_] + j_, n_blocks - 1)

    slab = pl.pallas_call(
        kernel,
        out_shape=jax.ShapeDtypeStruct((c_pad, w), jnp.float32),
        grid_spec=pltpu.PrefetchScalarGridSpec(
            num_scalar_prefetch=2,
            grid=(n_ct, max_nblk),
            in_specs=[
                pl.BlockSpec((1, TILE_N), lambda i, j, b, nb: (0, _nb(i, j, b, nb))),      # cluster ids
                pl.BlockSpec((1, TILE_N), lambda i, j, b, nb: (0, _nb(i, j, b, nb))),      # first-of-run flag
                pl.BlockSpec((TILE_N, w_in), lambda i, j, b, nb: (_nb(i, j, b, nb), 0)),   # x|key|pos|ones
            ],
            out_specs=pl.BlockSpec((TILE_C, w), lambda i, j, b, nb: (i, 0)),
        ),
        compiler_params=pltpu.CompilerParams(
            dimension_semantics=("parallel", "arbitrary")),
    )(jnp.asarray(base, jnp.int32), jnp.asarray(nblk, jnp.int32),
      cl_row, flag_row, xpk)

    x_out = slab[:c, :f].astype(x.dtype)
    pos_out = slab[:c, f + 1:f + 1 + d].astype(pos.dtype)
    return x_out, pos_out


def _voxel_cluster(pos_np, batch_np, voxel_size):
    """voxel_grid on pos[:, :2] (start = per-dim min, batch highest-order) + relabel."""
    p = np.asarray(pos_np)[:, :2].astype(np.float64)
    start = p.min(axis=0)
    vx = np.floor((p[:, 0] - start[0]) / float(voxel_size[0])).astype(np.int64)
    vy = np.floor((p[:, 1] - start[1]) / float(voxel_size[1])).astype(np.int64)
    nx = int(vx.max()) + 1
    ny = int(vy.max()) + 1
    raw = batch_np.astype(np.int64) * (nx * ny) + vy * nx + vx
    uniq, cluster = np.unique(raw, return_inverse=True)
    return cluster, int(uniq.shape[0])


def maxpooling_forward(x, pos, batch, edge_index, voxel_size):
    """Equivalent of MaxPooling.forward -> (x, pos, batch, edge_index, edge_attr)."""
    pos_np = np.asarray(pos)
    batch_np = np.asarray(batch).astype(np.int64)

    cluster, num_clusters = _voxel_cluster(pos_np, batch_np, voxel_size)

    # pooled batch vector (any representative node; batch is constant within a cluster)
    perm = np.zeros(num_clusters, dtype=np.int64)
    perm[cluster] = np.arange(cluster.shape[0])
    batch_out = jnp.asarray(batch_np[perm].astype(np.int32))

    # pooled edges: remap -> drop self-loops -> coalesce (sorted dedup)
    ei = cluster[np.asarray(edge_index)]
    keep = ei[0] != ei[1]
    ei = np.unique(ei[:, keep], axis=1)
    edge_index_out = jnp.asarray(ei.astype(np.int32))

    # hot path on TPU: scatter-max of x, scatter-mean of pos
    x_out, pos_out = pallas_cluster_pool(cluster, x, pos, num_clusters)

    # edge_attr is None (input Data had no edge_attr), matching the PyTorch output
    return x_out, pos_out, batch_out, edge_index_out, None


if __name__ == "__main__":
    key = jax.random.PRNGKey(0)
    N, F, D = 64, 16, 3   # nodes, feature dim, pos dim (x, y, t)
    kx, kp, ke = jax.random.split(key, 3)

    x = jax.random.normal(kx, (N, F), dtype=jnp.float32)
    xy = jax.random.uniform(kp, (N, 2), minval=0.0, maxval=16.0, dtype=jnp.float32)
    t = jnp.linspace(0.0, 1.0, N, dtype=jnp.float32).reshape(N, 1)
    pos = jnp.concatenate([xy, t], axis=1)

    # two graphs in the batch, nodes sorted by batch id
    batch = jnp.concatenate([jnp.zeros(N // 2, jnp.int32), jnp.ones(N // 2, jnp.int32)])

    # within-graph random edges
    src0 = jax.random.randint(ke, (64,), 0, N // 2)
    dst0 = jax.random.randint(jax.random.fold_in(ke, 1), (64,), 0, N // 2)
    src1 = jax.random.randint(jax.random.fold_in(ke, 2), (64,), N // 2, N)
    dst1 = jax.random.randint(jax.random.fold_in(ke, 3), (64,), N // 2, N)
    edge_index = jnp.stack([jnp.concatenate([src0, src1]),
                            jnp.concatenate([dst0, dst1])]).astype(jnp.int32)

    voxel_size = [4.0, 4.0]

    x_out, pos_out, batch_out, ei_out, ea_out = maxpooling_forward(
        x, pos, batch, edge_index, voxel_size)
    jax.block_until_ready((x_out, pos_out, batch_out, ei_out))

    # reference check (segment max / mean over the same clusters)
    cluster_np, C = _voxel_cluster(np.asarray(pos), np.asarray(batch).astype(np.int64),
                                   voxel_size)
    cl_dev = jnp.asarray(cluster_np, jnp.int32)
    ref_max = jax.ops.segment_max(x, cl_dev, num_segments=C)
    cnt = jax.ops.segment_sum(jnp.ones((N,), jnp.float32), cl_dev, num_segments=C)
    ref_mean = jax.ops.segment_sum(pos, cl_dev, num_segments=C) / cnt[:, None]
    np.testing.assert_allclose(np.asarray(x_out), np.asarray(ref_max),
                               rtol=1e-4, atol=1e-4)
    np.testing.assert_allclose(np.asarray(pos_out), np.asarray(ref_mean),
                               rtol=1e-4, atol=1e-4)

    print("KERNEL_OK")
</pallas_src>

<mosaic_0001>
module attributes {stable_mosaic.version = 11 : i64} {
  func.func @kernel(%arg0: i32, %arg1: i32, %arg2: memref<1xi32, #tpu.memory_space<smem>>, %arg3: memref<1xi32, #tpu.memory_space<smem>>, %arg4: memref<1x512xi32, #tpu.memory_space<vmem>>, %arg5: memref<1x512xf32, #tpu.memory_space<vmem>>, %arg6: memref<512x21xf32, #tpu.memory_space<vmem>>, %arg7: memref<128x128xf32, #tpu.memory_space<vmem>>) attributes {dimension_semantics = [#tpu.dimension_semantics<parallel>, #tpu.dimension_semantics<arbitrary>], iteration_bounds = array<i64: 1, 1>, scalar_prefetch = 2 : i64, scratch_operands = 0 : i64, tpu.core_type = #tpu.core_type<tc>, window_params = [{transform_indices = @transform_0, window_bounds = array<i64: 1, 512>}, {transform_indices = @transform_1, window_bounds = array<i64: 1, 512>}, {transform_indices = @transform_2, window_bounds = array<i64: 512, 21>}, {transform_indices = @transform_3, window_bounds = array<i64: 128, 128>}]} {
    %0 = tpu.iota {dimensions = array<i32: 1>} : vector<128x128xi32>
    %c16_i32 = arith.constant 16 : i32
    %1 = vector.broadcast %c16_i32 : i32 to vector<128x128xi32>
    %2 = arith.cmpi slt, %0, %1 : vector<128x128xi32>
    %c0_i32 = arith.constant 0 : i32
    %3 = arith.cmpi eq, %arg1, %c0_i32 : i32
    %4 = arith.extui %3 : i1 to i32
    %c0_i32_0 = arith.constant 0 : i32
    %5 = arith.cmpi ne, %4, %c0_i32_0 : i32
    scf.if %5 {
      %cst = arith.constant -3.40282347E+38 : f32
      %cst_4 = arith.constant 0.000000e+00 : f32
      %14 = vector.broadcast %cst : f32 to vector<128x128xf32>
      %15 = vector.broadcast %cst_4 : f32 to vector<128x128xf32>
      %16 = arith.select %2, %14, %15 : vector<128x128xi1>, vector<128x128xf32>
      %c0 = arith.constant 0 : index
      %c0_5 = arith.constant 0 : index
      %17 = vector.load %arg7[%c0, %c0_5] : memref<128x128xf32, #tpu.memory_space<vmem>>, vector<128x128xf32>
      tpu.vector_store %arg7[%c0, %c0_5], %16 {strides = array<i32>} : memref<128x128xf32, #tpu.memory_space<vmem>>, vector<128x128xf32>,
    } else {
    }
    %6 = arith.index_cast %arg0 : i32 to index
    %7 = memref.load %arg3[%6] : memref<1xi32, #tpu.memory_space<smem>>
    %8 = arith.cmpi slt, %arg1, %7 : i32
    %9 = arith.extui %8 : i1 to i32
    %c0_i32_1 = arith.constant 0 : i32
    %10 = arith.cmpi ne, %9, %c0_i32_1 : i32
    scf.if %10 {
      %c128_i32 = arith.constant 128 : i32
      %14 = arith.muli %arg0, %c128_i32 : i32
      %15 = tpu.iota {dimensions = array<i32: 0>} : vector<128x1xi32>
      %16 = vector.broadcast %14 : i32 to vector<128x1xi32>
      %17 = arith.addi %16, %15 : vector<128x1xi32>
      %c0 = arith.constant 0 : index
      %c0_4 = arith.constant 0 : index
      %18 = vector.load %arg4[%c0, %c0_4] : memref<1x512xi32, #tpu.memory_space<vmem>>, vector<1x512xi32>
      %19 = vector.broadcast %18 : vector<1x512xi32> to vector<128x512xi32>
      %20 = vector.broadcast %17 : vector<128x1xi32> to vector<128x512xi32>
      %21 = arith.cmpi eq, %19, %20 : vector<128x512xi32>
      %22 = arith.extui %21 : vector<128x512xi1> to vector<128x512xi32>
      %23 = arith.sitofp %22 : vector<128x512xi32> to vector<128x512xf32>
      %24 = tpu.iota {dimensions = array<i32: 1>} : vector<512x21xi32>
      %c16_i32_5 = arith.constant 16 : i32
      %25 = vector.broadcast %c16_i32_5 : i32 to vector<512x21xi32>
      %26 = arith.cmpi sle, %24, %25 : vector<512x21xi32>
      %cst = arith.constant -3.40282347E+38 : f32
      %cst_6 = arith.constant 0.000000e+00 : f32
      %27 = vector.broadcast %cst : f32 to vector<512x21xf32>
      %28 = vector.broadcast %cst_6 : f32 to vector<512x21xf32>
      %29 = arith.select %26, %27, %28 : vector<512x21xi1>, vector<512x21xf32>
      %c0_7 = arith.constant 0 : index
      %c0_8 = arith.constant 0 : index
      %30 = vector.load %arg6[%c0_7, %c0_8] : memref<512x21xf32, #tpu.memory_space<vmem>>, vector<512x21xf32>
      %31 = vector.extract_strided_slice %30 {offsets = [1, 0], sizes = [511, 21], strides = [1, 1]} : vector<512x21xf32> to vector<511x21xf32>
      %32 = vector.extract_strided_slice %30 {offsets = [0, 0], sizes = [1, 21], strides = [1, 1]} : vector<512x21xf32> to vector<1x21xf32>
      %33 = tpu.concatenate %31, %32 in 0 : vector<511x21xf32>, vector<1x21xf32> -> vector<512x21xf32>
      %34 = vector.extract_strided_slice %33 {offsets = [0, 16], sizes = [512, 1], strides = [1, 1]} : vector<512x21xf32> to vector<512x1xf32>
      %35 = vector.extract_strided_slice %30 {offsets = [0, 16], sizes = [512, 1], strides = [1, 1]} : vector<512x21xf32> to vector<512x1xf32>
      %36 = arith.cmpf oeq, %34, %35 : vector<512x1xf32>
      %37 = vector.shape_cast %36 : vector<512x1xi1> to vector<512x1xi1>
      %38 = vector.broadcast %37 : vector<512x1xi1> to vector<512x21xi1>
      %39 = arith.select %38, %33, %29 : vector<512x21xi1>, vector<512x21xf32>
      %40 = arith.maximumf %30, %39 : vector<512x21xf32>
      %41 = arith.addf %30, %39 : vector<512x21xf32>
      %42 = arith.select %26, %40, %41 : vector<512x21xi1>, vector<512x21xf32>
      %43 = vector.extract_strided_slice %42 {offsets = [2, 0], sizes = [510, 21], strides = [1, 1]} : vector<512x21xf32> to vector<510x21xf32>
      %44 = vector.extract_strided_slice %42 {offsets = [0, 0], sizes = [2, 21], strides = [1, 1]} : vector<512x21xf32> to vector<2x21xf32>
      %45 = tpu.concatenate %43, %44 in 0 : vector<510x21xf32>, vector<2x21xf32> -> vector<512x21xf32>
      %46 = vector.extract_strided_slice %45 {offsets = [0, 16], sizes = [512, 1], strides = [1, 1]} : vector<512x21xf32> to vector<512x1xf32>
      %47 = vector.extract_strided_slice %42 {offsets = [0, 16], sizes = [512, 1], strides = [1, 1]} : vector<512x21xf32> to vector<512x1xf32>
      %48 = arith.cmpf oeq, %46, %47 : vector<512x1xf32>
      %49 = vector.shape_cast %48 : vector<512x1xi1> to vector<512x1xi1>
      %50 = vector.broadcast %49 : vector<512x1xi1> to vector<512x21xi1>
      %51 = arith.select %50, %45, %29 : vector<512x21xi1>, vector<512x21xf32>
      %52 = arith.maximumf %42, %51 : vector<512x21xf32>
      %53 = arith.addf %42, %51 : vector<512x21xf32>
      %54 = arith.select %26, %52, %53 : vector<512x21xi1>, vector<512x21xf32>
      %55 = vector.extract_strided_slice %54 {offsets = [4, 0], sizes = [508, 21], strides = [1, 1]} : vector<512x21xf32> to vector<508x21xf32>
      %56 = vector.extract_strided_slice %54 {offsets = [0, 0], sizes = [4, 21], strides = [1, 1]} : vector<512x21xf32> to vector<4x21xf32>
      %57 = tpu.concatenate %55, %56 in 0 : vector<508x21xf32>, vector<4x21xf32> -> vector<512x21xf32>
      %58 = vector.extract_strided_slice %57 {offsets = [0, 16], sizes = [512, 1], strides = [1, 1]} : vector<512x21xf32> to vector<512x1xf32>
      %59 = vector.extract_strided_slice %54 {offsets = [0, 16], sizes = [512, 1], strides = [1, 1]} : vector<512x21xf32> to vector<512x1xf32>
      %60 = arith.cmpf oeq, %58, %59 : vector<512x1xf32>
      %61 = vector.shape_cast %60 : vector<512x1xi1> to vector<512x1xi1>
      %62 = vector.broadcast %61 : vector<512x1xi1> to vector<512x21xi1>
      %63 = arith.select %62, %57, %29 : vector<512x21xi1>, vector<512x21xf32>
      %64 = arith.maximumf %54, %63 : vector<512x21xf32>
      %65 = arith.addf %54, %63 : vector<512x21xf32>
      %66 = arith.select %26, %64, %65 : vector<512x21xi1>, vector<512x21xf32>
      %67 = vector.extract_strided_slice %66 {offsets = [8, 0], sizes = [504, 21], strides = [1, 1]} : vector<512x21xf32> to vector<504x21xf32>
      %68 = vector.extract_strided_slice %66 {offsets = [0, 0], sizes = [8, 21], strides = [1, 1]} : vector<512x21xf32> to vector<8x21xf32>
      %69 = tpu.concatenate %67, %68 in 0 : vector<504x21xf32>, vector<8x21xf32> -> vector<512x21xf32>
      %70 = vector.extract_strided_slice %69 {offsets = [0, 16], sizes = [512, 1], strides = [1, 1]} : vector<512x21xf32> to vector<512x1xf32>
      %71 = vector.extract_strided_slice %66 {offsets = [0, 16], sizes = [512, 1], strides = [1, 1]} : vector<512x21xf32> to vector<512x1xf32>
      %72 = arith.cmpf oeq, %70, %71 : vector<512x1xf32>
      %73 = vector.shape_cast %72 : vector<512x1xi1> to vector<512x1xi1>
      %74 = vector.broadcast %73 : vector<512x1xi1> to vector<512x21xi1>
      %75 = arith.select %74, %69, %29 : vector<512x21xi1>, vector<512x21xf32>
      %76 = arith.maximumf %66, %75 : vector<512x21xf32>
      %77 = arith.addf %66, %75 : vector<512x21xf32>
      %78 = arith.select %26, %76, %77 : vector<512x21xi1>, vector<512x21xf32>
      %79 = vector.extract_strided_slice %78 {offsets = [16, 0], sizes = [496, 21], strides = [1, 1]} : vector<512x21xf32> to vector<496x21xf32>
      %80 = vector.extract_strided_slice %78 {offsets = [0, 0], sizes = [16, 21], strides = [1, 1]} : vector<512x21xf32> to vector<16x21xf32>
      %81 = tpu.concatenate %79, %80 in 0 : vector<496x21xf32>, vector<16x21xf32> -> vector<512x21xf32>
      %82 = vector.extract_strided_slice %81 {offsets = [0, 16], sizes = [512, 1], strides = [1, 1]} : vector<512x21xf32> to vector<512x1xf32>
      %83 = vector.extract_strided_slice %78 {offsets = [0, 16], sizes = [512, 1], strides = [1, 1]} : vector<512x21xf32> to vector<512x1xf32>
      %84 = arith.cmpf oeq, %82, %83 : vector<512x1xf32>
      %85 = vector.shape_cast %84 : vector<512x1xi1> to vector<512x1xi1>
      %86 = vector.broadcast %85 : vector<512x1xi1> to vector<512x21xi1>
      %87 = arith.select %86, %81, %29 : vector<512x21xi1>, vector<512x21xf32>
      %88 = arith.maximumf %78, %87 : vector<512x21xf32>
      %89 = arith.addf %78, %87 : vector<512x21xf32>
      %90 = arith.select %26, %88, %89 : vector<512x21xi1>, vector<512x21xf32>
      %91 = vector.extract_strided_slice %90 {offsets = [32, 0], sizes = [480, 21], strides = [1, 1]} : vector<512x21xf32> to vector<480x21xf32>
      %92 = vector.extract_strided_slice %90 {offsets = [0, 0], sizes = [32, 21], strides = [1, 1]} : vector<512x21xf32> to vector<32x21xf32>
      %93 = tpu.concatenate %91, %92 in 0 : vector<480x21xf32>, vector<32x21xf32> -> vector<512x21xf32>
      %94 = vector.extract_strided_slice %93 {offsets = [0, 16], sizes = [512, 1], strides = [1, 1]} : vector<512x21xf32> to vector<512x1xf32>
      %95 = vector.extract_strided_slice %90 {offsets = [0, 16], sizes = [512, 1], strides = [1, 1]} : vector<512x21xf32> to vector<512x1xf32>
      %96 = arith.cmpf oeq, %94, %95 : vector<512x1xf32>
      %97 = vector.shape_cast %96 : vector<512x1xi1> to vector<512x1xi1>
      %98 = vector.broadcast %97 : vector<512x1xi1> to vector<512x21xi1>
      %99 = arith.select %98, %93, %29 : vector<512x21xi1>, vector<512x21xf32>
      %100 = arith.maximumf %90, %99 : vector<512x21xf32>
      %101 = arith.addf %90, %99 : vector<512x21xf32>
      %102 = arith.select %26, %100, %101 : vector<512x21xi1>, vector<512x21xf32>
      %103 = vector.extract_strided_slice %102 {offsets = [64, 0], sizes = [448, 21], strides = [1, 1]} : vector<512x21xf32> to vector<448x21xf32>
      %104 = vector.extract_strided_slice %102 {offsets = [0, 0], sizes = [64, 21], strides = [1, 1]} : vector<512x21xf32> to vector<64x21xf32>
      %105 = tpu.concatenate %103, %104 in 0 : vector<448x21xf32>, vector<64x21xf32> -> vector<512x21xf32>
      %106 = vector.extract_strided_slice %105 {offsets = [0, 16], sizes = [512, 1], strides = [1, 1]} : vector<512x21xf32> to vector<512x1xf32>
      %107 = vector.extract_strided_slice %102 {offsets = [0, 16], sizes = [512, 1], strides = [1, 1]} : vector<512x21xf32> to vector<512x1xf32>
      %108 = arith.cmpf oeq, %106, %107 : vector<512x1xf32>
      %109 = vector.shape_cast %108 : vector<512x1xi1> to vector<512x1xi1>
      %110 = vector.broadcast %109 : vector<512x1xi1> to vector<512x21xi1>
      %111 = arith.select %110, %105, %29 : vector<512x21xi1>, vector<512x21xf32>
      %112 = arith.maximumf %102, %111 : vector<512x21xf32>
      %113 = arith.addf %102, %111 : vector<512x21xf32>
      %114 = arith.select %26, %112, %113 : vector<512x21xi1>, vector<512x21xf32>
      %115 = vector.extract_strided_slice %114 {offsets = [128, 0], sizes = [384, 21], strides = [1, 1]} : vector<512x21xf32> to vector<384x21xf32>
      %116 = vector.extract_strided_slice %114 {offsets = [0, 0], sizes = [128, 21], strides = [1, 1]} : vector<512x21xf32> to vector<128x21xf32>
      %117 = tpu.concatenate %115, %116 in 0 : vector<384x21xf32>, vector<128x21xf32> -> vector<512x21xf32>
      %118 = vector.extract_strided_slice %117 {offsets = [0, 16], sizes = [512, 1], strides = [1, 1]} : vector<512x21xf32> to vector<512x1xf32>
      %119 = vector.extract_strided_slice %114 {offsets = [0, 16], sizes = [512, 1], strides = [1, 1]} : vector<512x21xf32> to vector<512x1xf32>
      %120 = arith.cmpf oeq, %118, %119 : vector<512x1xf32>
      %121 = vector.shape_cast %120 : vector<512x1xi1> to vector<512x1xi1>
      %122 = vector.broadcast %121 : vector<512x1xi1> to vector<512x21xi1>
      %123 = arith.select %122, %117, %29 : vector<512x21xi1>, vector<512x21xf32>
      %124 = arith.maximumf %114, %123 : vector<512x21xf32>
      %125 = arith.addf %114, %123 : vector<512x21xf32>
      %126 = arith.select %26, %124, %125 : vector<512x21xi1>, vector<512x21xf32>
      %127 = vector.extract_strided_slice %126 {offsets = [256, 0], sizes = [256, 21], strides = [1, 1]} : vector<512x21xf32> to vector<256x21xf32>
      %128 = vector.extract_strided_slice %126 {offsets = [0, 0], sizes = [256, 21], strides = [1, 1]} : vector<512x21xf32> to vector<256x21xf32>
      %129 = tpu.concatenate %127, %128 in 0 : vector<256x21xf32>, vector<256x21xf32> -> vector<512x21xf32>
      %130 = vector.extract_strided_slice %129 {offsets = [0, 16], sizes = [512, 1], strides = [1, 1]} : vector<512x21xf32> to vector<512x1xf32>
      %131 = vector.extract_strided_slice %126 {offsets = [0, 16], sizes = [512, 1], strides = [1, 1]} : vector<512x21xf32> to vector<512x1xf32>
      %132 = arith.cmpf oeq, %130, %131 : vector<512x1xf32>
      %133 = vector.shape_cast %132 : vector<512x1xi1> to vector<512x1xi1>
      %134 = vector.broadcast %133 : vector<512x1xi1> to vector<512x21xi1>
      %135 = arith.select %134, %129, %29 : vector<512x21xi1>, vector<512x21xf32>
      %136 = arith.maximumf %126, %135 : vector<512x21xf32>
      %137 = arith.addf %126, %135 : vector<512x21xf32>
      %138 = arith.select %26, %136, %137 : vector<512x21xi1>, vector<512x21xf32>
      %c0_9 = arith.constant 0 : index
      %c0_10 = arith.constant 0 : index
      %139 = vector.load %arg5[%c0_9, %c0_10] : memref<1x512xf32, #tpu.memory_space<vmem>>, vector<1x512xf32>
      %140 = vector.broadcast %139 : vector<1x512xf32> to vector<128x512xf32>
      %141 = arith.mulf %23, %140 : vector<128x512xf32>
      %cst_11 = arith.constant dense<0.000000e+00> : vector<128x21xf32>
      %142 = tpu.matmul %141, %138, %cst_11 {dimension_numbers = #tpu.dot_dimension_numbers<[1], [0], [0], [1], [0, 0, 1, 1], [], []>} : vector<128x512xf32>, vector<512x21xf32>, vector<128x21xf32> -> vector<128x21xf32>
      %143 = tpu.iota {dimensions = array<i32: 1>} : vector<128x21xi32>
      %144 = vector.extract_strided_slice %142 {offsets = [0, 20], sizes = [128, 1], strides = [1, 1]} : vector<128x21xf32> to vector<128x1xf32>
      %cst_12 = arith.constant 0.000000e+00 : f32
      %145 = vector.broadcast %cst_12 : f32 to vector<128x1xf32>
      %146 = arith.cmpf ogt, %144, %145 : vector<128x1xf32>
      %c16_i32_13 = arith.constant 16 : i32
      %147 = vector.broadcast %c16_i32_13 : i32 to vector<128x21xi32>
      %148 = arith.cmpi slt, %143, %147 : vector<128x21xi32>
      %cst_14 = arith.constant -3.40282347E+38 : f32
      %149 = vector.shape_cast %146 : vector<128x1xi1> to vector<128x1xi1>
      %150 = vector.broadcast %149 : vector<128x1xi1> to vector<128x21xi1>
      %151 = vector.broadcast %cst_14 : f32 to vector<128x21xf32>
      %152 = arith.select %150, %142, %151 : vector<128x21xi1>, vector<128x21xf32>
      %153 = arith.select %148, %152, %142 : vector<128x21xi1>, vector<128x21xf32>
      %c16_i32_15 = arith.constant 16 : i32
      %154 = vector.broadcast %c16_i32_15 : i32 to vector<128x21xi32>
      %155 = arith.cmpi eq, %143, %154 : vector<128x21xi32>
      %cst_16 = arith.constant 0.000000e+00 : f32
      %156 = vector.broadcast %cst_16 : f32 to vector<128x21xf32>
      %157 = arith.select %155, %156, %153 : vector<128x21xi1>, vector<128x21xf32>
      %cst_17 = arith.constant 0.000000e+00 : f32
      %158 = vector.broadcast %cst_17 : f32 to vector<128x107xf32>
      %159 = tpu.concatenate %157, %158 in 1 : vector<128x21xf32>, vector<128x107xf32> -> vector<128x128xf32>
      %c0_18 = arith.constant 0 : index
      %c0_19 = arith.constant 0 : index
      %160 = vector.load %arg7[%c0_18, %c0_19] : memref<128x128xf32, #tpu.memory_space<vmem>>, vector<128x128xf32>
      %161 = arith.maximumf %160, %159 : vector<128x128xf32>
      %162 = arith.addf %160, %159 : vector<128x128xf32>
      %163 = arith.select %2, %161, %162 : vector<128x128xi1>, vector<128x128xf32>
      %c0_20 = arith.constant 0 : index
      %c0_21 = arith.constant 0 : index
      %164 = vector.load %arg7[%c0_20, %c0_21] : memref<128x128xf32, #tpu.memory_space<vmem>>, vector<128x128xf32>
      tpu.vector_store %arg7[%c0_20, %c0_21], %163 {strides = array<i32>} : memref<128x128xf32, #tpu.memory_space<vmem>>, vector<128x128xf32>,
    } else {
    }
    %c0_i32_2 = arith.constant 0 : i32
    %11 = arith.cmpi eq, %arg1, %c0_i32_2 : i32
    %12 = arith.extui %11 : i1 to i32
    %c0_i32_3 = arith.constant 0 : i32
    %13 = arith.cmpi ne, %12, %c0_i32_3 : i32
    scf.if %13 {
      %c0 = arith.constant 0 : index
      %c0_4 = arith.constant 0 : index
      %14 = vector.load %arg7[%c0, %c0_4] : memref<128x128xf32, #tpu.memory_space<vmem>>, vector<128x128xf32>
      %15 = vector.extract_strided_slice %14 {offsets = [0, 20], sizes = [128, 1], strides = [1, 1]} : vector<128x128xf32> to vector<128x1xf32>
      %cst = arith.constant 1.000000e+00 : f32
      %16 = vector.broadcast %cst : f32 to vector<128x1xf32>
      %17 = arith.maximumf %15, %16 : vector<128x1xf32>
      %18 = tpu.reciprocal %17 : vector<128x1xf32> -> vector<128x1xf32>
      %c16_i32_5 = arith.constant 16 : i32
      %19 = vector.broadcast %c16_i32_5 : i32 to vector<128x128xi32>
      %20 = arith.cmpi sgt, %0, %19 : vector<128x128xi32>
      %c20_i32 = arith.constant 20 : i32
      %21 = vector.broadcast %c20_i32 : i32 to vector<128x128xi32>
      %22 = arith.cmpi slt, %0, %21 : vector<128x128xi32>
      %23 = arith.andi %20, %22 : vector<128x128xi1>
      %24 = vector.broadcast %18 : vector<128x1xf32> to vector<128x128xf32>
      %25 = arith.mulf %14, %24 : vector<128x128xf32>
      %26 = arith.select %23, %25, %14 : vector<128x128xi1>, vector<128x128xf32>
      %c0_6 = arith.constant 0 : index
      %c0_7 = arith.constant 0 : index
      %27 = vector.load %arg7[%c0_6, %c0_7] : memref<128x128xf32, #tpu.memory_space<vmem>>, vector<128x128xf32>
      tpu.vector_store %arg7[%c0_6, %c0_7], %26 {strides = array<i32>} : memref<128x128xf32, #tpu.memory_space<vmem>>, vector<128x128xf32>,
    } else {
    }
    return
  }
  func.func @transform_0(%arg0: i32, %arg1: i32, %arg2: memref<1xi32, #tpu.memory_space<smem>>, %arg3: memref<1xi32, #tpu.memory_space<smem>>) -> (i32, i32) {
    %0 = arith.index_cast %arg0 : i32 to index
    %1 = memref.load %arg2[%0] : memref<1xi32, #tpu.memory_space<smem>>
    %2 = arith.addi %1, %arg1 : i32
    %c0_i32 = arith.constant 0 : i32
    %3 = arith.minsi %2, %c0_i32 : i32
    %c0_i32_0 = arith.constant 0 : i32
    %c0_i32_1 = arith.constant 0 : i32
    return %c0_i32_0, %3 : i32, i32
  }
  func.func @transform_1(%arg0: i32, %arg1: i32, %arg2: memref<1xi32, #tpu.memory_space<smem>>, %arg3: memref<1xi32, #tpu.memory_space<smem>>) -> (i32, i32) {
    %0 = arith.index_cast %arg0 : i32 to index
    %1 = memref.load %arg2[%0] : memref<1xi32, #tpu.memory_space<smem>>
    %2 = arith.addi %1, %arg1 : i32
    %c0_i32 = arith.constant 0 : i32
    %3 = arith.minsi %2, %c0_i32 : i32
    %c0_i32_0 = arith.constant 0 : i32
    %c0_i32_1 = arith.constant 0 : i32
    return %c0_i32_0, %3 : i32, i32
  }
  func.func @transform_2(%arg0: i32, %arg1: i32, %arg2: memref<1xi32, #tpu.memory_space<smem>>, %arg3: memref<1xi32, #tpu.memory_space<smem>>) -> (i32, i32) {
    %0 = arith.index_cast %arg0 : i32 to index
    %1 = memref.load %arg2[%0] : memref<1xi32, #tpu.memory_space<smem>>
    %2 = arith.addi %1, %arg1 : i32
    %c0_i32 = arith.constant 0 : i32
    %3 = arith.minsi %2, %c0_i32 : i32
    %c0_i32_0 = arith.constant 0 : i32
    %c0_i32_1 = arith.constant 0 : i32
    return %3, %c0_i32_0 : i32, i32
  }
  func.func @transform_3(%arg0: i32, %arg1: i32, %arg2: memref<1xi32, #tpu.memory_space<smem>>, %arg3: memref<1xi32, #tpu.memory_space<smem>>) -> (i32, i32) {
    %c0_i32 = arith.constant 0 : i32
    %c0_i32_0 = arith.constant 0 : i32
    return %arg0, %c0_i32 : i32, i32
  }
}

</mosaic_0001>

<bundles_post_ra>
// kernel: tpu_custom_call.1
= control target key start
LH: loop header
LB: loop body
LE: loop exit
PB: predicated region body
PF: predicated region fallthrough
CT: control target
= control target key end

     0   :  { %12 = vsyncpa [#allocation6], 0  ;;  %v16501_v0 = vlaneseq  ;;  %v8162_v2 = vmov 0.0   ;;  %s16495_s0 = inlined_call_operand.<no memory space> [shape: s32[1], index: 0, kind: input, shape index: {}]   ;;  %s16496_s1 = inlined_call_operand.<no memory space> [shape: s32[1], index: 1, kind: input, shape index: {}]   ;;  %s16497_s2 = inlined_call_operand.vmem [shape: s32[1,512], index: 2, kind: input, shape index: {}]   ;;  %s16498_s3 = inlined_call_operand.vmem [shape: f32[1,512], index: 3, kind: input, shape index: {}]   ;;  %s16499_s4 = inlined_call_operand.vmem [shape: f32[512,21], index: 4, kind: input, shape index: {}]   ;;  %s16500_s5 = inlined_call_operand.hbm [shape: f32[128,128], index: 5, kind: output, shape index: {}]  }
   0x1   :  { %p86_p0 = scmp.lt.s32.totalorder %s16495_s0, 0  ;;  %p7830_p3 = scmp.le.s32.totalorder %s16496_s1, 0 }
   0x2   :  { %v8208_v1 = vand.u32 127, %v16501_v0 }
   0x3   :  { %s17970_s0 = smov (!%p86_p0, %s16495_s0), 0 }
   0x4   :  { %s7825_s22 = sshll.u32 %s17970_s0, 2  ;;  %s7827_s23 = sshll.u32 %s17970_s0, 6  ;;  %vm126_vm0 = vcmp.lt.s32.totalorder %v8208_v1, 16 }
   0x5   :  { %p8211_p1 = scmp.lt.s32.totalorder %s7825_s22, 3  ;;  %p8215_p2 = scmp.lt.s32.totalorder %s7827_s23, 63  ;;  %v131_v3 = vsel %vm126_vm0, -3.4028235e+38, %v8162_v2 }
   0x6   :  { %132 = vst [vmem:[#allocation5] sm:$0xff] %v131_v3  ;;  %133 = vst [vmem:[#allocation5 + $0x8] sm:$0xff] %v131_v3 }
   0x7   :  { %134 = vst [vmem:[#allocation5 + $0x10] sm:$0xff] %v131_v3  ;;  %135 = vst [vmem:[#allocation5 + $0x18] sm:$0xff] %v131_v3  ;;  %s17972_s22 = smov (!%p8211_p1, %s7825_s22), 3  ;;  %s17974_s23 = smov (!%p8215_p2, %s7827_s23), 63 }
   0x8   :  { %136 = vst [vmem:[#allocation5 + $0x20] sm:$0xff] %v131_v3  ;;  %137 = vst [vmem:[#allocation5 + $0x28] sm:$0xff] %v131_v3  ;;  %s91_s27 = scalar_lea.vmem %s16497_s2, %s17972_s22  ;;  %s104_s30 = scalar_lea.vmem %s16498_s3, %s17972_s22 }
   0x9   :  { %138 = vst [vmem:[#allocation5 + $0x30] sm:$0xff] %v131_v3  ;;  %139 = vst [vmem:[#allocation5 + $0x38] sm:$0xff] %v131_v3  ;;  %s7828_s6 = sshll.u32 %s17974_s23, 3  ;;  %152 = sbr.rel (%p7830_p3) target bundleno = 1922 (0x782), region = 21 }
   0xa   :  { %140 = vst [vmem:[#allocation5 + $0x40] sm:$0xff] %v131_v3  ;;  %141 = vst [vmem:[#allocation5 + $0x48] sm:$0xff] %v131_v3  ;;  %s8238_s9 = scalar_lea.vmem %s16499_s4, %s7828_s6 }
   0xb   :  { %142 = vst [vmem:[#allocation5 + $0x50] sm:$0xff] %v131_v3  ;;  %143 = vst [vmem:[#allocation5 + $0x58] sm:$0xff] %v131_v3 }
   0xc   :  { %144 = vst [vmem:[#allocation5 + $0x60] sm:$0xff] %v131_v3  ;;  %145 = vst [vmem:[#allocation5 + $0x68] sm:$0xff] %v131_v3 }
   0xd   :  { %146 = vst [vmem:[#allocation5 + $0x70] sm:$0xff] %v131_v3  ;;  %147 = vst [vmem:[#allocation5 + $0x78] sm:$0xff] %v131_v3 }
   0xe   :  { %v8244_v4 = vld [vmem:[%s8238_s9 + $0x10] sm:$0xff]  ;;  %v8247_v5 = vld [vmem:[%s8238_s9 + $0x18] sm:$0xff]  ;;  %vm527_vm1 = vcmask 1046528   ;;  %v8250_v6 = vld [vmem:[%s8238_s9] sm:$0xff]  ;;  %v8163_v7 = vmov 16   ;;  %v16505_v27 = vmov 0  }
   0xf   :  { %8065 = vset.pattern.permute.xlu1 %v8163_v7  ;;  %8064 = vset.pattern.permute.xlu0 %v8163_v7  ;;  %v531_v8 = vrot.slane %v8244_v4, 1  ;;  %v533_v9 = vrot.slane %v8247_v5, 1  ;;  %v8255_v10 = vld [vmem:[%s8238_s9 + $0x8] sm:$0xff]  ;;  %v16502_v11 = vrot.slane %v8250_v6, 1  ;;  %v8259_v12 = vld [vmem:[%s8238_s9 + $0x20] sm:$0xff]  ;;  %v8267_v16 = vld [vmem:[%s8238_s9 + $0x30] sm:$0xff] }
  0x10   :  { %v8262_v13 = vld [vmem:[%s8238_s9 + $0x28] sm:$0xff]  ;;  %v529_v14 = vrot.slane %v8255_v10, 1  ;;  %v535_v15 = vrot.slane %v8259_v12, 1  ;;  %v8271_v18 = vld [vmem:[%s8238_s9 + $0x38] sm:$0xff]  ;;  %v8274_v19 = vld [vmem:[%s8238_s9 + $0x40] sm:$0xff]  ;;  %v539_v21 = vrot.slane %v8267_v16, 1 }
  0x11   :  { %v537_v17 = vrot.slane %v8262_v13, 1  ;;  %v8277_v20 = vsel %vm527_vm1, %v531_v8, %v533_v9  ;;  %v541_v22 = vrot.slane %v8271_v18, 1  ;;  %v543_v23 = vrot.slane %v8274_v19, 1  ;;  %v8307_v31 = vld [vmem:[%s8238_s9 + $0x48] sm:$0xff]  ;;  %v8314_v34 = vld [vmem:[%s8238_s9 + $0x50] sm:$0xff]  ;;  %v8330_v40 = vld [vmem:[%s8238_s9 + $0x58] sm:$0xff] }
  0x12   :  { %vm723_vm2 = vcmp.eq.f32.partialorder %v8277_v20, %v8244_v4  ;;  %v8287_v24 = vsel %vm527_vm1, %v16502_v11, %v529_v14  ;;  %v8290_v25 = vsel %vm527_vm1, %v533_v9, %v535_v15  ;;  %v8293_v26 = vsel %vm527_vm1, %v529_v14, %v531_v8  ;;  %v8333_v41 = vld [vmem:[%s8238_s9 + $0x60] sm:$0xff]  ;;  %v8350_v48 = vld [vmem:[%s8238_s9 + $0x68] sm:$0xff]  ;;  %v8353_v49 = vld [vmem:[%s8238_s9 + $0x70] sm:$0xff] }
  0x13   :  { %v787_v28 = vsel %vm723_vm2, 1, %v16505_v27  ;;  %vm721_vm3 = vcmp.eq.f32.partialorder %v8287_v24, %v8250_v6  ;;  %vm724_vm4 = vcmp.eq.f32.partialorder %v8290_v25, %v8247_v5  ;;  %vm722_vm5 = vcmp.eq.f32.partialorder %v8293_v26, %v8255_v10  ;;  %v8370_v56 = vld [vmem:[%s8238_s9 + $0x78] sm:$0xff]  ;;  %v8373_v57 = vld [vmem:[%s8238_s9 + $0x80] sm:$0xff]  ;;  %v8390_v2 = vld [vmem:[%s8238_s9 + $0x88] sm:$0xff] }
  0x14   :  { %856 = vperm.xlu1 %8065, %v787_v28   ;;  %v785_v29 = vsel %vm721_vm3, 1, %v16505_v27  ;;  %v8304_v30 = vsel %vm527_vm1, %v537_v17, %v539_v21  ;;  %v788_v32 = vsel %vm724_vm4, 1, %v16505_v27  ;;  %v8311_v33 = vsel %vm527_vm1, %v535_v15, %v537_v17  ;;  %v8393_v3 = vld [vmem:[%s8238_s9 + $0x90] sm:$0xff] }
  0x15   :  { %850 = vperm.xlu0 %8064, %v785_v29   ;;  %v786_v35 = vsel %vm722_vm5, 1, %v16505_v27  ;;  %vm726_vm6 = vcmp.eq.f32.partialorder %v8304_v30, %v8262_v13  ;;  %vm725_vm7 = vcmp.eq.f32.partialorder %v8311_v33, %v8259_v12  ;;  %v8322_v36 = vsel %vm527_vm1, %v541_v22, %v543_v23  ;;  %17146 = vst [vmem:[#allocation8_spill] sm:$0xff] %v8393_v3 }
  0x16   :  { %v545_v37 = vrot.slane %v8307_v31, 1  ;;  %v8326_v38 = vsel %vm527_vm1, %v539_v21, %v541_v22  ;;  %v547_v39 = vrot.slane %v8314_v34, 1  ;;  %v790_v42 = vsel %vm726_vm6, 1, %v16505_v27  ;;  %v8410_v21 = vld [vmem:[%s8238_s9 + $0x98] sm:$0xff]  ;;  %v8413_v22 = vld [vmem:[%s8238_s9 + $0xa0] sm:$0xff] }
  0x17   :  { %v789_v43 = vsel %vm725_vm7, 1, %v16505_v27  ;;  %vm728_vm8 = vcmp.eq.f32.partialorder %v8322_v36, %v8271_v18  ;;  %vm727_vm9 = vcmp.eq.f32.partialorder %v8326_v38, %v8267_v16  ;;  %v549_v45 = vrot.slane %v8330_v40, 1  ;;  %17147 = vst [vmem:[#allocation9_spill] sm:$0xff] %v8413_v22 }
  0x18   :  { %859 = vperm.xlu1 %8065, %v788_v32   ;;  %v8342_v44 = vsel %vm527_vm1, %v545_v37, %v547_v39  ;;  %v551_v46 = vrot.slane %v8333_v41, 1  ;;  %v8347_v47 = vsel %vm527_vm1, %v543_v23, %v545_v37  ;;  %v792_v50 = vsel %vm728_vm8, 1, %v16505_v27 }
  0x19   :  { %853 = vperm.xlu0 %8064, %v786_v35   ;;  %v791_v51 = vsel %vm727_vm9, 1, %v16505_v27  ;;  %vm730_vm10 = vcmp.eq.f32.partialorder %v8342_v44, %v8307_v31  ;;  %vm729_vm11 = vcmp.eq.f32.partialorder %v8347_v47, %v8274_v19  ;;  %v553_v53 = vrot.slane %v8350_v48, 1 }
  0x1a   :  { %v8362_v52 = vsel %vm527_vm1, %v549_v45, %v551_v46  ;;  %v555_v54 = vrot.slane %v8353_v49, 1  ;;  %v8367_v55 = vsel %vm527_vm1, %v547_v39, %v549_v45  ;;  %v794_v58 = vsel %vm730_vm10, 1, %v16505_v27  ;;  %v8430_v39 = vld [vmem:[%s8238_s9 + $0xa8] sm:$0xff] }
  0x1b   :  { %v793_v59 = vsel %vm729_vm11, 1, %v16505_v27  ;;  %vm732_vm12 = vcmp.eq.f32.partialorder %v8362_v52, %v8330_v40  ;;  %vm731_vm13 = vcmp.eq.f32.partialorder %v8367_v55, %v8314_v34  ;;  %v557_v61 = vrot.slane %v8370_v56, 1  ;;  %17148 = vst [vmem:[#allocation10_spill] sm:$0xff] %v8430_v39 }
  0x1c   :  { %865 = vperm.xlu1 %8065, %v790_v42   ;;  %v8382_v60 = vsel %vm527_vm1, %v553_v53, %v555_v54  ;;  %v559_v62 = vrot.slane %v8373_v57, 1  ;;  %v8387_v63 = vsel %vm527_vm1, %v551_v46, %v553_v53  ;;  %v796_v7 = vsel %vm732_vm12, 1, %v16505_v27  ;;  %v8433_v42 = vld [vmem:[%s8238_s9 + $0xb0] sm:$0xff] }
  0x1d   :  { %862 = vperm.xlu0 %8064, %v789_v43   ;;  %v795_v8 = vsel %vm731_vm13, 1, %v16505_v27  ;;  %vm734_vm14 = vcmp.eq.f32.partialorder %v8382_v60, %v8350_v48  ;;  %vm733_vm15 = vcmp.eq.f32.partialorder %v8387_v63, %v8333_v41  ;;  %v561_v14 = vrot.slane %v8390_v2, 1  ;;  %17149 = vst [vmem:[#allocation11_spill] sm:$0xff] %v8433_v42 }
  0x1e   :  { %v8402_v9 = vsel %vm527_vm1, %v557_v61, %v559_v62  ;;  %v563_v15 = vrot.slane %v8393_v3, 1  ;;  %v8407_v17 = vsel %vm527_vm1, %v555_v54, %v557_v61  ;;  %v798_v23 = vsel %vm734_vm14, 1, %v16505_v27  ;;  %v8450_v54 = vld [vmem:[%s8238_s9 + $0xb8] sm:$0xff] }
  0x1f   :  { %v797_v28 = vsel %vm733_vm15, 1, %v16505_v27  ;;  %vm736_vm2 = vcmp.eq.f32.partialorder %v8402_v9, %v8370_v56  ;;  %vm735_vm3 = vcmp.eq.f32.partialorder %v8407_v17, %v8353_v49  ;;  %v565_v32 = vrot.slane %v8410_v21, 1  ;;  %17151 = vst [vmem:[#allocation13_spill] sm:$0xff] %v8450_v54 }
  0x20   :  { %871 = vperm.xlu1 %8065, %v792_v50   ;;  %v8422_v29 = vsel %vm527_vm1, %v561_v14, %v563_v15  ;;  %v567_v35 = vrot.slane %v8413_v22, 1  ;;  %v8427_v37 = vsel %vm527_vm1, %v559_v62, %v561_v14  ;;  %v800_v43 = vsel %vm736_vm2, 1, %v16505_v27 }
  0x21   :  { %868 = vperm.xlu0 %8064, %v791_v51   ;;  %v799_v45 = vsel %vm735_vm3, 1, %v16505_v27  ;;  %vm738_vm4 = vcmp.eq.f32.partialorder %v8422_v29, %v8390_v2  ;;  %vm737_vm5 = vcmp.eq.f32.partialorder %v8427_v37, %v8373_v57  ;;  %v569_v50 = vrot.slane %v8430_v39, 1 }
  0x22   :  { %v8442_v46 = vsel %vm527_vm1, %v565_v32, %v567_v35  ;;  %v571_v51 = vrot.slane %v8433_v42, 1  ;;  %v8447_v53 = vsel %vm527_vm1, %v563_v15, %v565_v32  ;;  %v801_v61 = vsel %vm737_vm5, 1, %v16505_v27  ;;  %v8470_v15 = vld [vmem:[%s8238_s9 + $0xc8] sm:$0xff] }
  0x23   :  { %17150 = vst [vmem:[#allocation12_spill] sm:$0xff] %v8447_v53  ;;  %vm740_vm6 = vcmp.eq.f32.partialorder %v8442_v46, %v8410_v21  ;;  %vm739_vm7 = vcmp.eq.f32.partialorder %v8447_v53, %v8393_v3  ;;  %v8467_v14 = vsel %vm527_vm1, %v567_v35, %v569_v50  ;;  %17155 = vst [vmem:[#allocation17_spill] sm:$0xff] %v8470_v15  ;;  %v577_v35 = vrot.slane %v8470_v15, 1 }
  0x24   :  { %877 = vperm.xlu1 %8065, %v794_v58   ;;  %v8453_v58 = vld [vmem:[%s8238_s9 + $0xc0] sm:$0xff]  ;;  %v8462_v62 = vsel %vm527_vm1, %v569_v50, %v571_v51  ;;  %17154 = vst [vmem:[#allocation16_spill] sm:$0xff] %v8467_v14  ;;  %v803_v32 = vsel %vm739_vm7, 1, %v16505_v27  ;;  %vm741_vm9 = vcmp.eq.f32.partialorder %v8467_v14, %v8413_v22  ;;  %v17161_v14 = vmov 0  }
  0x25   :  { %874 = vperm.xlu0 %8064, %v793_v59   ;;  %17152 = vst [vmem:[#allocation14_spill] sm:$0xff] %v8453_v58  ;;  %v802_v59 = vsel %vm738_vm4, 1, %v16505_v27  ;;  %17153 = vst [vmem:[#allocation15_spill] sm:$0xff] %v8462_v62  ;;  %vm742_vm8 = vcmp.eq.f32.partialorder %v8462_v62, %v8430_v39  ;;  %v805_v11 = vsel %vm741_vm9, 1, %v16505_v27 }
  0x26   :  { %v806_v0 = vsel %vm742_vm8, 1, %v16505_v27 }
  0x28   :  { %883 = vperm.xlu1 %8065, %v796_v7   ;;  %v573_v7 = vrot.slane %v8450_v54, 1 }
  0x29   :  { %880 = vperm.xlu0 %8064, %v795_v8   ;;  %v575_v8 = vrot.slane %v8453_v58, 1 }
  0x2a   :  { %v8484_v50 = vsel %vm527_vm1, %v571_v51, %v573_v7 }
  0x2b   :  { %17157 = vst [vmem:[#allocation19_spill] sm:$0xff] %v8484_v50  ;;  %vm743_vm11 = vcmp.eq.f32.partialorder %v8484_v50, %v8433_v42  ;;  %v431_v50 = vld [vmem:[%s8238_s9 + $0x100] sm:$0xff] }
  0x2c   :  { %889 = vperm.xlu1 %8065, %v798_v23   ;;  %v425_v23 = vld [vmem:[%s8238_s9 + $0xd0] sm:$0xff] }
  0x2d   :  { %886 = vperm.xlu0 %8064, %v797_v28   ;;  %v804_v28 = vsel %vm740_vm6, 1, %v16505_v27  ;;  %v429_v27 = vld [vmem:[%s8238_s9 + $0xf0] sm:$0xff] }
  0x30   :  { %895 = vperm.xlu1 %8065, %v800_v43   ;;  %v8480_v43 = vsel %vm527_vm1, %v573_v7, %v575_v8 }
  0x31   :  { %892 = vperm.xlu0 %8064, %v799_v45   ;;  %17156 = vst [vmem:[#allocation18_spill] sm:$0xff] %v8480_v43  ;;  %v579_v45 = vrot.slane %v425_v23, 1  ;;  %vm744_vm10 = vcmp.eq.f32.partialorder %v8480_v43, %v8450_v54  ;;  %v807_v43 = vsel %vm743_vm11, 1, %v17161_v14 }
  0x32   :  { %v808_v54 = vsel %vm744_vm10, 1, %v17161_v14 }
  0x33   :  { %v8497_v22 = vsel %vm527_vm1, %v577_v35, %v579_v45 }
  0x34   :  { %901 = vperm.xlu1 %8065, %v802_v59   ;;  %v8487_v59 = vld [vmem:[%s8238_s9 + $0xd8] sm:$0xff]  ;;  %17159 = vst [vmem:[#allocation21_spill] sm:$0xff] %v8497_v22  ;;  %vm746_vm12 = vcmp.eq.f32.partialorder %v8497_v22, %v8470_v15 }
  0x35   :  { %898 = vperm.xlu0 %8064, %v801_v61   ;;  %17158 = vst [vmem:[#allocation20_spill] sm:$0xff] %v8487_v59  ;;  %v427_v61 = vld [vmem:[%s8238_s9 + $0xe0] sm:$0xff]  ;;  %v581_v51 = vrot.slane %v8487_v59, 1  ;;  %v810_v39 = vsel %vm746_vm12, 1, %v17161_v14 }
  0x36   :  { %v583_v7 = vrot.slane %v427_v61, 1 }
  0x38   :  { %907 = vperm.xlu1 %8065, %v804_v28   ;;  %v8501_v28 = vsel %vm527_vm1, %v575_v8, %v577_v35  ;;  %v8512_v42 = vsel %vm527_vm1, %v581_v51, %v583_v7  ;;  %v587_v8 = vrot.slane %v429_v27, 1  ;;  %v430_v35 = vld [vmem:[%s8238_s9 + $0xf8] sm:$0xff] }
  0x39   :  { %904 = vperm.xlu0 %8064, %v803_v32   ;;  %17160 = vst [vmem:[#allocation22_spill] sm:$0xff] %v8501_v28  ;;  %v428_v32 = vld [vmem:[%s8238_s9 + $0xe8] sm:$0xff]  ;;  %vm745_vm13 = vcmp.eq.f32.partialorder %v8501_v28, %v8453_v58  ;;  %17162 = vst [vmem:[#allocation23_spill] sm:$0xff] %v8512_v42  ;;  %vm748_vm14 = vcmp.eq.f32.partialorder %v8512_v42, %v8487_v59  ;;  %v589_v28 = vrot.slane %v430_v35, 1 }
  0x3a   :  { %v809_v15 = vsel %vm745_vm13, 1, %v17161_v14  ;;  %v812_v22 = vsel %vm748_vm14, 1, %v17161_v14 }
  0x3c   :  { %913 = vperm.xlu1 %8065, %v806_v0   ;;  %v585_v0 = vrot.slane %v428_v32, 1 }
  0x3d   :  { %910 = vperm.xlu0 %8064, %v805_v11   ;;  %v8515_v11 = vsel %vm527_vm1, %v579_v45, %v581_v51  ;;  %v433_v51 = vld [vmem:[%s8238_s9 + $0x110] sm:$0xff] }
  0x3e   :  { %17163 = vst [vmem:[#allocation24_spill] sm:$0xff] %v8515_v11  ;;  %vm747_vm15 = vcmp.eq.f32.partialorder %v8515_v11, %v425_v23  ;;  %v8525_v58 = vsel %vm527_vm1, %v585_v0, %v587_v8  ;;  %v8528_v45 = vsel %vm527_vm1, %v583_v7, %v585_v0  ;;  %v595_v11 = vrot.slane %v433_v51, 1  ;;  %v435_v0 = vld [vmem:[%s8238_s9 + $0x120] sm:$0xff] }
  0x3f   :  { %17164 = vst [vmem:[#allocation25_spill] sm:$0xff] %v8525_v58  ;;  %17165 = vst [vmem:[#allocation26_spill] sm:$0xff] %v8528_v45  ;;  %v811_v59 = vsel %vm747_vm15, 1, %v17161_v14  ;;  %vm750_vm2 = vcmp.eq.f32.partialorder %v8525_v58, %v428_v32  ;;  %vm749_vm3 = vcmp.eq.f32.partialorder %v8528_v45, %v427_v61  ;;  %v8540_v7 = vsel %vm527_vm1, %v587_v8, %v589_v28  ;;  %v8548_v61 = vld [vmem:[%s8238_s9 + $0x1f8] sm:$0xff]  ;;  %v437_v8 = vld [vmem:[%s8238_s9 + $0x130] sm:$0xff] }
  0x40   :  { %919 = vperm.xlu1 %8065, %v808_v54   ;;  %v591_v54 = vrot.slane %v431_v50, 1  ;;  %17167 = vst [vmem:[#allocation28_spill] sm:$0xff] %v8540_v7  ;;  %v814_v42 = vsel %vm750_vm2, 1, %v17161_v14  ;;  %v813_v32 = vsel %vm749_vm3, 1, %v17161_v14  ;;  %vm751_vm5 = vcmp.eq.f32.partialorder %v8540_v7, %v429_v27 }
  0x41   :  { %916 = vperm.xlu0 %8064, %v807_v43   ;;  %v432_v43 = vld [vmem:[%s8238_s9 + $0x108] sm:$0xff]  ;;  %v599_v58 = vrot.slane %v435_v0, 1  ;;  %v815_v27 = vsel %vm751_vm5, 1, %v17161_v14 }
  0x42   :  { %v8537_v23 = vsel %vm527_vm1, %v589_v28, %v591_v54  ;;  %v436_v28 = vld [vmem:[%s8238_s9 + $0x128] sm:$0xff] }
  0x43   :  { %17166 = vst [vmem:[#allocation27_spill] sm:$0xff] %v8537_v23  ;;  %vm752_vm4 = vcmp.eq.f32.partialorder %v8537_v23, %v430_v35  ;;  %v16534_v23 = vrot.slane %v8548_v61, 1  ;;  %v601_v7 = vrot.slane %v436_v28, 1 }
  0x44   :  { %925 = vperm.xlu1 %8065, %v810_v39   ;;  %v593_v39 = vrot.slane %v432_v43, 1  ;;  %v816_v35 = vsel %vm752_vm4, 1, %v17161_v14 }
  0x45   :  { %922 = vperm.xlu0 %8064, %v809_v15   ;;  %v434_v15 = vld [vmem:[%s8238_s9 + $0x118] sm:$0xff] }
  0x46   :  { %v8552_v45 = vsel %vm527_vm1, %v593_v39, %v595_v11 }
  0x47   :  { %17168 = vst [vmem:[#allocation29_spill] sm:$0xff] %v8552_v45  ;;  %vm754_vm6 = vcmp.eq.f32.partialorder %v8552_v45, %v432_v43  ;;  %v438_v43 = vld [vmem:[%s8238_s9 + $0x138] sm:$0xff]  ;;  %v439_v45 = vld [vmem:[%s8238_s9 + $0x140] sm:$0xff] }
  0x48   :  { %931 = vperm.xlu1 %8065, %v812_v22   ;;  %v597_v22 = vrot.slane %v434_v15, 1 }
  0x49   :  { %928 = vperm.xlu0 %8064, %v811_v59   ;;  %v8556_v59 = vsel %vm527_vm1, %v591_v54, %v593_v39  ;;  %v17171_v54 = vrot.slane %v8250_v6, 1 }
  0x4a   :  { %17169 = vst [vmem:[#allocation30_spill] sm:$0xff] %v8556_v59  ;;  %vm753_vm7 = vcmp.eq.f32.partialorder %v8556_v59, %v431_v50  ;;  %v8565_v62 = vsel %vm527_vm1, %v597_v22, %v599_v58  ;;  %v818_v50 = vsel %vm754_vm6, 1, %v17161_v14 }
  0x4b   :  { %17170 = vst [vmem:[#allocation31_spill] sm:$0xff] %v8565_v62  ;;  %v8572_v39 = vsel %vm527_vm1, %v16534_v23, %v17171_v54  ;;  %v817_v59 = vsel %vm753_vm7, 1, %v17161_v14  ;;  %vm756_vm8 = vcmp.eq.f32.partialorder %v8565_v62, %v434_v15  ;;  %v605_v54 = vrot.slane %v438_v43, 1 }
  0x4c   :  { %937 = vperm.xlu1 %8065, %v814_v42   ;;  %v603_v42 = vrot.slane %v437_v8, 1  ;;  %v820_v23 = vsel %vm756_vm8, 1, %v17161_v14 }
  0x4d   :  { %934 = vperm.xlu0 %8064, %v813_v32   ;;  %v8575_v32 = vsel %vm527_vm1, %v595_v11, %v597_v22  ;;  %v8587_v11 = vsel %vm527_vm1, %v599_v58, %v601_v7  ;;  %v440_v22 = vld [vmem:[%s8238_s9 + $0x148] sm:$0xff] }
  0x4e   :  { %17172 = vst [vmem:[#allocation32_spill] sm:$0xff] %v8575_v32  ;;  %vm755_vm9 = vcmp.eq.f32.partialorder %v8575_v32, %v433_v51  ;;  %v8584_v3 = vsel %vm527_vm1, %v601_v7, %v603_v42  ;;  %17174 = vst [vmem:[#allocation34_spill] sm:$0xff] %v8587_v11  ;;  %vm757_vm11 = vcmp.eq.f32.partialorder %v8587_v11, %v435_v0  ;;  %v609_v32 = vrot.slane %v440_v22, 1  ;;  %v442_v7 = vld [vmem:[%s8238_s9 + $0x158] sm:$0xff] }
  0x4f   :  { %17173 = vst [vmem:[#allocation33_spill] sm:$0xff] %v8584_v3  ;;  %v819_v15 = vsel %vm755_vm9, 1, %v17161_v14  ;;  %vm758_vm10 = vcmp.eq.f32.partialorder %v8584_v3, %v436_v28  ;;  %v8599_v58 = vsel %vm527_vm1, %v603_v42, %v605_v54  ;;  %v821_v28 = vsel %vm757_vm11, 1, %v17161_v14 }
  0x50   :  { %943 = vperm.xlu1 %8065, %v816_v35   ;;  %v607_v35 = vrot.slane %v439_v45, 1  ;;  %17176 = vst [vmem:[#allocation36_spill] sm:$0xff] %v8599_v58  ;;  %v822_v62 = vsel %vm758_vm10, 1, %v17161_v14  ;;  %vm759_vm13 = vcmp.eq.f32.partialorder %v8599_v58, %v437_v8  ;;  %v613_v11 = vrot.slane %v442_v7, 1 }
  0x51   :  { %940 = vperm.xlu0 %8064, %v815_v27   ;;  %v441_v27 = vld [vmem:[%s8238_s9 + $0x150] sm:$0xff] }
  0x52   :  { %v8596_v51 = vsel %vm527_vm1, %v605_v54, %v607_v35  ;;  %v8611_v42 = vsel %vm527_vm1, %v607_v35, %v609_v32  ;;  %v444_v54 = vld [vmem:[%s8238_s9 + $0x168] sm:$0xff]  ;;  %v446_v35 = vld [vmem:[%s8238_s9 + $0x178] sm:$0xff] }
  0x53   :  { %17175 = vst [vmem:[#allocation35_spill] sm:$0xff] %v8596_v51  ;;  %vm760_vm12 = vcmp.eq.f32.partialorder %v8596_v51, %v438_v43  ;;  %17178 = vst [vmem:[#allocation38_spill] sm:$0xff] %v8611_v42  ;;  %v823_v43 = vsel %vm759_vm13, 1, %v17161_v14  ;;  %vm761_vm15 = vcmp.eq.f32.partialorder %v8611_v42, %v439_v45  ;;  %v617_v58 = vrot.slane %v444_v54, 1 }
  0x54   :  { %949 = vperm.xlu1 %8065, %v818_v50   ;;  %v611_v50 = vrot.slane %v441_v27, 1  ;;  %v824_v3 = vsel %vm760_vm12, 1, %v17161_v14  ;;  %v621_v42 = vrot.slane %v446_v35, 1 }
  0x55   :  { %946 = vperm.xlu0 %8064, %v817_v59   ;;  %v443_v59 = vld [vmem:[%s8238_s9 + $0x160] sm:$0xff] }
  0x56   :  { %v8608_v0 = vsel %vm527_vm1, %v609_v32, %v611_v50  ;;  %v8623_v32 = vsel %vm527_vm1, %v611_v50, %v613_v11  ;;  %v448_v50 = vld [vmem:[%s8238_s9 + $0x188] sm:$0xff] }
  0x57   :  { %17177 = vst [vmem:[#allocation37_spill] sm:$0xff] %v8608_v0  ;;  %vm762_vm14 = vcmp.eq.f32.partialorder %v8608_v0, %v440_v22  ;;  %17180 = vst [vmem:[#allocation40_spill] sm:$0xff] %v8623_v32  ;;  %v825_v22 = vsel %vm761_vm15, 1, %v17161_v14  ;;  %vm763_vm3 = vcmp.eq.f32.partialorder %v8623_v32, %v441_v27  ;;  %v625_v32 = vrot.slane %v448_v50, 1 }
  0x58   :  { %955 = vperm.xlu1 %8065, %v820_v23   ;;  %v615_v23 = vrot.slane %v443_v59, 1  ;;  %v826_v51 = vsel %vm762_vm14, 1, %v17161_v14 }
  0x59   :  { %952 = vperm.xlu0 %8064, %v819_v15   ;;  %v445_v15 = vld [vmem:[%s8238_s9 + $0x170] sm:$0xff] }
  0x5a   :  { %v8620_v8 = vsel %vm527_vm1, %v613_v11, %v615_v23  ;;  %v8635_v11 = vsel %vm527_vm1, %v615_v23, %v617_v58  ;;  %v450_v23 = vld [vmem:[%s8238_s9 + $0x198] sm:$0xff] }
  0x5b   :  { %17179 = vst [vmem:[#allocation39_spill] sm:$0xff] %v8620_v8  ;;  %vm764_vm2 = vcmp.eq.f32.partialorder %v8620_v8, %v442_v7  ;;  %17182 = vst [vmem:[#allocation42_spill] sm:$0xff] %v8635_v11  ;;  %v827_v7 = vsel %vm763_vm3, 1, %v17161_v14  ;;  %vm765_vm5 = vcmp.eq.f32.partialorder %v8635_v11, %v443_v59  ;;  %v629_v11 = vrot.slane %v450_v23, 1 }
  0x5c   :  { %961 = vperm.xlu1 %8065, %v822_v62   ;;  %v619_v62 = vrot.slane %v445_v15, 1  ;;  %v828_v0 = vsel %vm764_vm2, 1, %v17161_v14 }
  0x5d   :  { %958 = vperm.xlu0 %8064, %v821_v28   ;;  %v447_v28 = vld [vmem:[%s8238_s9 + $0x180] sm:$0xff] }
  0x5e   :  { %v8632_v45 = vsel %vm527_vm1, %v617_v58, %v619_v62  ;;  %v8647_v58 = vsel %vm527_vm1, %v619_v62, %v621_v42  ;;  %v452_v62 = vld [vmem:[%s8238_s9 + $0x1a8] sm:$0xff] }
  0x5f   :  { %17181 = vst [vmem:[#allocation41_spill] sm:$0xff] %v8632_v45  ;;  %vm766_vm4 = vcmp.eq.f32.partialorder %v8632_v45, %v444_v54  ;;  %17184 = vst [vmem:[#allocation44_spill] sm:$0xff] %v8647_v58  ;;  %v829_v54 = vsel %vm765_vm5, 1, %v17161_v14  ;;  %vm767_vm7 = vcmp.eq.f32.partialorder %v8647_v58, %v445_v15  ;;  %v633_v58 = vrot.slane %v452_v62, 1 }
  0x60   :  { %967 = vperm.xlu1 %8065, %v824_v3   ;;  %v623_v3 = vrot.slane %v447_v28, 1  ;;  %v830_v8 = vsel %vm766_vm4, 1, %v17161_v14 }
  0x61   :  { %964 = vperm.xlu0 %8064, %v823_v43   ;;  %v449_v43 = vld [vmem:[%s8238_s9 + $0x190] sm:$0xff] }
  0x62   :  { %v8644_v27 = vsel %vm527_vm1, %v621_v42, %v623_v3  ;;  %v8659_v42 = vsel %vm527_vm1, %v623_v3, %v625_v32  ;;  %v454_v3 = vld [vmem:[%s8238_s9 + $0x1b8] sm:$0xff] }
  0x63   :  { %17183 = vst [vmem:[#allocation43_spill] sm:$0xff] %v8644_v27  ;;  %vm768_vm6 = vcmp.eq.f32.partialorder %v8644_v27, %v446_v35  ;;  %17186 = vst [vmem:[#allocation46_spill] sm:$0xff] %v8659_v42  ;;  %v831_v35 = vsel %vm767_vm7, 1, %v17161_v14  ;;  %vm769_vm9 = vcmp.eq.f32.partialorder %v8659_v42, %v447_v28  ;;  %v637_v42 = vrot.slane %v454_v3, 1 }
  0x64   :  { %973 = vperm.xlu1 %8065, %v826_v51   ;;  %v627_v51 = vrot.slane %v449_v43, 1  ;;  %v832_v45 = vsel %vm768_vm6, 1, %v17161_v14 }
  0x65   :  { %970 = vperm.xlu0 %8064, %v825_v22   ;;  %v451_v22 = vld [vmem:[%s8238_s9 + $0x1a0] sm:$0xff] }
  0x66   :  { %v8656_v59 = vsel %vm527_vm1, %v625_v32, %v627_v51  ;;  %v8671_v32 = vsel %vm527_vm1, %v627_v51, %v629_v11  ;;  %v456_v51 = vld [vmem:[%s8238_s9 + $0x1c8] sm:$0xff] }
  0x67   :  { %17185 = vst [vmem:[#allocation45_spill] sm:$0xff] %v8656_v59  ;;  %vm770_vm8 = vcmp.eq.f32.partialorder %v8656_v59, %v448_v50  ;;  %17188 = vst [vmem:[#allocation48_spill] sm:$0xff] %v8671_v32  ;;  %v833_v50 = vsel %vm769_vm9, 1, %v17161_v14  ;;  %vm771_vm11 = vcmp.eq.f32.partialorder %v8671_v32, %v449_v43  ;;  %v641_v32 = vrot.slane %v456_v51, 1 }
  0x68   :  { %979 = vperm.xlu1 %8065, %v828_v0   ;;  %v631_v0 = vrot.slane %v451_v22, 1  ;;  %v834_v27 = vsel %vm770_vm8, 1, %v17161_v14  ;;  %vm784_vm8 = vcmp.eq.f32.partialorder %v8572_v39, %v8548_v61 }
  0x69   :  { %976 = vperm.xlu0 %8064, %v827_v7   ;;  %v453_v7 = vld [vmem:[%s8238_s9 + $0x1b0] sm:$0xff] }
  0x6a   :  { %v8668_v15 = vsel %vm527_vm1, %v629_v11, %v631_v0  ;;  %v8683_v11 = vsel %vm527_vm1, %v631_v0, %v633_v58  ;;  %v458_v0 = vld [vmem:[%s8238_s9 + $0x1d8] sm:$0xff] }
  0x6b   :  { %17187 = vst [vmem:[#allocation47_spill] sm:$0xff] %v8668_v15  ;;  %vm772_vm10 = vcmp.eq.f32.partialorder %v8668_v15, %v450_v23  ;;  %17190 = vst [vmem:[#allocation50_spill] sm:$0xff] %v8683_v11  ;;  %v835_v23 = vsel %vm771_vm11, 1, %v17161_v14  ;;  %vm773_vm13 = vcmp.eq.f32.partialorder %v8683_v11, %v451_v22  ;;  %v645_v11 = vrot.slane %v458_v0, 1 }
  0x6c   :  { %985 = vperm.xlu1 %8065, %v830_v8   ;;  %v635_v8 = vrot.slane %v453_v7, 1  ;;  %v836_v59 = vsel %vm772_vm10, 1, %v17161_v14  ;;  %vm397_vm10 = vcmp.le.s32.totalorder %v8208_v1, 16 }
  0x6d   :  { %982 = vperm.xlu0 %8064, %v829_v54   ;;  %v455_v54 = vld [vmem:[%s8238_s9 + $0x1c0] sm:$0xff] }
  0x6e   :  { %v8680_v28 = vsel %vm527_vm1, %v633_v58, %v635_v8  ;;  %v8695_v58 = vsel %vm527_vm1, %v635_v8, %v637_v42  ;;  %v461_v8 = vld [vmem:[%s8238_s9 + $0x1f0] sm:$0xff] }
  0x6f   :  { %17189 = vst [vmem:[#allocation49_spill] sm:$0xff] %v8680_v28  ;;  %vm774_vm12 = vcmp.eq.f32.partialorder %v8680_v28, %v452_v62  ;;  %17191 = vst [vmem:[#allocation51_spill] sm:$0xff] %v8695_v58  ;;  %v837_v62 = vsel %vm773_vm13, 1, %v17161_v14  ;;  %vm775_vm15 = vcmp.eq.f32.partialorder %v8695_v58, %v453_v7  ;;  %v651_v58 = vrot.slane %v461_v8, 1 }
  0x70   :  { %991 = vperm.xlu1 %8065, %v832_v45   ;;  %v639_v45 = vrot.slane %v455_v54, 1  ;;  %v838_v15 = vsel %vm774_vm12, 1, %v17161_v14  ;;  %v839_v53 = vsel %vm775_vm15, 1, %v17161_v14  ;;  %vm1425_vm15 = vcmask 1045504  }
  0x71   :  { %988 = vperm.xlu0 %8064, %v831_v35   ;;  %v457_v35 = vld [vmem:[%s8238_s9 + $0x1d0] sm:$0xff] }
  0x72   :  { %v8692_v43 = vsel %vm527_vm1, %v637_v42, %v639_v45  ;;  %v460_v42 = vld [vmem:[%s8238_s9 + $0x1e8] sm:$0xff] }
  0x73   :  { %vm776_vm14 = vcmp.eq.f32.partialorder %v8692_v43, %v454_v3  ;;  %v649_v3 = vrot.slane %v460_v42, 1 }
  0x74   :  { %997 = vperm.xlu1 %8065, %v834_v27   ;;  %v643_v27 = vrot.slane %v457_v35, 1 }
  0x75   :  { %994 = vperm.xlu0 %8064, %v833_v50   ;;  %v459_v50 = vld [vmem:[%s8238_s9 + $0x1e0] sm:$0xff] }
  0x76   :  { %v8704_v22 = vsel %vm527_vm1, %v641_v32, %v643_v27  ;;  %v647_v28 = vrot.slane %v459_v50, 1 }
  0x77   :  { %vm778_vm2 = vcmp.eq.f32.partialorder %v8704_v22, %v456_v51 }
  0x78   :  { %1003 = vperm.xlu1 %8065, %v836_v59   ;;  %v8707_v59 = vsel %vm527_vm1, %v639_v45, %v641_v32  ;;  %v8716_v7 = vsel %vm527_vm1, %v645_v11, %v647_v28  ;;  %v842_v32 = vsel %vm778_vm2, 1, %v17161_v14  ;;  %v8729_v51 = vsel %vm527_vm1, %v647_v28, %v649_v3 }
  0x79   :  { %1000 = vperm.xlu0 %8064, %v835_v23   ;;  %v840_v23 = vsel %vm776_vm14, 1, %v17161_v14  ;;  %vm777_vm3 = vcmp.eq.f32.partialorder %v8707_v59, %v455_v54  ;;  %vm780_vm4 = vcmp.eq.f32.partialorder %v8716_v7, %v458_v0  ;;  %v8726_v54 = vsel %vm527_vm1, %v649_v3, %v651_v58 }
  0x7a   :  { %v841_v45 = vsel %vm777_vm3, 1, %v17161_v14  ;;  %vm782_vm6 = vcmp.eq.f32.partialorder %v8726_v54, %v460_v42  ;;  %vm781_vm7 = vcmp.eq.f32.partialorder %v8729_v51, %v459_v50  ;;  %v848_v50 = vsel %vm784_vm8, 1, %v17161_v14 }
  0x7b   :  { %v846_v0 = vsel %vm782_vm6, 1, %v17161_v14  ;;  %v845_v28 = vsel %vm781_vm7, 1, %v17161_v14  ;;  %v16557_v42 = vmov 0.0  }
  0x7c   :  { %1009 = vperm.xlu1 %8065, %v838_v15   ;;  %v8719_v15 = vsel %vm527_vm1, %v643_v27, %v645_v11  ;;  %v844_v11 = vsel %vm780_vm4, 1, %v17161_v14  ;;  %v17192_v27 = vrot.slane %v8548_v61, 1 }
  0x7d   :  { %1006 = vperm.xlu0 %8064, %v837_v62   ;;  %vm779_vm5 = vcmp.eq.f32.partialorder %v8719_v15, %v457_v35 }
  0x7e   :  { %v8738_v35 = vsel %vm527_vm1, %v651_v58, %v17192_v27 }
  0x7f   :  { %vm783_vm9 = vcmp.eq.f32.partialorder %v8738_v35, %v461_v8 }
  0x80   :  { %1015 = vperm.xlu1 %8065, %v840_v23   ;;  %v847_v62 = vsel %vm783_vm9, 1, %v17161_v14  ;;  %v8751_v23 = vsel %vm397_vm10, -3.4028235e+38, %v16557_v42 }
  0x81   :  { %1012 = vperm.xlu0 %8064, %v839_v53   ;;  %v843_v53 = vsel %vm779_vm5, 1, %v17161_v14 }
  0x84   :  { %1021 = vperm.xlu1 %8065, %v842_v32  }
  0x85   :  { %1018 = vperm.xlu0 %8064, %v841_v45  }
  0x88   :  { %1027 = vperm.xlu1 %8065, %v844_v11  }
  0x89   :  { %1024 = vperm.xlu0 %8064, %v843_v53  }
  0x8c   :  { %1033 = vperm.xlu1 %8065, %v846_v0  }
  0x8d   :  { %1030 = vperm.xlu0 %8064, %v845_v28  }
  0x8f   :  { %v857_v58 = vpop.permute.xlu1 %856 }
  0x90   :  { %vm1043_vm1 = vcmp.eq.s32.totalorder %v857_v58, 1  ;;  %v851_v3 = vpop.permute.xlu0 %850  ;;  %1039 = vperm.xlu1 %8065, %v848_v50  }
  0x91   :  { %v1107_v61 = vsel %vm1043_vm1, %v8277_v20, %v8751_v23  ;;  %vm1041_vm11 = vcmp.eq.s32.totalorder %v851_v3, 1  ;;  %1036 = vperm.xlu0 %8064, %v847_v62  }
  0x92   :  { %v1171_v8 = vmax.f32 %v8244_v4, %v1107_v61  ;;  %v1235_v32 = vadd.f32 %v1107_v61, %v8244_v4  ;;  %v1105_v45 = vsel %vm1041_vm11, %v8287_v24, %v8751_v23 }
  0x93   :  { %v1169_v11 = vmax.f32 %v8250_v6, %v1105_v45  ;;  %v1233_v53 = vadd.f32 %v1105_v45, %v8250_v6  ;;  %v860_v27 = vpop.permute.xlu1 %859 }
  0x94   :  { %v8763_v0 = vsel %vm397_vm10, %v1171_v8, %v1235_v32  ;;  %vm1044_vm12 = vcmp.eq.s32.totalorder %v860_v27, 1  ;;  %v854_v20 = vpop.permute.xlu0 %853 }
  0x95   :  { %v1108_v28 = vsel %vm1044_vm12, %v8290_v25, %v8751_v23  ;;  %vm1042_vm13 = vcmp.eq.s32.totalorder %v854_v20, 1  ;;  %v1429_v3 = vrot.slane %v8763_v0, 2  ;;  %v8776_v61 = vsel %vm397_vm10, %v1169_v11, %v1233_v53 }
  0x96   :  { %v1172_v4 = vmax.f32 %v8247_v5, %v1108_v28  ;;  %v1236_v50 = vadd.f32 %v1108_v28, %v8247_v5  ;;  %v1106_v24 = vsel %vm1042_vm13, %v8293_v26, %v8751_v23  ;;  %v16559_v53 = vrot.slane %v8776_v61, 2 }
  0x97   :  { %v1170_v6 = vmax.f32 %v8255_v10, %v1106_v24  ;;  %v1234_v62 = vadd.f32 %v1106_v24, %v8255_v10  ;;  %v866_v58 = vpop.permute.xlu1 %865 }
  0x98   :  { %vm1046_vm14 = vcmp.eq.s32.totalorder %v866_v58, 1  ;;  %v863_v25 = vpop.permute.xlu0 %862  ;;  %v8780_v5 = vsel %vm397_vm10, %v1172_v4, %v1236_v50 }
  0x99   :  { %v1110_v26 = vsel %vm1046_vm14, %v8304_v30, %v8751_v23  ;;  %vm1045_vm2 = vcmp.eq.s32.totalorder %v863_v25, 1  ;;  %v8786_v10 = vsel %vm397_vm10, %v1170_v6, %v1234_v62  ;;  %v1431_v8 = vrot.slane %v8780_v5, 2 }
  0x9a   :  { %v1174_v32 = vmax.f32 %v8262_v13, %v1110_v26  ;;  %v1109_v45 = vsel %vm1045_vm2, %v8311_v33, %v8751_v23  ;;  %v1427_v11 = vrot.slane %v8786_v10, 2  ;;  %v1238_v27 = vadd.f32 %v1110_v26, %v8262_v13 }
  0x9b   :  { %v1173_v30 = vmax.f32 %v8259_v12, %v1109_v45  ;;  %v1237_v20 = vadd.f32 %v1109_v45, %v8259_v12  ;;  %v872_v28 = vpop.permute.xlu1 %871  ;;  %v8798_v4 = vsel %vm1425_vm15, %v1429_v3, %v1431_v8 }
  0x9c   :  { %vm1048_vm3 = vcmp.eq.s32.totalorder %v872_v28, 1  ;;  %v869_v50 = vpop.permute.xlu0 %868  ;;  %v8801_v24 = vsel %vm1425_vm15, %v1427_v11, %v1429_v3  ;;  %v8806_v33 = vsel %vm1425_vm15, %v16559_v53, %v1427_v11  ;;  %vm1621_vm4 = vcmp.eq.f32.partialorder %v8798_v4, %v8763_v0 }
  0x9d   :  { %v8812_v12 = vsel %vm397_vm10, %v1173_v30, %v1237_v20  ;;  %v1112_v13 = vsel %vm1048_vm3, %v8322_v36, %v8751_v23  ;;  %vm1047_vm5 = vcmp.eq.s32.totalorder %v869_v50, 1  ;;  %vm1620_vm6 = vcmp.eq.f32.partialorder %v8801_v24, %v8786_v10 }
  0x9e   :  { %v1176_v6 = vmax.f32 %v8271_v18, %v1112_v13  ;;  %v1240_v62 = vadd.f32 %v1112_v13, %v8271_v18  ;;  %v1111_v58 = vsel %vm1047_vm5, %v8326_v38, %v8751_v23  ;;  %v1684_v3 = vsel %vm1620_vm6, 1, %v17161_v14 }
  0x9f   :  { %v1175_v25 = vmax.f32 %v8267_v16, %v1111_v58  ;;  %v1239_v26 = vadd.f32 %v1111_v58, %v8267_v16  ;;  %1751 = vperm.xlu1 %8065, %v1684_v3   ;;  %vm1619_vm7 = vcmp.eq.f32.partialorder %v8806_v33, %v8776_v61  ;;  %v878_v36 = vpop.permute.xlu1 %877  ;;  %v1433_v45 = vrot.slane %v8812_v12, 2 }
  0xa0   :  { %v1683_v11 = vsel %vm1619_vm7, 1, %v17161_v14  ;;  %vm1050_vm8 = vcmp.eq.s32.totalorder %v878_v36, 1  ;;  %v875_v18 = vpop.permute.xlu0 %874  ;;  %v1685_v38 = vsel %vm1621_vm4, 1, %v17161_v14  ;;  %v8835_v30 = vsel %vm397_vm10, %v1174_v32, %v1238_v27 }
  0xa1   :  { %v8839_v16 = vsel %vm397_vm10, %v1175_v25, %v1239_v26  ;;  %1748 = vperm.xlu0 %8064, %v1683_v11   ;;  %v1114_v20 = vsel %vm1050_vm8, %v8342_v44, %v8751_v23  ;;  %vm1049_vm9 = vcmp.eq.s32.totalorder %v875_v18, 1  ;;  %v8844_v28 = vsel %vm1425_vm15, %v1431_v8, %v1433_v45 }
  0xa2   :  { %v1178_v50 = vmax.f32 %v8307_v31, %v1114_v20  ;;  %v1242_v13 = vadd.f32 %v1114_v20, %v8307_v31  ;;  %v1113_v32 = vsel %vm1049_vm9, %v8347_v47, %v8751_v23  ;;  %vm1622_vm1 = vcmp.eq.f32.partialorder %v8844_v28, %v8780_v5 }
  0xa3   :  { %v1177_v27 = vmax.f32 %v8274_v19, %v1113_v32  ;;  %v1241_v58 = vadd.f32 %v1113_v32, %v8274_v19  ;;  %v1686_v44 = vsel %vm1622_vm1, 1, %v17161_v14  ;;  %v884_v3 = vpop.permute.xlu1 %883  ;;  %v1435_v8 = vrot.slane %v8835_v30, 2 }
  0xa4   :  { %1757 = vperm.xlu1 %8065, %v1686_v44   ;;  %vm1052_vm11 = vcmp.eq.s32.totalorder %v884_v3, 1  ;;  %v881_v25 = vpop.permute.xlu0 %880  ;;  %v1437_v31 = vrot.slane %v8839_v16, 2  ;;  %v8859_v47 = vsel %vm397_vm10, %v1176_v6, %v1240_v62  ;;  %v8863_v26 = vsel %vm397_vm10, %v1178_v50, %v1242_v13 }
  0xa5   :  { %v8867_v19 = vsel %vm397_vm10, %v1177_v27, %v1241_v58  ;;  %1754 = vperm.xlu0 %8064, %v1685_v38   ;;  %v1116_v36 = vsel %vm1052_vm11, %v8362_v52, %v8751_v23  ;;  %vm1051_vm12 = vcmp.eq.s32.totalorder %v881_v25, 1  ;;  %v8872_v11 = vsel %vm1425_vm15, %v1433_v45, %v1435_v8 }
  0xa6   :  { %v1180_v18 = vmax.f32 %v8330_v40, %v1116_v36  ;;  %v1244_v6 = vadd.f32 %v1116_v36, %v8330_v40  ;;  %v1115_v62 = vsel %vm1051_vm12, %v8367_v55, %v8751_v23  ;;  %v8879_v20 = vsel %vm1425_vm15, %v1435_v8, %v1437_v31 }
  0xa7   :  { %v1179_v50 = vmax.f32 %v8314_v34, %v1115_v62  ;;  %v1243_v38 = vadd.f32 %v1115_v62, %v8314_v34  ;;  %vm1624_vm13 = vcmp.eq.f32.partialorder %v8879_v20, %v8835_v30  ;;  %vm1623_vm14 = vcmp.eq.f32.partialorder %v8872_v11, %v8812_v12  ;;  %v890_v52 = vpop.permute.xlu1 %889 }
  0xa8   :  { %v1688_v45 = vsel %vm1624_vm13, 1, %v17161_v14  ;;  %v1687_v40 = vsel %vm1623_vm14, 1, %v17161_v14  ;;  %vm1054_vm2 = vcmp.eq.s32.totalorder %v890_v52, 1  ;;  %v887_v55 = vpop.permute.xlu0 %886  ;;  %v1439_v13 = vrot.slane %v8859_v47, 2 }
  0xa9   :  { %v8892_v32 = vsel %vm397_vm10, %v1179_v50, %v1243_v38  ;;  %1763 = vperm.xlu1 %8065, %v1688_v45   ;;  %1760 = vperm.xlu0 %8064, %v1687_v40   ;;  %v1118_v34 = vsel %vm1054_vm2, %v8382_v60, %v8751_v23  ;;  %vm1053_vm3 = vcmp.eq.s32.totalorder %v887_v55, 1  ;;  %v1441_v27 = vrot.slane %v8867_v19, 2 }
  0xaa   :  { %17193 = vst [vmem:[#allocation52_spill] sm:$0xff] %v8892_v32  ;;  %v1182_v58 = vmax.f32 %v8350_v48, %v1118_v34  ;;  %v1246_v44 = vadd.f32 %v1118_v34, %v8350_v48  ;;  %v1117_v3 = vsel %vm1053_vm3, %v8387_v63, %v8751_v23  ;;  %v8902_v8 = vsel %vm1425_vm15, %v1437_v31, %v1439_v13 }
  0xab   :  { %v1181_v25 = vmax.f32 %v8333_v41, %v1117_v3  ;;  %v1245_v36 = vadd.f32 %v1117_v3, %v8333_v41  ;;  %v8907_v62 = vsel %vm1425_vm15, %v1439_v13, %v1441_v27  ;;  %vm1625_vm4 = vcmp.eq.f32.partialorder %v8902_v8, %v8839_v16  ;;  %v896_v60 = vpop.permute.xlu1 %895 }
  0xac   :  { %vm1626_vm5 = vcmp.eq.f32.partialorder %v8907_v62, %v8859_v47  ;;  %v1689_v48 = vsel %vm1625_vm4, 1, %v17161_v14  ;;  %vm1056_vm6 = vcmp.eq.s32.totalorder %v896_v60, 1  ;;  %v893_v63 = vpop.permute.xlu0 %892  ;;  %v1443_v31 = vrot.slane %v8863_v26, 2 }
  0xad   :  { %v8917_v50 = vsel %vm397_vm10, %v1181_v25, %v1245_v36  ;;  %v1690_v41 = vsel %vm1626_vm5, 1, %v17161_v14  ;;  %1766 = vperm.xlu0 %8064, %v1689_v48   ;;  %v1120_v38 = vsel %vm1056_vm6, %v8402_v9, %v8751_v23  ;;  %vm1055_vm7 = vcmp.eq.s32.totalorder %v893_v63, 1 }
  0xae   :  { %17194 = vst [vmem:[#allocation53_spill] sm:$0xff] %v8917_v50  ;;  %1769 = vperm.xlu1 %8065, %v1690_v41   ;;  %v1184_v52 = vmax.f32 %v8370_v56, %v1120_v38  ;;  %v1248_v45 = vadd.f32 %v1120_v38, %v8370_v56  ;;  %v1119_v40 = vsel %vm1055_vm7, %v8407_v17, %v8751_v23  ;;  %v1445_v55 = vrot.slane %v8892_v32, 2 }
  0xaf   :  { %v1183_v13 = vmax.f32 %v8353_v49, %v1119_v40  ;;  %v1247_v34 = vadd.f32 %v1119_v40, %v8353_v49  ;;  %v8930_v3 = vsel %vm1425_vm15, %v1441_v27, %v1443_v31  ;;  %v902_v25 = vpop.permute.xlu1 %901  ;;  %v8934_v9 = vsel %vm397_vm10, %v1180_v18, %v1244_v6 }
  0xb0   :  { %17195 = vst [vmem:[#allocation54_spill] sm:$0xff] %v8934_v9  ;;  %v8937_v36 = vsel %vm1425_vm15, %v1443_v31, %v1445_v55  ;;  %vm1627_vm8 = vcmp.eq.f32.partialorder %v8930_v3, %v8867_v19  ;;  %vm1058_vm9 = vcmp.eq.s32.totalorder %v902_v25, 1  ;;  %v899_v56 = vpop.permute.xlu0 %898  ;;  %v1447_v17 = vrot.slane %v8934_v9, 2 }
  0xb1   :  { %v8944_v49 = vsel %vm397_vm10, %v1183_v13, %v1247_v34  ;;  %vm1628_vm1 = vcmp.eq.f32.partialorder %v8937_v36, %v8863_v26  ;;  %v1691_v18 = vsel %vm1627_vm8, 1, %v17161_v14  ;;  %v1122_v6 = vsel %vm1058_vm9, %v8422_v29, %v8751_v23 }
  0xb2   :  { %17196 = vst [vmem:[#allocation55_spill] sm:$0xff] %v8944_v49  ;;  %v1692_v27 = vsel %vm1628_vm1, 1, %v17161_v14  ;;  %1772 = vperm.xlu0 %8064, %v1691_v18   ;;  %v1186_v60 = vmax.f32 %v8390_v2, %v1122_v6  ;;  %v1250_v48 = vadd.f32 %v1122_v6, %v8390_v2  ;;  %vm1057_vm11 = vcmp.eq.s32.totalorder %v899_v56, 1 }
  0xb3   :  { %1775 = vperm.xlu1 %8065, %v1692_v27   ;;  %v1121_v63 = vsel %vm1057_vm11, %v8427_v37, %v8751_v23  ;;  %v1449_v31 = vrot.slane %v8917_v50, 2  ;;  %v8958_v41 = vsel %vm1425_vm15, %v1445_v55, %v1447_v17  ;;  %v908_v38 = vpop.permute.xlu1 %907  ;;  %v8962_v29 = vsel %vm397_vm10, %v1182_v58, %v1246_v44  ;;  %v17202_v27 = vld [vmem:[#allocation8_spill] sm:$0xff] }
  0xb4   :  { %17197 = vst [vmem:[#allocation56_spill] sm:$0xff] %v8958_v41  ;;  %17198 = vst [vmem:[#allocation57_spill] sm:$0xff] %v8962_v29  ;;  %v1185_v40 = vmax.f32 %v8373_v57, %v1121_v63  ;;  %v1249_v13 = vadd.f32 %v1121_v63, %v8373_v57  ;;  %vm1629_vm12 = vcmp.eq.f32.partialorder %v8958_v41, %v8892_v32  ;;  %vm1060_vm13 = vcmp.eq.s32.totalorder %v908_v38, 1  ;;  %v905_v2 = vpop.permute.xlu0 %904 }
  0xb5   :  { %v8969_v37 = vsel %vm1425_vm15, %v1447_v17, %v1449_v31  ;;  %v1693_v55 = vsel %vm1629_vm12, 1, %v17161_v14  ;;  %v8974_v34 = vsel %vm1060_vm13, %v8442_v46, %v8751_v23  ;;  %vm1059_vm14 = vcmp.eq.s32.totalorder %v905_v2, 1  ;;  %v17201_v46 = vld [vmem:[#allocation12_spill] sm:$0xff] }
  0xb6   :  { %17199 = vst [vmem:[#allocation58_spill] sm:$0xff] %v8969_v37  ;;  %v8978_v58 = vsel %vm397_vm10, %v1185_v40, %v1249_v13  ;;  %vm1630_vm2 = vcmp.eq.f32.partialorder %v8969_v37, %v8934_v9  ;;  %1778 = vperm.xlu0 %8064, %v1693_v55   ;;  %v8986_v44 = vadd.f32 %v8974_v34, %v8410_v21  ;;  %v1451_v17 = vrot.slane %v8962_v29, 2 }
  0xb7   :  { %17200 = vst [vmem:[#allocation59_spill] sm:$0xff] %v8978_v58  ;;  %v1694_v25 = vsel %vm1630_vm2, 1, %v17161_v14  ;;  %v1123_v56 = vsel %vm1059_vm14, %v17201_v46, %v8751_v23  ;;  %v1453_v18 = vrot.slane %v8944_v49, 2  ;;  %v914_v6 = vpop.permute.xlu1 %913  ;;  %v8997_v13 = vsel %vm397_vm10, %v1184_v52, %v1248_v45  ;;  %v17206_v46 = vld [vmem:[#allocation15_spill] sm:$0xff]  ;;  %v17208_v52 = vld [vmem:[#allocation10_spill] sm:$0xff] }
  0xb8   :  { %1781 = vperm.xlu1 %8065, %v1694_v25   ;;  %v1187_v63 = vmax.f32 %v17202_v27, %v1123_v56  ;;  %v1251_v38 = vadd.f32 %v1123_v56, %v17202_v27  ;;  %vm1062_vm3 = vcmp.eq.s32.totalorder %v914_v6, 1  ;;  %v911_v40 = vpop.permute.xlu0 %910  ;;  %17203 = vst [vmem:[#allocation12_spill] sm:$0xff] %v8997_v13  ;;  %v9003_v55 = vsel %vm1425_vm15, %v1449_v31, %v1451_v17  ;;  %v17209_v6 = vld [vmem:[#allocation16_spill] sm:$0xff] }
  0xb9   :  { %v9000_v2 = vsel %vm1425_vm15, %v1451_v17, %v1453_v18  ;;  %17205 = vst [vmem:[#allocation60_spill] sm:$0xff] %v9003_v55  ;;  %v9007_v42 = vsel %vm1062_vm3, %v17206_v46, %v8751_v23  ;;  %vm1061_vm4 = vcmp.eq.s32.totalorder %v911_v40, 1  ;;  %vm1631_vm6 = vcmp.eq.f32.partialorder %v9003_v55, %v8917_v50 }
  0xba   :  { %17204 = vst [vmem:[#allocation8_spill] sm:$0xff] %v9000_v2  ;;  %v9011_v25 = vsel %vm397_vm10, %v1187_v63, %v1251_v38  ;;  %vm1632_vm5 = vcmp.eq.f32.partialorder %v9000_v2, %v8962_v29  ;;  %v1190_v45 = vmax.f32 %v17208_v52, %v9007_v42  ;;  %v1695_v56 = vsel %vm1631_vm6, 1, %v17161_v14  ;;  %v17210_v38 = vld [vmem:[#allocation9_spill] sm:$0xff] }
  0xbb   :  { %17207 = vst [vmem:[#allocation15_spill] sm:$0xff] %v9011_v25  ;;  %v1696_v31 = vsel %vm1632_vm5, 1, %v17161_v14  ;;  %v1254_v17 = vadd.f32 %v9007_v42, %v17208_v52  ;;  %v1125_v27 = vsel %vm1061_vm4, %v17209_v6, %v8751_v23  ;;  %v920_v63 = vpop.permute.xlu1 %919  ;;  %1784 = vperm.xlu0 %8064, %v1695_v56   ;;  %v1455_v53 = vrot.slane %v8997_v13, 2 }
  0xbc   :  { %1787 = vperm.xlu1 %8065, %v1696_v31   ;;  %v1189_v40 = vmax.f32 %v17210_v38, %v1125_v27  ;;  %v1253_v46 = vadd.f32 %v1125_v27, %v17210_v38  ;;  %v1457_v57 = vrot.slane %v8978_v58, 2  ;;  %v917_v50 = vpop.permute.xlu0 %916  ;;  %vm1064_vm7 = vcmp.eq.s32.totalorder %v920_v63, 1  ;;  %v17215_v27 = vld [vmem:[#allocation18_spill] sm:$0xff] }
  0xbd   :  { %vm1063_vm8 = vcmp.eq.s32.totalorder %v917_v50, 1  ;;  %v9031_v42 = vsel %vm397_vm10, %v1186_v60, %v1250_v48  ;;  %v1461_v52 = vrot.slane %v9011_v25, 2  ;;  %v9042_v6 = vsel %vm1425_vm15, %v1453_v18, %v1455_v53  ;;  %v17216_v50 = vld [vmem:[#allocation13_spill] sm:$0xff] }
  0xbe   :  { %17211 = vst [vmem:[#allocation10_spill] sm:$0xff] %v9031_v42  ;;  %v9036_v31 = vsel %vm397_vm10, %v1189_v40, %v1253_v46  ;;  %v9039_v56 = vsel %vm1425_vm15, %v1455_v53, %v1457_v57  ;;  %17214 = vst [vmem:[#allocation61_spill] sm:$0xff] %v9042_v6  ;;  %v9046_v63 = vsel %vm1064_vm7, %v17215_v27, %v8751_v23  ;;  %v17217_v40 = vld [vmem:[#allocation19_spill] sm:$0xff]  ;;  %v1459_v27 = vrot.slane %v9031_v42, 2 }
  0xbf   :  { %17212 = vst [vmem:[#allocation16_spill] sm:$0xff] %v9036_v31  ;;  %17213 = vst [vmem:[#allocation9_spill] sm:$0xff] %v9039_v56  ;;  %vm1634_vm9 = vcmp.eq.f32.partialorder %v9039_v56, %v8997_v13  ;;  %vm1633_vm1 = vcmp.eq.f32.partialorder %v9042_v6, %v8944_v49  ;;  %v9056_v48 = vadd.f32 %v9046_v63, %v17216_v50  ;;  %v926_v38 = vpop.permute.xlu1 %925  ;;  %v17218_v49 = vld [vmem:[#allocation11_spill] sm:$0xff] }
  0xc0   :  { %v1698_v53 = vsel %vm1634_vm9, 1, %v17161_v14  ;;  %v1697_v18 = vsel %vm1633_vm1, 1, %v17161_v14  ;;  %v1127_v46 = vsel %vm1063_vm8, %v17217_v40, %v8751_v23  ;;  %v923_v13 = vpop.permute.xlu0 %922  ;;  %vm1066_vm11 = vcmp.eq.s32.totalorder %v926_v38, 1  ;;  %v17221_v40 = vld [vmem:[#allocation21_spill] sm:$0xff] }
  0xc1   :  { %1793 = vperm.xlu1 %8065, %v1698_v53   ;;  %1790 = vperm.xlu0 %8064, %v1697_v18   ;;  %v1191_v6 = vmax.f32 %v17218_v49, %v1127_v46  ;;  %v1255_v60 = vadd.f32 %v1127_v46, %v17218_v49  ;;  %vm1065_vm12 = vcmp.eq.s32.totalorder %v923_v13, 1  ;;  %v9066_v56 = vsel %vm1425_vm15, %v1459_v27, %v1461_v52  ;;  %v17222_v53 = vld [vmem:[#allocation22_spill] sm:$0xff]  ;;  %v17224_v49 = vld [vmem:[#allocation17_spill] sm:$0xff] }
  0xc2   :  { %17219 = vst [vmem:[#allocation18_spill] sm:$0xff] %v9066_v56  ;;  %v9069_v29 = vsel %vm1425_vm15, %v1457_v57, %v1459_v27  ;;  %v9073_v55 = vsel %vm1066_vm11, %v17221_v40, %v8751_v23  ;;  %v1129_v18 = vsel %vm1065_vm12, %v17222_v53, %v8751_v23  ;;  %vm1636_vm13 = vcmp.eq.f32.partialorder %v9066_v56, %v9031_v42  ;;  %v17225_v40 = vld [vmem:[#allocation14_spill] sm:$0xff]  ;;  %v8068_v53 = vld [vmem:[%s8238_s9 + $0xc0] sm:$0xff] }
  0xc3   :  { %17220 = vst [vmem:[#allocation13_spill] sm:$0xff] %v9069_v29  ;;  %v9079_v2 = vsel %vm397_vm10, %v1191_v6, %v1255_v60  ;;  %vm1635_vm14 = vcmp.eq.f32.partialorder %v9069_v29, %v8978_v58  ;;  %v932_v13 = vpop.permute.xlu1 %931  ;;  %v1700_v38 = vsel %vm1636_vm13, 1, %v17161_v14  ;;  %v1258_v27 = vadd.f32 %v9073_v55, %v17224_v49 }
  0xc4   :  { %17223 = vst [vmem:[#allocation19_spill] sm:$0xff] %v9079_v2  ;;  %v1699_v46 = vsel %vm1635_vm14, 1, %v17161_v14  ;;  %v1193_v6 = vmax.f32 %v17225_v40, %v1129_v18  ;;  %v929_v60 = vpop.permute.xlu0 %928  ;;  %v1257_v42 = vadd.f32 %v8068_v53, %v1129_v18  ;;  %v17226_v57 = vmax.f32 %v8410_v21, %v8974_v34  ;;  %v17228_v40 = vld [vmem:[#allocation23_spill] sm:$0xff]  ;;  %v17231_v34 = vld [vmem:[#allocation20_spill] sm:$0xff] }
  0xc5   :  { %1799 = vperm.xlu1 %8065, %v1700_v38   ;;  %1796 = vperm.xlu0 %8064, %v1699_v46   ;;  %v1465_v29 = vrot.slane %v9036_v31, 2  ;;  %vm1068_vm2 = vcmp.eq.s32.totalorder %v932_v13, 1  ;;  %vm1067_vm3 = vcmp.eq.s32.totalorder %v929_v60, 1  ;;  %v9109_v18 = vsel %vm397_vm10, %v1190_v45, %v1254_v17  ;;  %v17232_v13 = vld [vmem:[#allocation24_spill] sm:$0xff]  ;;  %v8069_v17 = vld [vmem:[%s8238_s9 + $0xd0] sm:$0xff] }
  0xc6   :  { %v9099_v58 = vsel %vm397_vm10, %v17226_v57, %v8986_v44  ;;  %v9105_v38 = vsel %vm1068_vm2, %v17228_v40, %v8751_v23  ;;  %17229 = vst [vmem:[#allocation21_spill] sm:$0xff] %v9109_v18  ;;  %v9113_v21 = vsel %vm397_vm10, %v1193_v6, %v1257_v42  ;;  %v1131_v46 = vsel %vm1067_vm3, %v17232_v13, %v8751_v23 }
  0xc7   :  { %17227 = vst [vmem:[#allocation11_spill] sm:$0xff] %v9099_v58  ;;  %v1463_v56 = vrot.slane %v9099_v58, 2  ;;  %17230 = vst [vmem:[#allocation22_spill] sm:$0xff] %v9113_v21  ;;  %v9119_v57 = vadd.f32 %v9105_v38, %v17231_v34  ;;  %v938_v53 = vpop.permute.xlu1 %937  ;;  %v1195_v42 = vmax.f32 %v8069_v17, %v1131_v46  ;;  %v1259_v6 = vadd.f32 %v8069_v17, %v1131_v46 }
  0xc8   :  { %v935_v40 = vpop.permute.xlu0 %934  ;;  %v1467_v13 = vrot.slane %v9109_v18, 2  ;;  %v1469_v44 = vrot.slane %v9079_v2, 2  ;;  %vm1070_vm6 = vcmp.eq.s32.totalorder %v938_v53, 1  ;;  %v8071_v53 = vld [vmem:[%s8238_s9 + $0xe0] sm:$0xff] }
  0xc9   :  { %v9124_v60 = vsel %vm1425_vm15, %v1463_v56, %v1465_v29  ;;  %v9127_v45 = vsel %vm1425_vm15, %v1461_v52, %v1463_v56  ;;  %v9140_v56 = vsel %vm397_vm10, %v1195_v42, %v1259_v6  ;;  %vm1069_vm7 = vcmp.eq.s32.totalorder %v935_v40, 1  ;;  %v17239_v40 = vld [vmem:[#allocation26_spill] sm:$0xff] }
  0xca   :  { %17233 = vst [vmem:[#allocation17_spill] sm:$0xff] %v9124_v60  ;;  %17234 = vst [vmem:[#allocation14_spill] sm:$0xff] %v9127_v45  ;;  %vm1638_vm4 = vcmp.eq.f32.partialorder %v9124_v60, %v9099_v58  ;;  %vm1637_vm5 = vcmp.eq.f32.partialorder %v9127_v45, %v9011_v25  ;;  %v9143_v46 = vsel %vm1425_vm15, %v1467_v13, %v1469_v44  ;;  %v17238_v25 = vld [vmem:[#allocation25_spill] sm:$0xff]  ;;  %v1473_v60 = vrot.slane %v9113_v21, 2 }
  0xcb   :  { %v1702_v9 = vsel %vm1638_vm4, 1, %v17161_v14  ;;  %v1701_v52 = vsel %vm1637_vm5, 1, %v17161_v14  ;;  %17235 = vst [vmem:[#allocation23_spill] sm:$0xff] %v9140_v56  ;;  %17236 = vst [vmem:[#allocation20_spill] sm:$0xff] %v9143_v46  ;;  %v9146_v17 = vsel %vm1425_vm15, %v1465_v29, %v1467_v13  ;;  %v9150_v58 = vsel %vm1070_vm6, %v17238_v25, %v8751_v23  ;;  %v944_v45 = vpop.permute.xlu1 %943 }
  0xcc   :  { %1805 = vperm.xlu1 %8065, %v1702_v9   ;;  %1802 = vperm.xlu0 %8064, %v1701_v52   ;;  %17237 = vst [vmem:[#allocation24_spill] sm:$0xff] %v9146_v17  ;;  %vm1640_vm8 = vcmp.eq.f32.partialorder %v9143_v46, %v9109_v18  ;;  %vm1639_vm9 = vcmp.eq.f32.partialorder %v9146_v17, %v9036_v31  ;;  %v9157_v9 = vld [vmem:[%s8238_s9 + $0xe8] sm:$0xff]  ;;  %v941_v42 = vpop.permute.xlu0 %940  ;;  %vm1072_vm1 = vcmp.eq.s32.totalorder %v944_v45, 1 }
  0xcd   :  { %v9163_v29 = vadd.f32 %v9157_v9, %v9150_v58  ;;  %v1704_v25 = vsel %vm1640_vm8, 1, %v17161_v14  ;;  %v1703_v6 = vsel %vm1639_vm9, 1, %v17161_v14  ;;  %v1133_v13 = vsel %vm1069_vm7, %v17239_v40, %v8751_v23 }
  0xce   :  { %v17240_v52 = vmax.f32 %v17216_v50, %v9046_v63  ;;  %v1197_v17 = vmax.f32 %v8071_v53, %v1133_v13  ;;  %v1261_v18 = vadd.f32 %v8071_v53, %v1133_v13  ;;  %vm1071_vm11 = vcmp.eq.s32.totalorder %v941_v42, 1  ;;  %v17248_v13 = vld [vmem:[#allocation28_spill] sm:$0xff]  ;;  %v17251_v42 = vld [vmem:[#allocation29_spill] sm:$0xff] }
  0xcf   :  { %v17242_v40 = vmax.f32 %v17224_v49, %v9073_v55  ;;  %v1477_v50 = vrot.slane %v9140_v56, 2  ;;  %v17247_v55 = vld [vmem:[#allocation27_spill] sm:$0xff] }
  0xd0   :  { %v9175_v31 = vsel %vm397_vm10, %v17240_v52, %v9056_v48  ;;  %1811 = vperm.xlu1 %8065, %v1704_v25   ;;  %1808 = vperm.xlu0 %8064, %v1703_v6   ;;  %v950_v48 = vpop.permute.xlu1 %949  ;;  %v9190_v53 = vsel %vm397_vm10, %v1197_v17, %v1261_v18  ;;  %v9200_v49 = vsel %vm1072_vm1, %v17247_v55, %v8751_v23  ;;  %v9207_v18 = vld [vmem:[%s8238_s9 + $0xf8] sm:$0xff]  ;;  %v8073_v55 = vld [vmem:[%s8238_s9 + $0xf0] sm:$0xff] }
  0xd1   :  { %17241 = vst [vmem:[#allocation25_spill] sm:$0xff] %v9175_v31  ;;  %v1471_v46 = vrot.slane %v9175_v31, 2  ;;  %v9185_v63 = vsel %vm397_vm10, %v17242_v40, %v1258_v27  ;;  %17244 = vst [vmem:[#allocation62_spill] sm:$0xff] %v9190_v53  ;;  %v947_v27 = vpop.permute.xlu0 %946  ;;  %v1135_v52 = vsel %vm1071_vm11, %v17248_v13, %v8751_v23  ;;  %vm1074_vm14 = vcmp.eq.s32.totalorder %v950_v48, 1 }
  0xd2   :  { %17243 = vst [vmem:[#allocation26_spill] sm:$0xff] %v9185_v63  ;;  %v1475_v40 = vrot.slane %v9185_v63, 2  ;;  %v1263_v17 = vadd.f32 %v8073_v55, %v1135_v52  ;;  %vm1073_vm2 = vcmp.eq.s32.totalorder %v947_v27, 1  ;;  %v9230_v13 = vsel %vm1074_vm14, %v17251_v42, %v8751_v23 }
  0xd3   :  { %v9193_v25 = vsel %vm1425_vm15, %v1471_v46, %v1473_v60  ;;  %v9196_v45 = vsel %vm1425_vm15, %v1469_v44, %v1471_v46  ;;  %v9213_v44 = vadd.f32 %v9207_v18, %v9200_v49 }
  0xd4   :  { %17245 = vst [vmem:[#allocation63_spill] sm:$0xff] %v9193_v25  ;;  %17246 = vst [vmem:[#allocation64_spill] sm:$0xff] %v9196_v45  ;;  %vm1642_vm12 = vcmp.eq.f32.partialorder %v9193_v25, %v9175_v31  ;;  %vm1641_vm13 = vcmp.eq.f32.partialorder %v9196_v45, %v9079_v2  ;;  %v1199_v2 = vmax.f32 %v8073_v55, %v1135_v52  ;;  %v956_v31 = vpop.permute.xlu1 %955 }
  0xd5   :  { %v1706_v46 = vsel %vm1642_vm12, 1, %v17161_v14  ;;  %v1705_v6 = vsel %vm1641_vm13, 1, %v17161_v14  ;;  %v9223_v45 = vsel %vm1425_vm15, %v1475_v40, %v1477_v50  ;;  %v9226_v25 = vsel %vm1425_vm15, %v1473_v60, %v1475_v40  ;;  %v953_v32 = vpop.permute.xlu0 %952  ;;  %v9243_v60 = vld [vmem:[%s8238_s9 + $0x108] sm:$0xff] }
  0xd6   :  { %1817 = vperm.xlu1 %8065, %v1706_v46   ;;  %1814 = vperm.xlu0 %8064, %v1705_v6   ;;  %17249 = vst [vmem:[#allocation27_spill] sm:$0xff] %v9223_v45  ;;  %17250 = vst [vmem:[#allocation28_spill] sm:$0xff] %v9226_v25  ;;  %v17252_v46 = vld [vmem:[#allocation30_spill] sm:$0xff]  ;;  %v9236_v48 = vsel %vm397_vm10, %v1199_v2, %v1263_v17  ;;  %vm1644_vm3 = vcmp.eq.f32.partialorder %v9223_v45, %v9185_v63  ;;  %v8075_v2 = vld [vmem:[%s8238_s9 + $0x100] sm:$0xff]  ;;  %vm1076_vm5 = vcmp.eq.s32.totalorder %v956_v31, 1 }
  0xd7   :  { %v1137_v6 = vsel %vm1073_vm2, %v17252_v46, %v8751_v23  ;;  %17253 = vst [vmem:[#allocation29_spill] sm:$0xff] %v9236_v48  ;;  %vm1643_vm4 = vcmp.eq.f32.partialorder %v9226_v25, %v9113_v21  ;;  %v1708_v52 = vsel %vm1644_vm3, 1, %v17161_v14  ;;  %v1266_v55 = vadd.f32 %v9243_v60, %v9230_v13  ;;  %v17256_v45 = vld [vmem:[#allocation31_spill] sm:$0xff] }
  0xd8   :  { %v1707_v40 = vsel %vm1643_vm4, 1, %v17161_v14  ;;  %v1201_v17 = vmax.f32 %v8075_v2, %v1137_v6  ;;  %v1265_v42 = vadd.f32 %v8075_v2, %v1137_v6  ;;  %v17254_v46 = vmax.f32 %v17231_v34, %v9105_v38  ;;  %v962_v63 = vpop.permute.xlu1 %961  ;;  %v9279_v6 = vld [vmem:[%s8238_s9 + $0x118] sm:$0xff]  ;;  %v8077_v2 = vld [vmem:[%s8238_s9 + $0x110] sm:$0xff] }
  0xd9   :  { %v1481_v21 = vrot.slane %v9190_v53, 2  ;;  %vm1075_vm6 = vcmp.eq.s32.totalorder %v953_v32, 1  ;;  %v17257_v38 = vmax.f32 %v9157_v9, %v9150_v58  ;;  %v17260_v58 = vld [vmem:[#allocation32_spill] sm:$0xff]  ;;  %vm1078_vm9 = vcmp.eq.s32.totalorder %v962_v63, 1  ;;  %v9323_v63 = vld [vmem:[%s8238_s9 + $0x128] sm:$0xff] }
  0xda   :  { %1823 = vperm.xlu1 %8065, %v1708_v52   ;;  %1820 = vperm.xlu0 %8064, %v1707_v40   ;;  %v9258_v27 = vsel %vm397_vm10, %v17254_v46, %v9119_v57  ;;  %v9264_v52 = vsel %vm1076_vm5, %v17256_v45, %v8751_v23  ;;  %v959_v57 = vpop.permute.xlu0 %958  ;;  %v9276_v31 = vsel %vm397_vm10, %v1201_v17, %v1265_v42 }
  0xdb   :  { %17255 = vst [vmem:[#allocation30_spill] sm:$0xff] %v9258_v27  ;;  %v1479_v25 = vrot.slane %v9258_v27, 2  ;;  %v9272_v34 = vsel %vm397_vm10, %v17257_v38, %v9163_v29  ;;  %17259 = vst [vmem:[#allocation65_spill] sm:$0xff] %v9276_v31  ;;  %v9285_v32 = vadd.f32 %v9279_v6, %v9264_v52  ;;  %v1139_v9 = vsel %vm1075_vm6, %v17260_v58, %v8751_v23 }
  0xdc   :  { %17258 = vst [vmem:[#allocation31_spill] sm:$0xff] %v9272_v34  ;;  %v1203_v17 = vmax.f32 %v8077_v2, %v1139_v9  ;;  %v1267_v42 = vadd.f32 %v8077_v2, %v1139_v9  ;;  %v1483_v46 = vrot.slane %v9272_v34, 2  ;;  %v1485_v38 = vrot.slane %v9236_v48, 2  ;;  %v968_v58 = vpop.permute.xlu1 %967 }
  0xdd   :  { %v9290_v29 = vsel %vm1425_vm15, %v1479_v25, %v1481_v21  ;;  %v9293_v40 = vsel %vm1425_vm15, %v1477_v50, %v1479_v25  ;;  %vm1077_vm1 = vcmp.eq.s32.totalorder %v959_v57, 1  ;;  %v17267_v57 = vld [vmem:[#allocation34_spill] sm:$0xff]  ;;  %vm1080_vm13 = vcmp.eq.s32.totalorder %v968_v58, 1 }
  0xde   :  { %17261 = vst [vmem:[#allocation32_spill] sm:$0xff] %v9290_v29  ;;  %17262 = vst [vmem:[#allocation66_spill] sm:$0xff] %v9293_v40  ;;  %vm1646_vm7 = vcmp.eq.f32.partialorder %v9290_v29, %v9258_v27  ;;  %vm1645_vm8 = vcmp.eq.f32.partialorder %v9293_v40, %v9140_v56  ;;  %v9306_v25 = vsel %vm397_vm10, %v1203_v17, %v1267_v42  ;;  %v965_v9 = vpop.permute.xlu0 %964  ;;  %v17266_v27 = vld [vmem:[#allocation33_spill] sm:$0xff]  ;;  %v1489_v29 = vrot.slane %v9276_v31, 2 }
  0xdf   :  { %v1710_v45 = vsel %vm1646_vm7, 1, %v17161_v14  ;;  %v1709_v50 = vsel %vm1645_vm8, 1, %v17161_v14  ;;  %17263 = vst [vmem:[#allocation67_spill] sm:$0xff] %v9306_v25  ;;  %v9309_v2 = vsel %vm1425_vm15, %v1483_v46, %v1485_v38  ;;  %v9312_v56 = vsel %vm1425_vm15, %v1481_v21, %v1483_v46 }
  0xe0   :  { %1829 = vperm.xlu1 %8065, %v1710_v45   ;;  %1826 = vperm.xlu0 %8064, %v1709_v50   ;;  %17264 = vst [vmem:[#allocation68_spill] sm:$0xff] %v9309_v2  ;;  %17265 = vst [vmem:[#allocation69_spill] sm:$0xff] %v9312_v56  ;;  %v9316_v40 = vsel %vm1078_vm9, %v17266_v27, %v8751_v23  ;;  %vm1648_vm11 = vcmp.eq.f32.partialorder %v9309_v2, %v9272_v34  ;;  %v974_v45 = vpop.permute.xlu1 %973  ;;  %vm1079_vm14 = vcmp.eq.s32.totalorder %v965_v9, 1  ;;  %v17275_v9 = vld [vmem:[#allocation35_spill] sm:$0xff] }
  0xe1   :  { %vm1647_vm12 = vcmp.eq.f32.partialorder %v9312_v56, %v9190_v53  ;;  %v9329_v21 = vadd.f32 %v9323_v63, %v9316_v40  ;;  %v1712_v17 = vsel %vm1648_vm11, 1, %v17161_v14  ;;  %v1141_v42 = vsel %vm1077_vm1, %v17267_v57, %v8751_v23  ;;  %v8079_v53 = vld [vmem:[%s8238_s9 + $0x120] sm:$0xff] }
  0xe2   :  { %v1711_v27 = vsel %vm1647_vm12, 1, %v17161_v14  ;;  %v17268_v46 = vmax.f32 %v9207_v18, %v9200_v49  ;;  %v1205_v34 = vmax.f32 %v8079_v53, %v1141_v42  ;;  %v1269_v56 = vadd.f32 %v8079_v53, %v1141_v42  ;;  %v971_v37 = vpop.permute.xlu0 %970 }
  0xe3   :  { %v17270_v49 = vmax.f32 %v9243_v60, %v9230_v13  ;;  %v9366_v13 = vsel %vm1080_vm13, %v17275_v9, %v8751_v23  ;;  %v9373_v60 = vld [vmem:[%s8238_s9 + $0x138] sm:$0xff]  ;;  %vm1082_vm4 = vcmp.eq.s32.totalorder %v974_v45, 1  ;;  %vm1081_vm5 = vcmp.eq.s32.totalorder %v971_v37, 1  ;;  %v9408_v37 = vld [vmem:[%s8238_s9 + $0x148] sm:$0xff] }
  0xe4   :  { %v9341_v50 = vsel %vm397_vm10, %v17268_v46, %v9213_v44  ;;  %1835 = vperm.xlu1 %8065, %v1712_v17   ;;  %1832 = vperm.xlu0 %8064, %v1711_v27   ;;  %v1493_v44 = vrot.slane %v9306_v25, 2  ;;  %v9356_v53 = vsel %vm397_vm10, %v1205_v34, %v1269_v56  ;;  %v980_v34 = vpop.permute.xlu1 %979  ;;  %v17276_v17 = vld [vmem:[#allocation36_spill] sm:$0xff] }
  0xe5   :  { %17269 = vst [vmem:[#allocation33_spill] sm:$0xff] %v9341_v50  ;;  %v1487_v2 = vrot.slane %v9341_v50, 2  ;;  %v9351_v18 = vsel %vm397_vm10, %v17270_v49, %v1266_v55  ;;  %17272 = vst [vmem:[#allocation70_spill] sm:$0xff] %v9356_v53  ;;  %v9379_v55 = vadd.f32 %v9373_v60, %v9366_v13  ;;  %v1143_v27 = vsel %vm1079_vm14, %v17276_v17, %v8751_v23  ;;  %v8081_v49 = vld [vmem:[%s8238_s9 + $0x130] sm:$0xff]  ;;  %v17279_v17 = vld [vmem:[#allocation37_spill] sm:$0xff] }
  0xe6   :  { %17271 = vst [vmem:[#allocation34_spill] sm:$0xff] %v9351_v18  ;;  %v1491_v42 = vrot.slane %v9351_v18, 2  ;;  %v977_v46 = vpop.permute.xlu0 %976  ;;  %v1207_v9 = vmax.f32 %v8081_v49, %v1143_v27  ;;  %v1271_v56 = vadd.f32 %v8081_v49, %v1143_v27  ;;  %vm1084_vm8 = vcmp.eq.s32.totalorder %v980_v34, 1  ;;  %v17288_v34 = vld [vmem:[#allocation40_spill] sm:$0xff] }
  0xe7   :  { %v9359_v57 = vsel %vm1425_vm15, %v1487_v2, %v1489_v29  ;;  %v9362_v58 = vsel %vm1425_vm15, %v1485_v38, %v1487_v2  ;;  %vm1083_vm9 = vcmp.eq.s32.totalorder %v977_v46, 1 }
  0xe8   :  { %17273 = vst [vmem:[#allocation71_spill] sm:$0xff] %v9359_v57  ;;  %17274 = vst [vmem:[#allocation72_spill] sm:$0xff] %v9362_v58  ;;  %vm1650_vm2 = vcmp.eq.f32.partialorder %v9359_v57, %v9341_v50  ;;  %vm1649_vm3 = vcmp.eq.f32.partialorder %v9362_v58, %v9236_v48  ;;  %v9388_v48 = vsel %vm1425_vm15, %v1491_v42, %v1493_v44  ;;  %v17280_v57 = vld [vmem:[#allocation38_spill] sm:$0xff]  ;;  %v986_v45 = vpop.permute.xlu1 %985 }
  0xe9   :  { %v1714_v38 = vsel %vm1650_vm2, 1, %v17161_v14  ;;  %v1713_v2 = vsel %vm1649_vm3, 1, %v17161_v14  ;;  %17277 = vst [vmem:[#allocation35_spill] sm:$0xff] %v9388_v48  ;;  %v9391_v50 = vsel %vm1425_vm15, %v1489_v29, %v1491_v42  ;;  %v9395_v58 = vsel %vm1082_vm4, %v17279_v17, %v8751_v23  ;;  %v8083_v42 = vld [vmem:[%s8238_s9 + $0x140] sm:$0xff] }
  0xea   :  { %1841 = vperm.xlu1 %8065, %v1714_v38   ;;  %1838 = vperm.xlu0 %8064, %v1713_v2   ;;  %17278 = vst [vmem:[#allocation36_spill] sm:$0xff] %v9391_v50  ;;  %v1145_v38 = vsel %vm1081_vm5, %v17280_v57, %v8751_v23  ;;  %v9401_v2 = vsel %vm397_vm10, %v1207_v9, %v1271_v56  ;;  %v983_v9 = vpop.permute.xlu0 %982  ;;  %vm1086_vm12 = vcmp.eq.s32.totalorder %v986_v45, 1  ;;  %v9488_v45 = vld [vmem:[%s8238_s9 + $0x168] sm:$0xff] }
  0xeb   :  { %17281 = vst [vmem:[#allocation37_spill] sm:$0xff] %v9401_v2  ;;  %vm1652_vm6 = vcmp.eq.f32.partialorder %v9388_v48, %v9351_v18  ;;  %vm1651_vm7 = vcmp.eq.f32.partialorder %v9391_v50, %v9276_v31  ;;  %v1274_v56 = vadd.f32 %v9408_v37, %v9395_v58  ;;  %v1209_v49 = vmax.f32 %v8083_v42, %v1145_v38  ;;  %v17284_v48 = vld [vmem:[#allocation39_spill] sm:$0xff] }
  0xec   :  { %v1716_v27 = vsel %vm1652_vm6, 1, %v17161_v14  ;;  %v1715_v57 = vsel %vm1651_vm7, 1, %v17161_v14  ;;  %v1273_v17 = vadd.f32 %v8083_v42, %v1145_v38  ;;  %v17282_v31 = vmax.f32 %v9279_v6, %v9264_v52  ;;  %v9444_v6 = vld [vmem:[%s8238_s9 + $0x158] sm:$0xff] }
  0xed   :  { %v1497_v50 = vrot.slane %v9356_v53, 2  ;;  %v9429_v41 = vsel %vm1084_vm8, %v17284_v48, %v8751_v23  ;;  %v17285_v38 = vmax.f32 %v9323_v63, %v9316_v40  ;;  %v1147_v40 = vsel %vm1083_vm9, %v17288_v34, %v8751_v23  ;;  %v992_v63 = vpop.permute.xlu1 %991 }
  0xee   :  { %1847 = vperm.xlu1 %8065, %v1716_v27   ;;  %1844 = vperm.xlu0 %8064, %v1715_v57   ;;  %v9423_v29 = vsel %vm397_vm10, %v17282_v31, %v9285_v32  ;;  %v9441_v31 = vsel %vm397_vm10, %v1209_v49, %v1273_v17  ;;  %v9450_v48 = vadd.f32 %v9444_v6, %v9429_v41  ;;  %v8085_v27 = vld [vmem:[%s8238_s9 + $0x150] sm:$0xff]  ;;  %v989_v49 = vpop.permute.xlu0 %988  ;;  %v17294_v32 = vld [vmem:[#allocation41_spill] sm:$0xff]  ;;  %vm1085_vm13 = vcmp.eq.s32.totalorder %v983_v9, 1 }
  0xef   :  { %17283 = vst [vmem:[#allocation38_spill] sm:$0xff] %v9423_v29  ;;  %v1495_v18 = vrot.slane %v9423_v29, 2  ;;  %v9437_v52 = vsel %vm397_vm10, %v17285_v38, %v9329_v21  ;;  %17287 = vst [vmem:[#allocation73_spill] sm:$0xff] %v9441_v31  ;;  %v1211_v57 = vmax.f32 %v8085_v27, %v1147_v40  ;;  %v1275_v42 = vadd.f32 %v8085_v27, %v1147_v40 }
  0xf0   :  { %17286 = vst [vmem:[#allocation39_spill] sm:$0xff] %v9437_v52  ;;  %v1499_v17 = vrot.slane %v9437_v52, 2  ;;  %v1501_v38 = vrot.slane %v9401_v2, 2  ;;  %vm1088_vm3 = vcmp.eq.s32.totalorder %v992_v63, 1  ;;  %vm1087_vm4 = vcmp.eq.s32.totalorder %v989_v49, 1  ;;  %v17307_v49 = vld [vmem:[#allocation45_spill] sm:$0xff] }
  0xf1   :  { %v9455_v21 = vsel %vm1425_vm15, %v1495_v18, %v1497_v50  ;;  %v9458_v46 = vsel %vm1425_vm15, %v1493_v44, %v1495_v18  ;;  %v9471_v44 = vsel %vm397_vm10, %v1211_v57, %v1275_v42  ;;  %v8087_v57 = vld [vmem:[%s8238_s9 + $0x160] sm:$0xff] }
  0xf2   :  { %17289 = vst [vmem:[#allocation40_spill] sm:$0xff] %v9455_v21  ;;  %17290 = vst [vmem:[#allocation74_spill] sm:$0xff] %v9458_v46  ;;  %vm1654_vm1 = vcmp.eq.f32.partialorder %v9455_v21, %v9423_v29  ;;  %vm1653_vm11 = vcmp.eq.f32.partialorder %v9458_v46, %v9306_v25  ;;  %v9474_v40 = vsel %vm1425_vm15, %v1499_v17, %v1501_v38  ;;  %v998_v29 = vpop.permute.xlu1 %997  ;;  %v995_v42 = vpop.permute.xlu0 %994  ;;  %v1505_v46 = vrot.slane %v9441_v31, 2 }
  0xf3   :  { %v1718_v34 = vsel %vm1654_vm1, 1, %v17161_v14  ;;  %v1717_v18 = vsel %vm1653_vm11, 1, %v17161_v14  ;;  %17291 = vst [vmem:[#allocation75_spill] sm:$0xff] %v9471_v44  ;;  %17292 = vst [vmem:[#allocation76_spill] sm:$0xff] %v9474_v40  ;;  %v9477_v27 = vsel %vm1425_vm15, %v1497_v50, %v1499_v17  ;;  %v9481_v25 = vsel %vm1086_vm12, %v17294_v32, %v8751_v23  ;;  %v17295_v17 = vld [vmem:[#allocation42_spill] sm:$0xff] }
  0xf4   :  { %1853 = vperm.xlu1 %8065, %v1718_v34   ;;  %1850 = vperm.xlu0 %8064, %v1717_v18   ;;  %17293 = vst [vmem:[#allocation77_spill] sm:$0xff] %v9477_v27  ;;  %vm1656_vm14 = vcmp.eq.f32.partialorder %v9474_v40, %v9437_v52  ;;  %vm1655_vm2 = vcmp.eq.f32.partialorder %v9477_v27, %v9356_v53  ;;  %vm1090_vm7 = vcmp.eq.s32.totalorder %v998_v29, 1  ;;  %vm1089_vm8 = vcmp.eq.s32.totalorder %v995_v42, 1 }
  0xf5   :  { %v9494_v50 = vadd.f32 %v9488_v45, %v9481_v25  ;;  %v1720_v32 = vsel %vm1656_vm14, 1, %v17161_v14  ;;  %v1719_v9 = vsel %vm1655_vm2, 1, %v17161_v14  ;;  %v1149_v34 = vsel %vm1085_vm13, %v17295_v17, %v8751_v23 }
  0xf6   :  { %v17296_v18 = vmax.f32 %v9373_v60, %v9366_v13  ;;  %v1213_v52 = vmax.f32 %v8087_v57, %v1149_v34  ;;  %v1277_v27 = vadd.f32 %v8087_v57, %v1149_v34  ;;  %v17298_v17 = vmax.f32 %v9408_v37, %v9395_v58  ;;  %v17303_v58 = vld [vmem:[#allocation43_spill] sm:$0xff]  ;;  %v17304_v34 = vld [vmem:[#allocation44_spill] sm:$0xff] }
  0xf7   :  { %v1509_v60 = vrot.slane %v9471_v44, 2  ;;  %v9531_v37 = vsel %vm1088_vm3, %v17303_v58, %v8751_v23  ;;  %v8089_v58 = vld [vmem:[%s8238_s9 + $0x170] sm:$0xff] }
  0xf8   :  { %v9506_v53 = vsel %vm397_vm10, %v17296_v18, %v9379_v55  ;;  %1859 = vperm.xlu1 %8065, %v1720_v32   ;;  %1856 = vperm.xlu0 %8064, %v1719_v9   ;;  %v9516_v13 = vsel %vm397_vm10, %v17298_v17, %v1274_v56  ;;  %v1004_v55 = vpop.permute.xlu1 %1003  ;;  %v9521_v57 = vsel %vm397_vm10, %v1213_v52, %v1277_v27  ;;  %v1001_v56 = vpop.permute.xlu0 %1000  ;;  %v9538_v52 = vld [vmem:[%s8238_s9 + $0x178] sm:$0xff] }
  0xf9   :  { %17297 = vst [vmem:[#allocation41_spill] sm:$0xff] %v9506_v53  ;;  %v1503_v40 = vrot.slane %v9506_v53, 2  ;;  %17299 = vst [vmem:[#allocation42_spill] sm:$0xff] %v9516_v13  ;;  %v1151_v18 = vsel %vm1087_vm4, %v17304_v34, %v8751_v23  ;;  %v1507_v17 = vrot.slane %v9516_v13, 2  ;;  %v9561_v34 = vsel %vm1090_vm7, %v17307_v49, %v8751_v23 }
  0xfa   :  { %17300 = vst [vmem:[#allocation78_spill] sm:$0xff] %v9521_v57  ;;  %v1279_v27 = vadd.f32 %v8089_v58, %v1151_v18  ;;  %vm1092_vm11 = vcmp.eq.s32.totalorder %v1004_v55, 1  ;;  %vm1091_vm12 = vcmp.eq.s32.totalorder %v1001_v56, 1 }
  0xfb   :  { %v9524_v32 = vsel %vm1425_vm15, %v1503_v40, %v1505_v46  ;;  %v9527_v63 = vsel %vm1425_vm15, %v1501_v38, %v1503_v40  ;;  %v9544_v38 = vadd.f32 %v9538_v52, %v9531_v37 }
  0xfc   :  { %17301 = vst [vmem:[#allocation79_spill] sm:$0xff] %v9524_v32  ;;  %17302 = vst [vmem:[#allocation80_spill] sm:$0xff] %v9527_v63  ;;  %vm1658_vm5 = vcmp.eq.f32.partialorder %v9524_v32, %v9506_v53  ;;  %vm1657_vm6 = vcmp.eq.f32.partialorder %v9527_v63, %v9401_v2  ;;  %v1215_v2 = vmax.f32 %v8089_v58, %v1151_v18  ;;  %v1010_v53 = vpop.permute.xlu1 %1009  ;;  %v1007_v21 = vpop.permute.xlu0 %1006 }
  0xfd   :  { %v1722_v40 = vsel %vm1658_vm5, 1, %v17161_v14  ;;  %v1721_v9 = vsel %vm1657_vm6, 1, %v17161_v14  ;;  %v9554_v63 = vsel %vm1425_vm15, %v1507_v17, %v1509_v60  ;;  %v9557_v32 = vsel %vm1425_vm15, %v1505_v46, %v1507_v17  ;;  %v9574_v46 = vld [vmem:[%s8238_s9 + $0x188] sm:$0xff] }
  0xfe   :  { %1865 = vperm.xlu1 %8065, %v1722_v40   ;;  %1862 = vperm.xlu0 %8064, %v1721_v9   ;;  %17305 = vst [vmem:[#allocation43_spill] sm:$0xff] %v9554_v63  ;;  %17306 = vst [vmem:[#allocation44_spill] sm:$0xff] %v9557_v32  ;;  %v17308_v40 = vld [vmem:[#allocation46_spill] sm:$0xff]  ;;  %v9567_v29 = vsel %vm397_vm10, %v1215_v2, %v1279_v27  ;;  %vm1660_vm9 = vcmp.eq.f32.partialorder %v9554_v63, %v9516_v13  ;;  %v8091_v2 = vld [vmem:[%s8238_s9 + $0x180] sm:$0xff]  ;;  %vm1094_vm2 = vcmp.eq.s32.totalorder %v1010_v53, 1 }
  0xff   :  { %v1153_v9 = vsel %vm1089_vm8, %v17308_v40, %v8751_v23  ;;  %17309 = vst [vmem:[#allocation45_spill] sm:$0xff] %v9567_v29  ;;  %vm1659_vm1 = vcmp.eq.f32.partialorder %v9557_v32, %v9441_v31  ;;  %v1724_v18 = vsel %vm1660_vm9, 1, %v17161_v14  ;;  %v1282_v58 = vadd.f32 %v9574_v46, %v9561_v34  ;;  %v17312_v32 = vld [vmem:[#allocation47_spill] sm:$0xff]  ;;  %v9654_v53 = vld [vmem:[%s8238_s9 + $0x1a8] sm:$0xff] }
 0x100   :  { %v1723_v17 = vsel %vm1659_vm1, 1, %v17161_v14  ;;  %v1217_v27 = vmax.f32 %v8091_v2, %v1153_v9  ;;  %v1281_v49 = vadd.f32 %v8091_v2, %v1153_v9  ;;  %v17310_v40 = vmax.f32 %v9444_v6, %v9429_v41  ;;  %v1016_v6 = vpop.permute.xlu1 %1015  ;;  %v8093_v2 = vld [vmem:[%s8238_s9 + $0x190] sm:$0xff] }
 0x101   :  { %v1513_v31 = vrot.slane %v9521_v57, 2  ;;  %v9595_v63 = vsel %vm1092_vm11, %v17312_v32, %v8751_v23  ;;  %v17313_v9 = vmax.f32 %v9488_v45, %v9481_v25  ;;  %v17316_v25 = vld [vmem:[#allocation48_spill] sm:$0xff]  ;;  %vm1093_vm3 = vcmp.eq.s32.totalorder %v1007_v21, 1 }
 0x102   :  { %1871 = vperm.xlu1 %8065, %v1724_v18   ;;  %1868 = vperm.xlu0 %8064, %v1723_v17   ;;  %v9589_v42 = vsel %vm397_vm10, %v17310_v40, %v9450_v48  ;;  %v1013_v48 = vpop.permute.xlu0 %1012  ;;  %v9607_v55 = vsel %vm397_vm10, %v1217_v27, %v1281_v49  ;;  %v9610_v18 = vld [vmem:[%s8238_s9 + $0x198] sm:$0xff]  ;;  %v1155_v45 = vsel %vm1091_vm12, %v17316_v25, %v8751_v23  ;;  %vm1096_vm6 = vcmp.eq.s32.totalorder %v1016_v6, 1 }
 0x103   :  { %17311 = vst [vmem:[#allocation46_spill] sm:$0xff] %v9589_v42  ;;  %v1511_v13 = vrot.slane %v9589_v42, 2  ;;  %v9603_v41 = vsel %vm397_vm10, %v17313_v9, %v9494_v50  ;;  %17315 = vst [vmem:[#allocation81_spill] sm:$0xff] %v9607_v55  ;;  %v9616_v56 = vadd.f32 %v9610_v18, %v9595_v63  ;;  %v1219_v27 = vmax.f32 %v8093_v2, %v1155_v45 }
 0x104   :  { %17314 = vst [vmem:[#allocation47_spill] sm:$0xff] %v9603_v41  ;;  %v1283_v49 = vadd.f32 %v8093_v2, %v1155_v45  ;;  %v1515_v40 = vrot.slane %v9603_v41, 2  ;;  %v1517_v9 = vrot.slane %v9567_v29, 2  ;;  %v17320_v2 = vld [vmem:[#allocation49_spill] sm:$0xff]  ;;  %vm1095_vm7 = vcmp.eq.s32.totalorder %v1013_v48, 1  ;;  %v17326_v48 = vld [vmem:[#allocation51_spill] sm:$0xff] }
 0x105   :  { %v9621_v50 = vsel %vm1425_vm15, %v1511_v13, %v1513_v31  ;;  %v9624_v17 = vsel %vm1425_vm15, %v1509_v60, %v1511_v13 }
 0x106   :  { %17317 = vst [vmem:[#allocation48_spill] sm:$0xff] %v9624_v17  ;;  %vm1662_vm13 = vcmp.eq.f32.partialorder %v9621_v50, %v9589_v42  ;;  %vm1661_vm14 = vcmp.eq.f32.partialorder %v9624_v17, %v9471_v44  ;;  %v9637_v13 = vsel %vm397_vm10, %v1219_v27, %v1283_v49  ;;  %v9640_v60 = vsel %vm1425_vm15, %v1515_v40, %v1517_v9  ;;  %v1022_v27 = vpop.permute.xlu1 %1021  ;;  %v1019_v49 = vpop.permute.xlu0 %1018 }
 0x107   :  { %v1726_v25 = vsel %vm1662_vm13, 1, %v17161_v14  ;;  %v1725_v32 = vsel %vm1661_vm14, 1, %v17161_v14  ;;  %17318 = vst [vmem:[#allocation82_spill] sm:$0xff] %v9640_v60  ;;  %v9643_v45 = vsel %vm1425_vm15, %v1513_v31, %v1515_v40  ;;  %v9647_v44 = vsel %vm1094_vm2, %v17320_v2, %v8751_v23 }
 0x108   :  { %1877 = vperm.xlu1 %8065, %v1726_v25   ;;  %1874 = vperm.xlu0 %8064, %v1725_v32   ;;  %17319 = vst [vmem:[#allocation83_spill] sm:$0xff] %v9643_v45  ;;  %vm1664_vm4 = vcmp.eq.f32.partialorder %v9640_v60, %v9603_v41  ;;  %vm1663_vm5 = vcmp.eq.f32.partialorder %v9643_v45, %v9521_v57  ;;  %v17321_v25 = vld [vmem:[#allocation50_spill] sm:$0xff]  ;;  %v8095_v45 = vld [vmem:[%s8238_s9 + $0x1a0] sm:$0xff]  ;;  %v1521_v17 = vrot.slane %v9607_v55, 2  ;;  %vm1098_vm1 = vcmp.eq.s32.totalorder %v1022_v27, 1  ;;  %v9739_v27 = vld [vmem:[%s8238_s9 + $0x1c8] sm:$0xff] }
 0x109   :  { %v9660_v31 = vadd.f32 %v9654_v53, %v9647_v44  ;;  %v1728_v40 = vsel %vm1664_vm4, 1, %v17161_v14  ;;  %v1727_v21 = vsel %vm1663_vm5, 1, %v17161_v14  ;;  %v1157_v2 = vsel %vm1093_vm3, %v17321_v25, %v8751_v23 }
 0x10a   :  { %v17322_v57 = vmax.f32 %v9538_v52, %v9531_v37  ;;  %v1221_v41 = vmax.f32 %v8095_v45, %v1157_v2  ;;  %v1285_v60 = vadd.f32 %v8095_v45, %v1157_v2  ;;  %v17323_v25 = vmax.f32 %v9574_v46, %v9561_v34  ;;  %v9704_v46 = vld [vmem:[%s8238_s9 + $0x1b8] sm:$0xff]  ;;  %v1028_v45 = vpop.permute.xlu1 %1027 }
 0x10b   :  { %v9697_v34 = vsel %vm1096_vm6, %v8692_v43, %v8751_v23  ;;  %vm1097_vm11 = vcmp.eq.s32.totalorder %v1019_v49, 1  ;;  %vm1100_vm14 = vcmp.eq.s32.totalorder %v1028_v45, 1 }
 0x10c   :  { %v9672_v32 = vsel %vm397_vm10, %v17322_v57, %v9544_v38  ;;  %1883 = vperm.xlu1 %8065, %v1728_v40   ;;  %1880 = vperm.xlu0 %8064, %v1727_v21   ;;  %v9682_v37 = vsel %vm397_vm10, %v17323_v25, %v1282_v58  ;;  %v1525_v57 = vrot.slane %v9637_v13, 2  ;;  %v9687_v52 = vsel %vm397_vm10, %v1221_v41, %v1285_v60  ;;  %v1025_v40 = vpop.permute.xlu0 %1024  ;;  %v8097_v21 = vld [vmem:[%s8238_s9 + $0x1b0] sm:$0xff] }
 0x10d   :  { %v1519_v42 = vrot.slane %v9672_v32, 2  ;;  %17324 = vst [vmem:[#allocation49_spill] sm:$0xff] %v9682_v37  ;;  %17325 = vst [vmem:[#allocation50_spill] sm:$0xff] %v9687_v52  ;;  %v9710_v41 = vadd.f32 %v9704_v46, %v9697_v34  ;;  %v1523_v60 = vrot.slane %v9682_v37, 2  ;;  %vm1099_vm2 = vcmp.eq.s32.totalorder %v1025_v40, 1 }
 0x10f   :  { %v9690_v38 = vsel %vm1425_vm15, %v1519_v42, %v1521_v17  ;;  %v9693_v6 = vsel %vm1425_vm15, %v1517_v9, %v1519_v42  ;;  %v1159_v9 = vsel %vm1095_vm7, %v17326_v48, %v8751_v23  ;;  %v9719_v58 = vsel %vm1425_vm15, %v1523_v60, %v1525_v57 }
 0x110   :  { %vm1666_vm8 = vcmp.eq.f32.partialorder %v9690_v38, %v9672_v32  ;;  %vm1665_vm9 = vcmp.eq.f32.partialorder %v9693_v6, %v9567_v29  ;;  %v1223_v2 = vmax.f32 %v8097_v21, %v1159_v9  ;;  %v1287_v25 = vadd.f32 %v8097_v21, %v1159_v9  ;;  %v8099_v9 = vld [vmem:[%s8238_s9 + $0x1c0] sm:$0xff] }
 0x111   :  { %v1730_v42 = vsel %vm1666_vm8, 1, %v17161_v14  ;;  %v1729_v43 = vsel %vm1665_vm9, 1, %v17161_v14  ;;  %v9722_v29 = vsel %vm1425_vm15, %v1521_v17, %v1523_v60  ;;  %v9726_v48 = vsel %vm1098_vm1, %v8704_v22, %v8751_v23 }
 0x112   :  { %1889 = vperm.xlu1 %8065, %v1730_v42   ;;  %1886 = vperm.xlu0 %8064, %v1729_v43   ;;  %v1161_v42 = vsel %vm1097_vm11, %v8707_v59, %v8751_v23  ;;  %v9732_v43 = vsel %vm397_vm10, %v1223_v2, %v1287_v25  ;;  %vm1668_vm12 = vcmp.eq.f32.partialorder %v9719_v58, %v9682_v37  ;;  %v1529_v17 = vrot.slane %v9687_v52, 2 }
 0x113   :  { %vm1667_vm13 = vcmp.eq.f32.partialorder %v9722_v29, %v9607_v55  ;;  %v1732_v22 = vsel %vm1668_vm12, 1, %v17161_v14  ;;  %v1290_v59 = vadd.f32 %v9739_v27, %v9726_v48  ;;  %v1225_v60 = vmax.f32 %v8099_v9, %v1161_v42 }
 0x114   :  { %v1731_v49 = vsel %vm1667_vm13, 1, %v17161_v14  ;;  %v1289_v21 = vadd.f32 %v8099_v9, %v1161_v42  ;;  %v17327_v2 = vmax.f32 %v9610_v18, %v9595_v63  ;;  %v9760_v37 = vsel %vm1100_vm14, %v8716_v7, %v8751_v23  ;;  %v1034_v18 = vpop.permute.xlu1 %1033 }
 0x115   :  { %v17328_v42 = vmax.f32 %v9654_v53, %v9647_v44  ;;  %v1163_v44 = vsel %vm1099_vm2, %v8719_v15, %v8751_v23  ;;  %v1533_v15 = vrot.slane %v9732_v43, 2  ;;  %vm1102_vm5 = vcmp.eq.s32.totalorder %v1034_v18, 1  ;;  %v8102_v18 = vld [vmem:[%s8238_s9 + $0x1e8] sm:$0xff] }
 0x116   :  { %1895 = vperm.xlu1 %8065, %v1732_v22   ;;  %1892 = vperm.xlu0 %8064, %v1731_v49   ;;  %v9754_v25 = vsel %vm397_vm10, %v17327_v2, %v9616_v56  ;;  %v1031_v56 = vpop.permute.xlu0 %1030  ;;  %v9772_v45 = vsel %vm397_vm10, %v1225_v60, %v1289_v21  ;;  %v9775_v22 = vld [vmem:[%s8238_s9 + $0x1d8] sm:$0xff]  ;;  %v8101_v49 = vld [vmem:[%s8238_s9 + $0x1d0] sm:$0xff] }
 0x117   :  { %v1527_v55 = vrot.slane %v9754_v25, 2  ;;  %v9768_v63 = vsel %vm397_vm10, %v17328_v42, %v9660_v31  ;;  %v9781_v40 = vadd.f32 %v9775_v22, %v9760_v37  ;;  %v1227_v9 = vmax.f32 %v8101_v49, %v1163_v44 }
 0x118   :  { %17329 = vst [vmem:[#allocation51_spill] sm:$0xff] %v9768_v63  ;;  %v1291_v60 = vadd.f32 %v8101_v49, %v1163_v44  ;;  %v1531_v21 = vrot.slane %v9768_v63, 2  ;;  %v1166_v49 = vsel %vm1102_vm5, %v8726_v54, %v8751_v23  ;;  %vm1101_vm6 = vcmp.eq.s32.totalorder %v1031_v56, 1 }
 0x119   :  { %v9786_v53 = vsel %vm1425_vm15, %v1527_v55, %v1529_v17  ;;  %v9789_v31 = vsel %vm1425_vm15, %v1525_v57, %v1527_v55  ;;  %v17332_v54 = vmax.f32 %v9704_v46, %v9697_v34 }
 0x11a   :  { %vm1670_vm3 = vcmp.eq.f32.partialorder %v9786_v53, %v9754_v25  ;;  %vm1669_vm4 = vcmp.eq.f32.partialorder %v9789_v31, %v9637_v13  ;;  %v9802_v55 = vsel %vm397_vm10, %v1227_v9, %v1291_v60  ;;  %v9805_v57 = vsel %vm1425_vm15, %v1531_v21, %v1533_v15 }
 0x11b   :  { %v1734_v2 = vsel %vm1670_vm3, 1, %v17161_v14  ;;  %v1733_v42 = vsel %vm1669_vm4, 1, %v17161_v14  ;;  %17330 = vst [vmem:[#allocation84_spill] sm:$0xff] %v9802_v55  ;;  %v9808_v44 = vsel %vm1425_vm15, %v1529_v17, %v1531_v21  ;;  %vm1672_vm7 = vcmp.eq.f32.partialorder %v9805_v57, %v9768_v63 }
 0x11c   :  { %1901 = vperm.xlu1 %8065, %v1734_v2   ;;  %1898 = vperm.xlu0 %8064, %v1733_v42   ;;  %17331 = vst [vmem:[#allocation85_spill] sm:$0xff] %v9808_v44  ;;  %vm1671_vm8 = vcmp.eq.f32.partialorder %v9808_v44, %v9687_v52  ;;  %v1230_v9 = vmax.f32 %v8102_v18, %v1166_v49  ;;  %v1040_v2 = vpop.permute.xlu1 %1039  ;;  %v1037_v42 = vpop.permute.xlu0 %1036  ;;  %v1736_v7 = vsel %vm1672_vm7, 1, %v17161_v14  ;;  %v8103_v52 = vld [vmem:[%s8238_s9 + $0x1e0] sm:$0xff]  ;;  %v1537_v63 = vrot.slane %v9772_v45, 2 }
 0x11d   :  { %v1294_v60 = vadd.f32 %v8102_v18, %v1166_v49  ;;  %v1735_v17 = vsel %vm1671_vm8, 1, %v17161_v14  ;;  %v1165_v21 = vsel %vm1101_vm6, %v8729_v51, %v8751_v23  ;;  %v9827_v56 = vsel %vm397_vm10, %v17332_v54, %v9710_v41 }
 0x11e   :  { %v1229_v44 = vmax.f32 %v8103_v52, %v1165_v21  ;;  %v1293_v49 = vadd.f32 %v8103_v52, %v1165_v21  ;;  %v1535_v18 = vrot.slane %v9827_v56, 2  ;;  %vm1104_vm9 = vcmp.eq.s32.totalorder %v1040_v2, 1 }
 0x11f   :  { %vm1103_vm1 = vcmp.eq.s32.totalorder %v1037_v42, 1  ;;  %v17333_v51 = vmax.f32 %v9739_v27, %v9726_v48  ;;  %v1541_v46 = vrot.slane %v9802_v55, 2  ;;  %v1168_v48 = vsel %vm1104_vm9, %v8572_v39, %v8751_v23  ;;  %v8104_v27 = vld [vmem:[%s8238_s9 + $0x1f8] sm:$0xff]  ;;  %v8105_v39 = vld [vmem:[%s8238_s9 + $0x1f0] sm:$0xff] }
 0x120   :  { %1907 = vperm.xlu1 %8065, %v1736_v7   ;;  %1904 = vperm.xlu0 %8064, %v1735_v17   ;;  %v9842_v52 = vsel %vm397_vm10, %v1229_v44, %v1293_v49  ;;  %v9845_v41 = vsel %vm1425_vm15, %v1535_v18, %v1537_v63  ;;  %v9848_v7 = vsel %vm1425_vm15, %v1533_v15, %v1535_v18  ;;  %v1752_v21 = vpop.permute.xlu1 %1751 }
 0x121   :  { %v9837_v34 = vsel %vm397_vm10, %v17333_v51, %v1290_v59  ;;  %17334 = vst [vmem:[#allocation86_spill] sm:$0xff] %v9842_v52  ;;  %vm1674_vm11 = vcmp.eq.f32.partialorder %v9845_v41, %v9827_v56  ;;  %vm1673_vm12 = vcmp.eq.f32.partialorder %v9848_v7, %v9732_v43  ;;  %v1232_v59 = vmax.f32 %v8104_v27, %v1168_v48 }
 0x122   :  { %v1296_v44 = vadd.f32 %v8104_v27, %v1168_v48  ;;  %v1738_v2 = vsel %vm1674_vm11, 1, %v17161_v14  ;;  %v1737_v42 = vsel %vm1673_vm12, 1, %v17161_v14  ;;  %v1167_v15 = vsel %vm1103_vm1, %v8738_v35, %v8751_v23 }
 0x123   :  { %v1539_v17 = vrot.slane %v9837_v34, 2  ;;  %v1231_v54 = vmax.f32 %v8105_v39, %v1167_v15  ;;  %v1295_v49 = vadd.f32 %v8105_v39, %v1167_v15  ;;  %v17335_v18 = vmax.f32 %v9775_v22, %v9760_v37  ;;  %v1749_v15 = vpop.permute.xlu0 %1748 }
 0x124   :  { %1913 = vperm.xlu1 %8065, %v1738_v2   ;;  %1910 = vperm.xlu0 %8064, %v1737_v42   ;;  %v1545_v48 = vrot.slane %v9842_v52, 2  ;;  %v9881_v42 = vsel %vm397_vm10, %v1230_v9, %v1294_v60  ;;  %vm1940_vm5 = vcmp.eq.s32.totalorder %v1752_v21, 1  ;;  %vm1939_vm6 = vcmp.eq.s32.totalorder %v1749_v15, 1 }
 0x125   :  { %v9869_v51 = vsel %vm397_vm10, %v17335_v18, %v9781_v40  ;;  %v9873_v35 = vsel %vm1425_vm15, %v1539_v17, %v1541_v46  ;;  %v9876_v27 = vsel %vm1425_vm15, %v1537_v63, %v1539_v17  ;;  %v9885_v37 = vsel %vm397_vm10, %v1231_v54, %v1295_v49  ;;  %v1758_v54 = vpop.permute.xlu1 %1757 }
 0x126   :  { %v1543_v2 = vrot.slane %v9869_v51, 2  ;;  %vm1676_vm13 = vcmp.eq.f32.partialorder %v9873_v35, %v9837_v34  ;;  %vm1675_vm14 = vcmp.eq.f32.partialorder %v9876_v27, %v9772_v45  ;;  %v1547_v63 = vrot.slane %v9881_v42, 2 }
 0x127   :  { %v1740_v22 = vsel %vm1676_vm13, 1, %v17161_v14  ;;  %v1739_v40 = vsel %vm1675_vm14, 1, %v17161_v14  ;;  %v1549_v17 = vrot.slane %v9885_v37, 2  ;;  %v2003_v21 = vsel %vm1939_vm6, %v8806_v33, %v8751_v23 }
 0x128   :  { %v9895_v9 = vsel %vm1425_vm15, %v1543_v2, %v1545_v48  ;;  %v9898_v60 = vsel %vm1425_vm15, %v1541_v46, %v1543_v2  ;;  %1919 = vperm.xlu1 %8065, %v1740_v22   ;;  %1916 = vperm.xlu0 %8064, %v1739_v40   ;;  %v9906_v39 = vsel %vm1425_vm15, %v1545_v48, %v1547_v63  ;;  %v1755_v46 = vpop.permute.xlu0 %1754  ;;  %vm1942_vm8 = vcmp.eq.s32.totalorder %v1758_v54, 1 }
 0x129   :  { %vm1678_vm2 = vcmp.eq.f32.partialorder %v9895_v9, %v9869_v51  ;;  %vm1677_vm3 = vcmp.eq.f32.partialorder %v9898_v60, %v9802_v55  ;;  %17336 = vst [vmem:[#allocation87_spill] sm:$0xff] %v9906_v39  ;;  %vm1679_vm4 = vcmp.eq.f32.partialorder %v9906_v39, %v9842_v52  ;;  %v9913_v2 = vsel %vm1425_vm15, %v1547_v63, %v1549_v17  ;;  %v1764_v33 = vpop.permute.xlu1 %1763 }
 0x12a   :  { %v1742_v49 = vsel %vm1678_vm2, 1, %v17161_v14  ;;  %v1741_v18 = vsel %vm1677_vm3, 1, %v17161_v14  ;;  %v1743_v22 = vsel %vm1679_vm4, 1, %v17161_v14  ;;  %v2004_v40 = vsel %vm1940_vm5, %v8801_v24, %v8751_v23 }
 0x12b   :  { %vm1680_vm7 = vcmp.eq.f32.partialorder %v9913_v2, %v9881_v42  ;;  %v2068_v48 = vmax.f32 %v8786_v10, %v2004_v40  ;;  %v2132_v55 = vadd.f32 %v2004_v40, %v8786_v10  ;;  %v2067_v52 = vmax.f32 %v8776_v61, %v2003_v21 }
 0x12c   :  { %1925 = vperm.xlu1 %8065, %v1742_v49   ;;  %1922 = vperm.xlu0 %8064, %v1741_v18   ;;  %v1744_v63 = vsel %vm1680_vm7, 1, %v17161_v14  ;;  %v2131_v39 = vadd.f32 %v2003_v21, %v8776_v61  ;;  %v9929_v24 = vsel %vm397_vm10, %v1232_v59, %v1296_v44  ;;  %vm1941_vm9 = vcmp.eq.s32.totalorder %v1755_v46, 1  ;;  %v1761_v49 = vpop.permute.xlu0 %1760 }
 0x12d   :  { %v9933_v15 = vsel %vm397_vm10, %v2068_v48, %v2132_v55  ;;  %v1551_v10 = vrot.slane %v9929_v24, 2  ;;  %v2006_v18 = vsel %vm1942_vm8, %v8844_v28, %v8751_v23  ;;  %v2005_v40 = vsel %vm1941_vm9, %v8798_v4, %v8751_v23 }
 0x12e   :  { %vm1944_vm1 = vcmp.eq.s32.totalorder %v1764_v33, 1  ;;  %vm1943_vm11 = vcmp.eq.s32.totalorder %v1761_v49, 1  ;;  %v17337_v59 = vrot.slane %v8776_v61, 2  ;;  %v2070_v54 = vmax.f32 %v8780_v5, %v2006_v18 }
 0x12f   :  { %v9946_v55 = vsel %vm1425_vm15, %v1549_v17, %v1551_v10  ;;  %v2134_v46 = vadd.f32 %v2006_v18, %v8780_v5  ;;  %v2069_v61 = vmax.f32 %v8763_v0, %v2005_v40  ;;  %vm2323_vm14 = vcmask 1043456   ;;  %v1770_v18 = vpop.permute.xlu1 %1769 }
 0x130   :  { %v9943_v44 = vsel %vm1425_vm15, %v1551_v10, %v17337_v59  ;;  %1931 = vperm.xlu1 %8065, %v1744_v63   ;;  %1928 = vperm.xlu0 %8064, %v1743_v22   ;;  %vm1681_vm13 = vcmp.eq.f32.partialorder %v9946_v55, %v9885_v37  ;;  %v2133_v5 = vadd.f32 %v2005_v40, %v8763_v0  ;;  %v1767_v22 = vpop.permute.xlu0 %1766  ;;  %v2325_v10 = vrot.slane %v9933_v15, 4 }
 0x131   :  { %vm1682_vm12 = vcmp.eq.f32.partialorder %v9943_v44, %v9929_v24  ;;  %v1745_v28 = vsel %vm1681_vm13, 1, %v17161_v14  ;;  %v9959_v17 = vsel %vm397_vm10, %v2070_v54, %v2134_v46  ;;  %v2008_v48 = vsel %vm1944_vm1, %v8879_v20, %v8751_v23 }
 0x132   :  { %v1746_v4 = vsel %vm1682_vm12, 1, %v17161_v14  ;;  %v2007_v21 = vsel %vm1943_vm11, %v8872_v11, %v8751_v23  ;;  %v9970_v63 = vsel %vm397_vm10, %v2067_v52, %v2131_v39  ;;  %v2072_v59 = vmax.f32 %v8835_v30, %v2008_v48 }
 0x133   :  { %v2136_v0 = vadd.f32 %v2008_v48, %v8835_v30  ;;  %v2071_v40 = vmax.f32 %v8812_v12, %v2007_v21  ;;  %v2135_v33 = vadd.f32 %v2007_v21, %v8812_v12  ;;  %v16683_v20 = vrot.slane %v9970_v63, 4 }
 0x134   :  { %1937 = vperm.xlu1 %8065, %v1746_v4   ;;  %1934 = vperm.xlu0 %8064, %v1745_v28   ;;  %vm1946_vm15 = vcmp.eq.s32.totalorder %v1770_v18, 1  ;;  %vm1945_vm2 = vcmp.eq.s32.totalorder %v1767_v22, 1  ;;  %v9980_v11 = vsel %vm397_vm10, %v2069_v61, %v2133_v5  ;;  %v1773_v4 = vpop.permute.xlu0 %1772  ;;  %v1776_v5 = vpop.permute.xlu1 %1775 }
 0x135   :  { %v9984_v52 = vsel %vm397_vm10, %v2072_v59, %v2136_v0  ;;  %v2010_v30 = vsel %vm1946_vm15, %v8907_v62, %v8751_v23  ;;  %v2009_v12 = vsel %vm1945_vm2, %v8902_v8, %v8751_v23  ;;  %v2327_v39 = vrot.slane %v9980_v11, 4 }
 0x136   :  { %17338 = vst [vmem:[#allocation88_spill] sm:$0xff] %v9984_v52  ;;  %v9994_v49 = vsel %vm2323_vm14, %v16683_v20, %v2325_v10  ;;  %v2074_v54 = vmax.f32 %v8859_v47, %v2010_v30  ;;  %v2138_v46 = vadd.f32 %v2010_v30, %v8859_v47  ;;  %v2073_v61 = vmax.f32 %v8839_v16, %v2009_v12 }
 0x137   :  { %vm2517_vm3 = vcmp.eq.f32.partialorder %v9994_v49, %v9970_v63  ;;  %v2137_v62 = vadd.f32 %v2009_v12, %v8839_v16  ;;  %v2329_v8 = vrot.slane %v9959_v17, 4  ;;  %v10004_v28 = vsel %vm2323_vm14, %v2325_v10, %v2327_v39 }
 0x138   :  { %v2581_v22 = vsel %vm2517_vm3, 1, %v17161_v14  ;;  %v10009_v48 = vsel %vm397_vm10, %v2074_v54, %v2138_v46  ;;  %vm2518_vm4 = vcmp.eq.f32.partialorder %v10004_v28, %v9933_v15  ;;  %vm1948_vm5 = vcmp.eq.s32.totalorder %v1776_v5, 1  ;;  %v1779_v0 = vpop.permute.xlu0 %1778 }
 0x139   :  { %17339 = vst [vmem:[#allocation89_spill] sm:$0xff] %v10009_v48  ;;  %2646 = vperm.xlu0 %8064, %v2581_v22   ;;  %v10014_v47 = vsel %vm2323_vm14, %v2327_v39, %v2329_v8  ;;  %v2582_v16 = vsel %vm2518_vm4, 1, %v17161_v14  ;;  %v2012_v21 = vsel %vm1948_vm5, %v8937_v36, %v8751_v23  ;;  %vm1947_vm6 = vcmp.eq.s32.totalorder %v1773_v4, 1  ;;  %v17342_v4 = vld [vmem:[#allocation56_spill] sm:$0xff] }
 0x13a   :  { %vm2519_vm7 = vcmp.eq.f32.partialorder %v10014_v47, %v9980_v11  ;;  %2649 = vperm.xlu1 %8065, %v2582_v16   ;;  %v2076_v10 = vmax.f32 %v8863_v26, %v2012_v21  ;;  %v2140_v18 = vadd.f32 %v2012_v21, %v8863_v26  ;;  %v2011_v59 = vsel %vm1947_vm6, %v8930_v3, %v8751_v23  ;;  %v1782_v3 = vpop.permute.xlu1 %1781  ;;  %v17345_v16 = vld [vmem:[#allocation58_spill] sm:$0xff] }
 0x13b   :  { %v2583_v30 = vsel %vm2519_vm7, 1, %v17161_v14  ;;  %v2075_v12 = vmax.f32 %v8867_v19, %v2011_v59  ;;  %v2139_v39 = vadd.f32 %v2011_v59, %v8867_v19  ;;  %v10030_v36 = vsel %vm397_vm10, %v2071_v40, %v2135_v33 }
 0x13c   :  { %17340 = vst [vmem:[#allocation90_spill] sm:$0xff] %v10030_v36  ;;  %v10034_v54 = vsel %vm397_vm10, %v2076_v10, %v2140_v18  ;;  %v2331_v26 = vrot.slane %v10030_v36, 4  ;;  %v2333_v46 = vrot.slane %v9984_v52, 4  ;;  %vm1949_vm8 = vcmp.eq.s32.totalorder %v1779_v0, 1  ;;  %v17346_v10 = vld [vmem:[#allocation52_spill] sm:$0xff] }
 0x13d   :  { %17341 = vst [vmem:[#allocation91_spill] sm:$0xff] %v10034_v54  ;;  %2652 = vperm.xlu0 %8064, %v2583_v30   ;;  %vm1950_vm9 = vcmp.eq.s32.totalorder %v1782_v3, 1  ;;  %v2013_v5 = vsel %vm1949_vm8, %v17342_v4, %v8751_v23  ;;  %v10042_v19 = vsel %vm397_vm10, %v2073_v61, %v2137_v62  ;;  %v2337_v40 = vrot.slane %v10009_v48, 4  ;;  %v17347_v61 = vld [vmem:[#allocation54_spill] sm:$0xff]  ;;  %v1785_v4 = vpop.permute.xlu0 %1784 }
 0x13e   :  { %17343 = vst [vmem:[#allocation56_spill] sm:$0xff] %v10042_v19  ;;  %v10046_v33 = vsel %vm2323_vm14, %v2331_v26, %v2333_v46  ;;  %v10049_v22 = vsel %vm2323_vm14, %v2329_v8, %v2331_v26  ;;  %v2014_v21 = vsel %vm1950_vm9, %v17345_v16, %v8751_v23  ;;  %v2077_v18 = vmax.f32 %v17346_v10, %v2013_v5  ;;  %v1788_v3 = vpop.permute.xlu1 %1787 }
 0x13f   :  { %17344 = vst [vmem:[#allocation92_spill] sm:$0xff] %v10046_v33  ;;  %vm2521_vm1 = vcmp.eq.f32.partialorder %v10046_v33, %v10030_v36  ;;  %vm2520_vm11 = vcmp.eq.f32.partialorder %v10049_v22, %v9959_v17  ;;  %v2078_v62 = vmax.f32 %v17347_v61, %v2014_v21  ;;  %v2142_v59 = vadd.f32 %v2014_v21, %v17347_v61 }
 0x140   :  { %v2585_v0 = vsel %vm2521_vm1, 1, %v17161_v14  ;;  %v2584_v8 = vsel %vm2520_vm11, 1, %v17161_v14  ;;  %v2141_v30 = vadd.f32 %v2013_v5, %v17346_v10  ;;  %v2335_v26 = vrot.slane %v10042_v19, 4  ;;  %v17352_v10 = vld [vmem:[#allocation8_spill] sm:$0xff] }
 0x141   :  { %2658 = vperm.xlu0 %8064, %v2585_v0   ;;  %2655 = vperm.xlu1 %8065, %v2584_v8   ;;  %v10066_v16 = vsel %vm397_vm10, %v2078_v62, %v2142_v59  ;;  %vm1952_vm12 = vcmp.eq.s32.totalorder %v1788_v3, 1  ;;  %vm1951_vm13 = vcmp.eq.s32.totalorder %v1785_v4, 1  ;;  %v10070_v21 = vsel %vm397_vm10, %v2075_v12, %v2139_v39  ;;  %v17353_v8 = vld [vmem:[#allocation60_spill] sm:$0xff]  ;;  %v17354_v12 = vld [vmem:[#allocation57_spill] sm:$0xff] }
 0x142   :  { %17348 = vst [vmem:[#allocation58_spill] sm:$0xff] %v10066_v16  ;;  %17349 = vst [vmem:[#allocation52_spill] sm:$0xff] %v10070_v21  ;;  %v10073_v61 = vsel %vm2323_vm14, %v2335_v26, %v2337_v40  ;;  %v10076_v5 = vsel %vm2323_vm14, %v2333_v46, %v2335_v26  ;;  %v2016_v0 = vsel %vm1952_vm12, %v17352_v10, %v8751_v23  ;;  %v17355_v26 = vld [vmem:[#allocation53_spill] sm:$0xff] }
 0x143   :  { %17350 = vst [vmem:[#allocation54_spill] sm:$0xff] %v10073_v61  ;;  %17351 = vst [vmem:[#allocation93_spill] sm:$0xff] %v10076_v5  ;;  %v2015_v20 = vsel %vm1951_vm13, %v17353_v8, %v8751_v23  ;;  %vm2523_vm15 = vcmp.eq.f32.partialorder %v10073_v61, %v10042_v19  ;;  %vm2522_vm2 = vcmp.eq.f32.partialorder %v10076_v5, %v9984_v52  ;;  %v2339_v8 = vrot.slane %v10070_v21, 4  ;;  %v1794_v61 = vpop.permute.xlu1 %1793  ;;  %v17361_v52 = vld [vmem:[#allocation61_spill] sm:$0xff] }
 0x144   :  { %v2080_v39 = vmax.f32 %v17354_v12, %v2016_v0  ;;  %v2144_v62 = vadd.f32 %v2016_v0, %v17354_v12  ;;  %v2587_v59 = vsel %vm2523_vm15, 1, %v17161_v14  ;;  %v2586_v46 = vsel %vm2522_vm2, 1, %v17161_v14  ;;  %v1791_v0 = vpop.permute.xlu0 %1790 }
 0x145   :  { %v2079_v3 = vmax.f32 %v17355_v26, %v2015_v20  ;;  %v2143_v4 = vadd.f32 %v2015_v20, %v17355_v26  ;;  %2664 = vperm.xlu0 %8064, %v2587_v59   ;;  %2661 = vperm.xlu1 %8065, %v2586_v46   ;;  %v2341_v19 = vrot.slane %v10034_v54, 4  ;;  %v10100_v12 = vsel %vm397_vm10, %v2077_v18, %v2141_v30  ;;  %v17362_v18 = vld [vmem:[#allocation12_spill] sm:$0xff] }
 0x146   :  { %v10094_v10 = vsel %vm397_vm10, %v2080_v39, %v2144_v62  ;;  %17357 = vst [vmem:[#allocation60_spill] sm:$0xff] %v10100_v12  ;;  %vm1954_vm3 = vcmp.eq.s32.totalorder %v1794_v61, 1  ;;  %vm1953_vm4 = vcmp.eq.s32.totalorder %v1791_v0, 1  ;;  %v2343_v20 = vrot.slane %v10100_v12, 4  ;;  %v17360_v62 = vld [vmem:[#allocation9_spill] sm:$0xff] }
 0x147   :  { %17356 = vst [vmem:[#allocation8_spill] sm:$0xff] %v10094_v10  ;;  %v2345_v59 = vrot.slane %v10066_v16, 4  ;;  %v10105_v46 = vsel %vm2323_vm14, %v2339_v8, %v2341_v19  ;;  %v10108_v39 = vsel %vm2323_vm14, %v2337_v40, %v2339_v8  ;;  %v2018_v26 = vsel %vm1954_vm3, %v17360_v62, %v8751_v23  ;;  %v17363_v8 = vld [vmem:[#allocation55_spill] sm:$0xff]  ;;  %v1800_v33 = vpop.permute.xlu1 %1799 }
 0x148   :  { %17358 = vst [vmem:[#allocation57_spill] sm:$0xff] %v10105_v46  ;;  %17359 = vst [vmem:[#allocation53_spill] sm:$0xff] %v10108_v39  ;;  %v2017_v36 = vsel %vm1953_vm4, %v17361_v52, %v8751_v23  ;;  %vm2525_vm5 = vcmp.eq.f32.partialorder %v10105_v46, %v10070_v21  ;;  %vm2524_vm6 = vcmp.eq.f32.partialorder %v10108_v39, %v10009_v48  ;;  %v1797_v52 = vpop.permute.xlu0 %1796  ;;  %vm1956_vm7 = vcmp.eq.s32.totalorder %v1800_v33, 1  ;;  %v17369_v33 = vld [vmem:[#allocation13_spill] sm:$0xff] }
 0x149   :  { %v2082_v30 = vmax.f32 %v17362_v18, %v2018_v26  ;;  %v2146_v61 = vadd.f32 %v2018_v26, %v17362_v18  ;;  %v2589_v0 = vsel %vm2525_vm5, 1, %v17161_v14  ;;  %v2588_v40 = vsel %vm2524_vm6, 1, %v17161_v14 }
 0x14a   :  { %v2081_v5 = vmax.f32 %v17363_v8, %v2017_v36  ;;  %v2145_v62 = vadd.f32 %v2017_v36, %v17363_v8  ;;  %2670 = vperm.xlu0 %8064, %v2589_v0   ;;  %2667 = vperm.xlu1 %8065, %v2588_v40   ;;  %v10129_v46 = vsel %vm2323_vm14, %v2343_v20, %v2345_v59  ;;  %v17367_v36 = vld [vmem:[#allocation18_spill] sm:$0xff]  ;;  %vm1955_vm1 = vcmp.eq.s32.totalorder %v1797_v52, 1 }
 0x14b   :  { %v10126_v21 = vsel %vm397_vm10, %v2082_v30, %v2146_v61  ;;  %17365 = vst [vmem:[#allocation61_spill] sm:$0xff] %v10129_v46  ;;  %v10132_v26 = vsel %vm2323_vm14, %v2341_v19, %v2343_v20  ;;  %vm2527_vm8 = vcmp.eq.f32.partialorder %v10129_v46, %v10100_v12  ;;  %v2020_v18 = vsel %vm1956_vm7, %v17367_v36, %v8751_v23  ;;  %v17368_v0 = vld [vmem:[#allocation10_spill] sm:$0xff] }
 0x14c   :  { %17364 = vst [vmem:[#allocation9_spill] sm:$0xff] %v10126_v21  ;;  %17366 = vst [vmem:[#allocation12_spill] sm:$0xff] %v10132_v26  ;;  %vm2526_vm9 = vcmp.eq.f32.partialorder %v10132_v26, %v10034_v54  ;;  %v2591_v30 = vsel %vm2527_vm8, 1, %v17161_v14  ;;  %v2084_v40 = vmax.f32 %v17368_v0, %v2020_v18  ;;  %v2148_v19 = vadd.f32 %v2020_v18, %v17368_v0  ;;  %v17373_v0 = vld [vmem:[#allocation59_spill] sm:$0xff] }
 0x14d   :  { %v2590_v61 = vsel %vm2526_vm9, 1, %v17161_v14  ;;  %v2019_v20 = vsel %vm1955_vm1, %v17369_v33, %v8751_v23  ;;  %v10148_v8 = vsel %vm397_vm10, %v2079_v3, %v2143_v4  ;;  %v2349_v12 = vrot.slane %v10094_v10, 4  ;;  %v1806_v3 = vpop.permute.xlu1 %1805  ;;  %v1803_v4 = vpop.permute.xlu0 %1802 }
 0x14e   :  { %17370 = vst [vmem:[#allocation55_spill] sm:$0xff] %v10148_v8  ;;  %v10153_v52 = vsel %vm397_vm10, %v2081_v5, %v2145_v62  ;;  %2676 = vperm.xlu0 %8064, %v2591_v30   ;;  %2673 = vperm.xlu1 %8065, %v2590_v61   ;;  %v10157_v36 = vsel %vm397_vm10, %v2084_v40, %v2148_v19  ;;  %v2347_v18 = vrot.slane %v10148_v8, 4  ;;  %v2353_v26 = vrot.slane %v10126_v21, 4  ;;  %v17376_v30 = vld [vmem:[#allocation17_spill] sm:$0xff]  ;;  %v17377_v40 = vld [vmem:[#allocation14_spill] sm:$0xff] }
 0x14f   :  { %17371 = vst [vmem:[#allocation18_spill] sm:$0xff] %v10153_v52  ;;  %17372 = vst [vmem:[#allocation10_spill] sm:$0xff] %v10157_v36  ;;  %v2083_v33 = vmax.f32 %v17373_v0, %v2019_v20  ;;  %v2147_v46 = vadd.f32 %v2019_v20, %v17373_v0  ;;  %v2351_v54 = vrot.slane %v10153_v52, 4  ;;  %vm1958_vm11 = vcmp.eq.s32.totalorder %v1806_v3, 1 }
 0x150   :  { %v10165_v5 = vsel %vm2323_vm14, %v2347_v18, %v2349_v12  ;;  %v10168_v62 = vsel %vm2323_vm14, %v2345_v59, %v2347_v18  ;;  %vm1957_vm12 = vcmp.eq.s32.totalorder %v1803_v4, 1  ;;  %v2022_v61 = vsel %vm1958_vm11, %v17376_v30, %v8751_v23  ;;  %v17378_v59 = vld [vmem:[#allocation11_spill] sm:$0xff] }
 0x151   :  { %17374 = vst [vmem:[#allocation13_spill] sm:$0xff] %v10165_v5  ;;  %17375 = vst [vmem:[#allocation59_spill] sm:$0xff] %v10168_v62  ;;  %vm2529_vm13 = vcmp.eq.f32.partialorder %v10165_v5, %v10148_v8  ;;  %vm2528_vm15 = vcmp.eq.f32.partialorder %v10168_v62, %v10066_v16  ;;  %v2021_v19 = vsel %vm1957_vm12, %v17377_v40, %v8751_v23  ;;  %v17379_v4 = vld [vmem:[#allocation15_spill] sm:$0xff]  ;;  %v1812_v30 = vpop.permute.xlu1 %1811  ;;  %v1809_v62 = vpop.permute.xlu0 %1808  ;;  %v2357_v40 = vrot.slane %v10157_v36, 4 }
 0x152   :  { %v2593_v20 = vsel %vm2529_vm13, 1, %v17161_v14  ;;  %v2592_v0 = vsel %vm2528_vm15, 1, %v17161_v14  ;;  %v2086_v18 = vmax.f32 %v17378_v59, %v2022_v61  ;;  %v2150_v3 = vadd.f32 %v2022_v61, %v17378_v59 }
 0x153   :  { %2682 = vperm.xlu0 %8064, %v2593_v20   ;;  %2679 = vperm.xlu1 %8065, %v2592_v0   ;;  %v2085_v8 = vmax.f32 %v17379_v4, %v2021_v19  ;;  %v2149_v16 = vadd.f32 %v2021_v19, %v17379_v4  ;;  %v10185_v5 = vsel %vm2323_vm14, %v2351_v54, %v2353_v26  ;;  %vm1960_vm3 = vcmp.eq.s32.totalorder %v1812_v30, 1  ;;  %v17383_v20 = vld [vmem:[#allocation20_spill] sm:$0xff] }
 0x154   :  { %17380 = vst [vmem:[#allocation17_spill] sm:$0xff] %v10185_v5  ;;  %v10190_v48 = vsel %vm397_vm10, %v2086_v18, %v2150_v3  ;;  %vm2531_vm2 = vcmp.eq.f32.partialorder %v10185_v5, %v10153_v52  ;;  %v10195_v61 = vsel %vm2323_vm14, %v2349_v12, %v2351_v54  ;;  %v2024_v0 = vsel %vm1960_vm3, %v17383_v20, %v8751_v23  ;;  %v17384_v18 = vld [vmem:[#allocation21_spill] sm:$0xff]  ;;  %v17385_v52 = vld [vmem:[#allocation24_spill] sm:$0xff] }
 0x155   :  { %17381 = vst [vmem:[#allocation14_spill] sm:$0xff] %v10190_v48  ;;  %17382 = vst [vmem:[#allocation11_spill] sm:$0xff] %v10195_v61  ;;  %v2595_v19 = vsel %vm2531_vm2, 1, %v17161_v14  ;;  %vm2530_vm4 = vcmp.eq.f32.partialorder %v10195_v61, %v10094_v10  ;;  %vm1959_vm5 = vcmp.eq.s32.totalorder %v1809_v62, 1  ;;  %v2088_v3 = vmax.f32 %v17384_v18, %v2024_v0  ;;  %v17386_v12 = vld [vmem:[#allocation16_spill] sm:$0xff]  ;;  %v1818_v62 = vpop.permute.xlu1 %1817  ;;  %v1815_v20 = vpop.permute.xlu0 %1814 }
 0x156   :  { %v2594_v59 = vsel %vm2530_vm4, 1, %v17161_v14  ;;  %v2152_v4 = vadd.f32 %v2024_v0, %v17384_v18  ;;  %v2023_v54 = vsel %vm1959_vm5, %v17385_v52, %v8751_v23  ;;  %v10211_v10 = vsel %vm397_vm10, %v2083_v33, %v2147_v46  ;;  %v17390_v18 = vld [vmem:[#allocation64_spill] sm:$0xff] }
 0x157   :  { %2688 = vperm.xlu0 %8064, %v2595_v19   ;;  %2685 = vperm.xlu1 %8065, %v2594_v59   ;;  %v2087_v30 = vmax.f32 %v17386_v12, %v2023_v54  ;;  %v2151_v5 = vadd.f32 %v2023_v54, %v17386_v12  ;;  %17387 = vst [vmem:[#allocation15_spill] sm:$0xff] %v10211_v10  ;;  %v2361_v61 = vrot.slane %v10190_v48, 4  ;;  %v2355_v52 = vrot.slane %v10211_v10, 4  ;;  %v17389_v19 = vld [vmem:[#allocation63_spill] sm:$0xff]  ;;  %v17395_v12 = vld [vmem:[#allocation25_spill] sm:$0xff] }
 0x158   :  { %v10216_v0 = vsel %vm397_vm10, %v2088_v3, %v2152_v4  ;;  %vm1962_vm6 = vcmp.eq.s32.totalorder %v1818_v62, 1  ;;  %vm1961_vm7 = vcmp.eq.s32.totalorder %v1815_v20, 1  ;;  %v10225_v46 = vsel %vm397_vm10, %v2085_v8, %v2149_v16  ;;  %v17396_v16 = vld [vmem:[#allocation19_spill] sm:$0xff] }
 0x159   :  { %17388 = vst [vmem:[#allocation20_spill] sm:$0xff] %v10216_v0  ;;  %v2026_v59 = vsel %vm1962_vm6, %v17389_v19, %v8751_v23  ;;  %v2025_v54 = vsel %vm1961_vm7, %v17390_v18, %v8751_v23  ;;  %17391 = vst [vmem:[#allocation21_spill] sm:$0xff] %v10225_v46  ;;  %v10229_v33 = vsel %vm397_vm10, %v2087_v30, %v2151_v5  ;;  %v1824_v30 = vpop.permute.xlu1 %1823  ;;  %v1821_v19 = vpop.permute.xlu0 %1820 }
 0x15a   :  { %17392 = vst [vmem:[#allocation24_spill] sm:$0xff] %v10229_v33  ;;  %v10232_v3 = vsel %vm2323_vm14, %v2355_v52, %v2357_v40  ;;  %v10235_v4 = vsel %vm2323_vm14, %v2353_v26, %v2355_v52  ;;  %v2090_v62 = vmax.f32 %v17395_v12, %v2026_v59  ;;  %v2154_v20 = vadd.f32 %v2026_v59, %v17395_v12 }
 0x15b   :  { %17393 = vst [vmem:[#allocation16_spill] sm:$0xff] %v10232_v3  ;;  %17394 = vst [vmem:[#allocation63_spill] sm:$0xff] %v10235_v4  ;;  %vm2533_vm8 = vcmp.eq.f32.partialorder %v10232_v3, %v10211_v10  ;;  %vm2532_vm9 = vcmp.eq.f32.partialorder %v10235_v4, %v10126_v21  ;;  %v2089_v8 = vmax.f32 %v17396_v16, %v2025_v54  ;;  %v2359_v59 = vrot.slane %v10225_v46, 4  ;;  %v17400_v21 = vld [vmem:[#allocation27_spill] sm:$0xff] }
 0x15c   :  { %v2153_v5 = vadd.f32 %v2025_v54, %v17396_v16  ;;  %v2597_v18 = vsel %vm2533_vm8, 1, %v17161_v14  ;;  %v2596_v26 = vsel %vm2532_vm9, 1, %v17161_v14  ;;  %v10249_v52 = vsel %vm397_vm10, %v2090_v62, %v2154_v20  ;;  %v17401_v20 = vld [vmem:[#allocation28_spill] sm:$0xff] }
 0x15d   :  { %17397 = vst [vmem:[#allocation64_spill] sm:$0xff] %v10249_v52  ;;  %2694 = vperm.xlu0 %8064, %v2597_v18   ;;  %2691 = vperm.xlu1 %8065, %v2596_v26   ;;  %vm1964_vm1 = vcmp.eq.s32.totalorder %v1824_v30, 1  ;;  %vm1963_vm11 = vcmp.eq.s32.totalorder %v1821_v19, 1  ;;  %v2363_v12 = vrot.slane %v10229_v33, 4  ;;  %v2365_v54 = vrot.slane %v10216_v0, 4  ;;  %v17402_v30 = vld [vmem:[#allocation26_spill] sm:$0xff] }
 0x15e   :  { %v10255_v16 = vsel %vm2323_vm14, %v2359_v59, %v2361_v61  ;;  %v10258_v10 = vsel %vm2323_vm14, %v2357_v40, %v2359_v59  ;;  %v2028_v62 = vsel %vm1964_vm1, %v17400_v21, %v8751_v23  ;;  %v2027_v3 = vsel %vm1963_vm11, %v17401_v20, %v8751_v23  ;;  %v17403_v59 = vld [vmem:[#allocation22_spill] sm:$0xff] }
 0x15f   :  { %17398 = vst [vmem:[#allocation25_spill] sm:$0xff] %v10255_v16  ;;  %17399 = vst [vmem:[#allocation19_spill] sm:$0xff] %v10258_v10  ;;  %vm2535_vm12 = vcmp.eq.f32.partialorder %v10255_v16, %v10225_v46  ;;  %vm2534_vm13 = vcmp.eq.f32.partialorder %v10258_v10, %v10157_v36  ;;  %v2092_v19 = vmax.f32 %v17402_v30, %v2028_v62  ;;  %v2369_v16 = vrot.slane %v10249_v52, 4 }
 0x160   :  { %v2156_v18 = vadd.f32 %v2028_v62, %v17402_v30  ;;  %v2599_v26 = vsel %vm2535_vm12, 1, %v17161_v14  ;;  %v2598_v40 = vsel %vm2534_vm13, 1, %v17161_v14  ;;  %v2091_v4 = vmax.f32 %v17403_v59, %v2027_v3  ;;  %v1830_v62 = vpop.permute.xlu1 %1829  ;;  %v1827_v30 = vpop.permute.xlu0 %1826 }
 0x161   :  { %v2155_v21 = vadd.f32 %v2027_v3, %v17403_v59  ;;  %2700 = vperm.xlu0 %8064, %v2599_v26   ;;  %2697 = vperm.xlu1 %8065, %v2598_v40   ;;  %v10279_v46 = vsel %vm2323_vm14, %v2363_v12, %v2365_v54  ;;  %v10282_v36 = vsel %vm2323_vm14, %v2361_v61, %v2363_v12  ;;  %vm1966_vm3 = vcmp.eq.s32.totalorder %v1830_v62, 1  ;;  %v17408_v12 = vld [vmem:[#allocation66_spill] sm:$0xff] }
 0x162   :  { %v10276_v20 = vsel %vm397_vm10, %v2092_v19, %v2156_v18  ;;  %17405 = vst [vmem:[#allocation28_spill] sm:$0xff] %v10279_v46  ;;  %17406 = vst [vmem:[#allocation26_spill] sm:$0xff] %v10282_v36  ;;  %vm2537_vm15 = vcmp.eq.f32.partialorder %v10279_v46, %v10229_v33  ;;  %vm2536_vm2 = vcmp.eq.f32.partialorder %v10282_v36, %v10190_v48  ;;  %vm1965_vm4 = vcmp.eq.s32.totalorder %v1827_v30, 1  ;;  %v17407_v18 = vld [vmem:[#allocation32_spill] sm:$0xff]  ;;  %v17409_v40 = vld [vmem:[#allocation30_spill] sm:$0xff] }
 0x163   :  { %17404 = vst [vmem:[#allocation27_spill] sm:$0xff] %v10276_v20  ;;  %v2601_v3 = vsel %vm2537_vm15, 1, %v17161_v14  ;;  %v2600_v19 = vsel %vm2536_vm2, 1, %v17161_v14  ;;  %v2030_v61 = vsel %vm1966_vm3, %v17407_v18, %v8751_v23  ;;  %v2029_v26 = vsel %vm1965_vm4, %v17408_v12, %v8751_v23  ;;  %v17410_v33 = vld [vmem:[#allocation23_spill] sm:$0xff] }
 0x164   :  { %v2094_v59 = vmax.f32 %v17409_v40, %v2030_v61  ;;  %v2158_v10 = vadd.f32 %v2030_v61, %v17409_v40  ;;  %v2093_v46 = vmax.f32 %v17410_v33, %v2029_v26  ;;  %v2157_v48 = vadd.f32 %v2029_v26, %v17410_v33  ;;  %v1836_v30 = vpop.permute.xlu1 %1835  ;;  %v1833_v36 = vpop.permute.xlu0 %1832  ;;  %v17419_v40 = vld [vmem:[#allocation31_spill] sm:$0xff] }
 0x165   :  { %2706 = vperm.xlu0 %8064, %v2601_v3   ;;  %2703 = vperm.xlu1 %8065, %v2600_v19   ;;  %v10301_v62 = vsel %vm397_vm10, %v2089_v8, %v2153_v5  ;;  %v10305_v18 = vsel %vm397_vm10, %v2091_v4, %v2155_v21  ;;  %v2373_v12 = vrot.slane %v10276_v20, 4  ;;  %vm1968_vm5 = vcmp.eq.s32.totalorder %v1836_v30, 1  ;;  %v17414_v3 = vld [vmem:[#allocation68_spill] sm:$0xff]  ;;  %v17415_v5 = vld [vmem:[#allocation69_spill] sm:$0xff]  ;;  %v17420_v30 = vld [vmem:[#allocation62_spill] sm:$0xff] }
 0x166   :  { %17411 = vst [vmem:[#allocation22_spill] sm:$0xff] %v10301_v62  ;;  %17412 = vst [vmem:[#allocation32_spill] sm:$0xff] %v10305_v18  ;;  %v10310_v61 = vsel %vm397_vm10, %v2094_v59, %v2158_v10  ;;  %v2367_v33 = vrot.slane %v10301_v62, 4  ;;  %vm1967_vm6 = vcmp.eq.s32.totalorder %v1833_v36, 1  ;;  %v2032_v8 = vsel %vm1968_vm5, %v17414_v3, %v8751_v23 }
 0x167   :  { %17413 = vst [vmem:[#allocation66_spill] sm:$0xff] %v10310_v61  ;;  %v2031_v19 = vsel %vm1967_vm6, %v17415_v5, %v8751_v23  ;;  %v2371_v26 = vrot.slane %v10305_v18, 4  ;;  %v10320_v4 = vsel %vm397_vm10, %v2093_v46, %v2157_v48  ;;  %v2096_v36 = vmax.f32 %v17419_v40, %v2032_v8 }
 0x168   :  { %17416 = vst [vmem:[#allocation30_spill] sm:$0xff] %v10320_v4  ;;  %v10323_v21 = vsel %vm2323_vm14, %v2367_v33, %v2369_v16  ;;  %v10326_v10 = vsel %vm2323_vm14, %v2365_v54, %v2367_v33  ;;  %v2160_v59 = vadd.f32 %v2032_v8, %v17419_v40  ;;  %v2095_v3 = vmax.f32 %v17420_v30, %v2031_v19  ;;  %v1842_v46 = vpop.permute.xlu1 %1841  ;;  %v1839_v5 = vpop.permute.xlu0 %1838 }
 0x169   :  { %17417 = vst [vmem:[#allocation23_spill] sm:$0xff] %v10323_v21  ;;  %17418 = vst [vmem:[#allocation68_spill] sm:$0xff] %v10326_v10  ;;  %vm2539_vm7 = vcmp.eq.f32.partialorder %v10323_v21, %v10301_v62  ;;  %vm2538_vm8 = vcmp.eq.f32.partialorder %v10326_v10, %v10216_v0  ;;  %v2159_v48 = vadd.f32 %v2031_v19, %v17420_v30  ;;  %vm1970_vm1 = vcmp.eq.s32.totalorder %v1842_v46, 1  ;;  %v17425_v30 = vld [vmem:[#allocation72_spill] sm:$0xff]  ;;  %v17426_v62 = vld [vmem:[#allocation33_spill] sm:$0xff] }
 0x16a   :  { %v2603_v39 = vsel %vm2539_vm7, 1, %v17161_v14  ;;  %v2602_v54 = vsel %vm2538_vm8, 1, %v17161_v14  ;;  %v10340_v33 = vsel %vm397_vm10, %v2096_v36, %v2160_v59  ;;  %v10343_v8 = vsel %vm2323_vm14, %v2371_v26, %v2373_v12  ;;  %v17424_v36 = vld [vmem:[#allocation71_spill] sm:$0xff] }
 0x16b   :  { %17421 = vst [vmem:[#allocation69_spill] sm:$0xff] %v10340_v33  ;;  %17422 = vst [vmem:[#allocation31_spill] sm:$0xff] %v10343_v8  ;;  %2712 = vperm.xlu0 %8064, %v2603_v39   ;;  %2709 = vperm.xlu1 %8065, %v2602_v54   ;;  %vm2541_vm9 = vcmp.eq.f32.partialorder %v10343_v8, %v10305_v18  ;;  %v10348_v19 = vsel %vm2323_vm14, %v2369_v16, %v2371_v26  ;;  %vm1969_vm11 = vcmp.eq.s32.totalorder %v1839_v5, 1  ;;  %v17427_v26 = vld [vmem:[#allocation29_spill] sm:$0xff] }
 0x16c   :  { %17423 = vst [vmem:[#allocation62_spill] sm:$0xff] %v10348_v19  ;;  %v2605_v40 = vsel %vm2541_vm9, 1, %v17161_v14  ;;  %vm2540_vm12 = vcmp.eq.f32.partialorder %v10348_v19, %v10249_v52  ;;  %v2034_v59 = vsel %vm1970_vm1, %v17424_v36, %v8751_v23  ;;  %v2033_v39 = vsel %vm1969_vm11, %v17425_v30, %v8751_v23  ;;  %v1848_v5 = vpop.permute.xlu1 %1847  ;;  %v1845_v8 = vpop.permute.xlu0 %1844  ;;  %v17429_v30 = vld [vmem:[#allocation35_spill] sm:$0xff] }
 0x16d   :  { %v2604_v54 = vsel %vm2540_vm12, 1, %v17161_v14  ;;  %v2098_v18 = vmax.f32 %v17426_v62, %v2034_v59  ;;  %v2162_v16 = vadd.f32 %v2034_v59, %v17426_v62  ;;  %v2097_v46 = vmax.f32 %v17427_v26, %v2033_v39 }
 0x16e   :  { %v2161_v0 = vadd.f32 %v2033_v39, %v17427_v26  ;;  %v2375_v52 = vrot.slane %v10320_v4, 4  ;;  %v2377_v19 = vrot.slane %v10310_v61, 4  ;;  %vm1972_vm13 = vcmp.eq.s32.totalorder %v1848_v5, 1 }
 0x16f   :  { %2718 = vperm.xlu0 %8064, %v2605_v40   ;;  %2715 = vperm.xlu1 %8065, %v2604_v54   ;;  %v10366_v36 = vsel %vm397_vm10, %v2098_v18, %v2162_v16  ;;  %v2036_v62 = vsel %vm1972_vm13, %v17429_v30, %v8751_v23  ;;  %vm1971_vm15 = vcmp.eq.s32.totalorder %v1845_v8, 1  ;;  %v10372_v59 = vsel %vm397_vm10, %v2095_v3, %v2159_v48  ;;  %v17433_v40 = vld [vmem:[#allocation34_spill] sm:$0xff]  ;;  %v17434_v18 = vld [vmem:[#allocation36_spill] sm:$0xff]  ;;  %v17436_v16 = vld [vmem:[#allocation65_spill] sm:$0xff] }
 0x170   :  { %17428 = vst [vmem:[#allocation71_spill] sm:$0xff] %v10366_v36  ;;  %17430 = vst [vmem:[#allocation72_spill] sm:$0xff] %v10372_v59  ;;  %v10375_v39 = vsel %vm2323_vm14, %v2375_v52, %v2377_v19  ;;  %v10378_v26 = vsel %vm2323_vm14, %v2373_v12, %v2375_v52  ;;  %v2100_v54 = vmax.f32 %v17433_v40, %v2036_v62  ;;  %v2379_v48 = vrot.slane %v10372_v59, 4 }
 0x171   :  { %17431 = vst [vmem:[#allocation33_spill] sm:$0xff] %v10375_v39  ;;  %17432 = vst [vmem:[#allocation29_spill] sm:$0xff] %v10378_v26  ;;  %v2164_v5 = vadd.f32 %v2036_v62, %v17433_v40  ;;  %vm2543_vm2 = vcmp.eq.f32.partialorder %v10375_v39, %v10320_v4  ;;  %vm2542_vm3 = vcmp.eq.f32.partialorder %v10378_v26, %v10276_v20  ;;  %v2381_v40 = vrot.slane %v10340_v33, 4  ;;  %v1854_v4 = vpop.permute.xlu1 %1853  ;;  %v1851_v20 = vpop.permute.xlu0 %1850 }
 0x172   :  { %v2035_v3 = vsel %vm1971_vm15, %v17434_v18, %v8751_v23  ;;  %v2607_v8 = vsel %vm2543_vm2, 1, %v17161_v14  ;;  %v2606_v52 = vsel %vm2542_vm3, 1, %v17161_v14  ;;  %v10399_v18 = vsel %vm2323_vm14, %v2377_v19, %v2379_v48  ;;  %v17440_v19 = vld [vmem:[#allocation40_spill] sm:$0xff] }
 0x173   :  { %v10393_v12 = vsel %vm397_vm10, %v2100_v54, %v2164_v5  ;;  %v2099_v30 = vmax.f32 %v17436_v16, %v2035_v3  ;;  %2724 = vperm.xlu0 %8064, %v2607_v8   ;;  %2721 = vperm.xlu1 %8065, %v2606_v52   ;;  %v2163_v62 = vadd.f32 %v2035_v3, %v17436_v16  ;;  %vm1974_vm5 = vcmp.eq.s32.totalorder %v1854_v4, 1  ;;  %v17441_v52 = vld [vmem:[#allocation74_spill] sm:$0xff]  ;;  %v17443_v4 = vld [vmem:[#allocation67_spill] sm:$0xff] }
 0x174   :  { %17435 = vst [vmem:[#allocation35_spill] sm:$0xff] %v10393_v12  ;;  %17437 = vst [vmem:[#allocation34_spill] sm:$0xff] %v10399_v18  ;;  %v10403_v39 = vsel %vm397_vm10, %v2097_v46, %v2161_v0  ;;  %vm2544_vm4 = vcmp.eq.f32.partialorder %v10399_v18, %v10310_v61  ;;  %vm1973_vm6 = vcmp.eq.s32.totalorder %v1851_v20, 1  ;;  %v10409_v5 = vsel %vm2323_vm14, %v2379_v48, %v2381_v40  ;;  %v17442_v0 = vld [vmem:[#allocation38_spill] sm:$0xff] }
 0x175   :  { %17438 = vst [vmem:[#allocation36_spill] sm:$0xff] %v10403_v39  ;;  %v2383_v54 = vrot.slane %v10403_v39, 4  ;;  %17439 = vst [vmem:[#allocation65_spill] sm:$0xff] %v10409_v5  ;;  %v2608_v3 = vsel %vm2544_vm4, 1, %v17161_v14  ;;  %v2038_v8 = vsel %vm1974_vm5, %v17440_v19, %v8751_v23  ;;  %v2037_v16 = vsel %vm1973_vm6, %v17441_v52, %v8751_v23  ;;  %v1860_v52 = vpop.permute.xlu1 %1859  ;;  %v1857_v21 = vpop.permute.xlu0 %1856 }
 0x176   :  { %vm2545_vm7 = vcmp.eq.f32.partialorder %v10409_v5, %v10372_v59  ;;  %v2102_v46 = vmax.f32 %v17442_v0, %v2038_v8  ;;  %v2166_v20 = vadd.f32 %v2038_v8, %v17442_v0  ;;  %v2101_v61 = vmax.f32 %v17443_v4, %v2037_v16  ;;  %v17448_v0 = vld [vmem:[#allocation77_spill] sm:$0xff] }
 0x177   :  { %v2609_v48 = vsel %vm2545_vm7, 1, %v17161_v14  ;;  %2727 = vperm.xlu1 %8065, %v2608_v3   ;;  %v2165_v18 = vadd.f32 %v2037_v16, %v17443_v4  ;;  %v2385_v26 = vrot.slane %v10366_v36, 4  ;;  %v10425_v19 = vsel %vm2323_vm14, %v2381_v40, %v2383_v54  ;;  %v17447_v40 = vld [vmem:[#allocation76_spill] sm:$0xff] }
 0x178   :  { %17444 = vst [vmem:[#allocation40_spill] sm:$0xff] %v10425_v19  ;;  %2730 = vperm.xlu0 %8064, %v2609_v48   ;;  %v10429_v59 = vsel %vm397_vm10, %v2102_v46, %v2166_v20  ;;  %vm2546_vm8 = vcmp.eq.f32.partialorder %v10425_v19, %v10340_v33  ;;  %vm1976_vm9 = vcmp.eq.s32.totalorder %v1860_v52, 1  ;;  %vm1975_vm1 = vcmp.eq.s32.totalorder %v1857_v21, 1  ;;  %v17449_v46 = vld [vmem:[#allocation39_spill] sm:$0xff]  ;;  %v17450_v52 = vld [vmem:[#allocation70_spill] sm:$0xff] }
 0x179   :  { %17445 = vst [vmem:[#allocation74_spill] sm:$0xff] %v10429_v59  ;;  %v10434_v3 = vsel %vm2323_vm14, %v2383_v54, %v2385_v26  ;;  %v2610_v8 = vsel %vm2546_vm8, 1, %v17161_v14  ;;  %v2040_v16 = vsel %vm1976_vm9, %v17447_v40, %v8751_v23  ;;  %v2039_v4 = vsel %vm1975_vm1, %v17448_v0, %v8751_v23  ;;  %v1866_v19 = vpop.permute.xlu1 %1865  ;;  %v1863_v5 = vpop.permute.xlu0 %1862 }
 0x17a   :  { %17446 = vst [vmem:[#allocation38_spill] sm:$0xff] %v10434_v3  ;;  %vm2547_vm11 = vcmp.eq.f32.partialorder %v10434_v3, %v10403_v39  ;;  %v2104_v20 = vmax.f32 %v17449_v46, %v2040_v16  ;;  %v2168_v48 = vadd.f32 %v2040_v16, %v17449_v46  ;;  %v2103_v21 = vmax.f32 %v17450_v52, %v2039_v4  ;;  %v17454_v46 = vld [vmem:[#allocation80_spill] sm:$0xff] }
 0x17b   :  { %v2611_v54 = vsel %vm2547_vm11, 1, %v17161_v14  ;;  %2733 = vperm.xlu1 %8065, %v2610_v8   ;;  %v2167_v33 = vadd.f32 %v2039_v4, %v17450_v52  ;;  %v10450_v40 = vsel %vm397_vm10, %v2099_v30, %v2163_v62  ;;  %v2389_v0 = vrot.slane %v10393_v12, 4  ;;  %v17453_v8 = vld [vmem:[#allocation79_spill] sm:$0xff] }
 0x17c   :  { %17451 = vst [vmem:[#allocation67_spill] sm:$0xff] %v10450_v40  ;;  %2736 = vperm.xlu0 %8064, %v2611_v54   ;;  %v10455_v39 = vsel %vm397_vm10, %v2104_v20, %v2168_v48  ;;  %v2387_v16 = vrot.slane %v10450_v40, 4  ;;  %vm1978_vm12 = vcmp.eq.s32.totalorder %v1866_v19, 1  ;;  %vm1977_vm13 = vcmp.eq.s32.totalorder %v1863_v5, 1  ;;  %v17456_v19 = vld [vmem:[#allocation41_spill] sm:$0xff] }
 0x17d   :  { %17452 = vst [vmem:[#allocation76_spill] sm:$0xff] %v10455_v39  ;;  %v2042_v4 = vsel %vm1978_vm12, %v17453_v8, %v8751_v23  ;;  %v2041_v30 = vsel %vm1977_vm13, %v17454_v46, %v8751_v23  ;;  %v10464_v62 = vsel %vm397_vm10, %v2101_v61, %v2165_v18  ;;  %v2393_v52 = vrot.slane %v10429_v59, 4  ;;  %v17457_v61 = vld [vmem:[#allocation37_spill] sm:$0xff]  ;;  %v1872_v46 = vpop.permute.xlu1 %1871  ;;  %v1869_v3 = vpop.permute.xlu0 %1868 }
 0x17e   :  { %17455 = vst [vmem:[#allocation77_spill] sm:$0xff] %v10464_v62  ;;  %v10468_v54 = vsel %vm2323_vm14, %v2387_v16, %v2389_v0  ;;  %v10471_v20 = vsel %vm2323_vm14, %v2385_v26, %v2387_v16  ;;  %v2106_v5 = vmax.f32 %v17456_v19, %v2042_v4  ;;  %v2170_v48 = vadd.f32 %v2042_v4, %v17456_v19 }
 0x17f   :  { %vm2549_vm15 = vcmp.eq.f32.partialorder %v10468_v54, %v10450_v40  ;;  %vm2548_vm2 = vcmp.eq.f32.partialorder %v10471_v20, %v10366_v36  ;;  %v2105_v18 = vmax.f32 %v17457_v61, %v2041_v30  ;;  %v2169_v8 = vadd.f32 %v2041_v30, %v17457_v61 }
 0x180   :  { %v2613_v10 = vsel %vm2549_vm15, 1, %v17161_v14  ;;  %v2612_v26 = vsel %vm2548_vm2, 1, %v17161_v14  ;;  %v10485_v16 = vsel %vm397_vm10, %v2106_v5, %v2170_v48  ;;  %v2391_v4 = vrot.slane %v10464_v62, 4  ;;  %v17461_v5 = vld [vmem:[#allocation43_spill] sm:$0xff] }
 0x181   :  { %2742 = vperm.xlu0 %8064, %v2613_v10   ;;  %2739 = vperm.xlu1 %8065, %v2612_v26   ;;  %vm1980_vm3 = vcmp.eq.s32.totalorder %v1872_v46, 1  ;;  %vm1979_vm4 = vcmp.eq.s32.totalorder %v1869_v3, 1  ;;  %v10490_v19 = vsel %vm397_vm10, %v2103_v21, %v2167_v33  ;;  %v2397_v30 = vrot.slane %v10455_v39, 4  ;;  %v17462_v10 = vld [vmem:[#allocation44_spill] sm:$0xff]  ;;  %v17463_v33 = vld [vmem:[#allocation42_spill] sm:$0xff] }
 0x182   :  { %17458 = vst [vmem:[#allocation39_spill] sm:$0xff] %v10490_v19  ;;  %v10494_v61 = vsel %vm2323_vm14, %v2391_v4, %v2393_v52  ;;  %v10497_v40 = vsel %vm2323_vm14, %v2389_v0, %v2391_v4  ;;  %v2044_v48 = vsel %vm1980_vm3, %v17461_v5, %v8751_v23  ;;  %v2043_v26 = vsel %vm1979_vm4, %v17462_v10, %v8751_v23  ;;  %v17464_v4 = vld [vmem:[#allocation73_spill] sm:$0xff] }
 0x183   :  { %17459 = vst [vmem:[#allocation70_spill] sm:$0xff] %v10494_v61  ;;  %17460 = vst [vmem:[#allocation79_spill] sm:$0xff] %v10497_v40  ;;  %vm2551_vm5 = vcmp.eq.f32.partialorder %v10494_v61, %v10464_v62  ;;  %vm2550_vm6 = vcmp.eq.f32.partialorder %v10497_v40, %v10393_v12  ;;  %v2108_v3 = vmax.f32 %v17463_v33, %v2044_v48  ;;  %v2395_v62 = vrot.slane %v10490_v19, 4  ;;  %v1878_v12 = vpop.permute.xlu1 %1877  ;;  %v1875_v61 = vpop.permute.xlu0 %1874 }
 0x184   :  { %v2172_v21 = vadd.f32 %v2044_v48, %v17463_v33  ;;  %v2615_v46 = vsel %vm2551_vm5, 1, %v17161_v14  ;;  %v2614_v0 = vsel %vm2550_vm6, 1, %v17161_v14  ;;  %v2107_v36 = vmax.f32 %v17464_v4, %v2043_v26 }
 0x185   :  { %v2171_v5 = vadd.f32 %v2043_v26, %v17464_v4  ;;  %2748 = vperm.xlu0 %8064, %v2615_v46   ;;  %2745 = vperm.xlu1 %8065, %v2614_v0   ;;  %v10520_v48 = vsel %vm397_vm10, %v2105_v18, %v2169_v8  ;;  %v2401_v33 = vrot.slane %v10485_v16, 4  ;;  %vm1982_vm7 = vcmp.eq.s32.totalorder %v1878_v12, 1  ;;  %v17467_v8 = vld [vmem:[#allocation48_spill] sm:$0xff] }
 0x186   :  { %v10515_v10 = vsel %vm397_vm10, %v2108_v3, %v2172_v21  ;;  %17465 = vst [vmem:[#allocation80_spill] sm:$0xff] %v10520_v48  ;;  %vm1981_vm8 = vcmp.eq.s32.totalorder %v1875_v61, 1  ;;  %v2399_v26 = vrot.slane %v10520_v48, 4  ;;  %v10529_v3 = vsel %vm2323_vm14, %v2395_v62, %v2397_v30 }
 0x187   :  { %v10526_v46 = vsel %vm397_vm10, %v2107_v36, %v2171_v5  ;;  %17466 = vst [vmem:[#allocation41_spill] sm:$0xff] %v10529_v3  ;;  %v10532_v21 = vsel %vm2323_vm14, %v2393_v52, %v2395_v62  ;;  %v2046_v18 = vsel %vm1982_vm7, %v9621_v50, %v8751_v23  ;;  %v2045_v0 = vsel %vm1981_vm8, %v17467_v8, %v8751_v23  ;;  %v17468_v36 = vld [vmem:[#allocation46_spill] sm:$0xff]  ;;  %v17469_v52 = vld [vmem:[#allocation75_spill] sm:$0xff]  ;;  %v1884_v40 = vpop.permute.xlu1 %1883  ;;  %v1881_v8 = vpop.permute.xlu0 %1880 }
 0x188   :  { %vm2553_vm9 = vcmp.eq.f32.partialorder %v10529_v3, %v10490_v19  ;;  %vm2552_vm1 = vcmp.eq.f32.partialorder %v10532_v21, %v10429_v59  ;;  %v2110_v12 = vmax.f32 %v17468_v36, %v2046_v18  ;;  %v2174_v61 = vadd.f32 %v2046_v18, %v17468_v36 }
 0x189   :  { %v2617_v4 = vsel %vm2553_vm9, 1, %v17161_v14  ;;  %v2616_v62 = vsel %vm2552_vm1, 1, %v17161_v14  ;;  %v2109_v5 = vmax.f32 %v17469_v52, %v2045_v0  ;;  %v2173_v50 = vadd.f32 %v2045_v0, %v17469_v52  ;;  %v17472_v0 = vld [vmem:[#allocation82_spill] sm:$0xff] }
 0x18a   :  { %2754 = vperm.xlu0 %8064, %v2617_v4   ;;  %2751 = vperm.xlu1 %8065, %v2616_v62   ;;  %v10550_v19 = vsel %vm397_vm10, %v2110_v12, %v2174_v61  ;;  %v10553_v59 = vsel %vm2323_vm14, %v2399_v26, %v2401_v33  ;;  %v10556_v18 = vsel %vm2323_vm14, %v2397_v30, %v2399_v26  ;;  %vm1984_vm11 = vcmp.eq.s32.totalorder %v1884_v40, 1  ;;  %v17473_v4 = vld [vmem:[#allocation47_spill] sm:$0xff] }
 0x18b   :  { %17470 = vst [vmem:[#allocation37_spill] sm:$0xff] %v10553_v59  ;;  %17471 = vst [vmem:[#allocation43_spill] sm:$0xff] %v10556_v18  ;;  %vm2555_vm12 = vcmp.eq.f32.partialorder %v10553_v59, %v10520_v48  ;;  %vm2554_vm13 = vcmp.eq.f32.partialorder %v10556_v18, %v10455_v39  ;;  %v2048_v36 = vsel %vm1984_vm11, %v17472_v0, %v8751_v23  ;;  %vm1983_vm15 = vcmp.eq.s32.totalorder %v1881_v8, 1  ;;  %v17474_v40 = vld [vmem:[#allocation83_spill] sm:$0xff] }
 0x18c   :  { %v2619_v12 = vsel %vm2555_vm12, 1, %v17161_v14  ;;  %v2618_v61 = vsel %vm2554_vm13, 1, %v17161_v14  ;;  %v2112_v62 = vmax.f32 %v17473_v4, %v2048_v36  ;;  %v2176_v30 = vadd.f32 %v2048_v36, %v17473_v4  ;;  %v17477_v36 = vld [vmem:[#allocation78_spill] sm:$0xff] }
 0x18d   :  { %v2047_v26 = vsel %vm1983_vm15, %v17474_v40, %v8751_v23  ;;  %v2403_v52 = vrot.slane %v10526_v46, 4  ;;  %v2405_v48 = vrot.slane %v10515_v10, 4  ;;  %v1890_v39 = vpop.permute.xlu1 %1889  ;;  %v1887_v59 = vpop.permute.xlu0 %1886  ;;  %v10574_v8 = vsel %vm397_vm10, %v2109_v5, %v2173_v50 }
 0x18e   :  { %17475 = vst [vmem:[#allocation44_spill] sm:$0xff] %v10574_v8  ;;  %2760 = vperm.xlu0 %8064, %v2619_v12   ;;  %2757 = vperm.xlu1 %8065, %v2618_v61   ;;  %v10578_v0 = vsel %vm397_vm10, %v2112_v62, %v2176_v30  ;;  %v2111_v4 = vmax.f32 %v17477_v36, %v2047_v26  ;;  %vm1986_vm2 = vcmp.eq.s32.totalorder %v1890_v39, 1  ;;  %vm1985_vm3 = vcmp.eq.s32.totalorder %v1887_v59, 1 }
 0x18f   :  { %17476 = vst [vmem:[#allocation42_spill] sm:$0xff] %v10578_v0  ;;  %v2175_v40 = vadd.f32 %v2047_v26, %v17477_v36  ;;  %v10583_v18 = vsel %vm2323_vm14, %v2403_v52, %v2405_v48  ;;  %v10586_v3 = vsel %vm2323_vm14, %v2401_v33, %v2403_v52  ;;  %v2050_v5 = vsel %vm1986_vm2, %v9690_v38, %v8751_v23  ;;  %v17478_v26 = vld [vmem:[#allocation45_spill] sm:$0xff] }
 0x190   :  { %vm2557_vm4 = vcmp.eq.f32.partialorder %v10583_v18, %v10526_v46  ;;  %vm2556_vm5 = vcmp.eq.f32.partialorder %v10586_v3, %v10485_v16  ;;  %v2114_v50 = vmax.f32 %v9672_v32, %v2050_v5  ;;  %v2178_v39 = vadd.f32 %v2050_v5, %v9672_v32 }
 0x191   :  { %v2621_v12 = vsel %vm2557_vm4, 1, %v17161_v14  ;;  %v2620_v61 = vsel %vm2556_vm5, 1, %v17161_v14  ;;  %v2049_v33 = vsel %vm1985_vm3, %v9693_v6, %v8751_v23  ;;  %v2407_v38 = vrot.slane %v10574_v8, 4  ;;  %v1896_v59 = vpop.permute.xlu1 %1895  ;;  %v1893_v62 = vpop.permute.xlu0 %1892 }
 0x192   :  { %2766 = vperm.xlu0 %8064, %v2621_v12   ;;  %2763 = vperm.xlu1 %8065, %v2620_v61   ;;  %v10603_v30 = vsel %vm397_vm10, %v2114_v50, %v2178_v39  ;;  %v2113_v52 = vmax.f32 %v17478_v26, %v2049_v33  ;;  %v2177_v32 = vadd.f32 %v2049_v33, %v17478_v26  ;;  %v2409_v36 = vrot.slane %v10550_v19, 4  ;;  %v17481_v61 = vld [vmem:[#allocation49_spill] sm:$0xff] }
 0x193   :  { %v10609_v5 = vsel %vm2323_vm14, %v2405_v48, %v2407_v38  ;;  %vm1988_vm6 = vcmp.eq.s32.totalorder %v1896_v59, 1  ;;  %vm1987_vm7 = vcmp.eq.s32.totalorder %v1893_v62, 1  ;;  %v10613_v6 = vsel %vm397_vm10, %v2111_v4, %v2175_v40 }
 0x194   :  { %17479 = vst [vmem:[#allocation73_spill] sm:$0xff] %v10613_v6  ;;  %v10616_v12 = vsel %vm2323_vm14, %v2407_v38, %v2409_v36  ;;  %vm2558_vm8 = vcmp.eq.f32.partialorder %v10609_v5, %v10515_v10  ;;  %v2052_v50 = vsel %vm1988_vm6, %v9719_v58, %v8751_v23  ;;  %v2051_v39 = vsel %vm1987_vm7, %v9722_v29, %v8751_v23  ;;  %v17482_v38 = vld [vmem:[#allocation81_spill] sm:$0xff] }
 0x195   :  { %17480 = vst [vmem:[#allocation48_spill] sm:$0xff] %v10616_v12  ;;  %vm2559_vm9 = vcmp.eq.f32.partialorder %v10616_v12, %v10574_v8  ;;  %v2622_v48 = vsel %vm2558_vm8, 1, %v17161_v14  ;;  %v2116_v4 = vmax.f32 %v17481_v61, %v2052_v50  ;;  %v2180_v40 = vadd.f32 %v2052_v50, %v17481_v61 }
 0x196   :  { %v2623_v33 = vsel %vm2559_vm9, 1, %v17161_v14  ;;  %2769 = vperm.xlu1 %8065, %v2622_v48   ;;  %v2115_v59 = vmax.f32 %v17482_v38, %v2051_v39  ;;  %v2179_v62 = vadd.f32 %v2051_v39, %v17482_v38  ;;  %v2411_v58 = vrot.slane %v10613_v6, 4 }
 0x197   :  { %2772 = vperm.xlu0 %8064, %v2623_v33   ;;  %v10635_v29 = vsel %vm397_vm10, %v2116_v4, %v2180_v40  ;;  %v2413_v26 = vrot.slane %v10578_v0, 4  ;;  %v1902_v8 = vpop.permute.xlu1 %1901  ;;  %v1899_v12 = vpop.permute.xlu0 %1898  ;;  %v10640_v50 = vsel %vm397_vm10, %v2113_v52, %v2177_v32  ;;  %v2417_v48 = vrot.slane %v10603_v30, 4 }
 0x198   :  { %17483 = vst [vmem:[#allocation46_spill] sm:$0xff] %v10640_v50  ;;  %v10644_v61 = vsel %vm2323_vm14, %v2409_v36, %v2411_v58  ;;  %vm1990_vm1 = vcmp.eq.s32.totalorder %v1902_v8, 1  ;;  %vm1989_vm11 = vcmp.eq.s32.totalorder %v1899_v12, 1  ;;  %v2415_v39 = vrot.slane %v10640_v50, 4 }
 0x199   :  { %v10648_v4 = vsel %vm2323_vm14, %v2411_v58, %v2413_v26  ;;  %vm2560_vm12 = vcmp.eq.f32.partialorder %v10644_v61, %v10550_v19  ;;  %v2054_v40 = vsel %vm1990_vm1, %v9786_v53, %v8751_v23  ;;  %v2053_v52 = vsel %vm1989_vm11, %v9789_v31, %v8751_v23 }
 0x19a   :  { %vm2561_vm13 = vcmp.eq.f32.partialorder %v10648_v4, %v10613_v6  ;;  %v2624_v8 = vsel %vm2560_vm12, 1, %v17161_v14  ;;  %v2118_v32 = vmax.f32 %v9754_v25, %v2054_v40  ;;  %v2182_v36 = vadd.f32 %v2054_v40, %v9754_v25 }
 0x19b   :  { %v2625_v12 = vsel %vm2561_vm13, 1, %v17161_v14  ;;  %2775 = vperm.xlu1 %8065, %v2624_v8   ;;  %v2117_v33 = vmax.f32 %v9637_v13, %v2053_v52  ;;  %v2181_v38 = vadd.f32 %v2053_v52, %v9637_v13  ;;  %v10665_v53 = vsel %vm2323_vm14, %v2415_v39, %v2417_v48  ;;  %v1908_v31 = vpop.permute.xlu1 %1907  ;;  %v1905_v58 = vpop.permute.xlu0 %1904  ;;  %v17485_v8 = vld [vmem:[#allocation51_spill] sm:$0xff] }
 0x19c   :  { %17484 = vst [vmem:[#allocation75_spill] sm:$0xff] %v10665_v53  ;;  %2778 = vperm.xlu0 %8064, %v2625_v12   ;;  %v10669_v6 = vsel %vm397_vm10, %v2118_v32, %v2182_v36  ;;  %vm2563_vm15 = vcmp.eq.f32.partialorder %v10665_v53, %v10640_v50  ;;  %v10674_v25 = vsel %vm2323_vm14, %v2413_v26, %v2415_v39  ;;  %vm1992_vm2 = vcmp.eq.s32.totalorder %v1908_v31, 1  ;;  %v17486_v12 = vld [vmem:[#allocation85_spill] sm:$0xff]  ;;  %v17487_v39 = vld [vmem:[#allocation50_spill] sm:$0xff] }
 0x19d   :  { %v2627_v40 = vsel %vm2563_vm15, 1, %v17161_v14  ;;  %vm2562_vm3 = vcmp.eq.f32.partialorder %v10674_v25, %v10578_v0  ;;  %v2056_v13 = vsel %vm1992_vm2, %v9805_v57, %v8751_v23  ;;  %vm1991_vm4 = vcmp.eq.s32.totalorder %v1905_v58, 1 }
 0x19e   :  { %v2626_v52 = vsel %vm2562_vm3, 1, %v17161_v14  ;;  %v2120_v32 = vmax.f32 %v17485_v8, %v2056_v13  ;;  %v2184_v36 = vadd.f32 %v2056_v13, %v17485_v8  ;;  %v2055_v26 = vsel %vm1991_vm4, %v17486_v12, %v8751_v23 }
 0x19f   :  { %2781 = vperm.xlu1 %8065, %v2626_v52   ;;  %v2119_v31 = vmax.f32 %v17487_v39, %v2055_v26  ;;  %v2183_v50 = vadd.f32 %v2055_v26, %v17487_v39  ;;  %v10690_v53 = vsel %vm397_vm10, %v2115_v59, %v2179_v62  ;;  %v2421_v57 = vrot.slane %v10635_v29, 4  ;;  %v1914_v58 = vpop.permute.xlu1 %1913  ;;  %v1911_v0 = vpop.permute.xlu0 %1910 }
 0x1a0   :  { %2784 = vperm.xlu0 %8064, %v2627_v40   ;;  %v10695_v13 = vsel %vm397_vm10, %v2120_v32, %v2184_v36  ;;  %v2419_v8 = vrot.slane %v10690_v53, 4  ;;  %vm1994_vm5 = vcmp.eq.s32.totalorder %v1914_v58, 1  ;;  %vm1993_vm6 = vcmp.eq.s32.totalorder %v1911_v0, 1 }
 0x1a1   :  { %17488 = vst [vmem:[#allocation82_spill] sm:$0xff] %v10695_v13  ;;  %v2058_v52 = vsel %vm1994_vm5, %v9845_v41, %v8751_v23  ;;  %v2057_v59 = vsel %vm1993_vm6, %v9848_v7, %v8751_v23  ;;  %v10704_v62 = vsel %vm397_vm10, %v2117_v33, %v2181_v38  ;;  %v2425_v40 = vrot.slane %v10669_v6, 4 }
 0x1a2   :  { %v10708_v12 = vsel %vm2323_vm14, %v2419_v8, %v2421_v57  ;;  %v10711_v32 = vsel %vm2323_vm14, %v2417_v48, %v2419_v8  ;;  %v2122_v0 = vmax.f32 %v9827_v56, %v2058_v52  ;;  %v2186_v36 = vadd.f32 %v2058_v52, %v9827_v56 }
 0x1a3   :  { %vm2565_vm7 = vcmp.eq.f32.partialorder %v10708_v12, %v10690_v53  ;;  %vm2564_vm8 = vcmp.eq.f32.partialorder %v10711_v32, %v10603_v30  ;;  %v2121_v41 = vmax.f32 %v9732_v43, %v2057_v59  ;;  %v2185_v7 = vadd.f32 %v2057_v59, %v9732_v43  ;;  %v1920_v33 = vpop.permute.xlu1 %1919  ;;  %v1917_v38 = vpop.permute.xlu0 %1916 }
 0x1a4   :  { %v2629_v26 = vsel %vm2565_vm7, 1, %v17161_v14  ;;  %v2628_v48 = vsel %vm2564_vm8, 1, %v17161_v14  ;;  %v10725_v39 = vsel %vm397_vm10, %v2122_v0, %v2186_v36  ;;  %v2423_v56 = vrot.slane %v10704_v62, 4 }
 0x1a5   :  { %2790 = vperm.xlu0 %8064, %v2629_v26   ;;  %2787 = vperm.xlu1 %8065, %v2628_v48   ;;  %vm1996_vm9 = vcmp.eq.s32.totalorder %v1920_v33, 1  ;;  %vm1995_vm1 = vcmp.eq.s32.totalorder %v1917_v38, 1  ;;  %v10730_v58 = vsel %vm397_vm10, %v2119_v31, %v2183_v50  ;;  %v2429_v43 = vrot.slane %v10695_v13, 4 }
 0x1a6   :  { %v10734_v8 = vsel %vm2323_vm14, %v2423_v56, %v2425_v40  ;;  %v10737_v52 = vsel %vm2323_vm14, %v2421_v57, %v2423_v56  ;;  %v2060_v59 = vsel %vm1996_vm9, %v9873_v35, %v8751_v23  ;;  %v2059_v0 = vsel %vm1995_vm1, %v9876_v27, %v8751_v23 }
 0x1a7   :  { %vm2567_vm11 = vcmp.eq.f32.partialorder %v10734_v8, %v10704_v62  ;;  %vm2566_vm12 = vcmp.eq.f32.partialorder %v10737_v52, %v10635_v29  ;;  %v2124_v50 = vmax.f32 %v9837_v34, %v2060_v59  ;;  %v2188_v31 = vadd.f32 %v2060_v59, %v9837_v34  ;;  %v1926_v36 = vpop.permute.xlu1 %1925  ;;  %v1923_v33 = vpop.permute.xlu0 %1922 }
 0x1a8   :  { %v2631_v57 = vsel %vm2567_vm11, 1, %v17161_v14  ;;  %v2630_v38 = vsel %vm2566_vm12, 1, %v17161_v14  ;;  %v2123_v35 = vmax.f32 %v9772_v45, %v2059_v0  ;;  %v2187_v27 = vadd.f32 %v2059_v0, %v9772_v45 }
 0x1a9   :  { %2796 = vperm.xlu0 %8064, %v2631_v57   ;;  %2793 = vperm.xlu1 %8065, %v2630_v38   ;;  %v10755_v26 = vsel %vm397_vm10, %v2124_v50, %v2188_v31  ;;  %v2427_v48 = vrot.slane %v10730_v58, 4  ;;  %vm1998_vm13 = vcmp.eq.s32.totalorder %v1926_v36, 1  ;;  %vm1997_vm15 = vcmp.eq.s32.totalorder %v1923_v33, 1 }
 0x1aa   :  { %v2062_v34 = vsel %vm1998_vm13, %v9895_v9, %v8751_v23  ;;  %v2061_v56 = vsel %vm1997_vm15, %v9898_v60, %v8751_v23  ;;  %v10764_v59 = vsel %vm397_vm10, %v2121_v41, %v2185_v7  ;;  %v2433_v45 = vrot.slane %v10725_v39, 4  ;;  %v17490_v60 = vld [vmem:[#allocation84_spill] sm:$0xff] }
 0x1ab   :  { %17489 = vst [vmem:[#allocation47_spill] sm:$0xff] %v10764_v59  ;;  %v10768_v0 = vsel %vm2323_vm14, %v2427_v48, %v2429_v43  ;;  %v10771_v50 = vsel %vm2323_vm14, %v2425_v40, %v2427_v48  ;;  %v2126_v31 = vmax.f32 %v9869_v51, %v2062_v34  ;;  %v2190_v36 = vadd.f32 %v2062_v34, %v9869_v51  ;;  %v1932_v9 = vpop.permute.xlu1 %1931  ;;  %v1929_v33 = vpop.permute.xlu0 %1928 }
 0x1ac   :  { %vm2569_vm2 = vcmp.eq.f32.partialorder %v10768_v0, %v10730_v58  ;;  %vm2568_vm3 = vcmp.eq.f32.partialorder %v10771_v50, %v10669_v6  ;;  %v2125_v41 = vmax.f32 %v17490_v60, %v2061_v56  ;;  %v2189_v7 = vadd.f32 %v2061_v56, %v17490_v60 }
 0x1ad   :  { %v2633_v57 = vsel %vm2569_vm2, 1, %v17161_v14  ;;  %v2632_v40 = vsel %vm2568_vm3, 1, %v17161_v14  ;;  %v10785_v38 = vsel %vm397_vm10, %v2126_v31, %v2190_v36  ;;  %v2431_v51 = vrot.slane %v10764_v59, 4  ;;  %v17492_v36 = vld [vmem:[#allocation87_spill] sm:$0xff] }
 0x1ae   :  { %2802 = vperm.xlu0 %8064, %v2633_v57   ;;  %2799 = vperm.xlu1 %8065, %v2632_v40   ;;  %vm2000_vm4 = vcmp.eq.s32.totalorder %v1932_v9, 1  ;;  %vm1999_vm5 = vcmp.eq.s32.totalorder %v1929_v33, 1  ;;  %v10790_v48 = vsel %vm397_vm10, %v2123_v35, %v2187_v27  ;;  %v2437_v34 = vrot.slane %v10755_v26, 4 }
 0x1af   :  { %v10794_v56 = vsel %vm2323_vm14, %v2431_v51, %v2433_v45  ;;  %v10797_v60 = vsel %vm2323_vm14, %v2429_v43, %v2431_v51  ;;  %v2064_v31 = vsel %vm2000_vm4, %v9913_v2, %v8751_v23  ;;  %v2063_v57 = vsel %vm1999_vm5, %v17492_v36, %v8751_v23  ;;  %v1938_v9 = vpop.permute.xlu1 %1937  ;;  %v1935_v33 = vpop.permute.xlu0 %1934  ;;  %v17493_v2 = vld [vmem:[#allocation86_spill] sm:$0xff] }
 0x1b0   :  { %17491 = vst [vmem:[#allocation83_spill] sm:$0xff] %v10794_v56  ;;  %vm2571_vm6 = vcmp.eq.f32.partialorder %v10794_v56, %v10764_v59  ;;  %vm2570_vm7 = vcmp.eq.f32.partialorder %v10797_v60, %v10695_v13  ;;  %v2128_v35 = vmax.f32 %v9881_v42, %v2064_v31  ;;  %v2192_v27 = vadd.f32 %v2064_v31, %v9881_v42 }
 0x1b1   :  { %v2635_v43 = vsel %vm2571_vm6, 1, %v17161_v14  ;;  %v2634_v40 = vsel %vm2570_vm7, 1, %v17161_v14  ;;  %v2127_v51 = vmax.f32 %v17493_v2, %v2063_v57  ;;  %v2191_v36 = vadd.f32 %v2063_v57, %v17493_v2 }
 0x1b2   :  { %2808 = vperm.xlu0 %8064, %v2635_v43   ;;  %2805 = vperm.xlu1 %8065, %v2634_v40   ;;  %v10815_v59 = vsel %vm397_vm10, %v2128_v35, %v2192_v27  ;;  %v2435_v13 = vrot.slane %v10790_v48, 4  ;;  %vm2002_vm8 = vcmp.eq.s32.totalorder %v1938_v9, 1  ;;  %vm2001_vm9 = vcmp.eq.s32.totalorder %v1935_v33, 1 }
 0x1b3   :  { %17494 = vst [vmem:[#allocation78_spill] sm:$0xff] %v10815_v59  ;;  %v2066_v42 = vsel %vm2002_vm8, %v9943_v44, %v8751_v23  ;;  %v2065_v31 = vsel %vm2001_vm9, %v9946_v55, %v8751_v23  ;;  %v10824_v56 = vsel %vm397_vm10, %v2125_v41, %v2189_v7  ;;  %v2441_v57 = vrot.slane %v10785_v38, 4 }
 0x1b4   :  { %17495 = vst [vmem:[#allocation45_spill] sm:$0xff] %v10824_v56  ;;  %v10828_v43 = vsel %vm2323_vm14, %v2435_v13, %v2437_v34  ;;  %v10831_v35 = vsel %vm2323_vm14, %v2433_v45, %v2435_v13  ;;  %v2130_v9 = vmax.f32 %v9929_v24, %v2066_v42  ;;  %v2194_v33 = vadd.f32 %v2066_v42, %v9929_v24  ;;  %v2647_v44 = vpop.permute.xlu0 %2646 }
 0x1b5   :  { %vm2573_vm1 = vcmp.eq.f32.partialorder %v10828_v43, %v10790_v48  ;;  %vm2572_vm11 = vcmp.eq.f32.partialorder %v10831_v35, %v10725_v39  ;;  %v2129_v55 = vmax.f32 %v9885_v37, %v2065_v31  ;;  %v2193_v41 = vadd.f32 %v2065_v31, %v9885_v37  ;;  %v2650_v27 = vpop.permute.xlu1 %2649 }
 0x1b6   :  { %v2637_v7 = vsel %vm2573_vm1, 1, %v17161_v14  ;;  %v2636_v13 = vsel %vm2572_vm11, 1, %v17161_v14  ;;  %v2439_v45 = vrot.slane %v10824_v56, 4  ;;  %v10846_v24 = vsel %vm397_vm10, %v2127_v51, %v2191_v36 }
 0x1b7   :  { %2814 = vperm.xlu0 %8064, %v2637_v7   ;;  %2811 = vperm.xlu1 %8065, %v2636_v13   ;;  %17496 = vst [vmem:[#allocation49_spill] sm:$0xff] %v10846_v24  ;;  %v2445_v40 = vrot.slane %v10815_v59, 4  ;;  %vm2837_vm12 = vcmp.eq.s32.totalorder %v2647_v44, 1  ;;  %v10851_v2 = vsel %vm397_vm10, %v2129_v55, %v2193_v41  ;;  %v2443_v31 = vrot.slane %v10846_v24, 4 }
 0x1b8   :  { %17497 = vst [vmem:[#allocation81_spill] sm:$0xff] %v10851_v2  ;;  %v10854_v37 = vsel %vm2323_vm14, %v2439_v45, %v2441_v57  ;;  %v10857_v42 = vsel %vm2323_vm14, %v2437_v34, %v2439_v45  ;;  %v2901_v7 = vsel %vm2837_vm12, %v9994_v49, %v8751_v23  ;;  %v2653_v51 = vpop.permute.xlu0 %2652  ;;  %v10864_v36 = vsel %vm397_vm10, %v2130_v9, %v2194_v33 }
 0x1b9   :  { %vm2575_vm13 = vcmp.eq.f32.partialorder %v10854_v37, %v10824_v56  ;;  %vm2574_vm15 = vcmp.eq.f32.partialorder %v10857_v42, %v10755_v26  ;;  %v2965_v44 = vmax.f32 %v9970_v63, %v2901_v7  ;;  %v10874_v41 = vsel %vm2323_vm14, %v2443_v31, %v2445_v40 }
 0x1ba   :  { %v2639_v34 = vsel %vm2575_vm13, 1, %v17161_v14  ;;  %v2638_v55 = vsel %vm2574_vm15, 1, %v17161_v14  ;;  %v10877_v49 = vsel %vm2323_vm14, %v2441_v57, %v2443_v31  ;;  %vm2577_vm2 = vcmp.eq.f32.partialorder %v10874_v41, %v10846_v24 }
 0x1bb   :  { %2820 = vperm.xlu0 %8064, %v2639_v34   ;;  %2817 = vperm.xlu1 %8065, %v2638_v55   ;;  %vm2576_vm3 = vcmp.eq.f32.partialorder %v10877_v49, %v10785_v38  ;;  %v3029_v9 = vadd.f32 %v2901_v7, %v9970_v63  ;;  %v2447_v33 = vrot.slane %v10851_v2, 4  ;;  %v2641_v13 = vsel %vm2577_vm2, 1, %v17161_v14 }
 0x1bc   :  { %v2640_v45 = vsel %vm2576_vm3, 1, %v17161_v14  ;;  %v2449_v56 = vrot.slane %v10864_v36, 4  ;;  %vm2838_vm4 = vcmp.eq.s32.totalorder %v2650_v27, 1  ;;  %v2656_v57 = vpop.permute.xlu1 %2655  ;;  %v2659_v31 = vpop.permute.xlu0 %2658  ;;  %vm2839_vm5 = vcmp.eq.s32.totalorder %v2653_v51, 1 }
 0x1bd   :  { %v10889_v34 = vsel %vm2323_vm14, %v2445_v40, %v2447_v33  ;;  %v2902_v55 = vsel %vm2838_vm4, %v10004_v28, %v8751_v23  ;;  %vm2840_vm6 = vcmp.eq.s32.totalorder %v2656_v57, 1  ;;  %v2903_v28 = vsel %vm2839_vm5, %v10014_v47, %v8751_v23 }
 0x1be   :  { %v10894_v7 = vsel %vm2323_vm14, %v2447_v33, %v2449_v56  ;;  %vm2578_vm7 = vcmp.eq.f32.partialorder %v10889_v34, %v10815_v59  ;;  %v2966_v24 = vmax.f32 %v9933_v15, %v2902_v55  ;;  %v3030_v27 = vadd.f32 %v2902_v55, %v9933_v15 }
 0x1bf   :  { %2826 = vperm.xlu0 %8064, %v2641_v13   ;;  %2823 = vperm.xlu1 %8065, %v2640_v45   ;;  %vm2579_vm8 = vcmp.eq.f32.partialorder %v10894_v7, %v10851_v2  ;;  %v2642_v40 = vsel %vm2578_vm7, 1, %v17161_v14  ;;  %v17498_v51 = vrot.slane %v9970_v63, 4  ;;  %v2967_v13 = vmax.f32 %v9980_v11, %v2903_v28 }
 0x1c0   :  { %v2643_v59 = vsel %vm2579_vm8, 1, %v17161_v14  ;;  %v10913_v15 = vsel %vm397_vm10, %v2966_v24, %v3030_v27  ;;  %v3031_v45 = vadd.f32 %v2903_v28, %v9980_v11  ;;  %v2662_v55 = vpop.permute.xlu1 %2661  ;;  %v2665_v2 = vpop.permute.xlu0 %2664  ;;  %v10919_v47 = vsel %vm397_vm10, %v2965_v44, %v3029_v9  ;;  %v17500_v44 = vld [vmem:[#allocation92_spill] sm:$0xff]  ;;  %v17503_v27 = vld [vmem:[#allocation90_spill] sm:$0xff] }
 0x1c1   :  { %v10908_v33 = vsel %vm2323_vm14, %v2449_v56, %v17498_v51  ;;  %v2904_v63 = vsel %vm2840_vm6, %v10049_v22, %v8751_v23  ;;  %vm2841_vm14 = vcmp.eq.s32.totalorder %v2659_v31, 1  ;;  %vm2842_vm9 = vcmp.eq.s32.totalorder %v2662_v55, 1  ;;  %v17501_v22 = vld [vmem:[#allocation93_spill] sm:$0xff] }
 0x1c2   :  { %v10926_v56 = vsel %vm397_vm10, %v2967_v13, %v3031_v45  ;;  %vm2580_vm1 = vcmp.eq.f32.partialorder %v10908_v33, %v10864_v36  ;;  %v2968_v11 = vmax.f32 %v9959_v17, %v2904_v63  ;;  %v3032_v24 = vadd.f32 %v2904_v63, %v9959_v17  ;;  %v17505_v45 = vld [vmem:[#allocation54_spill] sm:$0xff] }
 0x1c3   :  { %17499 = vst [vmem:[#allocation51_spill] sm:$0xff] %v10926_v56  ;;  %2832 = vperm.xlu0 %8064, %v2643_v59   ;;  %2829 = vperm.xlu1 %8065, %v2642_v40   ;;  %v2905_v9 = vsel %vm2841_vm14, %v17500_v44, %v8751_v23  ;;  %v2906_v57 = vsel %vm2842_vm9, %v17501_v22, %v8751_v23  ;;  %vm2843_vm12 = vcmp.eq.s32.totalorder %v2665_v2, 1  ;;  %v17504_v59 = vld [vmem:[#allocation88_spill] sm:$0xff] }
 0x1c4   :  { %vm3157_vm11 = vcmp.eq.f32.partialorder %v10913_v15, %v10919_v47  ;;  %v10940_v31 = vsel %vm397_vm10, %v2968_v11, %v3032_v24  ;;  %v2969_v28 = vmax.f32 %v17503_v27, %v2905_v9  ;;  %v3033_v17 = vadd.f32 %v2905_v9, %v17503_v27  ;;  %v17507_v44 = vld [vmem:[#allocation56_spill] sm:$0xff] }
 0x1c5   :  { %17502 = vst [vmem:[#allocation85_spill] sm:$0xff] %v10940_v31  ;;  %v2970_v40 = vmax.f32 %v17504_v59, %v2906_v57  ;;  %v3034_v51 = vadd.f32 %v2906_v57, %v17504_v59  ;;  %v3221_v13 = vsel %vm3157_vm11, 1, %v17161_v14  ;;  %vm3158_vm13 = vcmp.eq.f32.partialorder %v10926_v56, %v10913_v15  ;;  %v2668_v55 = vpop.permute.xlu1 %2667  ;;  %v2671_v63 = vpop.permute.xlu0 %2670 }
 0x1c6   :  { %v2907_v2 = vsel %vm2843_vm12, %v17505_v45, %v8751_v23  ;;  %v2644_v11 = vsel %vm2580_vm1, 1, %v17161_v14  ;;  %v10957_v24 = vsel %vm397_vm10, %v2969_v28, %v3033_v17  ;;  %vm2844_vm15 = vcmp.eq.s32.totalorder %v2668_v55, 1  ;;  %v17509_v17 = vld [vmem:[#allocation53_spill] sm:$0xff] }
 0x1c7   :  { %17506 = vst [vmem:[#allocation50_spill] sm:$0xff] %v10957_v24  ;;  %v2971_v9 = vmax.f32 %v17507_v44, %v2907_v2  ;;  %v3035_v22 = vadd.f32 %v2907_v2, %v17507_v44  ;;  %2835 = vperm.xlu1 %8065, %v2644_v11   ;;  %v10963_v57 = vsel %vm397_vm10, %v2970_v40, %v3034_v51  ;;  %v3222_v27 = vsel %vm3158_vm13, 1, %v17161_v14  ;;  %v17510_v51 = vld [vmem:[#allocation89_spill] sm:$0xff] }
 0x1c8   :  { %17508 = vst [vmem:[#allocation84_spill] sm:$0xff] %v10963_v57  ;;  %3286 = vperm.xlu0 %8064, %v3221_v13   ;;  %vm3159_vm2 = vcmp.eq.f32.partialorder %v10940_v31, %v10926_v56  ;;  %vm3160_vm3 = vcmp.eq.f32.partialorder %v10957_v24, %v10940_v31  ;;  %v2908_v59 = vsel %vm2844_vm15, %v17509_v17, %v8751_v23  ;;  %vm2845_vm4 = vcmp.eq.s32.totalorder %v2671_v63, 1  ;;  %v17511_v44 = vld [vmem:[#allocation57_spill] sm:$0xff]  ;;  %v17513_v17 = vld [vmem:[#allocation52_spill] sm:$0xff] }
 0x1c9   :  { %v10972_v28 = vsel %vm397_vm10, %v2971_v9, %v3035_v22  ;;  %v3223_v40 = vsel %vm3159_vm2, 1, %v17161_v14  ;;  %v2972_v13 = vmax.f32 %v17510_v51, %v2908_v59  ;;  %v3036_v45 = vadd.f32 %v2908_v59, %v17510_v51  ;;  %v2674_v2 = vpop.permute.xlu1 %2673  ;;  %v2677_v55 = vpop.permute.xlu0 %2676 }
 0x1ca   :  { %vm3161_vm5 = vcmp.eq.f32.partialorder %v10963_v57, %v10957_v24  ;;  %v3224_v11 = vsel %vm3160_vm3, 1, %v17161_v14  ;;  %v2909_v9 = vsel %vm2845_vm4, %v17511_v44, %v8751_v23  ;;  %vm2846_vm6 = vcmp.eq.s32.totalorder %v2674_v2, 1  ;;  %v17514_v24 = vld [vmem:[#allocation12_spill] sm:$0xff]  ;;  %v17517_v2 = vld [vmem:[#allocation61_spill] sm:$0xff] }
 0x1cb   :  { %3289 = vperm.xlu1 %8065, %v3222_v27   ;;  %v10986_v22 = vsel %vm397_vm10, %v2972_v13, %v3036_v45  ;;  %v2973_v59 = vmax.f32 %v17513_v17, %v2909_v9  ;;  %v3037_v63 = vadd.f32 %v2909_v9, %v17513_v17  ;;  %v3225_v51 = vsel %vm3161_vm5, 1, %v17161_v14  ;;  %v17518_v9 = vld [vmem:[#allocation60_spill] sm:$0xff] }
 0x1cc   :  { %17512 = vst [vmem:[#allocation87_spill] sm:$0xff] %v10986_v22  ;;  %3292 = vperm.xlu0 %8064, %v3223_v40   ;;  %v2910_v31 = vsel %vm2846_vm6, %v17514_v24, %v8751_v23  ;;  %vm3162_vm7 = vcmp.eq.f32.partialorder %v10972_v28, %v10963_v57  ;;  %vm2847_vm8 = vcmp.eq.s32.totalorder %v2677_v55, 1  ;;  %vm3163_vm14 = vcmp.eq.f32.partialorder %v10986_v22, %v10972_v28  ;;  %v17516_v40 = vld [vmem:[#allocation91_spill] sm:$0xff] }
 0x1cd   :  { %v10999_v27 = vsel %vm397_vm10, %v2973_v59, %v3037_v63  ;;  %v2974_v13 = vmax.f32 %v17516_v40, %v2910_v31  ;;  %v3038_v45 = vadd.f32 %v2910_v31, %v17516_v40  ;;  %v2911_v44 = vsel %vm2847_vm8, %v17517_v2, %v8751_v23  ;;  %v17520_v31 = vld [vmem:[#allocation59_spill] sm:$0xff] }
 0x1ce   :  { %17515 = vst [vmem:[#allocation86_spill] sm:$0xff] %v10999_v27  ;;  %v2975_v24 = vmax.f32 %v17518_v9, %v2911_v44  ;;  %v3039_v17 = vadd.f32 %v2911_v44, %v17518_v9  ;;  %v2680_v57 = vpop.permute.xlu1 %2679  ;;  %v2683_v55 = vpop.permute.xlu0 %2682  ;;  %v3226_v59 = vsel %vm3162_vm7, 1, %v17161_v14  ;;  %v3227_v40 = vsel %vm3163_vm14, 1, %v17161_v14  ;;  %v17524_v44 = vld [vmem:[#allocation55_spill] sm:$0xff] }
 0x1cf   :  { %3295 = vperm.xlu1 %8065, %v3224_v11   ;;  %v11009_v56 = vsel %vm397_vm10, %v2974_v13, %v3038_v45  ;;  %vm2848_vm9 = vcmp.eq.s32.totalorder %v2680_v57, 1  ;;  %vm2849_vm1 = vcmp.eq.s32.totalorder %v2683_v55, 1  ;;  %vm3164_vm11 = vcmp.eq.f32.partialorder %v10999_v27, %v10986_v22  ;;  %v17521_v11 = vld [vmem:[#allocation13_spill] sm:$0xff]  ;;  %v17523_v57 = vld [vmem:[#allocation58_spill] sm:$0xff] }
 0x1d0   :  { %17519 = vst [vmem:[#allocation92_spill] sm:$0xff] %v11009_v56  ;;  %3298 = vperm.xlu0 %8064, %v3225_v51   ;;  %v2912_v63 = vsel %vm2848_vm9, %v17520_v31, %v8751_v23  ;;  %v2913_v13 = vsel %vm2849_vm1, %v17521_v11, %v8751_v23  ;;  %v11024_v51 = vsel %vm397_vm10, %v2975_v24, %v3039_v17  ;;  %v3228_v24 = vsel %vm3164_vm11, 1, %v17161_v14  ;;  %v17526_v17 = vld [vmem:[#allocation11_spill] sm:$0xff] }
 0x1d1   :  { %17522 = vst [vmem:[#allocation93_spill] sm:$0xff] %v11024_v51  ;;  %v2976_v45 = vmax.f32 %v17523_v57, %v2912_v63  ;;  %v3040_v2 = vadd.f32 %v2912_v63, %v17523_v57  ;;  %vm3165_vm12 = vcmp.eq.f32.partialorder %v11009_v56, %v10999_v27  ;;  %v2977_v9 = vmax.f32 %v17524_v44, %v2913_v13 }
 0x1d2   :  { %v3041_v55 = vadd.f32 %v2913_v13, %v17524_v44  ;;  %v2686_v31 = vpop.permute.xlu1 %2685  ;;  %v2689_v22 = vpop.permute.xlu0 %2688  ;;  %v3229_v57 = vsel %vm3165_vm12, 1, %v17161_v14  ;;  %vm3166_vm15 = vcmp.eq.f32.partialorder %v11024_v51, %v11009_v56  ;;  %v17527_v13 = vld [vmem:[#allocation8_spill] sm:$0xff] }
 0x1d3   :  { %3301 = vperm.xlu1 %8065, %v3226_v59   ;;  %v11034_v11 = vsel %vm397_vm10, %v2976_v45, %v3040_v2  ;;  %vm2850_vm13 = vcmp.eq.s32.totalorder %v2686_v31, 1  ;;  %vm2851_vm2 = vcmp.eq.s32.totalorder %v2689_v22, 1  ;;  %v17528_v45 = vld [vmem:[#allocation17_spill] sm:$0xff]  ;;  %v17530_v31 = vld [vmem:[#allocation18_spill] sm:$0xff] }
 0x1d4   :  { %17525 = vst [vmem:[#allocation90_spill] sm:$0xff] %v11034_v11  ;;  %3304 = vperm.xlu0 %8064, %v3227_v40   ;;  %v2914_v63 = vsel %vm2850_vm13, %v17526_v17, %v8751_v23  ;;  %v2915_v2 = vsel %vm2851_vm2, %v17528_v45, %v8751_v23  ;;  %vm3167_vm3 = vcmp.eq.f32.partialorder %v11034_v11, %v11024_v51 }
 0x1d5   :  { %v2978_v44 = vmax.f32 %v17527_v13, %v2914_v63  ;;  %v3042_v59 = vadd.f32 %v2914_v63, %v17527_v13  ;;  %v11050_v40 = vsel %vm397_vm10, %v2977_v9, %v3041_v55  ;;  %v2979_v17 = vmax.f32 %v17530_v31, %v2915_v2  ;;  %v17532_v55 = vld [vmem:[#allocation63_spill] sm:$0xff] }
 0x1d6   :  { %17529 = vst [vmem:[#allocation88_spill] sm:$0xff] %v11050_v40  ;;  %v3043_v27 = vadd.f32 %v2915_v2, %v17530_v31  ;;  %v3230_v63 = vsel %vm3166_vm15, 1, %v17161_v14  ;;  %v3231_v45 = vsel %vm3167_vm3, 1, %v17161_v14  ;;  %vm3168_vm5 = vcmp.eq.f32.partialorder %v11050_v40, %v11034_v11 }
 0x1d7   :  { %3307 = vperm.xlu1 %8065, %v3228_v24   ;;  %v11056_v22 = vsel %vm397_vm10, %v2978_v44, %v3042_v59  ;;  %v17534_v59 = vld [vmem:[#allocation9_spill] sm:$0xff] }
 0x1d8   :  { %17531 = vst [vmem:[#allocation54_spill] sm:$0xff] %v11056_v22  ;;  %3310 = vperm.xlu0 %8064, %v3229_v57   ;;  %v2692_v13 = vpop.permute.xlu1 %2691  ;;  %v2695_v51 = vpop.permute.xlu0 %2694  ;;  %vm3169_vm7 = vcmp.eq.f32.partialorder %v11056_v22, %v11050_v40  ;;  %v11066_v9 = vsel %vm397_vm10, %v2979_v17, %v3043_v27  ;;  %v17533_v57 = vld [vmem:[#allocation16_spill] sm:$0xff]  ;;  %v3232_v40 = vsel %vm3168_vm5, 1, %v17161_v14 }
 0x1d9   :  { %vm2852_vm4 = vcmp.eq.s32.totalorder %v2692_v13, 1  ;;  %vm2853_vm6 = vcmp.eq.s32.totalorder %v2695_v51, 1  ;;  %v17535_v51 = vld [vmem:[#allocation15_spill] sm:$0xff]  ;;  %v3233_v17 = vsel %vm3169_vm7, 1, %v17161_v14  ;;  %vm3170_vm14 = vcmp.eq.f32.partialorder %v11066_v9, %v11056_v22 }
 0x1da   :  { %v2916_v24 = vsel %vm2852_vm4, %v17532_v55, %v8751_v23  ;;  %v2917_v44 = vsel %vm2853_vm6, %v17533_v57, %v8751_v23  ;;  %v17539_v57 = vld [vmem:[#allocation25_spill] sm:$0xff] }
 0x1db   :  { %3313 = vperm.xlu1 %8065, %v3230_v63   ;;  %v2980_v2 = vmax.f32 %v17534_v59, %v2916_v24  ;;  %v3044_v31 = vadd.f32 %v2916_v24, %v17534_v59  ;;  %v2981_v13 = vmax.f32 %v17535_v51, %v2917_v44  ;;  %v3045_v11 = vadd.f32 %v2917_v44, %v17535_v51  ;;  %v17540_v59 = vld [vmem:[#allocation10_spill] sm:$0xff] }
 0x1dc   :  { %3316 = vperm.xlu0 %8064, %v3231_v45   ;;  %v2698_v27 = vpop.permute.xlu1 %2697  ;;  %v2701_v56 = vpop.permute.xlu0 %2700  ;;  %v17538_v45 = vld [vmem:[#allocation19_spill] sm:$0xff] }
 0x1dd   :  { %v11080_v55 = vsel %vm397_vm10, %v2980_v2, %v3044_v31  ;;  %vm2854_vm8 = vcmp.eq.s32.totalorder %v2698_v27, 1  ;;  %vm2855_vm9 = vcmp.eq.s32.totalorder %v2701_v56, 1  ;;  %v11086_v63 = vsel %vm397_vm10, %v2981_v13, %v3045_v11  ;;  %v17541_v56 = vld [vmem:[#allocation21_spill] sm:$0xff] }
 0x1de   :  { %17536 = vst [vmem:[#allocation56_spill] sm:$0xff] %v11080_v55  ;;  %17537 = vst [vmem:[#allocation53_spill] sm:$0xff] %v11086_v63  ;;  %v2918_v24 = vsel %vm2854_vm8, %v17538_v45, %v8751_v23  ;;  %v2919_v44 = vsel %vm2855_vm9, %v17539_v57, %v8751_v23  ;;  %vm3171_vm1 = vcmp.eq.f32.partialorder %v11080_v55, %v11066_v9  ;;  %v3234_v11 = vsel %vm3170_vm14, 1, %v17161_v14 }
 0x1df   :  { %3319 = vperm.xlu1 %8065, %v3232_v40   ;;  %v2982_v2 = vmax.f32 %v17540_v59, %v2918_v24  ;;  %v3046_v31 = vadd.f32 %v2918_v24, %v17540_v59  ;;  %v2983_v51 = vmax.f32 %v17541_v56, %v2919_v44  ;;  %v3047_v13 = vadd.f32 %v2919_v44, %v17541_v56  ;;  %v17545_v44 = vld [vmem:[#allocation28_spill] sm:$0xff] }
 0x1e0   :  { %3322 = vperm.xlu0 %8064, %v3233_v17   ;;  %v2704_v27 = vpop.permute.xlu1 %2703  ;;  %v3235_v45 = vsel %vm3171_vm1, 1, %v17161_v14  ;;  %v2707_v22 = vpop.permute.xlu0 %2706  ;;  %vm3172_vm12 = vcmp.eq.f32.partialorder %v11086_v63, %v11080_v55  ;;  %v17544_v17 = vld [vmem:[#allocation26_spill] sm:$0xff] }
 0x1e1   :  { %v11102_v57 = vsel %vm397_vm10, %v2982_v2, %v3046_v31  ;;  %vm2856_vm11 = vcmp.eq.s32.totalorder %v2704_v27, 1  ;;  %vm2857_vm13 = vcmp.eq.s32.totalorder %v2707_v22, 1  ;;  %v11108_v40 = vsel %vm397_vm10, %v2983_v51, %v3047_v13  ;;  %v17546_v2 = vld [vmem:[#allocation14_spill] sm:$0xff]  ;;  %v17547_v22 = vld [vmem:[#allocation24_spill] sm:$0xff] }
 0x1e2   :  { %17542 = vst [vmem:[#allocation89_spill] sm:$0xff] %v11102_v57  ;;  %17543 = vst [vmem:[#allocation57_spill] sm:$0xff] %v11108_v40  ;;  %v2920_v24 = vsel %vm2856_vm11, %v17544_v17, %v8751_v23  ;;  %v2921_v59 = vsel %vm2857_vm13, %v17545_v44, %v8751_v23  ;;  %vm3173_vm15 = vcmp.eq.f32.partialorder %v11102_v57, %v11086_v63  ;;  %v3236_v51 = vsel %vm3172_vm12, 1, %v17161_v14 }
 0x1e3   :  { %3325 = vperm.xlu1 %8065, %v3234_v11   ;;  %v2984_v31 = vmax.f32 %v17546_v2, %v2920_v24  ;;  %v3048_v56 = vadd.f32 %v2920_v24, %v17546_v2  ;;  %v2985_v27 = vmax.f32 %v17547_v22, %v2921_v59  ;;  %v3049_v13 = vadd.f32 %v2921_v59, %v17547_v22  ;;  %v17550_v59 = vld [vmem:[#allocation68_spill] sm:$0xff] }
 0x1e4   :  { %3328 = vperm.xlu0 %8064, %v3235_v45   ;;  %v3237_v17 = vsel %vm3173_vm15, 1, %v17161_v14  ;;  %vm3174_vm2 = vcmp.eq.f32.partialorder %v11108_v40, %v11102_v57 }
 0x1e5   :  { %v11124_v44 = vsel %vm397_vm10, %v2984_v31, %v3048_v56  ;;  %v11130_v11 = vsel %vm397_vm10, %v2985_v27, %v3049_v13  ;;  %v3238_v31 = vsel %vm3174_vm2, 1, %v17161_v14  ;;  %v17551_v56 = vld [vmem:[#allocation23_spill] sm:$0xff]  ;;  %v17552_v13 = vld [vmem:[#allocation20_spill] sm:$0xff] }
 0x1e6   :  { %17548 = vst [vmem:[#allocation52_spill] sm:$0xff] %v11124_v44  ;;  %17549 = vst [vmem:[#allocation12_spill] sm:$0xff] %v11130_v11  ;;  %v2710_v45 = vpop.permute.xlu1 %2709  ;;  %v2713_v24 = vpop.permute.xlu0 %2712  ;;  %vm3175_vm3 = vcmp.eq.f32.partialorder %v11124_v44, %v11108_v40  ;;  %vm3176_vm6 = vcmp.eq.f32.partialorder %v11130_v11, %v11124_v44 }
 0x1e7   :  { %3331 = vperm.xlu1 %8065, %v3236_v51   ;;  %vm2858_vm4 = vcmp.eq.s32.totalorder %v2710_v45, 1  ;;  %vm2859_vm5 = vcmp.eq.s32.totalorder %v2713_v24, 1  ;;  %v3239_v27 = vsel %vm3175_vm3, 1, %v17161_v14  ;;  %v17553_v45 = vld [vmem:[#allocation22_spill] sm:$0xff]  ;;  %v3240_v44 = vsel %vm3176_vm6, 1, %v17161_v14 }
 0x1e8   :  { %3334 = vperm.xlu0 %8064, %v3237_v17   ;;  %v2922_v2 = vsel %vm2858_vm4, %v17550_v59, %v8751_v23  ;;  %v2923_v22 = vsel %vm2859_vm5, %v17551_v56, %v8751_v23 }
 0x1e9   :  { %v2986_v57 = vmax.f32 %v17552_v13, %v2922_v2  ;;  %v3050_v51 = vadd.f32 %v2922_v2, %v17552_v13  ;;  %v2987_v17 = vmax.f32 %v17553_v45, %v2923_v22  ;;  %v3051_v24 = vadd.f32 %v2923_v22, %v17553_v45  ;;  %v17556_v2 = vld [vmem:[#allocation62_spill] sm:$0xff]  ;;  %v17557_v22 = vld [vmem:[#allocation31_spill] sm:$0xff] }
 0x1ea   :  { %v2716_v40 = vpop.permute.xlu1 %2715  ;;  %v2719_v63 = vpop.permute.xlu0 %2718 }
 0x1eb   :  { %v11149_v59 = vsel %vm397_vm10, %v2986_v57, %v3050_v51  ;;  %3337 = vperm.xlu1 %8065, %v3238_v31   ;;  %v11153_v56 = vsel %vm397_vm10, %v2987_v17, %v3051_v24  ;;  %vm2860_vm7 = vcmp.eq.s32.totalorder %v2716_v40, 1  ;;  %vm2861_vm8 = vcmp.eq.s32.totalorder %v2719_v63, 1  ;;  %v17558_v57 = vld [vmem:[#allocation64_spill] sm:$0xff] }
 0x1ec   :  { %17554 = vst [vmem:[#allocation91_spill] sm:$0xff] %v11149_v59  ;;  %17555 = vst [vmem:[#allocation61_spill] sm:$0xff] %v11153_v56  ;;  %3340 = vperm.xlu0 %8064, %v3239_v27   ;;  %v2924_v13 = vsel %vm2860_vm7, %v17556_v2, %v8751_v23  ;;  %v2925_v45 = vsel %vm2861_vm8, %v17557_v22, %v8751_v23  ;;  %vm3177_vm14 = vcmp.eq.f32.partialorder %v11149_v59, %v11130_v11  ;;  %v17559_v17 = vld [vmem:[#allocation32_spill] sm:$0xff] }
 0x1ed   :  { %vm3178_vm9 = vcmp.eq.f32.partialorder %v11153_v56, %v11149_v59  ;;  %v2988_v31 = vmax.f32 %v17558_v57, %v2924_v13  ;;  %v3052_v51 = vadd.f32 %v2924_v13, %v17558_v57  ;;  %v2989_v40 = vmax.f32 %v17559_v17, %v2925_v45  ;;  %v17562_v13 = vld [vmem:[#allocation29_spill] sm:$0xff] }
 0x1ee   :  { %v3053_v63 = vadd.f32 %v2925_v45, %v17559_v17  ;;  %v2722_v27 = vpop.permute.xlu1 %2721  ;;  %v3241_v24 = vsel %vm3177_vm14, 1, %v17161_v14  ;;  %v3242_v2 = vsel %vm3178_vm9, 1, %v17161_v14  ;;  %v2725_v22 = vpop.permute.xlu0 %2724  ;;  %v17563_v57 = vld [vmem:[#allocation33_spill] sm:$0xff] }
 0x1ef   :  { %v11171_v11 = vsel %vm397_vm10, %v2988_v31, %v3052_v51  ;;  %3343 = vperm.xlu1 %8065, %v3240_v44   ;;  %vm2862_vm1 = vcmp.eq.s32.totalorder %v2722_v27, 1  ;;  %vm2863_vm11 = vcmp.eq.s32.totalorder %v2725_v22, 1  ;;  %v17564_v44 = vld [vmem:[#allocation27_spill] sm:$0xff] }
 0x1f0   :  { %17560 = vst [vmem:[#allocation60_spill] sm:$0xff] %v11171_v11  ;;  %v11175_v59 = vsel %vm397_vm10, %v2989_v40, %v3053_v63  ;;  %3346 = vperm.xlu0 %8064, %v3241_v24   ;;  %v2926_v45 = vsel %vm2862_vm1, %v17562_v13, %v8751_v23  ;;  %v2927_v17 = vsel %vm2863_vm11, %v17563_v57, %v8751_v23  ;;  %v17565_v40 = vld [vmem:[#allocation30_spill] sm:$0xff] }
 0x1f1   :  { %17561 = vst [vmem:[#allocation59_spill] sm:$0xff] %v11175_v59  ;;  %vm3179_vm12 = vcmp.eq.f32.partialorder %v11171_v11, %v11153_v56  ;;  %vm3180_vm13 = vcmp.eq.f32.partialorder %v11175_v59, %v11171_v11  ;;  %v2990_v31 = vmax.f32 %v17564_v44, %v2926_v45  ;;  %v3054_v51 = vadd.f32 %v2926_v45, %v17564_v44  ;;  %v17567_v11 = vld [vmem:[#allocation34_spill] sm:$0xff] }
 0x1f2   :  { %v2991_v63 = vmax.f32 %v17565_v40, %v2927_v17  ;;  %v3055_v27 = vadd.f32 %v2927_v17, %v17565_v40  ;;  %v2728_v24 = vpop.permute.xlu1 %2727  ;;  %v3243_v22 = vsel %vm3179_vm12, 1, %v17161_v14  ;;  %v3244_v45 = vsel %vm3180_vm13, 1, %v17161_v14  ;;  %v17569_v40 = vld [vmem:[#allocation65_spill] sm:$0xff] }
 0x1f3   :  { %v11192_v13 = vsel %vm397_vm10, %v2990_v31, %v3054_v51  ;;  %3349 = vperm.xlu1 %8065, %v3242_v2   ;;  %vm2864_vm15 = vcmp.eq.s32.totalorder %v2728_v24, 1  ;;  %v2731_v44 = vpop.permute.xlu0 %2730  ;;  %v17568_v2 = vld [vmem:[#allocation66_spill] sm:$0xff]  ;;  %v17570_v24 = vld [vmem:[#allocation72_spill] sm:$0xff] }
 0x1f4   :  { %17566 = vst [vmem:[#allocation13_spill] sm:$0xff] %v11192_v13  ;;  %v11196_v57 = vsel %vm397_vm10, %v2991_v63, %v3055_v27  ;;  %3352 = vperm.xlu0 %8064, %v3243_v22   ;;  %v2928_v17 = vsel %vm2864_vm15, %v17567_v11, %v8751_v23  ;;  %vm2865_vm2 = vcmp.eq.s32.totalorder %v2731_v44, 1  ;;  %vm3181_vm3 = vcmp.eq.f32.partialorder %v11192_v13, %v11175_v59 }
 0x1f5   :  { %vm3182_vm4 = vcmp.eq.f32.partialorder %v11196_v57, %v11192_v13  ;;  %v2992_v31 = vmax.f32 %v17568_v2, %v2928_v17  ;;  %v3056_v51 = vadd.f32 %v2928_v17, %v17568_v2  ;;  %v2929_v63 = vsel %vm2865_vm2, %v17569_v40, %v8751_v23  ;;  %v17571_v40 = vld [vmem:[#allocation40_spill] sm:$0xff] }
 0x1f6   :  { %v3245_v27 = vsel %vm3181_vm3, 1, %v17161_v14  ;;  %v2993_v22 = vmax.f32 %v17570_v24, %v2929_v63  ;;  %v3057_v11 = vadd.f32 %v2929_v63, %v17570_v24  ;;  %v2734_v44 = vpop.permute.xlu1 %2733  ;;  %v3246_v13 = vsel %vm3182_vm4, 1, %v17161_v14  ;;  %v17572_v63 = vld [vmem:[#allocation69_spill] sm:$0xff] }
 0x1f7   :  { %v11214_v59 = vsel %vm397_vm10, %v2992_v31, %v3056_v51  ;;  %3355 = vperm.xlu1 %8065, %v3244_v45   ;;  %vm2866_vm5 = vcmp.eq.s32.totalorder %v2734_v44, 1  ;;  %v2737_v17 = vpop.permute.xlu0 %2736  ;;  %v17573_v51 = vld [vmem:[#allocation38_spill] sm:$0xff]  ;;  %v17574_v44 = vld [vmem:[#allocation36_spill] sm:$0xff] }
 0x1f8   :  { %3358 = vperm.xlu0 %8064, %v3245_v27   ;;  %v11219_v2 = vsel %vm397_vm10, %v2993_v22, %v3057_v11  ;;  %v2930_v56 = vsel %vm2866_vm5, %v17571_v40, %v8751_v23  ;;  %vm2867_vm6 = vcmp.eq.s32.totalorder %v2737_v17, 1  ;;  %vm3183_vm7 = vcmp.eq.f32.partialorder %v11214_v59, %v11196_v57 }
 0x1f9   :  { %v2994_v31 = vmax.f32 %v17572_v63, %v2930_v56  ;;  %v3058_v45 = vadd.f32 %v2930_v56, %v17572_v63  ;;  %v2931_v27 = vsel %vm2867_vm6, %v17573_v51, %v8751_v23  ;;  %v3247_v24 = vsel %vm3183_vm7, 1, %v17161_v14 }
 0x1fa   :  { %v2995_v55 = vmax.f32 %v17574_v44, %v2931_v27  ;;  %v3059_v22 = vadd.f32 %v2931_v27, %v17574_v44  ;;  %vm3184_vm8 = vcmp.eq.f32.partialorder %v11219_v2, %v11214_v59 }
 0x1fb   :  { %v11236_v11 = vsel %vm397_vm10, %v2994_v31, %v3058_v45  ;;  %3361 = vperm.xlu1 %8065, %v3246_v13   ;;  %v3248_v40 = vsel %vm3184_vm8, 1, %v17161_v14  ;;  %v17576_v31 = vld [vmem:[#allocation71_spill] sm:$0xff] }
 0x1fc   :  { %17575 = vst [vmem:[#allocation58_spill] sm:$0xff] %v11236_v11  ;;  %3364 = vperm.xlu0 %8064, %v3247_v24   ;;  %v11240_v56 = vsel %vm397_vm10, %v2995_v55, %v3059_v22  ;;  %v2740_v17 = vpop.permute.xlu1 %2739  ;;  %v2743_v63 = vpop.permute.xlu0 %2742  ;;  %vm3185_vm14 = vcmp.eq.f32.partialorder %v11236_v11, %v11219_v2  ;;  %v17577_v24 = vld [vmem:[#allocation67_spill] sm:$0xff] }
 0x1fd   :  { %vm2868_vm9 = vcmp.eq.s32.totalorder %v2740_v17, 1  ;;  %vm2869_vm1 = vcmp.eq.s32.totalorder %v2743_v63, 1  ;;  %v3249_v51 = vsel %vm3185_vm14, 1, %v17161_v14  ;;  %vm3186_vm11 = vcmp.eq.f32.partialorder %v11240_v56, %v11236_v11 }
 0x1fe   :  { %v2932_v13 = vsel %vm2868_vm9, %v10471_v20, %v8751_v23  ;;  %v2933_v55 = vsel %vm2869_vm1, %v10468_v54, %v8751_v23  ;;  %v3250_v63 = vsel %vm3186_vm11, 1, %v17161_v14 }
 0x1ff   :  { %v2996_v45 = vmax.f32 %v17576_v31, %v2932_v13  ;;  %v3060_v27 = vadd.f32 %v2932_v13, %v17576_v31  ;;  %3367 = vperm.xlu1 %8065, %v3248_v40   ;;  %v2997_v44 = vmax.f32 %v17577_v24, %v2933_v55  ;;  %v3061_v22 = vadd.f32 %v2933_v55, %v17577_v24  ;;  %v17580_v40 = vld [vmem:[#allocation79_spill] sm:$0xff]  ;;  %v17581_v55 = vld [vmem:[#allocation70_spill] sm:$0xff]  ;;  %v17583_v24 = vld [vmem:[#allocation77_spill] sm:$0xff] }
 0x200   :  { %v2746_v17 = vpop.permute.xlu1 %2745  ;;  %3370 = vperm.xlu0 %8064, %v3249_v51   ;;  %v2749_v11 = vpop.permute.xlu0 %2748  ;;  %v17582_v51 = vld [vmem:[#allocation35_spill] sm:$0xff] }
 0x201   :  { %v11259_v20 = vsel %vm397_vm10, %v2996_v45, %v3060_v27  ;;  %v11263_v54 = vsel %vm397_vm10, %v2997_v44, %v3061_v22  ;;  %vm2870_vm12 = vcmp.eq.s32.totalorder %v2746_v17, 1  ;;  %vm2871_vm13 = vcmp.eq.s32.totalorder %v2749_v11, 1 }
 0x202   :  { %17578 = vst [vmem:[#allocation55_spill] sm:$0xff] %v11259_v20  ;;  %17579 = vst [vmem:[#allocation11_spill] sm:$0xff] %v11263_v54  ;;  %v2934_v13 = vsel %vm2870_vm12, %v17580_v40, %v8751_v23  ;;  %v2935_v31 = vsel %vm2871_vm13, %v17581_v55, %v8751_v23  ;;  %vm3187_vm15 = vcmp.eq.f32.partialorder %v11259_v20, %v11240_v56 }
 0x203   :  { %vm3188_vm2 = vcmp.eq.f32.partialorder %v11263_v54, %v11259_v20  ;;  %v2998_v45 = vmax.f32 %v17582_v51, %v2934_v13  ;;  %v3062_v27 = vadd.f32 %v2934_v13, %v17582_v51  ;;  %3373 = vperm.xlu1 %8065, %v3250_v63   ;;  %v2999_v44 = vmax.f32 %v17583_v24, %v2935_v31 }
 0x204   :  { %v3063_v11 = vadd.f32 %v2935_v31, %v17583_v24  ;;  %v3251_v22 = vsel %vm3187_vm15, 1, %v17161_v14  ;;  %v3252_v17 = vsel %vm3188_vm2, 1, %v17161_v14  ;;  %v17585_v31 = vld [vmem:[#allocation41_spill] sm:$0xff]  ;;  %v17586_v24 = vld [vmem:[#allocation74_spill] sm:$0xff] }
 0x205   :  { %v11281_v40 = vsel %vm397_vm10, %v2998_v45, %v3062_v27  ;;  %v2752_v20 = vpop.permute.xlu1 %2751  ;;  %3376 = vperm.xlu0 %8064, %v3251_v22   ;;  %v2755_v13 = vpop.permute.xlu0 %2754 }
 0x206   :  { %17584 = vst [vmem:[#allocation8_spill] sm:$0xff] %v11281_v40  ;;  %v11285_v55 = vsel %vm397_vm10, %v2999_v44, %v3063_v11  ;;  %vm2872_vm3 = vcmp.eq.s32.totalorder %v2752_v20, 1  ;;  %vm2873_vm4 = vcmp.eq.s32.totalorder %v2755_v13, 1  ;;  %vm3189_vm5 = vcmp.eq.f32.partialorder %v11281_v40, %v11263_v54  ;;  %v17587_v11 = vld [vmem:[#allocation39_spill] sm:$0xff] }
 0x207   :  { %vm3190_vm6 = vcmp.eq.f32.partialorder %v11285_v55, %v11281_v40  ;;  %v2936_v63 = vsel %vm2872_vm3, %v10532_v21, %v8751_v23  ;;  %3379 = vperm.xlu1 %8065, %v3252_v17   ;;  %v2937_v51 = vsel %vm2873_vm4, %v17585_v31, %v8751_v23  ;;  %v3253_v45 = vsel %vm3189_vm5, 1, %v17161_v14  ;;  %v17589_v31 = vld [vmem:[#allocation43_spill] sm:$0xff] }
 0x208   :  { %v3254_v27 = vsel %vm3190_vm6, 1, %v17161_v14  ;;  %v3000_v20 = vmax.f32 %v17586_v24, %v2936_v63  ;;  %v3064_v44 = vadd.f32 %v2936_v63, %v17586_v24  ;;  %v3001_v22 = vmax.f32 %v17587_v11, %v2937_v51  ;;  %v17590_v24 = vld [vmem:[#allocation37_spill] sm:$0xff] }
 0x209   :  { %v3065_v13 = vadd.f32 %v2937_v51, %v17587_v11  ;;  %v2758_v40 = vpop.permute.xlu1 %2757  ;;  %3382 = vperm.xlu0 %8064, %v3253_v45   ;;  %v2761_v54 = vpop.permute.xlu0 %2760  ;;  %v17591_v45 = vld [vmem:[#allocation76_spill] sm:$0xff] }
 0x20a   :  { %v11303_v21 = vsel %vm397_vm10, %v3000_v20, %v3064_v44  ;;  %vm2874_vm7 = vcmp.eq.s32.totalorder %v2758_v40, 1  ;;  %vm2875_vm8 = vcmp.eq.s32.totalorder %v2761_v54, 1  ;;  %v17592_v11 = vld [vmem:[#allocation80_spill] sm:$0xff] }
 0x20b   :  { %17588 = vst [vmem:[#allocation17_spill] sm:$0xff] %v11303_v21  ;;  %v11307_v17 = vsel %vm397_vm10, %v3001_v22, %v3065_v13  ;;  %v2938_v63 = vsel %vm2874_vm7, %v17589_v31, %v8751_v23  ;;  %3385 = vperm.xlu1 %8065, %v3254_v27   ;;  %v2939_v51 = vsel %vm2875_vm8, %v17590_v24, %v8751_v23 }
 0x20c   :  { %vm3191_vm14 = vcmp.eq.f32.partialorder %v11303_v21, %v11285_v55  ;;  %vm3192_vm9 = vcmp.eq.f32.partialorder %v11307_v17, %v11303_v21  ;;  %v3002_v20 = vmax.f32 %v17591_v45, %v2938_v63  ;;  %v3066_v44 = vadd.f32 %v2938_v63, %v17591_v45 }
 0x20d   :  { %v3003_v40 = vmax.f32 %v17592_v11, %v2939_v51  ;;  %v3067_v54 = vadd.f32 %v2939_v51, %v17592_v11  ;;  %v2764_v22 = vpop.permute.xlu1 %2763  ;;  %v3255_v27 = vsel %vm3191_vm14, 1, %v17161_v14  ;;  %v3256_v13 = vsel %vm3192_vm9, 1, %v17161_v14  ;;  %v2767_v31 = vpop.permute.xlu0 %2766 }
 0x20e   :  { %v11325_v24 = vsel %vm397_vm10, %v3002_v20, %v3066_v44  ;;  %vm2876_vm1 = vcmp.eq.s32.totalorder %v2764_v22, 1  ;;  %3388 = vperm.xlu0 %8064, %v3255_v27   ;;  %vm2877_vm11 = vcmp.eq.s32.totalorder %v2767_v31, 1  ;;  %v17593_v31 = vld [vmem:[#allocation48_spill] sm:$0xff] }
 0x20f   :  { %v11329_v21 = vsel %vm397_vm10, %v3003_v40, %v3067_v54  ;;  %v2940_v63 = vsel %vm2876_vm1, %v10586_v3, %v8751_v23  ;;  %3391 = vperm.xlu1 %8065, %v3256_v13   ;;  %v2941_v51 = vsel %vm2877_vm11, %v10583_v18, %v8751_v23  ;;  %vm3193_vm12 = vcmp.eq.f32.partialorder %v11325_v24, %v11307_v17 }
 0x210   :  { %vm3194_vm13 = vcmp.eq.f32.partialorder %v11329_v21, %v11325_v24  ;;  %v3004_v45 = vmax.f32 %v10485_v16, %v2940_v63  ;;  %v3068_v20 = vadd.f32 %v2940_v63, %v10485_v16  ;;  %v3005_v44 = vmax.f32 %v10526_v46, %v2941_v51 }
 0x211   :  { %v3069_v11 = vadd.f32 %v2941_v51, %v10526_v46  ;;  %v2770_v40 = vpop.permute.xlu1 %2769  ;;  %v3257_v3 = vsel %vm3193_vm12, 1, %v17161_v14  ;;  %v3258_v54 = vsel %vm3194_vm13, 1, %v17161_v14 }
 0x212   :  { %v11347_v18 = vsel %vm397_vm10, %v3004_v45, %v3068_v20  ;;  %vm2878_vm15 = vcmp.eq.s32.totalorder %v2770_v40, 1  ;;  %3394 = vperm.xlu0 %8064, %v3257_v3   ;;  %v2773_v16 = vpop.permute.xlu0 %2772  ;;  %v17594_v45 = vld [vmem:[#allocation44_spill] sm:$0xff] }
 0x213   :  { %v11351_v22 = vsel %vm397_vm10, %v3005_v44, %v3069_v11  ;;  %v2942_v27 = vsel %vm2878_vm15, %v10609_v5, %v8751_v23  ;;  %3397 = vperm.xlu1 %8065, %v3258_v54   ;;  %vm2879_vm2 = vcmp.eq.s32.totalorder %v2773_v16, 1  ;;  %vm3195_vm3 = vcmp.eq.f32.partialorder %v11347_v18, %v11329_v21 }
 0x214   :  { %vm3196_vm4 = vcmp.eq.f32.partialorder %v11351_v22, %v11347_v18  ;;  %v3006_v46 = vmax.f32 %v10515_v10, %v2942_v27  ;;  %v3070_v13 = vadd.f32 %v2942_v27, %v10515_v10  ;;  %v2943_v63 = vsel %vm2879_vm2, %v17593_v31, %v8751_v23 }
 0x215   :  { %v3259_v51 = vsel %vm3195_vm3, 1, %v17161_v14  ;;  %v3007_v20 = vmax.f32 %v17594_v45, %v2943_v63  ;;  %v3071_v5 = vadd.f32 %v2943_v63, %v17594_v45  ;;  %v3260_v44 = vsel %vm3196_vm4, 1, %v17161_v14  ;;  %v17595_v63 = vld [vmem:[#allocation73_spill] sm:$0xff] }
 0x216   :  { %v11369_v11 = vsel %vm397_vm10, %v3006_v46, %v3070_v13  ;;  %v2776_v40 = vpop.permute.xlu1 %2775  ;;  %3400 = vperm.xlu0 %8064, %v3259_v51  }
 0x217   :  { %v11373_v10 = vsel %vm397_vm10, %v3007_v20, %v3071_v5  ;;  %vm2880_vm5 = vcmp.eq.s32.totalorder %v2776_v40, 1  ;;  %3403 = vperm.xlu1 %8065, %v3260_v44   ;;  %v2779_v3 = vpop.permute.xlu0 %2778  ;;  %vm3197_vm6 = vcmp.eq.f32.partialorder %v11369_v11, %v11351_v22  ;;  %v17596_v44 = vld [vmem:[#allocation42_spill] sm:$0xff] }
 0x218   :  { %v2944_v54 = vsel %vm2880_vm5, %v10644_v61, %v8751_v23  ;;  %vm2881_vm7 = vcmp.eq.s32.totalorder %v2779_v3, 1  ;;  %v3261_v16 = vsel %vm3197_vm6, 1, %v17161_v14  ;;  %vm3198_vm8 = vcmp.eq.f32.partialorder %v11373_v10, %v11369_v11 }
 0x219   :  { %v3008_v27 = vmax.f32 %v10550_v19, %v2944_v54  ;;  %v3072_v46 = vadd.f32 %v2944_v54, %v10550_v19  ;;  %v2945_v13 = vsel %vm2881_vm7, %v10648_v4, %v8751_v23  ;;  %v3262_v31 = vsel %vm3198_vm8, 1, %v17161_v14  ;;  %v17597_v54 = vld [vmem:[#allocation75_spill] sm:$0xff] }
 0x21a   :  { %v3009_v51 = vmax.f32 %v17595_v63, %v2945_v13  ;;  %v3073_v45 = vadd.f32 %v2945_v13, %v17595_v63  ;;  %v2782_v61 = vpop.permute.xlu1 %2781  ;;  %3406 = vperm.xlu0 %8064, %v3261_v16  }
 0x21b   :  { %v11391_v20 = vsel %vm397_vm10, %v3008_v27, %v3072_v46  ;;  %vm2882_vm14 = vcmp.eq.s32.totalorder %v2782_v61, 1  ;;  %3409 = vperm.xlu1 %8065, %v3262_v31   ;;  %v2785_v5 = vpop.permute.xlu0 %2784  ;;  %v17598_v46 = vld [vmem:[#allocation46_spill] sm:$0xff] }
 0x21c   :  { %v11395_v19 = vsel %vm397_vm10, %v3009_v51, %v3073_v45  ;;  %v2946_v4 = vsel %vm2882_vm14, %v10674_v25, %v8751_v23  ;;  %vm2883_vm9 = vcmp.eq.s32.totalorder %v2785_v5, 1  ;;  %vm3199_vm1 = vcmp.eq.f32.partialorder %v11391_v20, %v11373_v10 }
 0x21d   :  { %v3010_v40 = vmax.f32 %v17596_v44, %v2946_v4  ;;  %v3074_v3 = vadd.f32 %v2946_v4, %v17596_v44  ;;  %v2947_v16 = vsel %vm2883_vm9, %v17597_v54, %v8751_v23  ;;  %v3263_v27 = vsel %vm3199_vm1, 1, %v17161_v14 }
 0x21e   :  { %v3011_v13 = vmax.f32 %v17598_v46, %v2947_v16  ;;  %v3075_v31 = vadd.f32 %v2947_v16, %v17598_v46  ;;  %3412 = vperm.xlu0 %8064, %v3263_v27   ;;  %vm3200_vm11 = vcmp.eq.f32.partialorder %v11395_v19, %v11391_v20 }
 0x21f   :  { %v11412_v25 = vsel %vm397_vm10, %v3010_v40, %v3074_v3  ;;  %v3264_v63 = vsel %vm3200_vm11, 1, %v17161_v14 }
 0x220   :  { %v11417_v51 = vsel %vm397_vm10, %v3011_v13, %v3075_v31  ;;  %v2788_v45 = vpop.permute.xlu1 %2787  ;;  %3415 = vperm.xlu1 %8065, %v3264_v63   ;;  %v2791_v61 = vpop.permute.xlu0 %2790  ;;  %vm3201_vm12 = vcmp.eq.f32.partialorder %v11412_v25, %v11395_v19 }
 0x221   :  { %vm2884_vm13 = vcmp.eq.s32.totalorder %v2788_v45, 1  ;;  %vm2885_vm15 = vcmp.eq.s32.totalorder %v2791_v61, 1  ;;  %v3265_v5 = vsel %vm3201_vm12, 1, %v17161_v14  ;;  %vm3202_vm2 = vcmp.eq.f32.partialorder %v11417_v51, %v11412_v25 }
 0x222   :  { %v2948_v4 = vsel %vm2884_vm13, %v10711_v32, %v8751_v23  ;;  %v2949_v44 = vsel %vm2885_vm15, %v10708_v12, %v8751_v23  ;;  %3418 = vperm.xlu0 %8064, %v3265_v5   ;;  %v3266_v40 = vsel %vm3202_vm2, 1, %v17161_v14 }
 0x223   :  { %v3012_v3 = vmax.f32 %v10603_v30, %v2948_v4  ;;  %v3076_v54 = vadd.f32 %v2948_v4, %v10603_v30  ;;  %v3013_v16 = vmax.f32 %v10690_v53, %v2949_v44  ;;  %v3077_v27 = vadd.f32 %v2949_v44, %v10690_v53 }
 0x224   :  { %v2794_v46 = vpop.permute.xlu1 %2793  ;;  %3421 = vperm.xlu1 %8065, %v3266_v40   ;;  %v2797_v13 = vpop.permute.xlu0 %2796 }
 0x225   :  { %v11435_v32 = vsel %vm397_vm10, %v3012_v3, %v3076_v54  ;;  %v11439_v12 = vsel %vm397_vm10, %v3013_v16, %v3077_v27  ;;  %vm2886_vm3 = vcmp.eq.s32.totalorder %v2794_v46, 1  ;;  %vm2887_vm4 = vcmp.eq.s32.totalorder %v2797_v13, 1 }
 0x226   :  { %v2950_v30 = vsel %vm2886_vm3, %v10737_v52, %v8751_v23  ;;  %v2951_v31 = vsel %vm2887_vm4, %v10734_v8, %v8751_v23  ;;  %vm3203_vm5 = vcmp.eq.f32.partialorder %v11435_v32, %v11417_v51  ;;  %vm3204_vm6 = vcmp.eq.f32.partialorder %v11439_v12, %v11435_v32 }
 0x227   :  { %v3014_v53 = vmax.f32 %v10635_v29, %v2950_v30  ;;  %v3078_v63 = vadd.f32 %v2950_v30, %v10635_v29  ;;  %v3015_v45 = vmax.f32 %v10704_v62, %v2951_v31  ;;  %v3079_v61 = vadd.f32 %v2951_v31, %v10704_v62 }
 0x228   :  { %v3267_v5 = vsel %vm3203_vm5, 1, %v17161_v14  ;;  %v3268_v52 = vsel %vm3204_vm6, 1, %v17161_v14 }
 0x229   :  { %v11457_v8 = vsel %vm397_vm10, %v3014_v53, %v3078_v63  ;;  %v11461_v4 = vsel %vm397_vm10, %v3015_v45, %v3079_v61  ;;  %v2800_v44 = vpop.permute.xlu1 %2799  ;;  %3424 = vperm.xlu0 %8064, %v3267_v5   ;;  %3427 = vperm.xlu1 %8065, %v3268_v52   ;;  %v2803_v29 = vpop.permute.xlu0 %2802  ;;  %v17599_v53 = vld [vmem:[#allocation83_spill] sm:$0xff]  ;;  %v17600_v63 = vld [vmem:[#allocation82_spill] sm:$0xff] }
 0x22a   :  { %vm2888_vm7 = vcmp.eq.s32.totalorder %v2800_v44, 1  ;;  %vm2889_vm8 = vcmp.eq.s32.totalorder %v2803_v29, 1  ;;  %vm3205_vm14 = vcmp.eq.f32.partialorder %v11457_v8, %v11439_v12  ;;  %vm3206_vm9 = vcmp.eq.f32.partialorder %v11461_v4, %v11457_v8  ;;  %v17601_v5 = vld [vmem:[#allocation47_spill] sm:$0xff] }
 0x22b   :  { %v2952_v62 = vsel %vm2888_vm7, %v10771_v50, %v8751_v23  ;;  %v2953_v40 = vsel %vm2889_vm8, %v10768_v0, %v8751_v23  ;;  %v3269_v3 = vsel %vm3205_vm14, 1, %v17161_v14  ;;  %v3270_v54 = vsel %vm3206_vm9, 1, %v17161_v14 }
 0x22c   :  { %v3016_v16 = vmax.f32 %v10669_v6, %v2952_v62  ;;  %v3080_v27 = vadd.f32 %v2952_v62, %v10669_v6  ;;  %v3017_v46 = vmax.f32 %v10730_v58, %v2953_v40  ;;  %v3081_v13 = vadd.f32 %v2953_v40, %v10730_v58 }
 0x22d   :  { %v2806_v30 = vpop.permute.xlu1 %2805  ;;  %3430 = vperm.xlu0 %8064, %v3269_v3   ;;  %3433 = vperm.xlu1 %8065, %v3270_v54   ;;  %v2809_v31 = vpop.permute.xlu0 %2808 }
 0x22e   :  { %v11479_v50 = vsel %vm397_vm10, %v3016_v16, %v3080_v27  ;;  %v11483_v0 = vsel %vm397_vm10, %v3017_v46, %v3081_v13  ;;  %vm2890_vm1 = vcmp.eq.s32.totalorder %v2806_v30, 1  ;;  %vm2891_vm11 = vcmp.eq.s32.totalorder %v2809_v31, 1 }
 0x22f   :  { %v2954_v6 = vsel %vm2890_vm1, %v10797_v60, %v8751_v23  ;;  %v2955_v58 = vsel %vm2891_vm11, %v17599_v53, %v8751_v23  ;;  %vm3207_vm12 = vcmp.eq.f32.partialorder %v11479_v50, %v11461_v4  ;;  %vm3208_vm13 = vcmp.eq.f32.partialorder %v11483_v0, %v11479_v50 }
 0x230   :  { %v3018_v45 = vmax.f32 %v17600_v63, %v2954_v6  ;;  %v3082_v61 = vadd.f32 %v2954_v6, %v17600_v63  ;;  %v3019_v52 = vmax.f32 %v17601_v5, %v2955_v58  ;;  %v3083_v44 = vadd.f32 %v2955_v58, %v17601_v5  ;;  %v17602_v5 = vld [vmem:[#allocation45_spill] sm:$0xff] }
 0x231   :  { %v3271_v29 = vsel %vm3207_vm12, 1, %v17161_v14  ;;  %v3272_v60 = vsel %vm3208_vm13, 1, %v17161_v14 }
 0x232   :  { %v11501_v62 = vsel %vm397_vm10, %v3018_v45, %v3082_v61  ;;  %v11505_v40 = vsel %vm397_vm10, %v3019_v52, %v3083_v44  ;;  %v2812_v3 = vpop.permute.xlu1 %2811  ;;  %3436 = vperm.xlu0 %8064, %v3271_v29   ;;  %3439 = vperm.xlu1 %8065, %v3272_v60   ;;  %v2815_v54 = vpop.permute.xlu0 %2814 }
 0x233   :  { %vm2892_vm15 = vcmp.eq.s32.totalorder %v2812_v3, 1  ;;  %vm2893_vm2 = vcmp.eq.s32.totalorder %v2815_v54, 1  ;;  %vm3209_vm3 = vcmp.eq.f32.partialorder %v11501_v62, %v11483_v0  ;;  %vm3210_vm4 = vcmp.eq.f32.partialorder %v11505_v40, %v11501_v62 }
 0x234   :  { %v2956_v16 = vsel %vm2892_vm15, %v10831_v35, %v8751_v23  ;;  %v2957_v27 = vsel %vm2893_vm2, %v10828_v43, %v8751_v23  ;;  %v3273_v46 = vsel %vm3209_vm3, 1, %v17161_v14  ;;  %v3274_v13 = vsel %vm3210_vm4, 1, %v17161_v14 }
 0x235   :  { %v3020_v30 = vmax.f32 %v10725_v39, %v2956_v16  ;;  %v3084_v31 = vadd.f32 %v2956_v16, %v10725_v39  ;;  %v3021_v6 = vmax.f32 %v10790_v48, %v2957_v27  ;;  %v3085_v53 = vadd.f32 %v2957_v27, %v10790_v48 }
 0x236   :  { %v2818_v58 = vpop.permute.xlu1 %2817  ;;  %3442 = vperm.xlu0 %8064, %v3273_v46   ;;  %3445 = vperm.xlu1 %8065, %v3274_v13   ;;  %v2821_v63 = vpop.permute.xlu0 %2820  ;;  %v17603_v13 = vld [vmem:[#allocation49_spill] sm:$0xff] }
 0x237   :  { %v11523_v35 = vsel %vm397_vm10, %v3020_v30, %v3084_v31  ;;  %v11527_v43 = vsel %vm397_vm10, %v3021_v6, %v3085_v53  ;;  %vm2894_vm5 = vcmp.eq.s32.totalorder %v2818_v58, 1  ;;  %vm2895_vm6 = vcmp.eq.s32.totalorder %v2821_v63, 1 }
 0x238   :  { %v2958_v39 = vsel %vm2894_vm5, %v10857_v42, %v8751_v23  ;;  %v2959_v48 = vsel %vm2895_vm6, %v10854_v37, %v8751_v23  ;;  %vm3211_vm7 = vcmp.eq.f32.partialorder %v11523_v35, %v11505_v40  ;;  %vm3212_vm8 = vcmp.eq.f32.partialorder %v11527_v43, %v11523_v35 }
 0x239   :  { %v3022_v45 = vmax.f32 %v10755_v26, %v2958_v39  ;;  %v3086_v61 = vadd.f32 %v2958_v39, %v10755_v26  ;;  %v3023_v52 = vmax.f32 %v17602_v5, %v2959_v48  ;;  %v3087_v44 = vadd.f32 %v2959_v48, %v17602_v5  ;;  %v17604_v48 = vld [vmem:[#allocation78_spill] sm:$0xff]  ;;  %v17605_v5 = vld [vmem:[#allocation81_spill] sm:$0xff] }
 0x23a   :  { %v2824_v29 = vpop.permute.xlu1 %2823  ;;  %v3275_v42 = vsel %vm3211_vm7, 1, %v17161_v14  ;;  %v3276_v60 = vsel %vm3212_vm8, 1, %v17161_v14  ;;  %v2827_v37 = vpop.permute.xlu0 %2826 }
 0x23b   :  { %v11545_v3 = vsel %vm397_vm10, %v3022_v45, %v3086_v61  ;;  %v11549_v54 = vsel %vm397_vm10, %v3023_v52, %v3087_v44  ;;  %vm2896_vm14 = vcmp.eq.s32.totalorder %v2824_v29, 1  ;;  %3448 = vperm.xlu0 %8064, %v3275_v42   ;;  %3451 = vperm.xlu1 %8065, %v3276_v60   ;;  %vm2897_vm9 = vcmp.eq.s32.totalorder %v2827_v37, 1 }
 0x23c   :  { %v2960_v26 = vsel %vm2896_vm14, %v10877_v49, %v8751_v23  ;;  %v2961_v16 = vsel %vm2897_vm9, %v10874_v41, %v8751_v23  ;;  %vm3213_vm1 = vcmp.eq.f32.partialorder %v11545_v3, %v11527_v43  ;;  %vm3214_vm11 = vcmp.eq.f32.partialorder %v11549_v54, %v11545_v3 }
 0x23d   :  { %v3024_v27 = vmax.f32 %v10785_v38, %v2960_v26  ;;  %v3088_v46 = vadd.f32 %v2960_v26, %v10785_v38  ;;  %v3025_v30 = vmax.f32 %v17603_v13, %v2961_v16  ;;  %v3089_v31 = vadd.f32 %v2961_v16, %v17603_v13 }
 0x23e   :  { %v2830_v6 = vpop.permute.xlu1 %2829  ;;  %v3277_v49 = vsel %vm3213_vm1, 1, %v17161_v14  ;;  %v3278_v53 = vsel %vm3214_vm11, 1, %v17161_v14  ;;  %v2833_v41 = vpop.permute.xlu0 %2832 }
 0x23f   :  { %v11567_v58 = vsel %vm397_vm10, %v3024_v27, %v3088_v46  ;;  %v11571_v63 = vsel %vm397_vm10, %v3025_v30, %v3089_v31  ;;  %vm2898_vm12 = vcmp.eq.s32.totalorder %v2830_v6, 1  ;;  %3454 = vperm.xlu0 %8064, %v3277_v49   ;;  %3457 = vperm.xlu1 %8065, %v3278_v53   ;;  %vm2899_vm13 = vcmp.eq.s32.totalorder %v2833_v41, 1  ;;  %v17606_v53 = vld [vmem:[#allocation51_spill] sm:$0xff] }
 0x240   :  { %v2962_v38 = vsel %vm2898_vm12, %v10889_v34, %v8751_v23  ;;  %v2963_v39 = vsel %vm2899_vm13, %v10894_v7, %v8751_v23  ;;  %vm3215_vm15 = vcmp.eq.f32.partialorder %v11567_v58, %v11549_v54  ;;  %vm3216_vm2 = vcmp.eq.f32.partialorder %v11571_v63, %v11567_v58 }
 0x241   :  { %v3026_v45 = vmax.f32 %v17604_v48, %v2962_v38  ;;  %v3090_v61 = vadd.f32 %v2962_v38, %v17604_v48  ;;  %v3027_v52 = vmax.f32 %v17605_v5, %v2963_v39  ;;  %v3091_v44 = vadd.f32 %v2963_v39, %v17605_v5  ;;  %v17607_v5 = vld [vmem:[#allocation85_spill] sm:$0xff] }
 0x242   :  { %v2836_v29 = vpop.permute.xlu1 %2835  ;;  %v3279_v34 = vsel %vm3215_vm15, 1, %v17161_v14  ;;  %v3280_v42 = vsel %vm3216_vm2, 1, %v17161_v14 }
 0x243   :  { %v3287_v7 = vpop.permute.xlu0 %3286  ;;  %v11589_v60 = vsel %vm397_vm10, %v3026_v45, %v3090_v61  ;;  %v11593_v37 = vsel %vm397_vm10, %v3027_v52, %v3091_v44  ;;  %vm2900_vm3 = vcmp.eq.s32.totalorder %v2836_v29, 1  ;;  %3460 = vperm.xlu0 %8064, %v3279_v34   ;;  %3463 = vperm.xlu1 %8065, %v3280_v42  }
 0x244   :  { %vm3477_vm4 = vcmp.eq.s32.totalorder %v3287_v7, 1  ;;  %v2964_v26 = vsel %vm2900_vm3, %v10908_v33, %v8751_v23  ;;  %vm3217_vm5 = vcmp.eq.f32.partialorder %v11589_v60, %v11571_v63  ;;  %vm3218_vm6 = vcmp.eq.f32.partialorder %v11593_v37, %v11589_v60  ;;  %v17609_v7 = vld [vmem:[#allocation50_spill] sm:$0xff] }
 0x245   :  { %v3541_v16 = vsel %vm3477_vm4, %v10913_v15, %v8751_v23  ;;  %v3028_v27 = vmax.f32 %v10864_v36, %v2964_v26  ;;  %v3092_v46 = vadd.f32 %v2964_v26, %v10864_v36  ;;  %v3281_v13 = vsel %vm3217_vm5, 1, %v17161_v14 }
 0x246   :  { %v3282_v30 = vsel %vm3218_vm6, 1, %v17161_v14  ;;  %v3290_v31 = vpop.permute.xlu1 %3289  ;;  %v3605_v49 = vmax.f32 %v10919_v47, %v3541_v16  ;;  %v3669_v36 = vadd.f32 %v3541_v16, %v10919_v47 }
 0x247   :  { %v3293_v6 = vpop.permute.xlu0 %3292  ;;  %v11609_v33 = vsel %vm397_vm10, %v3028_v27, %v3092_v46  ;;  %3466 = vperm.xlu0 %8064, %v3281_v13   ;;  %3469 = vperm.xlu1 %8065, %v3282_v30   ;;  %vm3478_vm7 = vcmp.eq.s32.totalorder %v3290_v31, 1  ;;  %v17610_v46 = vld [vmem:[#allocation84_spill] sm:$0xff] }
 0x248   :  { %vm3479_vm8 = vcmp.eq.s32.totalorder %v3293_v6, 1  ;;  %v3542_v41 = vsel %vm3478_vm7, %v17606_v53, %v8751_v23  ;;  %vm3219_vm14 = vcmp.eq.f32.partialorder %v11609_v33, %v11593_v37  ;;  %vm3220_vm9 = vcmp.eq.f32.partialorder %v10919_v47, %v11609_v33 }
 0x249   :  { %v3283_v38 = vsel %vm3219_vm14, 1, %v17161_v14  ;;  %v3284_v39 = vsel %vm3220_vm9, 1, %v17161_v14  ;;  %v3606_v48 = vmax.f32 %v10913_v15, %v3542_v41  ;;  %v3670_v45 = vadd.f32 %v3542_v41, %v10913_v15 }
 0x24a   :  { %v3296_v61 = vpop.permute.xlu1 %3295  ;;  %v3543_v52 = vsel %vm3479_vm8, %v17607_v5, %v8751_v23  ;;  %v11629_v42 = vsel %vm397_vm10, %v3605_v49, %v3669_v36 }
 0x24b   :  { %v3299_v44 = vpop.permute.xlu0 %3298  ;;  %3472 = vperm.xlu0 %8064, %v3283_v38   ;;  %3475 = vperm.xlu1 %8065, %v3284_v39   ;;  %vm3480_vm1 = vcmp.eq.s32.totalorder %v3296_v61, 1  ;;  %v3607_v29 = vmax.f32 %v17606_v53, %v3543_v52  ;;  %v3671_v34 = vadd.f32 %v3543_v52, %v17606_v53  ;;  %17608 = vst [vmem:[#allocation18_spill] sm:$0xff] %v11629_v42 }
 0x24c   :  { %v3544_v26 = vsel %vm3480_vm1, %v17609_v7, %v8751_v23  ;;  %vm3481_vm11 = vcmp.eq.s32.totalorder %v3299_v44, 1  ;;  %v11643_v30 = vsel %vm397_vm10, %v3606_v48, %v3670_v45  ;;  %v17612_v48 = vld [vmem:[#allocation87_spill] sm:$0xff] }
 0x24d   :  { %v3608_v15 = vmax.f32 %v17607_v5, %v3544_v26  ;;  %v3672_v16 = vadd.f32 %v3544_v26, %v17607_v5  ;;  %v11637_v27 = vsel %vm397_vm10, %v3607_v29, %v3671_v34  ;;  %v3545_v13 = vsel %vm3481_vm11, %v17610_v46, %v8751_v23  ;;  %17611 = vst [vmem:[#allocation63_spill] sm:$0xff] %v11643_v30 }
 0x24e   :  { %v3302_v31 = vpop.permute.xlu1 %3301  ;;  %v3609_v6 = vmax.f32 %v17609_v7, %v3545_v13  ;;  %v3673_v49 = vadd.f32 %v3545_v13, %v17609_v7  ;;  %vm3797_vm12 = vcmp.eq.f32.partialorder %v11637_v27, %v11629_v42 }
 0x24f   :  { %v3305_v53 = vpop.permute.xlu0 %3304  ;;  %v11651_v41 = vsel %vm397_vm10, %v3608_v15, %v3672_v16  ;;  %vm3482_vm13 = vcmp.eq.s32.totalorder %v3302_v31, 1  ;;  %v3861_v36 = vsel %vm3797_vm12, 1, %v17161_v14  ;;  %v17613_v16 = vld [vmem:[#allocation86_spill] sm:$0xff] }
 0x250   :  { %vm3483_vm15 = vcmp.eq.s32.totalorder %v3305_v53, 1  ;;  %v3546_v38 = vsel %vm3482_vm13, %v10972_v28, %v8751_v23  ;;  %v11658_v39 = vsel %vm397_vm10, %v3609_v6, %v3673_v49  ;;  %vm3798_vm2 = vcmp.eq.f32.partialorder %v11651_v41, %v11643_v30  ;;  %3926 = vperm.xlu0 %8064, %v3861_v36  }
 0x251   :  { %v3547_v45 = vsel %vm3483_vm15, %v17612_v48, %v8751_v23  ;;  %v3610_v61 = vmax.f32 %v17610_v46, %v3546_v38  ;;  %v3674_v5 = vadd.f32 %v3546_v38, %v17610_v46  ;;  %v3862_v52 = vsel %vm3798_vm2, 1, %v17161_v14 }
 0x252   :  { %v3611_v44 = vmax.f32 %v10972_v28, %v3547_v45  ;;  %v3308_v29 = vpop.permute.xlu1 %3307  ;;  %3929 = vperm.xlu1 %8065, %v3862_v52   ;;  %v3675_v34 = vadd.f32 %v3547_v45, %v10972_v28  ;;  %vm3799_vm3 = vcmp.eq.f32.partialorder %v11658_v39, %v11637_v27  ;;  %v17614_v28 = vld [vmem:[#allocation92_spill] sm:$0xff] }
 0x253   :  { %v3311_v7 = vpop.permute.xlu0 %3310  ;;  %v11673_v26 = vsel %vm397_vm10, %v3610_v61, %v3674_v5  ;;  %vm3484_vm4 = vcmp.eq.s32.totalorder %v3308_v29, 1  ;;  %v3863_v15 = vsel %vm3799_vm3, 1, %v17161_v14 }
 0x254   :  { %vm3485_vm5 = vcmp.eq.s32.totalorder %v3311_v7, 1  ;;  %v3548_v46 = vsel %vm3484_vm4, %v17613_v16, %v8751_v23  ;;  %v11680_v13 = vsel %vm397_vm10, %v3611_v44, %v3675_v34  ;;  %vm3800_vm6 = vcmp.eq.f32.partialorder %v11673_v26, %v11651_v41  ;;  %3932 = vperm.xlu0 %8064, %v3863_v15   ;;  %v17616_v34 = vld [vmem:[#allocation90_spill] sm:$0xff] }
 0x255   :  { %v3549_v31 = vsel %vm3485_vm5, %v17614_v28, %v8751_v23  ;;  %v3612_v6 = vmax.f32 %v17612_v48, %v3548_v46  ;;  %v3676_v49 = vadd.f32 %v3548_v46, %v17612_v48  ;;  %v3864_v53 = vsel %vm3800_vm6, 1, %v17161_v14  ;;  %v17615_v48 = vld [vmem:[#allocation93_spill] sm:$0xff] }
 0x256   :  { %v3613_v36 = vmax.f32 %v17613_v16, %v3549_v31  ;;  %v3314_v38 = vpop.permute.xlu1 %3313  ;;  %3935 = vperm.xlu1 %8065, %v3864_v53   ;;  %v3677_v45 = vadd.f32 %v3549_v31, %v17613_v16  ;;  %vm3801_vm7 = vcmp.eq.f32.partialorder %v11680_v13, %v11658_v39 }
 0x257   :  { %v3317_v61 = vpop.permute.xlu0 %3316  ;;  %v11695_v5 = vsel %vm397_vm10, %v3612_v6, %v3676_v49  ;;  %vm3486_vm8 = vcmp.eq.s32.totalorder %v3314_v38, 1  ;;  %v3865_v52 = vsel %vm3801_vm7, 1, %v17161_v14 }
 0x258   :  { %vm3487_vm14 = vcmp.eq.s32.totalorder %v3317_v61, 1  ;;  %v3550_v44 = vsel %vm3486_vm8, %v17615_v48, %v8751_v23  ;;  %v11702_v29 = vsel %vm397_vm10, %v3613_v36, %v3677_v45  ;;  %vm3802_vm9 = vcmp.eq.f32.partialorder %v11695_v5, %v11673_v26  ;;  %3938 = vperm.xlu0 %8064, %v3865_v52   ;;  %v17619_v52 = vld [vmem:[#allocation54_spill] sm:$0xff] }
 0x259   :  { %v3551_v7 = vsel %vm3487_vm14, %v17616_v34, %v8751_v23  ;;  %v3614_v15 = vmax.f32 %v17614_v28, %v3550_v44  ;;  %v3678_v16 = vadd.f32 %v3550_v44, %v17614_v28  ;;  %v3866_v46 = vsel %vm3802_vm9, 1, %v17161_v14  ;;  %v17617_v28 = vld [vmem:[#allocation88_spill] sm:$0xff] }
 0x25a   :  { %v3615_v31 = vmax.f32 %v17615_v48, %v3551_v7  ;;  %v3320_v6 = vpop.permute.xlu1 %3319  ;;  %3941 = vperm.xlu1 %8065, %v3866_v46   ;;  %v3679_v49 = vadd.f32 %v3551_v7, %v17615_v48  ;;  %vm3803_vm1 = vcmp.eq.f32.partialorder %v11702_v29, %v11680_v13 }
 0x25b   :  { %v3323_v53 = vpop.permute.xlu0 %3322  ;;  %v11717_v36 = vsel %vm397_vm10, %v3614_v15, %v3678_v16  ;;  %vm3488_vm11 = vcmp.eq.s32.totalorder %v3320_v6, 1  ;;  %v3867_v38 = vsel %vm3803_vm1, 1, %v17161_v14 }
 0x25c   :  { %vm3489_vm12 = vcmp.eq.s32.totalorder %v3323_v53, 1  ;;  %v3552_v45 = vsel %vm3488_vm11, %v17617_v28, %v8751_v23  ;;  %v11724_v61 = vsel %vm397_vm10, %v3615_v31, %v3679_v49  ;;  %vm3804_vm13 = vcmp.eq.f32.partialorder %v11717_v36, %v11695_v5  ;;  %3944 = vperm.xlu0 %8064, %v3867_v38  }
 0x25d   :  { %17618 = vst [vmem:[#allocation16_spill] sm:$0xff] %v11724_v61  ;;  %v3553_v48 = vsel %vm3489_vm12, %v17619_v52, %v8751_v23  ;;  %v3616_v44 = vmax.f32 %v17616_v34, %v3552_v45  ;;  %v3680_v7 = vadd.f32 %v3552_v45, %v17616_v34  ;;  %v3868_v15 = vsel %vm3804_vm13, 1, %v17161_v14 }
 0x25e   :  { %v3617_v16 = vmax.f32 %v17617_v28, %v3553_v48  ;;  %v3326_v46 = vpop.permute.xlu1 %3325  ;;  %3947 = vperm.xlu1 %8065, %v3868_v15   ;;  %v3681_v31 = vadd.f32 %v3553_v48, %v17617_v28  ;;  %vm3805_vm15 = vcmp.eq.f32.partialorder %v11724_v61, %v11702_v29  ;;  %v17622_v28 = vld [vmem:[#allocation56_spill] sm:$0xff] }
 0x25f   :  { %v3329_v6 = vpop.permute.xlu0 %3328  ;;  %v11739_v49 = vsel %vm397_vm10, %v3616_v44, %v3680_v7  ;;  %vm3490_vm2 = vcmp.eq.s32.totalorder %v3326_v46, 1  ;;  %v3869_v53 = vsel %vm3805_vm15, 1, %v17161_v14 }
 0x260   :  { %17620 = vst [vmem:[#allocation9_spill] sm:$0xff] %v11739_v49  ;;  %vm3491_vm3 = vcmp.eq.s32.totalorder %v3329_v6, 1  ;;  %v3554_v34 = vsel %vm3490_vm2, %v11066_v9, %v8751_v23  ;;  %v11746_v38 = vsel %vm397_vm10, %v3617_v16, %v3681_v31  ;;  %vm3806_vm4 = vcmp.eq.f32.partialorder %v11739_v49, %v11717_v36  ;;  %3950 = vperm.xlu0 %8064, %v3869_v53  }
 0x261   :  { %17621 = vst [vmem:[#allocation15_spill] sm:$0xff] %v11746_v38  ;;  %v3555_v45 = vsel %vm3491_vm3, %v17622_v28, %v8751_v23  ;;  %v3618_v48 = vmax.f32 %v17619_v52, %v3554_v34  ;;  %v3682_v44 = vadd.f32 %v3554_v34, %v17619_v52  ;;  %v3870_v7 = vsel %vm3806_vm4, 1, %v17161_v14  ;;  %v17624_v52 = vld [vmem:[#allocation53_spill] sm:$0xff] }
 0x262   :  { %v3619_v15 = vmax.f32 %v11066_v9, %v3555_v45  ;;  %v3332_v46 = vpop.permute.xlu1 %3331  ;;  %3953 = vperm.xlu1 %8065, %v3870_v7   ;;  %v3683_v16 = vadd.f32 %v3555_v45, %v11066_v9  ;;  %vm3807_vm5 = vcmp.eq.f32.partialorder %v11746_v38, %v11724_v61  ;;  %v17626_v9 = vld [vmem:[#allocation89_spill] sm:$0xff] }
 0x263   :  { %v3335_v31 = vpop.permute.xlu0 %3334  ;;  %v11761_v6 = vsel %vm397_vm10, %v3618_v48, %v3682_v44  ;;  %vm3492_vm6 = vcmp.eq.s32.totalorder %v3332_v46, 1  ;;  %v3871_v53 = vsel %vm3807_vm5, 1, %v17161_v14 }
 0x264   :  { %17623 = vst [vmem:[#allocation19_spill] sm:$0xff] %v11761_v6  ;;  %vm3493_vm7 = vcmp.eq.s32.totalorder %v3335_v31, 1  ;;  %v3556_v34 = vsel %vm3492_vm6, %v17624_v52, %v8751_v23  ;;  %v11768_v7 = vsel %vm397_vm10, %v3619_v15, %v3683_v16  ;;  %vm3808_vm8 = vcmp.eq.f32.partialorder %v11761_v6, %v11739_v49  ;;  %3956 = vperm.xlu0 %8064, %v3871_v53  }
 0x265   :  { %17625 = vst [vmem:[#allocation25_spill] sm:$0xff] %v11768_v7  ;;  %v3557_v45 = vsel %vm3493_vm7, %v17626_v9, %v8751_v23  ;;  %v3620_v48 = vmax.f32 %v17622_v28, %v3556_v34  ;;  %v3684_v44 = vadd.f32 %v3556_v34, %v17622_v28  ;;  %v3872_v46 = vsel %vm3808_vm8, 1, %v17161_v14  ;;  %v17628_v28 = vld [vmem:[#allocation57_spill] sm:$0xff] }
 0x266   :  { %v3621_v31 = vmax.f32 %v17624_v52, %v3557_v45  ;;  %v3338_v61 = vpop.permute.xlu1 %3337  ;;  %3959 = vperm.xlu1 %8065, %v3872_v46   ;;  %v3685_v15 = vadd.f32 %v3557_v45, %v17624_v52  ;;  %vm3809_vm14 = vcmp.eq.f32.partialorder %v11768_v7, %v11746_v38  ;;  %v17630_v52 = vld [vmem:[#allocation52_spill] sm:$0xff] }
 0x267   :  { %v3341_v16 = vpop.permute.xlu0 %3340  ;;  %v11783_v53 = vsel %vm397_vm10, %v3620_v48, %v3684_v44  ;;  %vm3494_vm9 = vcmp.eq.s32.totalorder %v3338_v61, 1  ;;  %v3873_v49 = vsel %vm3809_vm14, 1, %v17161_v14 }
 0x268   :  { %17627 = vst [vmem:[#allocation10_spill] sm:$0xff] %v11783_v53  ;;  %vm3495_vm1 = vcmp.eq.s32.totalorder %v3341_v16, 1  ;;  %v3558_v34 = vsel %vm3494_vm9, %v17628_v28, %v8751_v23  ;;  %v11790_v46 = vsel %vm397_vm10, %v3621_v31, %v3685_v15  ;;  %vm3810_vm11 = vcmp.eq.f32.partialorder %v11783_v53, %v11761_v6  ;;  %3962 = vperm.xlu0 %8064, %v3873_v49  }
 0x269   :  { %17629 = vst [vmem:[#allocation21_spill] sm:$0xff] %v11790_v46  ;;  %v3559_v45 = vsel %vm3495_vm1, %v17630_v52, %v8751_v23  ;;  %v3622_v48 = vmax.f32 %v17626_v9, %v3558_v34  ;;  %v3686_v61 = vadd.f32 %v3558_v34, %v17626_v9  ;;  %v3874_v44 = vsel %vm3810_vm11, 1, %v17161_v14  ;;  %v17632_v9 = vld [vmem:[#allocation12_spill] sm:$0xff] }
 0x26a   :  { %v3623_v16 = vmax.f32 %v17628_v28, %v3559_v45  ;;  %v3344_v38 = vpop.permute.xlu1 %3343  ;;  %3965 = vperm.xlu1 %8065, %v3874_v44   ;;  %v3687_v31 = vadd.f32 %v3559_v45, %v17628_v28  ;;  %vm3811_vm12 = vcmp.eq.f32.partialorder %v11790_v46, %v11768_v7  ;;  %v17634_v28 = vld [vmem:[#allocation91_spill] sm:$0xff] }
 0x26b   :  { %v3347_v15 = vpop.permute.xlu0 %3346  ;;  %v11805_v49 = vsel %vm397_vm10, %v3622_v48, %v3686_v61  ;;  %vm3496_vm13 = vcmp.eq.s32.totalorder %v3344_v38, 1  ;;  %v3875_v6 = vsel %vm3811_vm12, 1, %v17161_v14 }
 0x26c   :  { %17631 = vst [vmem:[#allocation26_spill] sm:$0xff] %v11805_v49  ;;  %vm3497_vm15 = vcmp.eq.s32.totalorder %v3347_v15, 1  ;;  %v3560_v34 = vsel %vm3496_vm13, %v17632_v9, %v8751_v23  ;;  %v11812_v44 = vsel %vm397_vm10, %v3623_v16, %v3687_v31  ;;  %vm3812_vm2 = vcmp.eq.f32.partialorder %v11805_v49, %v11783_v53  ;;  %3968 = vperm.xlu0 %8064, %v3875_v6  }
 0x26d   :  { %17633 = vst [vmem:[#allocation28_spill] sm:$0xff] %v11812_v44  ;;  %v3561_v45 = vsel %vm3497_vm15, %v17634_v28, %v8751_v23  ;;  %v3624_v48 = vmax.f32 %v17630_v52, %v3560_v34  ;;  %v3688_v38 = vadd.f32 %v3560_v34, %v17630_v52  ;;  %v3876_v61 = vsel %vm3812_vm2, 1, %v17161_v14  ;;  %v17636_v52 = vld [vmem:[#allocation61_spill] sm:$0xff] }
 0x26e   :  { %v3625_v15 = vmax.f32 %v17632_v9, %v3561_v45  ;;  %v3350_v7 = vpop.permute.xlu1 %3349  ;;  %3971 = vperm.xlu1 %8065, %v3876_v61   ;;  %v3689_v16 = vadd.f32 %v3561_v45, %v17632_v9  ;;  %vm3813_vm3 = vcmp.eq.f32.partialorder %v11812_v44, %v11790_v46  ;;  %v17637_v9 = vld [vmem:[#allocation60_spill] sm:$0xff] }
 0x26f   :  { %v3353_v31 = vpop.permute.xlu0 %3352  ;;  %v11827_v6 = vsel %vm397_vm10, %v3624_v48, %v3688_v38  ;;  %vm3498_vm4 = vcmp.eq.s32.totalorder %v3350_v7, 1  ;;  %v3877_v53 = vsel %vm3813_vm3, 1, %v17161_v14 }
 0x270   :  { %17635 = vst [vmem:[#allocation14_spill] sm:$0xff] %v11827_v6  ;;  %vm3499_vm5 = vcmp.eq.s32.totalorder %v3353_v31, 1  ;;  %v3562_v34 = vsel %vm3498_vm4, %v17636_v52, %v8751_v23  ;;  %v11834_v61 = vsel %vm397_vm10, %v3625_v15, %v3689_v16  ;;  %vm3814_vm6 = vcmp.eq.f32.partialorder %v11827_v6, %v11805_v49  ;;  %3974 = vperm.xlu0 %8064, %v3877_v53  }
 0x271   :  { %v3563_v45 = vsel %vm3499_vm5, %v17637_v9, %v8751_v23  ;;  %v3626_v48 = vmax.f32 %v17634_v28, %v3562_v34  ;;  %v3690_v7 = vadd.f32 %v3562_v34, %v17634_v28  ;;  %v3878_v38 = vsel %vm3814_vm6, 1, %v17161_v14  ;;  %v17638_v28 = vld [vmem:[#allocation59_spill] sm:$0xff] }
 0x272   :  { %v3627_v31 = vmax.f32 %v17636_v52, %v3563_v45  ;;  %v3356_v46 = vpop.permute.xlu1 %3355  ;;  %3977 = vperm.xlu1 %8065, %v3878_v38   ;;  %v3691_v15 = vadd.f32 %v3563_v45, %v17636_v52  ;;  %vm3815_vm7 = vcmp.eq.f32.partialorder %v11834_v61, %v11812_v44  ;;  %v17640_v52 = vld [vmem:[#allocation13_spill] sm:$0xff] }
 0x273   :  { %v3359_v16 = vpop.permute.xlu0 %3358  ;;  %v11849_v53 = vsel %vm397_vm10, %v3626_v48, %v3690_v7  ;;  %vm3500_vm8 = vcmp.eq.s32.totalorder %v3356_v46, 1  ;;  %v3879_v49 = vsel %vm3815_vm7, 1, %v17161_v14 }
 0x274   :  { %vm3501_vm14 = vcmp.eq.s32.totalorder %v3359_v16, 1  ;;  %v3564_v34 = vsel %vm3500_vm8, %v17638_v28, %v8751_v23  ;;  %v11856_v38 = vsel %vm397_vm10, %v3627_v31, %v3691_v15  ;;  %vm3816_vm9 = vcmp.eq.f32.partialorder %v11849_v53, %v11827_v6  ;;  %3980 = vperm.xlu0 %8064, %v3879_v49  }
 0x275   :  { %17639 = vst [vmem:[#allocation24_spill] sm:$0xff] %v11856_v38  ;;  %v3565_v45 = vsel %vm3501_vm14, %v17640_v52, %v8751_v23  ;;  %v3628_v48 = vmax.f32 %v17637_v9, %v3564_v34  ;;  %v3692_v46 = vadd.f32 %v3564_v34, %v17637_v9  ;;  %v3880_v7 = vsel %vm3816_vm9, 1, %v17161_v14 }
 0x276   :  { %v3629_v16 = vmax.f32 %v17638_v28, %v3565_v45  ;;  %v3362_v44 = vpop.permute.xlu1 %3361  ;;  %3983 = vperm.xlu1 %8065, %v3880_v7   ;;  %v3693_v31 = vadd.f32 %v3565_v45, %v17638_v28  ;;  %vm3817_vm1 = vcmp.eq.f32.partialorder %v11856_v38, %v11834_v61 }
 0x277   :  { %v3365_v15 = vpop.permute.xlu0 %3364  ;;  %v11871_v49 = vsel %vm397_vm10, %v3628_v48, %v3692_v46  ;;  %vm3502_vm11 = vcmp.eq.s32.totalorder %v3362_v44, 1  ;;  %v3881_v6 = vsel %vm3817_vm1, 1, %v17161_v14 }
 0x278   :  { %vm3503_vm12 = vcmp.eq.s32.totalorder %v3365_v15, 1  ;;  %v3566_v9 = vsel %vm3502_vm11, %v11196_v57, %v8751_v23  ;;  %v11878_v34 = vsel %vm397_vm10, %v3629_v16, %v3693_v31  ;;  %vm3818_vm13 = vcmp.eq.f32.partialorder %v11871_v49, %v11849_v53  ;;  %3986 = vperm.xlu0 %8064, %v3881_v6  }
 0x279   :  { %v3567_v28 = vsel %vm3503_vm12, %v11214_v59, %v8751_v23  ;;  %v3630_v45 = vmax.f32 %v17640_v52, %v3566_v9  ;;  %v3694_v44 = vadd.f32 %v3566_v9, %v17640_v52  ;;  %v3882_v48 = vsel %vm3818_vm13, 1, %v17161_v14 }
 0x27a   :  { %v3631_v46 = vmax.f32 %v11196_v57, %v3567_v28  ;;  %v3368_v7 = vpop.permute.xlu1 %3367  ;;  %3989 = vperm.xlu1 %8065, %v3882_v48   ;;  %v3695_v16 = vadd.f32 %v3567_v28, %v11196_v57  ;;  %vm3819_vm15 = vcmp.eq.f32.partialorder %v11878_v34, %v11856_v38 }
 0x27b   :  { %v11893_v6 = vsel %vm397_vm10, %v3630_v45, %v3694_v44  ;;  %vm3504_vm2 = vcmp.eq.s32.totalorder %v3368_v7, 1  ;;  %v3883_v31 = vsel %vm3819_vm15, 1, %v17161_v14  ;;  %v3371_v15 = vpop.permute.xlu0 %3370  ;;  %v17643_v44 = vld [vmem:[#allocation58_spill] sm:$0xff] }
 0x27c   :  { %17641 = vst [vmem:[#allocation68_spill] sm:$0xff] %v11893_v6  ;;  %v3568_v52 = vsel %vm3504_vm2, %v11219_v2, %v8751_v23  ;;  %v11900_v9 = vsel %vm397_vm10, %v3631_v46, %v3695_v16  ;;  %vm3820_vm3 = vcmp.eq.f32.partialorder %v11893_v6, %v11871_v49  ;;  %3992 = vperm.xlu0 %8064, %v3883_v31   ;;  %vm3505_vm4 = vcmp.eq.s32.totalorder %v3371_v15, 1 }
 0x27d   :  { %17642 = vst [vmem:[#allocation23_spill] sm:$0xff] %v11900_v9  ;;  %v3632_v57 = vmax.f32 %v11214_v59, %v3568_v52  ;;  %v3696_v28 = vadd.f32 %v3568_v52, %v11214_v59  ;;  %v3884_v45 = vsel %vm3820_vm3, 1, %v17161_v14  ;;  %v3569_v48 = vsel %vm3505_vm4, %v17643_v44, %v8751_v23 }
 0x27e   :  { %v3374_v7 = vpop.permute.xlu1 %3373  ;;  %3995 = vperm.xlu1 %8065, %v3884_v45   ;;  %v3633_v38 = vmax.f32 %v11219_v2, %v3569_v48  ;;  %v3697_v46 = vadd.f32 %v3569_v48, %v11219_v2  ;;  %vm3821_vm5 = vcmp.eq.f32.partialorder %v11900_v9, %v11878_v34  ;;  %v17645_v48 = vld [vmem:[#allocation55_spill] sm:$0xff] }
 0x27f   :  { %v11915_v16 = vsel %vm397_vm10, %v3632_v57, %v3696_v28  ;;  %vm3506_vm6 = vcmp.eq.s32.totalorder %v3374_v7, 1  ;;  %v3885_v59 = vsel %vm3821_vm5, 1, %v17161_v14 }
 0x280   :  { %v3570_v31 = vsel %vm3506_vm6, %v11240_v56, %v8751_v23  ;;  %v11922_v15 = vsel %vm397_vm10, %v3633_v38, %v3697_v46  ;;  %vm3822_vm7 = vcmp.eq.f32.partialorder %v11915_v16, %v11893_v6  ;;  %3998 = vperm.xlu0 %8064, %v3885_v59   ;;  %v3377_v2 = vpop.permute.xlu0 %3376  ;;  %v17647_v59 = vld [vmem:[#allocation11_spill] sm:$0xff] }
 0x281   :  { %17644 = vst [vmem:[#allocation20_spill] sm:$0xff] %v11922_v15  ;;  %v3634_v52 = vmax.f32 %v17643_v44, %v3570_v31  ;;  %v3698_v57 = vadd.f32 %v3570_v31, %v17643_v44  ;;  %v3886_v28 = vsel %vm3822_vm7, 1, %v17161_v14  ;;  %vm3507_vm8 = vcmp.eq.s32.totalorder %v3377_v2, 1 }
 0x282   :  { %v3380_v45 = vpop.permute.xlu1 %3379  ;;  %4001 = vperm.xlu1 %8065, %v3886_v28   ;;  %v3571_v7 = vsel %vm3507_vm8, %v17645_v48, %v8751_v23  ;;  %vm3823_vm14 = vcmp.eq.f32.partialorder %v11922_v15, %v11900_v9 }
 0x283   :  { %v11935_v38 = vsel %vm397_vm10, %v3634_v52, %v3698_v57  ;;  %vm3508_vm9 = vcmp.eq.s32.totalorder %v3380_v45, 1  ;;  %v3635_v46 = vmax.f32 %v11240_v56, %v3571_v7  ;;  %v3699_v44 = vadd.f32 %v3571_v7, %v11240_v56 }
 0x284   :  { %17646 = vst [vmem:[#allocation22_spill] sm:$0xff] %v11935_v38  ;;  %v3572_v31 = vsel %vm3508_vm9, %v17647_v59, %v8751_v23  ;;  %vm3824_vm1 = vcmp.eq.f32.partialorder %v11935_v38, %v11915_v16  ;;  %v3887_v2 = vsel %vm3823_vm14, 1, %v17161_v14  ;;  %v3383_v28 = vpop.permute.xlu0 %3382 }
 0x285   :  { %v3636_v9 = vmax.f32 %v17645_v48, %v3572_v31  ;;  %v3700_v6 = vadd.f32 %v3572_v31, %v17645_v48  ;;  %v11948_v52 = vsel %vm397_vm10, %v3635_v46, %v3699_v44  ;;  %v3888_v57 = vsel %vm3824_vm1, 1, %v17161_v14  ;;  %4004 = vperm.xlu0 %8064, %v3887_v2   ;;  %v17648_v48 = vld [vmem:[#allocation8_spill] sm:$0xff] }
 0x286   :  { %v3386_v56 = vpop.permute.xlu1 %3385  ;;  %4007 = vperm.xlu1 %8065, %v3888_v57   ;;  %vm3509_vm11 = vcmp.eq.s32.totalorder %v3383_v28, 1  ;;  %vm3825_vm12 = vcmp.eq.f32.partialorder %v11948_v52, %v11922_v15 }
 0x287   :  { %v11955_v45 = vsel %vm397_vm10, %v3636_v9, %v3700_v6  ;;  %vm3510_vm13 = vcmp.eq.s32.totalorder %v3386_v56, 1  ;;  %v3573_v7 = vsel %vm3509_vm11, %v17648_v48, %v8751_v23  ;;  %v3889_v46 = vsel %vm3825_vm12, 1, %v17161_v14 }
 0x288   :  { %v3574_v44 = vsel %vm3510_vm13, %v11285_v55, %v8751_v23  ;;  %v3637_v31 = vmax.f32 %v17647_v59, %v3573_v7  ;;  %v3701_v2 = vadd.f32 %v3573_v7, %v17647_v59  ;;  %vm3826_vm15 = vcmp.eq.f32.partialorder %v11955_v45, %v11935_v38  ;;  %v17649_v7 = vld [vmem:[#allocation17_spill] sm:$0xff] }
 0x289   :  { %v3638_v28 = vmax.f32 %v17648_v48, %v3574_v44  ;;  %v3702_v6 = vadd.f32 %v3574_v44, %v17648_v48  ;;  %v3890_v9 = vsel %vm3826_vm15, 1, %v17161_v14  ;;  %4010 = vperm.xlu0 %8064, %v3889_v46   ;;  %v3389_v57 = vpop.permute.xlu0 %3388 }
 0x28a   :  { %v11971_v56 = vsel %vm397_vm10, %v3637_v31, %v3701_v2  ;;  %v3392_v15 = vpop.permute.xlu1 %3391  ;;  %4013 = vperm.xlu1 %8065, %v3890_v9   ;;  %vm3511_vm2 = vcmp.eq.s32.totalorder %v3389_v57, 1 }
 0x28b   :  { %v11975_v59 = vsel %vm397_vm10, %v3638_v28, %v3702_v6  ;;  %vm3512_vm3 = vcmp.eq.s32.totalorder %v3392_v15, 1  ;;  %v3575_v38 = vsel %vm3511_vm2, %v17649_v7, %v8751_v23  ;;  %vm3827_vm4 = vcmp.eq.f32.partialorder %v11971_v56, %v11948_v52 }
 0x28c   :  { %v3576_v48 = vsel %vm3512_vm3, %v11307_v17, %v8751_v23  ;;  %v3639_v46 = vmax.f32 %v11285_v55, %v3575_v38  ;;  %v3703_v44 = vadd.f32 %v3575_v38, %v11285_v55  ;;  %vm3828_vm5 = vcmp.eq.f32.partialorder %v11975_v59, %v11955_v45 }
 0x28d   :  { %v3640_v31 = vmax.f32 %v17649_v7, %v3576_v48  ;;  %v3704_v15 = vadd.f32 %v3576_v48, %v17649_v7  ;;  %v3892_v2 = vsel %vm3828_vm5, 1, %v17161_v14  ;;  %v3891_v28 = vsel %vm3827_vm4, 1, %v17161_v14  ;;  %v3395_v6 = vpop.permute.xlu0 %3394 }
 0x28e   :  { %v11993_v9 = vsel %vm397_vm10, %v3639_v46, %v3703_v44  ;;  %v3398_v57 = vpop.permute.xlu1 %3397  ;;  %4019 = vperm.xlu1 %8065, %v3892_v2   ;;  %4016 = vperm.xlu0 %8064, %v3891_v28   ;;  %vm3513_vm6 = vcmp.eq.s32.totalorder %v3395_v6, 1 }
 0x28f   :  { %v11997_v55 = vsel %vm397_vm10, %v3640_v31, %v3704_v15  ;;  %vm3514_vm7 = vcmp.eq.s32.totalorder %v3398_v57, 1  ;;  %v3577_v38 = vsel %vm3513_vm6, %v11325_v24, %v8751_v23  ;;  %vm3829_vm8 = vcmp.eq.f32.partialorder %v11993_v9, %v11971_v56 }
 0x290   :  { %v3578_v7 = vsel %vm3514_vm7, %v11329_v21, %v8751_v23  ;;  %v3641_v48 = vmax.f32 %v11307_v17, %v3577_v38  ;;  %v3705_v46 = vadd.f32 %v3577_v38, %v11307_v17  ;;  %vm3830_vm14 = vcmp.eq.f32.partialorder %v11997_v55, %v11975_v59 }
 0x291   :  { %v3642_v44 = vmax.f32 %v11325_v24, %v3578_v7  ;;  %v3706_v31 = vadd.f32 %v3578_v7, %v11325_v24  ;;  %v3894_v15 = vsel %vm3830_vm14, 1, %v17161_v14  ;;  %v3893_v2 = vsel %vm3829_vm8, 1, %v17161_v14  ;;  %v3401_v28 = vpop.permute.xlu0 %3400 }
 0x292   :  { %v12015_v6 = vsel %vm397_vm10, %v3641_v48, %v3705_v46  ;;  %v3404_v57 = vpop.permute.xlu1 %3403  ;;  %4025 = vperm.xlu1 %8065, %v3894_v15   ;;  %4022 = vperm.xlu0 %8064, %v3893_v2   ;;  %vm3515_vm9 = vcmp.eq.s32.totalorder %v3401_v28, 1 }
 0x293   :  { %v12019_v17 = vsel %vm397_vm10, %v3642_v44, %v3706_v31  ;;  %vm3516_vm1 = vcmp.eq.s32.totalorder %v3404_v57, 1  ;;  %v3579_v24 = vsel %vm3515_vm9, %v11347_v18, %v8751_v23  ;;  %vm3831_vm11 = vcmp.eq.f32.partialorder %v12015_v6, %v11993_v9 }
 0x294   :  { %v3580_v38 = vsel %vm3516_vm1, %v11351_v22, %v8751_v23  ;;  %v3643_v7 = vmax.f32 %v11329_v21, %v3579_v24  ;;  %v3707_v48 = vadd.f32 %v3579_v24, %v11329_v21  ;;  %vm3832_vm12 = vcmp.eq.f32.partialorder %v12019_v17, %v11997_v55 }
 0x295   :  { %v3644_v46 = vmax.f32 %v11347_v18, %v3580_v38  ;;  %v3708_v44 = vadd.f32 %v3580_v38, %v11347_v18  ;;  %v3896_v31 = vsel %vm3832_vm12, 1, %v17161_v14  ;;  %v3895_v15 = vsel %vm3831_vm11, 1, %v17161_v14  ;;  %v3407_v2 = vpop.permute.xlu0 %3406 }
 0x296   :  { %v12037_v28 = vsel %vm397_vm10, %v3643_v7, %v3707_v48  ;;  %v3410_v57 = vpop.permute.xlu1 %3409  ;;  %4031 = vperm.xlu1 %8065, %v3896_v31   ;;  %4028 = vperm.xlu0 %8064, %v3895_v15   ;;  %vm3517_vm13 = vcmp.eq.s32.totalorder %v3407_v2, 1 }
 0x297   :  { %v12041_v21 = vsel %vm397_vm10, %v3644_v46, %v3708_v44  ;;  %vm3518_vm15 = vcmp.eq.s32.totalorder %v3410_v57, 1  ;;  %v3581_v18 = vsel %vm3517_vm13, %v11369_v11, %v8751_v23  ;;  %vm3833_vm2 = vcmp.eq.f32.partialorder %v12037_v28, %v12015_v6 }
 0x298   :  { %v3582_v24 = vsel %vm3518_vm15, %v11373_v10, %v8751_v23  ;;  %v3645_v38 = vmax.f32 %v11351_v22, %v3581_v18  ;;  %v3709_v7 = vadd.f32 %v3581_v18, %v11351_v22  ;;  %vm3834_vm3 = vcmp.eq.f32.partialorder %v12041_v21, %v12019_v17 }
 0x299   :  { %v3646_v48 = vmax.f32 %v11369_v11, %v3582_v24  ;;  %v3710_v46 = vadd.f32 %v3582_v24, %v11369_v11  ;;  %v3898_v44 = vsel %vm3834_vm3, 1, %v17161_v14  ;;  %v3897_v31 = vsel %vm3833_vm2, 1, %v17161_v14  ;;  %v3413_v15 = vpop.permute.xlu0 %3412 }
 0x29a   :  { %v12059_v2 = vsel %vm397_vm10, %v3645_v38, %v3709_v7  ;;  %4037 = vperm.xlu1 %8065, %v3898_v44   ;;  %4034 = vperm.xlu0 %8064, %v3897_v31   ;;  %vm3519_vm4 = vcmp.eq.s32.totalorder %v3413_v15, 1 }
 0x29b   :  { %v12063_v22 = vsel %vm397_vm10, %v3646_v48, %v3710_v46  ;;  %v3416_v57 = vpop.permute.xlu1 %3415  ;;  %v3583_v11 = vsel %vm3519_vm4, %v11391_v20, %v8751_v23  ;;  %vm3835_vm5 = vcmp.eq.f32.partialorder %v12059_v2, %v12037_v28 }
 0x29c   :  { %vm3520_vm6 = vcmp.eq.s32.totalorder %v3416_v57, 1  ;;  %v3647_v18 = vmax.f32 %v11373_v10, %v3583_v11  ;;  %v3711_v24 = vadd.f32 %v3583_v11, %v11373_v10  ;;  %vm3836_vm7 = vcmp.eq.f32.partialorder %v12063_v22, %v12041_v21 }
 0x29d   :  { %v3584_v38 = vsel %vm3520_vm6, %v11395_v19, %v8751_v23  ;;  %v3900_v7 = vsel %vm3836_vm7, 1, %v17161_v14  ;;  %v3899_v48 = vsel %vm3835_vm5, 1, %v17161_v14  ;;  %v3419_v46 = vpop.permute.xlu0 %3418 }
 0x29e   :  { %v3648_v44 = vmax.f32 %v11391_v20, %v3584_v38  ;;  %v3712_v31 = vadd.f32 %v3584_v38, %v11391_v20  ;;  %v12081_v15 = vsel %vm397_vm10, %v3647_v18, %v3711_v24  ;;  %4043 = vperm.xlu1 %8065, %v3900_v7   ;;  %4040 = vperm.xlu0 %8064, %v3899_v48   ;;  %vm3521_vm8 = vcmp.eq.s32.totalorder %v3419_v46, 1 }
 0x29f   :  { %v3422_v10 = vpop.permute.xlu1 %3421  ;;  %v3585_v57 = vsel %vm3521_vm8, %v11412_v25, %v8751_v23  ;;  %vm3837_vm14 = vcmp.eq.f32.partialorder %v12081_v15, %v12059_v2 }
 0x2a0   :  { %v12089_v11 = vsel %vm397_vm10, %v3648_v44, %v3712_v31  ;;  %vm3522_vm9 = vcmp.eq.s32.totalorder %v3422_v10, 1  ;;  %v3649_v20 = vmax.f32 %v11395_v19, %v3585_v57  ;;  %v3713_v18 = vadd.f32 %v3585_v57, %v11395_v19 }
 0x2a1   :  { %17650 = vst [vmem:[#allocation62_spill] sm:$0xff] %v12089_v11  ;;  %v3586_v24 = vsel %vm3522_vm9, %v11417_v51, %v8751_v23  ;;  %vm3838_vm1 = vcmp.eq.f32.partialorder %v12089_v11, %v12063_v22  ;;  %v3901_v38 = vsel %vm3837_vm14, 1, %v17161_v14 }
 0x2a2   :  { %v3650_v7 = vmax.f32 %v11412_v25, %v3586_v24  ;;  %v3714_v48 = vadd.f32 %v3586_v24, %v11412_v25  ;;  %v12102_v46 = vsel %vm397_vm10, %v3649_v20, %v3713_v18  ;;  %v3902_v44 = vsel %vm3838_vm1, 1, %v17161_v14  ;;  %4046 = vperm.xlu0 %8064, %v3901_v38  }
 0x2a3   :  { %4049 = vperm.xlu1 %8065, %v3902_v44   ;;  %vm3839_vm11 = vcmp.eq.f32.partialorder %v12102_v46, %v12081_v15 }
 0x2a4   :  { %v12109_v19 = vsel %vm397_vm10, %v3650_v7, %v3714_v48  ;;  %v3428_v31 = vpop.permute.xlu1 %3427  ;;  %v3425_v10 = vpop.permute.xlu0 %3424  ;;  %v3903_v57 = vsel %vm3839_vm11, 1, %v17161_v14 }
 0x2a5   :  { %vm3524_vm12 = vcmp.eq.s32.totalorder %v3428_v31, 1  ;;  %vm3523_vm13 = vcmp.eq.s32.totalorder %v3425_v10, 1  ;;  %vm3840_vm15 = vcmp.eq.f32.partialorder %v12109_v19, %v12089_v11 }
 0x2a6   :  { %v3588_v25 = vsel %vm3524_vm12, %v11439_v12, %v8751_v23  ;;  %v3587_v20 = vsel %vm3523_vm13, %v11435_v32, %v8751_v23  ;;  %v3904_v18 = vsel %vm3840_vm15, 1, %v17161_v14  ;;  %4052 = vperm.xlu0 %8064, %v3903_v57  }
 0x2a7   :  { %v3652_v24 = vmax.f32 %v11435_v32, %v3588_v25  ;;  %v3716_v38 = vadd.f32 %v3588_v25, %v11435_v32  ;;  %v3651_v7 = vmax.f32 %v11417_v51, %v3587_v20  ;;  %v3715_v48 = vadd.f32 %v3587_v20, %v11417_v51  ;;  %4055 = vperm.xlu1 %8065, %v3904_v18  }
 0x2a8   :  { %v3434_v44 = vpop.permute.xlu1 %3433  ;;  %v3431_v31 = vpop.permute.xlu0 %3430 }
 0x2a9   :  { %v12125_v10 = vsel %vm397_vm10, %v3652_v24, %v3716_v38  ;;  %v12129_v11 = vsel %vm397_vm10, %v3651_v7, %v3715_v48  ;;  %vm3526_vm2 = vcmp.eq.s32.totalorder %v3434_v44, 1  ;;  %vm3525_vm3 = vcmp.eq.s32.totalorder %v3431_v31, 1 }
 0x2aa   :  { %v3590_v32 = vsel %vm3526_vm2, %v11461_v4, %v8751_v23  ;;  %v3589_v57 = vsel %vm3525_vm3, %v11457_v8, %v8751_v23  ;;  %vm3842_vm4 = vcmp.eq.f32.partialorder %v12125_v10, %v12109_v19  ;;  %vm3841_vm5 = vcmp.eq.f32.partialorder %v12129_v11, %v12102_v46 }
 0x2ab   :  { %v3654_v51 = vmax.f32 %v11457_v8, %v3590_v32  ;;  %v3718_v25 = vadd.f32 %v3590_v32, %v11457_v8  ;;  %v3653_v20 = vmax.f32 %v11439_v12, %v3589_v57  ;;  %v3717_v18 = vadd.f32 %v3589_v57, %v11439_v12 }
 0x2ac   :  { %v3906_v24 = vsel %vm3842_vm4, 1, %v17161_v14  ;;  %v3905_v38 = vsel %vm3841_vm5, 1, %v17161_v14 }
 0x2ad   :  { %v12147_v7 = vsel %vm397_vm10, %v3654_v51, %v3718_v25  ;;  %v12151_v48 = vsel %vm397_vm10, %v3653_v20, %v3717_v18  ;;  %v3440_v44 = vpop.permute.xlu1 %3439  ;;  %4061 = vperm.xlu1 %8065, %v3906_v24   ;;  %4058 = vperm.xlu0 %8064, %v3905_v38   ;;  %v3437_v8 = vpop.permute.xlu0 %3436 }
 0x2ae   :  { %vm3528_vm6 = vcmp.eq.s32.totalorder %v3440_v44, 1  ;;  %vm3527_vm7 = vcmp.eq.s32.totalorder %v3437_v8, 1  ;;  %vm3844_vm8 = vcmp.eq.f32.partialorder %v12147_v7, %v12125_v10  ;;  %vm3843_vm14 = vcmp.eq.f32.partialorder %v12151_v48, %v12129_v11 }
 0x2af   :  { %v3592_v12 = vsel %vm3528_vm6, %v11483_v0, %v8751_v23  ;;  %v3591_v31 = vsel %vm3527_vm7, %v11479_v50, %v8751_v23  ;;  %v3908_v32 = vsel %vm3844_vm8, 1, %v17161_v14  ;;  %v3907_v57 = vsel %vm3843_vm14, 1, %v17161_v14 }
 0x2b0   :  { %v3656_v51 = vmax.f32 %v11479_v50, %v3592_v12  ;;  %v3720_v25 = vadd.f32 %v3592_v12, %v11479_v50  ;;  %v3655_v20 = vmax.f32 %v11461_v4, %v3591_v31  ;;  %v3719_v18 = vadd.f32 %v3591_v31, %v11461_v4 }
 0x2b1   :  { %v3446_v24 = vpop.permute.xlu1 %3445  ;;  %4067 = vperm.xlu1 %8065, %v3908_v32   ;;  %4064 = vperm.xlu0 %8064, %v3907_v57   ;;  %v3443_v38 = vpop.permute.xlu0 %3442 }
 0x2b2   :  { %v12169_v44 = vsel %vm397_vm10, %v3656_v51, %v3720_v25  ;;  %v12173_v8 = vsel %vm397_vm10, %v3655_v20, %v3719_v18  ;;  %vm3530_vm9 = vcmp.eq.s32.totalorder %v3446_v24, 1  ;;  %vm3529_vm1 = vcmp.eq.s32.totalorder %v3443_v38, 1 }
 0x2b3   :  { %v3594_v50 = vsel %vm3530_vm9, %v11505_v40, %v8751_v23  ;;  %v3593_v4 = vsel %vm3529_vm1, %v11501_v62, %v8751_v23  ;;  %vm3846_vm11 = vcmp.eq.f32.partialorder %v12169_v44, %v12147_v7  ;;  %vm3845_vm12 = vcmp.eq.f32.partialorder %v12173_v8, %v12151_v48 }
 0x2b4   :  { %v3658_v12 = vmax.f32 %v11501_v62, %v3594_v50  ;;  %v3722_v31 = vadd.f32 %v3594_v50, %v11501_v62  ;;  %v3657_v32 = vmax.f32 %v11483_v0, %v3593_v4  ;;  %v3721_v57 = vadd.f32 %v3593_v4, %v11483_v0 }
 0x2b5   :  { %v3910_v51 = vsel %vm3846_vm11, 1, %v17161_v14  ;;  %v3909_v25 = vsel %vm3845_vm12, 1, %v17161_v14 }
 0x2b6   :  { %v12191_v20 = vsel %vm397_vm10, %v3658_v12, %v3722_v31  ;;  %v12195_v18 = vsel %vm397_vm10, %v3657_v32, %v3721_v57  ;;  %v3452_v24 = vpop.permute.xlu1 %3451  ;;  %4073 = vperm.xlu1 %8065, %v3910_v51   ;;  %4070 = vperm.xlu0 %8064, %v3909_v25   ;;  %v3449_v62 = vpop.permute.xlu0 %3448 }
 0x2b7   :  { %vm3532_vm13 = vcmp.eq.s32.totalorder %v3452_v24, 1  ;;  %vm3531_vm15 = vcmp.eq.s32.totalorder %v3449_v62, 1  ;;  %vm3848_vm2 = vcmp.eq.f32.partialorder %v12191_v20, %v12169_v44  ;;  %vm3847_vm3 = vcmp.eq.f32.partialorder %v12195_v18, %v12173_v8 }
 0x2b8   :  { %v3596_v0 = vsel %vm3532_vm13, %v11527_v43, %v8751_v23  ;;  %v3595_v38 = vsel %vm3531_vm15, %v11523_v35, %v8751_v23  ;;  %v3912_v50 = vsel %vm3848_vm2, 1, %v17161_v14  ;;  %v3911_v4 = vsel %vm3847_vm3, 1, %v17161_v14 }
 0x2b9   :  { %v3660_v12 = vmax.f32 %v11523_v35, %v3596_v0  ;;  %v3724_v31 = vadd.f32 %v3596_v0, %v11523_v35  ;;  %v3659_v32 = vmax.f32 %v11505_v40, %v3595_v38  ;;  %v3723_v57 = vadd.f32 %v3595_v38, %v11505_v40 }
 0x2ba   :  { %v3458_v51 = vpop.permute.xlu1 %3457  ;;  %4079 = vperm.xlu1 %8065, %v3912_v50   ;;  %4076 = vperm.xlu0 %8064, %v3911_v4   ;;  %v3455_v25 = vpop.permute.xlu0 %3454 }
 0x2bb   :  { %v12213_v24 = vsel %vm397_vm10, %v3660_v12, %v3724_v31  ;;  %v12217_v62 = vsel %vm397_vm10, %v3659_v32, %v3723_v57  ;;  %vm3534_vm4 = vcmp.eq.s32.totalorder %v3458_v51, 1  ;;  %vm3533_vm5 = vcmp.eq.s32.totalorder %v3455_v25, 1 }
 0x2bc   :  { %v3598_v35 = vsel %vm3534_vm4, %v11549_v54, %v8751_v23  ;;  %v3597_v40 = vsel %vm3533_vm5, %v11545_v3, %v8751_v23  ;;  %vm3850_vm6 = vcmp.eq.f32.partialorder %v12213_v24, %v12191_v20  ;;  %vm3849_vm7 = vcmp.eq.f32.partialorder %v12217_v62, %v12195_v18 }
 0x2bd   :  { %v3662_v0 = vmax.f32 %v11545_v3, %v3598_v35  ;;  %v3726_v38 = vadd.f32 %v3598_v35, %v11545_v3  ;;  %v3661_v50 = vmax.f32 %v11527_v43, %v3597_v40  ;;  %v3725_v4 = vadd.f32 %v3597_v40, %v11527_v43 }
 0x2be   :  { %v3464_v12 = vpop.permute.xlu1 %3463  ;;  %v3914_v31 = vsel %vm3850_vm6, 1, %v17161_v14  ;;  %v3913_v32 = vsel %vm3849_vm7, 1, %v17161_v14  ;;  %v3461_v57 = vpop.permute.xlu0 %3460 }
 0x2bf   :  { %v12235_v51 = vsel %vm397_vm10, %v3662_v0, %v3726_v38  ;;  %v12239_v25 = vsel %vm397_vm10, %v3661_v50, %v3725_v4  ;;  %vm3536_vm8 = vcmp.eq.s32.totalorder %v3464_v12, 1  ;;  %4085 = vperm.xlu1 %8065, %v3914_v31   ;;  %4082 = vperm.xlu0 %8064, %v3913_v32   ;;  %vm3535_vm14 = vcmp.eq.s32.totalorder %v3461_v57, 1 }
 0x2c0   :  { %v3600_v43 = vsel %vm3536_vm8, %v11571_v63, %v8751_v23  ;;  %v3599_v3 = vsel %vm3535_vm14, %v11567_v58, %v8751_v23  ;;  %vm3852_vm9 = vcmp.eq.f32.partialorder %v12235_v51, %v12213_v24  ;;  %vm3851_vm1 = vcmp.eq.f32.partialorder %v12239_v25, %v12217_v62 }
 0x2c1   :  { %v3664_v35 = vmax.f32 %v11567_v58, %v3600_v43  ;;  %v3728_v40 = vadd.f32 %v3600_v43, %v11567_v58  ;;  %v3663_v0 = vmax.f32 %v11549_v54, %v3599_v3  ;;  %v3727_v38 = vadd.f32 %v3599_v3, %v11549_v54 }
 0x2c2   :  { %v3916_v50 = vsel %vm3852_vm9, 1, %v17161_v14  ;;  %v3470_v4 = vpop.permute.xlu1 %3469  ;;  %v3915_v12 = vsel %vm3851_vm1, 1, %v17161_v14  ;;  %v3467_v31 = vpop.permute.xlu0 %3466 }
 0x2c3   :  { %v12257_v32 = vsel %vm397_vm10, %v3664_v35, %v3728_v40  ;;  %v12261_v57 = vsel %vm397_vm10, %v3663_v0, %v3727_v38  ;;  %4091 = vperm.xlu1 %8065, %v3916_v50   ;;  %vm3538_vm11 = vcmp.eq.s32.totalorder %v3470_v4, 1  ;;  %4088 = vperm.xlu0 %8064, %v3915_v12   ;;  %vm3537_vm12 = vcmp.eq.s32.totalorder %v3467_v31, 1 }
 0x2c4   :  { %v3602_v54 = vsel %vm3538_vm11, %v11593_v37, %v8751_v23  ;;  %v3601_v58 = vsel %vm3537_vm12, %v11589_v60, %v8751_v23  ;;  %vm3854_vm13 = vcmp.eq.f32.partialorder %v12257_v32, %v12235_v51  ;;  %vm3853_vm15 = vcmp.eq.f32.partialorder %v12261_v57, %v12239_v25 }
 0x2c5   :  { %v3666_v43 = vmax.f32 %v11589_v60, %v3602_v54  ;;  %v3730_v3 = vadd.f32 %v3602_v54, %v11589_v60  ;;  %v3665_v35 = vmax.f32 %v11571_v63, %v3601_v58  ;;  %v3729_v40 = vadd.f32 %v3601_v58, %v11571_v63 }
 0x2c6   :  { %v3918_v0 = vsel %vm3854_vm13, 1, %v17161_v14  ;;  %v3476_v38 = vpop.permute.xlu1 %3475  ;;  %v3917_v50 = vsel %vm3853_vm15, 1, %v17161_v14  ;;  %v3473_v4 = vpop.permute.xlu0 %3472 }
 0x2c7   :  { %v12279_v12 = vsel %vm397_vm10, %v3666_v43, %v3730_v3  ;;  %v12283_v31 = vsel %vm397_vm10, %v3665_v35, %v3729_v40  ;;  %4097 = vperm.xlu1 %8065, %v3918_v0   ;;  %vm3540_vm2 = vcmp.eq.s32.totalorder %v3476_v38, 1  ;;  %4094 = vperm.xlu0 %8064, %v3917_v50   ;;  %vm3539_vm3 = vcmp.eq.s32.totalorder %v3473_v4, 1 }
 0x2c8   :  { %v3604_v63 = vsel %vm3540_vm2, %v10919_v47, %v8751_v23  ;;  %v3603_v60 = vsel %vm3539_vm3, %v11609_v33, %v8751_v23  ;;  %vm3856_vm4 = vcmp.eq.f32.partialorder %v12279_v12, %v12257_v32  ;;  %vm3855_vm5 = vcmp.eq.f32.partialorder %v12283_v31, %v12261_v57 }
 0x2c9   :  { %v3668_v54 = vmax.f32 %v11609_v33, %v3604_v63  ;;  %v3732_v58 = vadd.f32 %v3604_v63, %v11609_v33  ;;  %v3667_v43 = vmax.f32 %v11593_v37, %v3603_v60  ;;  %v3731_v3 = vadd.f32 %v3603_v60, %v11593_v37 }
 0x2ca   :  { %v3920_v35 = vsel %vm3856_vm4, 1, %v17161_v14  ;;  %v3919_v47 = vsel %vm3855_vm5, 1, %v17161_v14 }
 0x2cb   :  { %v12301_v40 = vsel %vm397_vm10, %v3668_v54, %v3732_v58  ;;  %v12305_v0 = vsel %vm397_vm10, %v3667_v43, %v3731_v3  ;;  %4103 = vperm.xlu1 %8065, %v3920_v35   ;;  %4100 = vperm.xlu0 %8064, %v3919_v47   ;;  %v3927_v38 = vpop.permute.xlu0 %3926 }
 0x2cc   :  { %17651 = vst [vmem:[#allocation31_spill] sm:$0xff] %v12305_v0  ;;  %vm3858_vm6 = vcmp.eq.f32.partialorder %v12301_v40, %v12279_v12  ;;  %vm3857_vm7 = vcmp.eq.f32.partialorder %v12305_v0, %v12283_v31  ;;  %vm4117_vm8 = vcmp.eq.s32.totalorder %v3927_v38, 1  ;;  %vm3860_vm9 = vcmp.eq.f32.partialorder %v11643_v30, %v12301_v40 }
 0x2cd   :  { %v3922_v37 = vsel %vm3858_vm6, 1, %v17161_v14  ;;  %v3921_v33 = vsel %vm3857_vm7, 1, %v17161_v14  ;;  %v3930_v50 = vpop.permute.xlu1 %3929  ;;  %v4181_v4 = vsel %vm4117_vm8, %v11637_v27, %v8751_v23  ;;  %vm3859_vm1 = vcmp.eq.f32.partialorder %v11629_v42, %v12305_v0 }
 0x2ce   :  { %vm4118_vm14 = vcmp.eq.s32.totalorder %v3930_v50, 1  ;;  %v4245_v54 = vmax.f32 %v11629_v42, %v4181_v4  ;;  %v4309_v58 = vadd.f32 %v4181_v4, %v11629_v42  ;;  %v3924_v3 = vsel %vm3860_vm9, 1, %v17161_v14 }
 0x2cf   :  { %4109 = vperm.xlu1 %8065, %v3922_v37   ;;  %4106 = vperm.xlu0 %8064, %v3921_v33   ;;  %v3933_v63 = vpop.permute.xlu0 %3932  ;;  %v4182_v60 = vsel %vm4118_vm14, %v11651_v41, %v8751_v23  ;;  %v3923_v35 = vsel %vm3859_vm1, 1, %v17161_v14 }
 0x2d0   :  { %vm4119_vm11 = vcmp.eq.s32.totalorder %v3933_v63, 1  ;;  %v4246_v47 = vmax.f32 %v11643_v30, %v4182_v60  ;;  %v4310_v38 = vadd.f32 %v4182_v60, %v11643_v30  ;;  %v12331_v50 = vsel %vm397_vm10, %v4245_v54, %v4309_v58 }
 0x2d1   :  { %v3936_v43 = vpop.permute.xlu1 %3935  ;;  %v4183_v33 = vsel %vm4119_vm11, %v11658_v39, %v8751_v23  ;;  %17652 = vst [vmem:[#allocation64_spill] sm:$0xff] %v12331_v50 }
 0x2d2   :  { %vm4120_vm12 = vcmp.eq.s32.totalorder %v3936_v43, 1  ;;  %v4311_v54 = vadd.f32 %v4183_v33, %v11637_v27 }
 0x2d3   :  { %4115 = vperm.xlu1 %8065, %v3924_v3   ;;  %4112 = vperm.xlu0 %8064, %v3923_v35   ;;  %v3939_v37 = vpop.permute.xlu0 %3938  ;;  %v4184_v42 = vsel %vm4120_vm12, %v11673_v26, %v8751_v23  ;;  %v12341_v3 = vsel %vm397_vm10, %v4246_v47, %v4310_v38  ;;  %v4247_v35 = vmax.f32 %v11637_v27, %v4183_v33 }
 0x2d4   :  { %vm4121_vm13 = vcmp.eq.s32.totalorder %v3939_v37, 1  ;;  %17653 = vst [vmem:[#allocation32_spill] sm:$0xff] %v12341_v3  ;;  %v4312_v47 = vadd.f32 %v4184_v42, %v11651_v41 }
 0x2d5   :  { %v3942_v4 = vpop.permute.xlu1 %3941  ;;  %v4185_v63 = vsel %vm4121_vm13, %v11680_v13, %v8751_v23 }
 0x2d6   :  { %vm4122_vm15 = vcmp.eq.s32.totalorder %v3942_v4, 1  ;;  %v4249_v60 = vmax.f32 %v11658_v39, %v4185_v63  ;;  %v4313_v43 = vadd.f32 %v4185_v63, %v11658_v39  ;;  %v4248_v39 = vmax.f32 %v11651_v41, %v4184_v42 }
 0x2d7   :  { %v4186_v58 = vsel %vm4122_vm15, %v11695_v5, %v8751_v23  ;;  %v3945_v37 = vpop.permute.xlu0 %3944 }
 0x2d8   :  { %v4250_v30 = vmax.f32 %v11673_v26, %v4186_v58  ;;  %v4314_v4 = vadd.f32 %v4186_v58, %v11673_v26  ;;  %v12351_v0 = vsel %vm397_vm10, %v4249_v60, %v4313_v43  ;;  %vm4123_vm2 = vcmp.eq.s32.totalorder %v3945_v37, 1 }
 0x2d9   :  { %17654 = vst [vmem:[#allocation29_spill] sm:$0xff] %v12351_v0  ;;  %v3948_v38 = vpop.permute.xlu1 %3947  ;;  %v4187_v27 = vsel %vm4123_vm2, %v11702_v29, %v8751_v23  ;;  %vm4437_vm3 = vcmp.eq.f32.partialorder %v12351_v0, %v12331_v50  ;;  %v12367_v60 = vsel %vm397_vm10, %v4247_v35, %v4311_v54  ;;  %v12383_v54 = vsel %vm397_vm10, %v4248_v39, %v4312_v47 }
 0x2da   :  { %v12361_v33 = vsel %vm397_vm10, %v4250_v30, %v4314_v4  ;;  %vm4124_vm4 = vcmp.eq.s32.totalorder %v3948_v38, 1  ;;  %v4251_v26 = vmax.f32 %v11680_v13, %v4187_v27  ;;  %v4315_v63 = vadd.f32 %v4187_v27, %v11680_v13  ;;  %17656 = vst [vmem:[#allocation27_spill] sm:$0xff] %v12367_v60  ;;  %v17659_v4 = vld [vmem:[#allocation16_spill] sm:$0xff] }
 0x2db   :  { %17655 = vst [vmem:[#allocation33_spill] sm:$0xff] %v12361_v33  ;;  %v4188_v42 = vsel %vm4124_vm4, %v11717_v36, %v8751_v23  ;;  %vm4438_vm5 = vcmp.eq.f32.partialorder %v12361_v33, %v12341_v3  ;;  %v4501_v41 = vsel %vm4437_vm3, 1, %v17161_v14  ;;  %v3951_v43 = vpop.permute.xlu0 %3950 }
 0x2dc   :  { %v4252_v30 = vmax.f32 %v11695_v5, %v4188_v42  ;;  %v4316_v58 = vadd.f32 %v4188_v42, %v11695_v5  ;;  %v12378_v13 = vsel %vm397_vm10, %v4251_v26, %v4315_v63  ;;  %v4502_v35 = vsel %vm4438_vm5, 1, %v17161_v14  ;;  %4566 = vperm.xlu0 %8064, %v4501_v41   ;;  %v17660_v26 = vld [vmem:[#allocation9_spill] sm:$0xff] }
 0x2dd   :  { %17657 = vst [vmem:[#allocation30_spill] sm:$0xff] %v12378_v13  ;;  %4569 = vperm.xlu1 %8065, %v4502_v35   ;;  %v3954_v37 = vpop.permute.xlu1 %3953  ;;  %vm4125_vm6 = vcmp.eq.s32.totalorder %v3951_v43, 1  ;;  %vm4439_vm7 = vcmp.eq.f32.partialorder %v12378_v13, %v12367_v60  ;;  %v17667_v60 = vld [vmem:[#allocation21_spill] sm:$0xff] }
 0x2de   :  { %v12389_v5 = vsel %vm397_vm10, %v4252_v30, %v4316_v58  ;;  %vm4126_vm8 = vcmp.eq.s32.totalorder %v3954_v37, 1  ;;  %v4189_v38 = vsel %vm4125_vm6, %v17659_v4, %v8751_v23  ;;  %v4503_v27 = vsel %vm4439_vm7, 1, %v17161_v14 }
 0x2df   :  { %17658 = vst [vmem:[#allocation34_spill] sm:$0xff] %v12389_v5  ;;  %v4190_v39 = vsel %vm4126_vm8, %v17660_v26, %v8751_v23  ;;  %v4253_v47 = vmax.f32 %v11702_v29, %v4189_v38  ;;  %v4317_v63 = vadd.f32 %v4189_v38, %v11702_v29  ;;  %vm4440_vm14 = vcmp.eq.f32.partialorder %v12389_v5, %v12383_v54  ;;  %v3957_v42 = vpop.permute.xlu0 %3956  ;;  %v17662_v29 = vld [vmem:[#allocation15_spill] sm:$0xff] }
 0x2e0   :  { %v4254_v41 = vmax.f32 %v11717_v36, %v4190_v39  ;;  %v4318_v43 = vadd.f32 %v4190_v39, %v11717_v36  ;;  %v4504_v30 = vsel %vm4440_vm14, 1, %v17161_v14  ;;  %4572 = vperm.xlu0 %8064, %v4503_v27   ;;  %vm4127_vm9 = vcmp.eq.s32.totalorder %v3957_v42, 1  ;;  %v17663_v27 = vld [vmem:[#allocation19_spill] sm:$0xff] }
 0x2e1   :  { %v12405_v58 = vsel %vm397_vm10, %v4253_v47, %v4317_v63  ;;  %4575 = vperm.xlu1 %8065, %v4504_v30   ;;  %v3960_v35 = vpop.permute.xlu1 %3959  ;;  %v4191_v37 = vsel %vm4127_vm9, %v17662_v29, %v8751_v23 }
 0x2e2   :  { %17661 = vst [vmem:[#allocation66_spill] sm:$0xff] %v12405_v58  ;;  %v12411_v38 = vsel %vm397_vm10, %v4254_v41, %v4318_v43  ;;  %vm4128_vm1 = vcmp.eq.s32.totalorder %v3960_v35, 1  ;;  %v4255_v36 = vmax.f32 %v17659_v4, %v4191_v37  ;;  %v4319_v39 = vadd.f32 %v4191_v37, %v17659_v4 }
 0x2e3   :  { %v4192_v42 = vsel %vm4128_vm1, %v17663_v27, %v8751_v23  ;;  %vm4442_vm11 = vcmp.eq.f32.partialorder %v12411_v38, %v12361_v33  ;;  %vm4441_vm12 = vcmp.eq.f32.partialorder %v12405_v58, %v12351_v0  ;;  %v3963_v47 = vpop.permute.xlu0 %3962 }
 0x2e4   :  { %v4256_v63 = vmax.f32 %v17660_v26, %v4192_v42  ;;  %v4320_v41 = vadd.f32 %v4192_v42, %v17660_v26  ;;  %v12425_v43 = vsel %vm397_vm10, %v4255_v36, %v4319_v39  ;;  %v4506_v4 = vsel %vm4442_vm11, 1, %v17161_v14  ;;  %v17665_v26 = vld [vmem:[#allocation25_spill] sm:$0xff]  ;;  %v17666_v42 = vld [vmem:[#allocation10_spill] sm:$0xff] }
 0x2e5   :  { %17664 = vst [vmem:[#allocation65_spill] sm:$0xff] %v12425_v43  ;;  %4581 = vperm.xlu1 %8065, %v4506_v4   ;;  %v3966_v30 = vpop.permute.xlu1 %3965  ;;  %v4505_v35 = vsel %vm4441_vm12, 1, %v17161_v14  ;;  %vm4129_vm13 = vcmp.eq.s32.totalorder %v3963_v47, 1  ;;  %vm4443_vm15 = vcmp.eq.f32.partialorder %v12425_v43, %v12378_v13 }
 0x2e6   :  { %v12433_v37 = vsel %vm397_vm10, %v4256_v63, %v4320_v41  ;;  %vm4130_vm2 = vcmp.eq.s32.totalorder %v3966_v30, 1  ;;  %4578 = vperm.xlu0 %8064, %v4505_v35   ;;  %v4193_v36 = vsel %vm4129_vm13, %v17665_v26, %v8751_v23  ;;  %v4507_v39 = vsel %vm4443_vm15, 1, %v17161_v14 }
 0x2e7   :  { %v4194_v4 = vsel %vm4130_vm2, %v17666_v42, %v8751_v23  ;;  %v4257_v33 = vmax.f32 %v17662_v29, %v4193_v36  ;;  %v4321_v47 = vadd.f32 %v4193_v36, %v17662_v29  ;;  %vm4444_vm3 = vcmp.eq.f32.partialorder %v12433_v37, %v12389_v5  ;;  %v3969_v13 = vpop.permute.xlu0 %3968 }
 0x2e8   :  { %v4258_v63 = vmax.f32 %v17663_v27, %v4194_v4  ;;  %v4322_v41 = vadd.f32 %v4194_v4, %v17663_v27  ;;  %v4508_v30 = vsel %vm4444_vm3, 1, %v17161_v14  ;;  %vm4131_vm4 = vcmp.eq.s32.totalorder %v3969_v13, 1  ;;  %v17668_v13 = vld [vmem:[#allocation26_spill] sm:$0xff] }
 0x2e9   :  { %v12449_v35 = vsel %vm397_vm10, %v4257_v33, %v4321_v47  ;;  %4587 = vperm.xlu1 %8065, %v4508_v30   ;;  %v3972_v0 = vpop.permute.xlu1 %3971  ;;  %v4195_v29 = vsel %vm4131_vm4, %v17667_v60, %v8751_v23 }
 0x2ea   :  { %v12455_v36 = vsel %vm397_vm10, %v4258_v63, %v4322_v41  ;;  %vm4132_vm5 = vcmp.eq.s32.totalorder %v3972_v0, 1  ;;  %4584 = vperm.xlu0 %8064, %v4507_v39   ;;  %v4259_v27 = vmax.f32 %v17665_v26, %v4195_v29  ;;  %v4323_v4 = vadd.f32 %v4195_v29, %v17665_v26 }
 0x2eb   :  { %v4196_v5 = vsel %vm4132_vm5, %v17668_v13, %v8751_v23  ;;  %vm4446_vm6 = vcmp.eq.f32.partialorder %v12455_v36, %v12411_v38  ;;  %vm4445_vm7 = vcmp.eq.f32.partialorder %v12449_v35, %v12405_v58  ;;  %v3975_v33 = vpop.permute.xlu0 %3974 }
 0x2ec   :  { %v4260_v47 = vmax.f32 %v17666_v42, %v4196_v5  ;;  %v4324_v63 = vadd.f32 %v4196_v5, %v17666_v42  ;;  %v12469_v0 = vsel %vm397_vm10, %v4259_v27, %v4323_v4  ;;  %v4510_v26 = vsel %vm4446_vm6, 1, %v17161_v14  ;;  %v17671_v5 = vld [vmem:[#allocation28_spill] sm:$0xff]  ;;  %v17672_v27 = vld [vmem:[#allocation14_spill] sm:$0xff] }
 0x2ed   :  { %17669 = vst [vmem:[#allocation72_spill] sm:$0xff] %v12469_v0  ;;  %4593 = vperm.xlu1 %8065, %v4510_v26   ;;  %v3978_v39 = vpop.permute.xlu1 %3977  ;;  %v4509_v41 = vsel %vm4445_vm7, 1, %v17161_v14  ;;  %vm4133_vm8 = vcmp.eq.s32.totalorder %v3975_v33, 1  ;;  %vm4447_vm14 = vcmp.eq.f32.partialorder %v12469_v0, %v12425_v43 }
 0x2ee   :  { %v12477_v30 = vsel %vm397_vm10, %v4260_v47, %v4324_v63  ;;  %vm4134_vm9 = vcmp.eq.s32.totalorder %v3978_v39, 1  ;;  %4590 = vperm.xlu0 %8064, %v4509_v41   ;;  %v4197_v42 = vsel %vm4133_vm8, %v17671_v5, %v8751_v23  ;;  %v4511_v29 = vsel %vm4447_vm14, 1, %v17161_v14 }
 0x2ef   :  { %17670 = vst [vmem:[#allocation40_spill] sm:$0xff] %v12477_v30  ;;  %v4198_v4 = vsel %vm4134_vm9, %v17672_v27, %v8751_v23  ;;  %v4261_v26 = vmax.f32 %v17667_v60, %v4197_v42  ;;  %v4325_v33 = vadd.f32 %v4197_v42, %v17667_v60  ;;  %vm4448_vm1 = vcmp.eq.f32.partialorder %v12477_v30, %v12433_v37  ;;  %v3981_v43 = vpop.permute.xlu0 %3980 }
 0x2f0   :  { %v4262_v47 = vmax.f32 %v17668_v13, %v4198_v4  ;;  %v4326_v63 = vadd.f32 %v4198_v4, %v17668_v13  ;;  %v4512_v39 = vsel %vm4448_vm1, 1, %v17161_v14  ;;  %vm4135_vm11 = vcmp.eq.s32.totalorder %v3981_v43, 1 }
 0x2f1   :  { %v12493_v41 = vsel %vm397_vm10, %v4261_v26, %v4325_v33  ;;  %4599 = vperm.xlu1 %8065, %v4512_v39   ;;  %v3984_v58 = vpop.permute.xlu1 %3983  ;;  %v4199_v60 = vsel %vm4135_vm11, %v11834_v61, %v8751_v23 }
 0x2f2   :  { %v12499_v42 = vsel %vm397_vm10, %v4262_v47, %v4326_v63  ;;  %vm4136_vm12 = vcmp.eq.s32.totalorder %v3984_v58, 1  ;;  %4596 = vperm.xlu0 %8064, %v4511_v29   ;;  %v4263_v13 = vmax.f32 %v17671_v5, %v4199_v60  ;;  %v4327_v4 = vadd.f32 %v4199_v60, %v17671_v5 }
 0x2f3   :  { %v4200_v43 = vsel %vm4136_vm12, %v11849_v53, %v8751_v23  ;;  %vm4450_vm13 = vcmp.eq.f32.partialorder %v12499_v42, %v12455_v36  ;;  %vm4449_vm15 = vcmp.eq.f32.partialorder %v12493_v41, %v12449_v35  ;;  %v3987_v26 = vpop.permute.xlu0 %3986 }
 0x2f4   :  { %v4264_v33 = vmax.f32 %v17672_v27, %v4200_v43  ;;  %v4328_v47 = vadd.f32 %v4200_v43, %v17672_v27  ;;  %v12513_v58 = vsel %vm397_vm10, %v4263_v13, %v4327_v4  ;;  %v4514_v5 = vsel %vm4450_vm13, 1, %v17161_v14  ;;  %v17675_v27 = vld [vmem:[#allocation24_spill] sm:$0xff] }
 0x2f5   :  { %17673 = vst [vmem:[#allocation69_spill] sm:$0xff] %v12513_v58  ;;  %4605 = vperm.xlu1 %8065, %v4514_v5   ;;  %v3990_v29 = vpop.permute.xlu1 %3989  ;;  %v4513_v63 = vsel %vm4449_vm15, 1, %v17161_v14  ;;  %vm4137_vm2 = vcmp.eq.s32.totalorder %v3987_v26, 1  ;;  %vm4451_vm3 = vcmp.eq.f32.partialorder %v12513_v58, %v12469_v0 }
 0x2f6   :  { %v12521_v39 = vsel %vm397_vm10, %v4264_v33, %v4328_v47  ;;  %vm4138_vm4 = vcmp.eq.s32.totalorder %v3990_v29, 1  ;;  %4602 = vperm.xlu0 %8064, %v4513_v63   ;;  %v4201_v60 = vsel %vm4137_vm2, %v17675_v27, %v8751_v23  ;;  %v4515_v13 = vsel %vm4451_vm3, 1, %v17161_v14 }
 0x2f7   :  { %17674 = vst [vmem:[#allocation38_spill] sm:$0xff] %v12521_v39  ;;  %v4202_v4 = vsel %vm4138_vm4, %v11871_v49, %v8751_v23  ;;  %v4265_v43 = vmax.f32 %v11834_v61, %v4201_v60  ;;  %v4329_v26 = vadd.f32 %v4201_v60, %v11834_v61  ;;  %vm4452_vm5 = vcmp.eq.f32.partialorder %v12521_v39, %v12477_v30  ;;  %v3993_v5 = vpop.permute.xlu0 %3992 }
 0x2f8   :  { %v4266_v33 = vmax.f32 %v11849_v53, %v4202_v4  ;;  %v4330_v47 = vadd.f32 %v4202_v4, %v11849_v53  ;;  %v4516_v29 = vsel %vm4452_vm5, 1, %v17161_v14  ;;  %vm4139_vm6 = vcmp.eq.s32.totalorder %v3993_v5, 1  ;;  %v17677_v5 = vld [vmem:[#allocation68_spill] sm:$0xff] }
 0x2f9   :  { %v12537_v63 = vsel %vm397_vm10, %v4265_v43, %v4329_v26  ;;  %4611 = vperm.xlu1 %8065, %v4516_v29   ;;  %v3996_v0 = vpop.permute.xlu1 %3995  ;;  %v4203_v61 = vsel %vm4139_vm6, %v11878_v34, %v8751_v23 }
 0x2fa   :  { %17676 = vst [vmem:[#allocation36_spill] sm:$0xff] %v12537_v63  ;;  %v12543_v60 = vsel %vm397_vm10, %v4266_v33, %v4330_v47  ;;  %vm4140_vm7 = vcmp.eq.s32.totalorder %v3996_v0, 1  ;;  %4608 = vperm.xlu0 %8064, %v4515_v13   ;;  %v4267_v53 = vmax.f32 %v17675_v27, %v4203_v61  ;;  %v4331_v4 = vadd.f32 %v4203_v61, %v17675_v27 }
 0x2fb   :  { %v4204_v30 = vsel %vm4140_vm7, %v17677_v5, %v8751_v23  ;;  %vm4454_vm8 = vcmp.eq.f32.partialorder %v12543_v60, %v12499_v42  ;;  %vm4453_vm14 = vcmp.eq.f32.partialorder %v12537_v63, %v12493_v41  ;;  %v3999_v43 = vpop.permute.xlu0 %3998 }
 0x2fc   :  { %v4268_v26 = vmax.f32 %v11871_v49, %v4204_v30  ;;  %v4332_v33 = vadd.f32 %v4204_v30, %v11871_v49  ;;  %v12557_v0 = vsel %vm397_vm10, %v4267_v53, %v4331_v4  ;;  %v4518_v27 = vsel %vm4454_vm8, 1, %v17161_v14  ;;  %v17678_v49 = vld [vmem:[#allocation23_spill] sm:$0xff] }
 0x2fd   :  { %4617 = vperm.xlu1 %8065, %v4518_v27   ;;  %v4002_v13 = vpop.permute.xlu1 %4001  ;;  %v4517_v47 = vsel %vm4453_vm14, 1, %v17161_v14  ;;  %vm4141_vm9 = vcmp.eq.s32.totalorder %v3999_v43, 1  ;;  %vm4455_vm1 = vcmp.eq.f32.partialorder %v12557_v0, %v12513_v58 }
 0x2fe   :  { %v12565_v29 = vsel %vm397_vm10, %v4268_v26, %v4332_v33  ;;  %vm4142_vm11 = vcmp.eq.s32.totalorder %v4002_v13, 1  ;;  %4614 = vperm.xlu0 %8064, %v4517_v47   ;;  %v4205_v30 = vsel %vm4141_vm9, %v17678_v49, %v8751_v23  ;;  %v4519_v61 = vsel %vm4455_vm1, 1, %v17161_v14 }
 0x2ff   :  { %v4206_v53 = vsel %vm4142_vm11, %v11915_v16, %v8751_v23  ;;  %v4269_v4 = vmax.f32 %v11878_v34, %v4205_v30  ;;  %v4333_v43 = vadd.f32 %v4205_v30, %v11878_v34  ;;  %vm4456_vm12 = vcmp.eq.f32.partialorder %v12565_v29, %v12521_v39  ;;  %v17680_v30 = vld [vmem:[#allocation20_spill] sm:$0xff] }
 0x300   :  { %v4270_v26 = vmax.f32 %v17677_v5, %v4206_v53  ;;  %v4334_v33 = vadd.f32 %v4206_v53, %v17677_v5  ;;  %v4520_v27 = vsel %vm4456_vm12, 1, %v17161_v14  ;;  %v4005_v13 = vpop.permute.xlu0 %4004  ;;  %v17681_v5 = vld [vmem:[#allocation22_spill] sm:$0xff] }
 0x301   :  { %v12581_v47 = vsel %vm397_vm10, %v4269_v4, %v4333_v43  ;;  %4623 = vperm.xlu1 %8065, %v4520_v27   ;;  %v4008_v58 = vpop.permute.xlu1 %4007  ;;  %vm4143_vm13 = vcmp.eq.s32.totalorder %v4005_v13, 1 }
 0x302   :  { %17679 = vst [vmem:[#allocation71_spill] sm:$0xff] %v12581_v47  ;;  %v12585_v34 = vsel %vm397_vm10, %v4270_v26, %v4334_v33  ;;  %vm4144_vm15 = vcmp.eq.s32.totalorder %v4008_v58, 1  ;;  %4620 = vperm.xlu0 %8064, %v4519_v61   ;;  %v4207_v39 = vsel %vm4143_vm13, %v17680_v30, %v8751_v23  ;;  %vm4457_vm2 = vcmp.eq.f32.partialorder %v12581_v47, %v12537_v63 }
 0x303   :  { %v4208_v53 = vsel %vm4144_vm15, %v17681_v5, %v8751_v23  ;;  %v4271_v4 = vmax.f32 %v17678_v49, %v4207_v39  ;;  %v4335_v43 = vadd.f32 %v4207_v39, %v17678_v49  ;;  %vm4458_vm3 = vcmp.eq.f32.partialorder %v12585_v34, %v12543_v60 }
 0x304   :  { %v4272_v26 = vmax.f32 %v11915_v16, %v4208_v53  ;;  %v4336_v58 = vadd.f32 %v4208_v53, %v11915_v16  ;;  %v4522_v61 = vsel %vm4458_vm3, 1, %v17161_v14  ;;  %v4521_v33 = vsel %vm4457_vm2, 1, %v17161_v14  ;;  %v4011_v27 = vpop.permute.xlu0 %4010 }
 0x305   :  { %v12603_v13 = vsel %vm397_vm10, %v4271_v4, %v4335_v43  ;;  %4629 = vperm.xlu1 %8065, %v4522_v61   ;;  %v4014_v63 = vpop.permute.xlu1 %4013  ;;  %vm4145_vm4 = vcmp.eq.s32.totalorder %v4011_v27, 1 }
 0x306   :  { %v12607_v39 = vsel %vm397_vm10, %v4272_v26, %v4336_v58  ;;  %vm4146_vm5 = vcmp.eq.s32.totalorder %v4014_v63, 1  ;;  %4626 = vperm.xlu0 %8064, %v4521_v33   ;;  %v4209_v16 = vsel %vm4145_vm4, %v11948_v52, %v8751_v23  ;;  %vm4459_vm6 = vcmp.eq.f32.partialorder %v12603_v13, %v12557_v0 }
 0x307   :  { %v4210_v49 = vsel %vm4146_vm5, %v11955_v45, %v8751_v23  ;;  %v4273_v53 = vmax.f32 %v17680_v30, %v4209_v16  ;;  %v4337_v4 = vadd.f32 %v4209_v16, %v17680_v30  ;;  %vm4460_vm7 = vcmp.eq.f32.partialorder %v12607_v39, %v12565_v29 }
 0x308   :  { %v4274_v43 = vmax.f32 %v17681_v5, %v4210_v49  ;;  %v4338_v63 = vadd.f32 %v4210_v49, %v17681_v5  ;;  %v4524_v26 = vsel %vm4460_vm7, 1, %v17161_v14  ;;  %v4523_v58 = vsel %vm4459_vm6, 1, %v17161_v14 }
 0x309   :  { %v12625_v61 = vsel %vm397_vm10, %v4273_v53, %v4337_v4  ;;  %4635 = vperm.xlu1 %8065, %v4524_v26   ;;  %v4020_v33 = vpop.permute.xlu1 %4019  ;;  %v4017_v27 = vpop.permute.xlu0 %4016 }
 0x30a   :  { %v12629_v30 = vsel %vm397_vm10, %v4274_v43, %v4338_v63  ;;  %vm4148_vm8 = vcmp.eq.s32.totalorder %v4020_v33, 1  ;;  %4632 = vperm.xlu0 %8064, %v4523_v58   ;;  %vm4147_vm14 = vcmp.eq.s32.totalorder %v4017_v27, 1  ;;  %vm4461_vm9 = vcmp.eq.f32.partialorder %v12625_v61, %v12581_v47 }
 0x30b   :  { %v4212_v5 = vsel %vm4148_vm8, %v11975_v59, %v8751_v23  ;;  %v4211_v16 = vsel %vm4147_vm14, %v11971_v56, %v8751_v23  ;;  %vm4462_vm1 = vcmp.eq.f32.partialorder %v12629_v30, %v12585_v34  ;;  %v4525_v49 = vsel %vm4461_vm9, 1, %v17161_v14 }
 0x30c   :  { %v4276_v53 = vmax.f32 %v11955_v45, %v4212_v5  ;;  %v4340_v4 = vadd.f32 %v4212_v5, %v11955_v45  ;;  %v4275_v43 = vmax.f32 %v11948_v52, %v4211_v16  ;;  %v4339_v63 = vadd.f32 %v4211_v16, %v11948_v52 }
 0x30d   :  { %v4526_v26 = vsel %vm4462_vm1, 1, %v17161_v14  ;;  %v4026_v58 = vpop.permute.xlu1 %4025  ;;  %v4023_v33 = vpop.permute.xlu0 %4022 }
 0x30e   :  { %v12647_v27 = vsel %vm397_vm10, %v4276_v53, %v4340_v4  ;;  %v12651_v47 = vsel %vm397_vm10, %v4275_v43, %v4339_v63  ;;  %4641 = vperm.xlu1 %8065, %v4526_v26   ;;  %vm4150_vm11 = vcmp.eq.s32.totalorder %v4026_v58, 1  ;;  %4638 = vperm.xlu0 %8064, %v4525_v49   ;;  %vm4149_vm12 = vcmp.eq.s32.totalorder %v4023_v33, 1 }
 0x30f   :  { %v4214_v45 = vsel %vm4150_vm11, %v11997_v55, %v8751_v23  ;;  %v4213_v52 = vsel %vm4149_vm12, %v11993_v9, %v8751_v23  ;;  %vm4464_vm13 = vcmp.eq.f32.partialorder %v12647_v27, %v12607_v39  ;;  %vm4463_vm15 = vcmp.eq.f32.partialorder %v12651_v47, %v12603_v13 }
 0x310   :  { %v4278_v5 = vmax.f32 %v11975_v59, %v4214_v45  ;;  %v4342_v16 = vadd.f32 %v4214_v45, %v11975_v59  ;;  %v4277_v53 = vmax.f32 %v11971_v56, %v4213_v52  ;;  %v4341_v49 = vadd.f32 %v4213_v52, %v11971_v56 }
 0x311   :  { %v4528_v4 = vsel %vm4464_vm13, 1, %v17161_v14  ;;  %v4032_v43 = vpop.permute.xlu1 %4031  ;;  %v4527_v63 = vsel %vm4463_vm15, 1, %v17161_v14  ;;  %v4029_v26 = vpop.permute.xlu0 %4028 }
 0x312   :  { %v12669_v58 = vsel %vm397_vm10, %v4278_v5, %v4342_v16  ;;  %v12673_v33 = vsel %vm397_vm10, %v4277_v53, %v4341_v49  ;;  %4647 = vperm.xlu1 %8065, %v4528_v4   ;;  %vm4152_vm2 = vcmp.eq.s32.totalorder %v4032_v43, 1  ;;  %4644 = vperm.xlu0 %8064, %v4527_v63   ;;  %vm4151_vm3 = vcmp.eq.s32.totalorder %v4029_v26, 1 }
 0x313   :  { %v4216_v56 = vsel %vm4152_vm2, %v12019_v17, %v8751_v23  ;;  %v4215_v59 = vsel %vm4151_vm3, %v12015_v6, %v8751_v23  ;;  %vm4466_vm4 = vcmp.eq.f32.partialorder %v12669_v58, %v12629_v30  ;;  %vm4465_vm5 = vcmp.eq.f32.partialorder %v12673_v33, %v12625_v61 }
 0x314   :  { %v4280_v45 = vmax.f32 %v11997_v55, %v4216_v56  ;;  %v4344_v52 = vadd.f32 %v4216_v56, %v11997_v55  ;;  %v4279_v5 = vmax.f32 %v11993_v9, %v4215_v59  ;;  %v4343_v16 = vadd.f32 %v4215_v59, %v11993_v9 }
 0x315   :  { %v4530_v53 = vsel %vm4466_vm4, 1, %v17161_v14  ;;  %v4038_v49 = vpop.permute.xlu1 %4037  ;;  %v4529_v4 = vsel %vm4465_vm5, 1, %v17161_v14  ;;  %v4035_v43 = vpop.permute.xlu0 %4034 }
 0x316   :  { %v12691_v63 = vsel %vm397_vm10, %v4280_v45, %v4344_v52  ;;  %v12695_v26 = vsel %vm397_vm10, %v4279_v5, %v4343_v16  ;;  %4653 = vperm.xlu1 %8065, %v4530_v53   ;;  %vm4154_vm6 = vcmp.eq.s32.totalorder %v4038_v49, 1  ;;  %4650 = vperm.xlu0 %8064, %v4529_v4   ;;  %vm4153_vm7 = vcmp.eq.s32.totalorder %v4035_v43, 1 }
 0x317   :  { %v4218_v9 = vsel %vm4154_vm6, %v12041_v21, %v8751_v23  ;;  %v4217_v55 = vsel %vm4153_vm7, %v12037_v28, %v8751_v23  ;;  %vm4468_vm8 = vcmp.eq.f32.partialorder %v12691_v63, %v12647_v27  ;;  %vm4467_vm14 = vcmp.eq.f32.partialorder %v12695_v26, %v12651_v47 }
 0x318   :  { %v4282_v56 = vmax.f32 %v12019_v17, %v4218_v9  ;;  %v4346_v59 = vadd.f32 %v4218_v9, %v12019_v17  ;;  %v4281_v45 = vmax.f32 %v12015_v6, %v4217_v55  ;;  %v4345_v52 = vadd.f32 %v4217_v55, %v12015_v6 }
 0x319   :  { %v4532_v5 = vsel %vm4468_vm8, 1, %v17161_v14  ;;  %v4044_v16 = vpop.permute.xlu1 %4043  ;;  %v4531_v53 = vsel %vm4467_vm14, 1, %v17161_v14  ;;  %v4041_v49 = vpop.permute.xlu0 %4040 }
 0x31a   :  { %v12713_v4 = vsel %vm397_vm10, %v4282_v56, %v4346_v59  ;;  %v12717_v43 = vsel %vm397_vm10, %v4281_v45, %v4345_v52  ;;  %4659 = vperm.xlu1 %8065, %v4532_v5   ;;  %vm4156_vm9 = vcmp.eq.s32.totalorder %v4044_v16, 1  ;;  %4656 = vperm.xlu0 %8064, %v4531_v53   ;;  %vm4155_vm1 = vcmp.eq.s32.totalorder %v4041_v49, 1 }
 0x31b   :  { %v4220_v6 = vsel %vm4156_vm9, %v12063_v22, %v8751_v23  ;;  %v4219_v17 = vsel %vm4155_vm1, %v12059_v2, %v8751_v23  ;;  %vm4470_vm11 = vcmp.eq.f32.partialorder %v12713_v4, %v12669_v58  ;;  %vm4469_vm12 = vcmp.eq.f32.partialorder %v12717_v43, %v12673_v33 }
 0x31c   :  { %v4284_v9 = vmax.f32 %v12041_v21, %v4220_v6  ;;  %v4348_v55 = vadd.f32 %v4220_v6, %v12041_v21  ;;  %v4283_v56 = vmax.f32 %v12037_v28, %v4219_v17  ;;  %v4347_v59 = vadd.f32 %v4219_v17, %v12037_v28  ;;  %v17683_v21 = vld [vmem:[#allocation62_spill] sm:$0xff] }
 0x31d   :  { %v4534_v45 = vsel %vm4470_vm11, 1, %v17161_v14  ;;  %v4533_v52 = vsel %vm4469_vm12, 1, %v17161_v14  ;;  %v4047_v5 = vpop.permute.xlu0 %4046 }
 0x31e   :  { %v12735_v16 = vsel %vm397_vm10, %v4284_v9, %v4348_v55  ;;  %v12739_v53 = vsel %vm397_vm10, %v4283_v56, %v4347_v59  ;;  %4665 = vperm.xlu1 %8065, %v4534_v45   ;;  %v4050_v49 = vpop.permute.xlu1 %4049  ;;  %4662 = vperm.xlu0 %8064, %v4533_v52   ;;  %vm4157_vm13 = vcmp.eq.s32.totalorder %v4047_v5, 1 }
 0x31f   :  { %17682 = vst [vmem:[#allocation67_spill] sm:$0xff] %v12739_v53  ;;  %vm4158_vm15 = vcmp.eq.s32.totalorder %v4050_v49, 1  ;;  %v4221_v28 = vsel %vm4157_vm13, %v12081_v15, %v8751_v23  ;;  %vm4472_vm2 = vcmp.eq.f32.partialorder %v12735_v16, %v12691_v63  ;;  %vm4471_vm3 = vcmp.eq.f32.partialorder %v12739_v53, %v12695_v26 }
 0x320   :  { %v4222_v6 = vsel %vm4158_vm15, %v17683_v21, %v8751_v23  ;;  %v4285_v17 = vmax.f32 %v12059_v2, %v4221_v28  ;;  %v4349_v9 = vadd.f32 %v4221_v28, %v12059_v2  ;;  %v4536_v55 = vsel %vm4472_vm2, 1, %v17161_v14 }
 0x321   :  { %v4286_v56 = vmax.f32 %v12063_v22, %v4222_v6  ;;  %v4350_v59 = vadd.f32 %v4222_v6, %v12063_v22  ;;  %v4535_v45 = vsel %vm4471_vm3, 1, %v17161_v14  ;;  %v4053_v52 = vpop.permute.xlu0 %4052 }
 0x322   :  { %v12757_v5 = vsel %vm397_vm10, %v4285_v17, %v4349_v9  ;;  %4671 = vperm.xlu1 %8065, %v4536_v55   ;;  %v4056_v49 = vpop.permute.xlu1 %4055  ;;  %4668 = vperm.xlu0 %8064, %v4535_v45   ;;  %vm4159_vm4 = vcmp.eq.s32.totalorder %v4053_v52, 1 }
 0x323   :  { %v12761_v2 = vsel %vm397_vm10, %v4286_v56, %v4350_v59  ;;  %vm4160_vm5 = vcmp.eq.s32.totalorder %v4056_v49, 1  ;;  %v4223_v28 = vsel %vm4159_vm4, %v12102_v46, %v8751_v23  ;;  %vm4473_vm6 = vcmp.eq.f32.partialorder %v12757_v5, %v12717_v43 }
 0x324   :  { %v4224_v22 = vsel %vm4160_vm5, %v12109_v19, %v8751_v23  ;;  %v4287_v6 = vmax.f32 %v12081_v15, %v4223_v28  ;;  %v4351_v17 = vadd.f32 %v4223_v28, %v12081_v15  ;;  %vm4474_vm7 = vcmp.eq.f32.partialorder %v12761_v2, %v12713_v4 }
 0x325   :  { %v4288_v9 = vmax.f32 %v17683_v21, %v4224_v22  ;;  %v4352_v55 = vadd.f32 %v4224_v22, %v17683_v21  ;;  %v4538_v56 = vsel %vm4474_vm7, 1, %v17161_v14  ;;  %v4537_v59 = vsel %vm4473_vm6, 1, %v17161_v14 }
 0x326   :  { %v12779_v45 = vsel %vm397_vm10, %v4287_v6, %v4351_v17  ;;  %4677 = vperm.xlu1 %8065, %v4538_v56   ;;  %4674 = vperm.xlu0 %8064, %v4537_v59  }
 0x327   :  { %v12783_v15 = vsel %vm397_vm10, %v4288_v9, %v4352_v55  ;;  %vm4475_vm8 = vcmp.eq.f32.partialorder %v12779_v45, %v12739_v53 }
 0x328   :  { %v4062_v52 = vpop.permute.xlu1 %4061  ;;  %v4059_v49 = vpop.permute.xlu0 %4058  ;;  %vm4476_vm14 = vcmp.eq.f32.partialorder %v12783_v15, %v12735_v16  ;;  %v4539_v21 = vsel %vm4475_vm8, 1, %v17161_v14 }
 0x329   :  { %vm4162_vm9 = vcmp.eq.s32.totalorder %v4062_v52, 1  ;;  %vm4161_vm1 = vcmp.eq.s32.totalorder %v4059_v49, 1  ;;  %v4540_v28 = vsel %vm4476_vm14, 1, %v17161_v14 }
 0x32a   :  { %v4226_v22 = vsel %vm4162_vm9, %v12125_v10, %v8751_v23  ;;  %v4225_v6 = vsel %vm4161_vm1, %v12129_v11, %v8751_v23  ;;  %4683 = vperm.xlu1 %8065, %v4540_v28   ;;  %4680 = vperm.xlu0 %8064, %v4539_v21  }
 0x32b   :  { %v4290_v17 = vmax.f32 %v12109_v19, %v4226_v22  ;;  %v4354_v9 = vadd.f32 %v4226_v22, %v12109_v19  ;;  %v4289_v55 = vmax.f32 %v12102_v46, %v4225_v6  ;;  %v4353_v56 = vadd.f32 %v4225_v6, %v12102_v46 }
 0x32c   :  { %v4068_v59 = vpop.permute.xlu1 %4067  ;;  %v4065_v52 = vpop.permute.xlu0 %4064 }
 0x32d   :  { %v12801_v49 = vsel %vm397_vm10, %v4290_v17, %v4354_v9  ;;  %v12805_v53 = vsel %vm397_vm10, %v4289_v55, %v4353_v56  ;;  %vm4164_vm11 = vcmp.eq.s32.totalorder %v4068_v59, 1  ;;  %vm4163_vm12 = vcmp.eq.s32.totalorder %v4065_v52, 1 }
 0x32e   :  { %v4228_v21 = vsel %vm4164_vm11, %v12147_v7, %v8751_v23  ;;  %v4227_v19 = vsel %vm4163_vm12, %v12151_v48, %v8751_v23  ;;  %vm4478_vm13 = vcmp.eq.f32.partialorder %v12801_v49, %v12761_v2  ;;  %vm4477_vm15 = vcmp.eq.f32.partialorder %v12805_v53, %v12757_v5 }
 0x32f   :  { %v4292_v46 = vmax.f32 %v12125_v10, %v4228_v21  ;;  %v4356_v28 = vadd.f32 %v4228_v21, %v12125_v10  ;;  %v4291_v22 = vmax.f32 %v12129_v11, %v4227_v19  ;;  %v4355_v6 = vadd.f32 %v4227_v19, %v12129_v11 }
 0x330   :  { %v4542_v17 = vsel %vm4478_vm13, 1, %v17161_v14  ;;  %v4541_v9 = vsel %vm4477_vm15, 1, %v17161_v14 }
 0x331   :  { %v12823_v55 = vsel %vm397_vm10, %v4292_v46, %v4356_v28  ;;  %v12827_v56 = vsel %vm397_vm10, %v4291_v22, %v4355_v6  ;;  %4689 = vperm.xlu1 %8065, %v4542_v17   ;;  %v4074_v59 = vpop.permute.xlu1 %4073  ;;  %4686 = vperm.xlu0 %8064, %v4541_v9   ;;  %v4071_v10 = vpop.permute.xlu0 %4070 }
 0x332   :  { %vm4166_vm2 = vcmp.eq.s32.totalorder %v4074_v59, 1  ;;  %vm4165_vm3 = vcmp.eq.s32.totalorder %v4071_v10, 1  ;;  %vm4480_vm4 = vcmp.eq.f32.partialorder %v12823_v55, %v12783_v15  ;;  %vm4479_vm5 = vcmp.eq.f32.partialorder %v12827_v56, %v12779_v45 }
 0x333   :  { %v4230_v11 = vsel %vm4166_vm2, %v12169_v44, %v8751_v23  ;;  %v4229_v52 = vsel %vm4165_vm3, %v12173_v8, %v8751_v23  ;;  %v4544_v21 = vsel %vm4480_vm4, 1, %v17161_v14  ;;  %v4543_v19 = vsel %vm4479_vm5, 1, %v17161_v14 }
 0x334   :  { %v4294_v46 = vmax.f32 %v12147_v7, %v4230_v11  ;;  %v4358_v28 = vadd.f32 %v4230_v11, %v12147_v7  ;;  %v4293_v22 = vmax.f32 %v12151_v48, %v4229_v52  ;;  %v4357_v6 = vadd.f32 %v4229_v52, %v12151_v48 }
 0x335   :  { %4695 = vperm.xlu1 %8065, %v4544_v21   ;;  %v4080_v17 = vpop.permute.xlu1 %4079  ;;  %4692 = vperm.xlu0 %8064, %v4543_v19   ;;  %v4077_v9 = vpop.permute.xlu0 %4076 }
 0x336   :  { %v12845_v59 = vsel %vm397_vm10, %v4294_v46, %v4358_v28  ;;  %v12849_v10 = vsel %vm397_vm10, %v4293_v22, %v4357_v6  ;;  %vm4168_vm6 = vcmp.eq.s32.totalorder %v4080_v17, 1  ;;  %vm4167_vm7 = vcmp.eq.s32.totalorder %v4077_v9, 1 }
 0x337   :  { %v4232_v7 = vsel %vm4168_vm6, %v12191_v20, %v8751_v23  ;;  %v4231_v48 = vsel %vm4167_vm7, %v12195_v18, %v8751_v23  ;;  %vm4482_vm8 = vcmp.eq.f32.partialorder %v12845_v59, %v12801_v49  ;;  %vm4481_vm14 = vcmp.eq.f32.partialorder %v12849_v10, %v12805_v53 }
 0x338   :  { %v4296_v11 = vmax.f32 %v12169_v44, %v4232_v7  ;;  %v4360_v52 = vadd.f32 %v4232_v7, %v12169_v44  ;;  %v4295_v21 = vmax.f32 %v12173_v8, %v4231_v48  ;;  %v4359_v19 = vadd.f32 %v4231_v48, %v12173_v8 }
 0x339   :  { %v4546_v46 = vsel %vm4482_vm8, 1, %v17161_v14  ;;  %v4545_v28 = vsel %vm4481_vm14, 1, %v17161_v14 }
 0x33a   :  { %v12867_v22 = vsel %vm397_vm10, %v4296_v11, %v4360_v52  ;;  %v12871_v6 = vsel %vm397_vm10, %v4295_v21, %v4359_v19  ;;  %4701 = vperm.xlu1 %8065, %v4546_v46   ;;  %v4086_v17 = vpop.permute.xlu1 %4085  ;;  %4698 = vperm.xlu0 %8064, %v4545_v28   ;;  %v4083_v44 = vpop.permute.xlu0 %4082 }
 0x33b   :  { %17684 = vst [vmem:[#allocation79_spill] sm:$0xff] %v12871_v6  ;;  %vm4170_vm9 = vcmp.eq.s32.totalorder %v4086_v17, 1  ;;  %vm4169_vm1 = vcmp.eq.s32.totalorder %v4083_v44, 1  ;;  %vm4484_vm11 = vcmp.eq.f32.partialorder %v12867_v22, %v12823_v55  ;;  %vm4483_vm12 = vcmp.eq.f32.partialorder %v12871_v6, %v12827_v56 }
 0x33c   :  { %v4234_v8 = vsel %vm4170_vm9, %v12213_v24, %v8751_v23  ;;  %v4233_v9 = vsel %vm4169_vm1, %v12217_v62, %v8751_v23  ;;  %v4548_v7 = vsel %vm4484_vm11, 1, %v17161_v14  ;;  %v4547_v48 = vsel %vm4483_vm12, 1, %v17161_v14 }
 0x33d   :  { %v4298_v11 = vmax.f32 %v12191_v20, %v4234_v8  ;;  %v4362_v52 = vadd.f32 %v4234_v8, %v12191_v20  ;;  %v4297_v21 = vmax.f32 %v12195_v18, %v4233_v9  ;;  %v4361_v19 = vadd.f32 %v4233_v9, %v12195_v18 }
 0x33e   :  { %4707 = vperm.xlu1 %8065, %v4548_v7   ;;  %v4092_v46 = vpop.permute.xlu1 %4091  ;;  %4704 = vperm.xlu0 %8064, %v4547_v48   ;;  %v4089_v28 = vpop.permute.xlu0 %4088 }
 0x33f   :  { %v12889_v17 = vsel %vm397_vm10, %v4298_v11, %v4362_v52  ;;  %v12893_v44 = vsel %vm397_vm10, %v4297_v21, %v4361_v19  ;;  %vm4172_vm13 = vcmp.eq.s32.totalorder %v4092_v46, 1  ;;  %vm4171_vm15 = vcmp.eq.s32.totalorder %v4089_v28, 1 }
 0x340   :  { %17685 = vst [vmem:[#allocation70_spill] sm:$0xff] %v12889_v17  ;;  %17686 = vst [vmem:[#allocation35_spill] sm:$0xff] %v12893_v44  ;;  %v4236_v20 = vsel %vm4172_vm13, %v12235_v51, %v8751_v23  ;;  %v4235_v18 = vsel %vm4171_vm15, %v12239_v25, %v8751_v23  ;;  %vm4486_vm2 = vcmp.eq.f32.partialorder %v12889_v17, %v12845_v59 }
 0x341   :  { %vm4485_vm3 = vcmp.eq.f32.partialorder %v12893_v44, %v12849_v10  ;;  %v4300_v8 = vmax.f32 %v12213_v24, %v4236_v20  ;;  %v4364_v9 = vadd.f32 %v4236_v20, %v12213_v24  ;;  %v4299_v7 = vmax.f32 %v12217_v62, %v4235_v18 }
 0x342   :  { %v4363_v48 = vadd.f32 %v4235_v18, %v12217_v62  ;;  %v4550_v11 = vsel %vm4486_vm2, 1, %v17161_v14  ;;  %v4098_v52 = vpop.permute.xlu1 %4097  ;;  %v4549_v21 = vsel %vm4485_vm3, 1, %v17161_v14  ;;  %v4095_v19 = vpop.permute.xlu0 %4094 }
 0x343   :  { %v12911_v46 = vsel %vm397_vm10, %v4300_v8, %v4364_v9  ;;  %4713 = vperm.xlu1 %8065, %v4550_v11   ;;  %vm4174_vm4 = vcmp.eq.s32.totalorder %v4098_v52, 1  ;;  %4710 = vperm.xlu0 %8064, %v4549_v21   ;;  %vm4173_vm5 = vcmp.eq.s32.totalorder %v4095_v19, 1 }
 0x344   :  { %17687 = vst [vmem:[#allocation77_spill] sm:$0xff] %v12911_v46  ;;  %v12915_v28 = vsel %vm397_vm10, %v4299_v7, %v4363_v48  ;;  %v4238_v24 = vsel %vm4174_vm4, %v12257_v32, %v8751_v23  ;;  %v4237_v62 = vsel %vm4173_vm5, %v12261_v57, %v8751_v23  ;;  %vm4488_vm6 = vcmp.eq.f32.partialorder %v12911_v46, %v12867_v22 }
 0x345   :  { %17688 = vst [vmem:[#allocation41_spill] sm:$0xff] %v12915_v28  ;;  %vm4487_vm7 = vcmp.eq.f32.partialorder %v12915_v28, %v12871_v6  ;;  %v4302_v20 = vmax.f32 %v12235_v51, %v4238_v24  ;;  %v4366_v18 = vadd.f32 %v4238_v24, %v12235_v51  ;;  %v4301_v8 = vmax.f32 %v12239_v25, %v4237_v62 }
 0x346   :  { %v4365_v9 = vadd.f32 %v4237_v62, %v12239_v25  ;;  %v4552_v7 = vsel %vm4488_vm6, 1, %v17161_v14  ;;  %v4104_v48 = vpop.permute.xlu1 %4103  ;;  %v4551_v11 = vsel %vm4487_vm7, 1, %v17161_v14  ;;  %v4101_v52 = vpop.permute.xlu0 %4100 }
 0x347   :  { %v12933_v21 = vsel %vm397_vm10, %v4302_v20, %v4366_v18  ;;  %4719 = vperm.xlu1 %8065, %v4552_v7   ;;  %vm4176_vm8 = vcmp.eq.s32.totalorder %v4104_v48, 1  ;;  %4716 = vperm.xlu0 %8064, %v4551_v11   ;;  %vm4175_vm14 = vcmp.eq.s32.totalorder %v4101_v52, 1 }
 0x348   :  { %17689 = vst [vmem:[#allocation74_spill] sm:$0xff] %v12933_v21  ;;  %v12937_v19 = vsel %vm397_vm10, %v4301_v8, %v4365_v9  ;;  %v4240_v51 = vsel %vm4176_vm8, %v12279_v12, %v8751_v23  ;;  %v4239_v25 = vsel %vm4175_vm14, %v12283_v31, %v8751_v23  ;;  %vm4490_vm9 = vcmp.eq.f32.partialorder %v12933_v21, %v12889_v17 }
 0x349   :  { %17690 = vst [vmem:[#allocation39_spill] sm:$0xff] %v12937_v19  ;;  %vm4489_vm1 = vcmp.eq.f32.partialorder %v12937_v19, %v12893_v44  ;;  %v4304_v24 = vmax.f32 %v12257_v32, %v4240_v51  ;;  %v4368_v62 = vadd.f32 %v4240_v51, %v12257_v32  ;;  %v4303_v20 = vmax.f32 %v12261_v57, %v4239_v25 }
 0x34a   :  { %v4367_v18 = vadd.f32 %v4239_v25, %v12261_v57  ;;  %v4554_v8 = vsel %vm4490_vm9, 1, %v17161_v14  ;;  %v4110_v9 = vpop.permute.xlu1 %4109  ;;  %v4553_v7 = vsel %vm4489_vm1, 1, %v17161_v14  ;;  %v4107_v48 = vpop.permute.xlu0 %4106  ;;  %v17693_v57 = vld [vmem:[#allocation31_spill] sm:$0xff] }
 0x34b   :  { %v12955_v11 = vsel %vm397_vm10, %v4304_v24, %v4368_v62  ;;  %4725 = vperm.xlu1 %8065, %v4554_v8   ;;  %vm4178_vm11 = vcmp.eq.s32.totalorder %v4110_v9, 1  ;;  %4722 = vperm.xlu0 %8064, %v4553_v7   ;;  %vm4177_vm12 = vcmp.eq.s32.totalorder %v4107_v48, 1 }
 0x34c   :  { %17691 = vst [vmem:[#allocation43_spill] sm:$0xff] %v12955_v11  ;;  %v12959_v52 = vsel %vm397_vm10, %v4303_v20, %v4367_v18  ;;  %v4242_v32 = vsel %vm4178_vm11, %v12301_v40, %v8751_v23  ;;  %v4241_v51 = vsel %vm4177_vm12, %v17693_v57, %v8751_v23  ;;  %vm4492_vm13 = vcmp.eq.f32.partialorder %v12955_v11, %v12911_v46 }
 0x34d   :  { %17692 = vst [vmem:[#allocation37_spill] sm:$0xff] %v12959_v52  ;;  %vm4491_vm15 = vcmp.eq.f32.partialorder %v12959_v52, %v12915_v28  ;;  %v4306_v25 = vmax.f32 %v12279_v12, %v4242_v32  ;;  %v4370_v24 = vadd.f32 %v4242_v32, %v12279_v12  ;;  %v4305_v62 = vmax.f32 %v12283_v31, %v4241_v51  ;;  %v17696_v12 = vld [vmem:[#allocation63_spill] sm:$0xff]  ;;  %v17697_v32 = vld [vmem:[#allocation18_spill] sm:$0xff] }
 0x34e   :  { %v4369_v20 = vadd.f32 %v4241_v51, %v12283_v31  ;;  %v4556_v18 = vsel %vm4492_vm13, 1, %v17161_v14  ;;  %v4116_v8 = vpop.permute.xlu1 %4115  ;;  %v4555_v9 = vsel %vm4491_vm15, 1, %v17161_v14  ;;  %v4113_v7 = vpop.permute.xlu0 %4112 }
 0x34f   :  { %v12977_v48 = vsel %vm397_vm10, %v4306_v25, %v4370_v24  ;;  %4731 = vperm.xlu1 %8065, %v4556_v18   ;;  %vm4180_vm2 = vcmp.eq.s32.totalorder %v4116_v8, 1  ;;  %4728 = vperm.xlu0 %8064, %v4555_v9   ;;  %vm4179_vm3 = vcmp.eq.s32.totalorder %v4113_v7, 1 }
 0x350   :  { %17694 = vst [vmem:[#allocation76_spill] sm:$0xff] %v12977_v48  ;;  %v12981_v28 = vsel %vm397_vm10, %v4305_v62, %v4369_v20  ;;  %v4244_v31 = vsel %vm4180_vm2, %v17696_v12, %v8751_v23  ;;  %v4243_v51 = vsel %vm4179_vm3, %v17697_v32, %v8751_v23  ;;  %vm4494_vm4 = vcmp.eq.f32.partialorder %v12977_v48, %v12933_v21 }
 0x351   :  { %17695 = vst [vmem:[#allocation80_spill] sm:$0xff] %v12981_v28  ;;  %vm4493_vm5 = vcmp.eq.f32.partialorder %v12981_v28, %v12937_v19  ;;  %v4308_v25 = vmax.f32 %v12301_v40, %v4244_v31  ;;  %v4372_v24 = vadd.f32 %v4244_v31, %v12301_v40  ;;  %v4307_v62 = vmax.f32 %v17693_v57, %v4243_v51 }
 0x352   :  { %v4371_v20 = vadd.f32 %v4243_v51, %v17693_v57  ;;  %v4558_v18 = vsel %vm4494_vm4, 1, %v17161_v14  ;;  %v4557_v8 = vsel %vm4493_vm5, 1, %v17161_v14  ;;  %vm4498_vm8 = vcmp.eq.f32.partialorder %v12341_v3, %v12977_v48 }
 0x353   :  { %v12999_v9 = vsel %vm397_vm10, %v4308_v25, %v4372_v24  ;;  %4737 = vperm.xlu1 %8065, %v4558_v18   ;;  %4734 = vperm.xlu0 %8064, %v4557_v8   ;;  %vm4497_vm14 = vcmp.eq.f32.partialorder %v12331_v50, %v12981_v28  ;;  %v4562_v32 = vsel %vm4498_vm8, 1, %v17161_v14  ;;  %v17700_v25 = vld [vmem:[#allocation27_spill] sm:$0xff] }
 0x354   :  { %17698 = vst [vmem:[#allocation48_spill] sm:$0xff] %v12999_v9  ;;  %v13003_v7 = vsel %vm397_vm10, %v4307_v62, %v4371_v20  ;;  %vm4496_vm6 = vcmp.eq.f32.partialorder %v12999_v9, %v12955_v11  ;;  %v4561_v51 = vsel %vm4497_vm14, 1, %v17161_v14  ;;  %vm4500_vm9 = vcmp.eq.f32.partialorder %v12383_v54, %v12999_v9 }
 0x355   :  { %17699 = vst [vmem:[#allocation44_spill] sm:$0xff] %v13003_v7  ;;  %vm4495_vm7 = vcmp.eq.f32.partialorder %v13003_v7, %v12959_v52  ;;  %v4560_v40 = vsel %vm4496_vm6, 1, %v17161_v14  ;;  %vm4499_vm1 = vcmp.eq.f32.partialorder %v17700_v25, %v13003_v7  ;;  %v4564_v20 = vsel %vm4500_vm9, 1, %v17161_v14 }
 0x356   :  { %v4559_v57 = vsel %vm4495_vm7, 1, %v17161_v14  ;;  %v4563_v18 = vsel %vm4499_vm1, 1, %v17161_v14 }
 0x357   :  { %4743 = vperm.xlu1 %8065, %v4560_v40   ;;  %4740 = vperm.xlu0 %8064, %v4559_v57   ;;  %v4567_v12 = vpop.permute.xlu0 %4566  ;;  %v17701_v40 = vld [vmem:[#allocation29_spill] sm:$0xff] }
 0x358   :  { %v4570_v31 = vpop.permute.xlu1 %4569  ;;  %vm4757_vm11 = vcmp.eq.s32.totalorder %v4567_v12, 1  ;;  %v17703_v12 = vld [vmem:[#allocation30_spill] sm:$0xff] }
 0x359   :  { %vm4758_vm12 = vcmp.eq.s32.totalorder %v4570_v31, 1  ;;  %v4821_v57 = vsel %vm4757_vm11, %v17701_v40, %v8751_v23 }
 0x35a   :  { %v4885_v28 = vmax.f32 %v12331_v50, %v4821_v57  ;;  %v4949_v31 = vadd.f32 %v4821_v57, %v12331_v50 }
 0x35b   :  { %4749 = vperm.xlu1 %8065, %v4562_v32   ;;  %4746 = vperm.xlu0 %8064, %v4561_v51   ;;  %v4573_v24 = vpop.permute.xlu0 %4572  ;;  %v17702_v51 = vld [vmem:[#allocation33_spill] sm:$0xff] }
 0x35c   :  { %v4576_v62 = vpop.permute.xlu1 %4575  ;;  %vm4759_vm13 = vcmp.eq.s32.totalorder %v4573_v24, 1  ;;  %v4822_v7 = vsel %vm4758_vm12, %v17702_v51, %v8751_v23  ;;  %v17704_v24 = vld [vmem:[#allocation34_spill] sm:$0xff] }
 0x35d   :  { %vm4760_vm15 = vcmp.eq.s32.totalorder %v4576_v62, 1  ;;  %v4823_v9 = vsel %vm4759_vm13, %v17703_v12, %v8751_v23  ;;  %v4886_v48 = vmax.f32 %v12341_v3, %v4822_v7  ;;  %v4950_v62 = vadd.f32 %v4822_v7, %v12341_v3 }
 0x35e   :  { %v4887_v19 = vmax.f32 %v17700_v25, %v4823_v9  ;;  %v4951_v21 = vadd.f32 %v4823_v9, %v17700_v25  ;;  %v13053_v9 = vsel %vm397_vm10, %v4885_v28, %v4949_v31 }
 0x35f   :  { %4755 = vperm.xlu1 %8065, %v4564_v20   ;;  %4752 = vperm.xlu0 %8064, %v4563_v18   ;;  %v4824_v20 = vsel %vm4760_vm15, %v17704_v24, %v8751_v23  ;;  %v13049_v6 = vsel %vm397_vm10, %v4886_v48, %v4950_v62  ;;  %17707 = vst [vmem:[#allocation42_spill] sm:$0xff] %v13053_v9 }
 0x360   :  { %v4582_v8 = vpop.permute.xlu1 %4581  ;;  %v4888_v57 = vmax.f32 %v12383_v54, %v4824_v20  ;;  %v4952_v50 = vadd.f32 %v4824_v20, %v12383_v54  ;;  %17706 = vst [vmem:[#allocation73_spill] sm:$0xff] %v13049_v6 }
 0x361   :  { %v4579_v32 = vpop.permute.xlu0 %4578  ;;  %vm4762_vm2 = vcmp.eq.s32.totalorder %v4582_v8, 1  ;;  %v17705_v8 = vld [vmem:[#allocation66_spill] sm:$0xff] }
 0x362   :  { %vm4761_vm3 = vcmp.eq.s32.totalorder %v4579_v32, 1  ;;  %v4826_v52 = vsel %vm4762_vm2, %v12411_v38, %v8751_v23  ;;  %v13067_v48 = vsel %vm397_vm10, %v4888_v57, %v4952_v50 }
 0x363   :  { %v4825_v32 = vsel %vm4761_vm3, %v17705_v8, %v8751_v23  ;;  %v4890_v46 = vmax.f32 %v17702_v51, %v4826_v52  ;;  %v4954_v7 = vadd.f32 %v4826_v52, %v17702_v51  ;;  %17709 = vst [vmem:[#allocation46_spill] sm:$0xff] %v13067_v48 }
 0x364   :  { %v4588_v18 = vpop.permute.xlu1 %4587  ;;  %v4889_v3 = vmax.f32 %v17701_v40, %v4825_v32  ;;  %v4953_v44 = vadd.f32 %v4825_v32, %v17701_v40 }
 0x365   :  { %v4585_v11 = vpop.permute.xlu0 %4584  ;;  %vm4764_vm4 = vcmp.eq.s32.totalorder %v4588_v18, 1  ;;  %v13057_v18 = vsel %vm397_vm10, %v4887_v19, %v4951_v21  ;;  %v13075_v19 = vsel %vm397_vm10, %v4890_v46, %v4954_v7 }
 0x366   :  { %17708 = vst [vmem:[#allocation75_spill] sm:$0xff] %v13057_v18  ;;  %v13061_v52 = vsel %vm4764_vm4, %v12433_v37, %v8751_v23  ;;  %17710 = vst [vmem:[#allocation83_spill] sm:$0xff] %v13075_v19  ;;  %v13079_v51 = vsel %vm397_vm10, %v4889_v3, %v4953_v44  ;;  %vm4763_vm7 = vcmp.eq.s32.totalorder %v4585_v11, 1  ;;  %v17712_v3 = vld [vmem:[#allocation40_spill] sm:$0xff] }
 0x367   :  { %17711 = vst [vmem:[#allocation82_spill] sm:$0xff] %v13079_v51  ;;  %v4892_v32 = vmax.f32 %v17704_v24, %v13061_v52 }
 0x368   :  { %v4594_v17 = vpop.permute.xlu1 %4593 }
 0x369   :  { %vm4766_vm5 = vcmp.eq.s32.totalorder %v4594_v17, 1  ;;  %v4591_v20 = vpop.permute.xlu0 %4590 }
 0x36a   :  { %v4830_v40 = vsel %vm4766_vm5, %v12455_v36, %v8751_v23  ;;  %vm4765_vm6 = vcmp.eq.s32.totalorder %v4591_v20, 1  ;;  %v17713_v20 = vld [vmem:[#allocation72_spill] sm:$0xff] }
 0x36b   :  { %v4894_v28 = vmax.f32 %v12411_v38, %v4830_v40  ;;  %v4958_v17 = vadd.f32 %v4830_v40, %v12411_v38  ;;  %v4829_v21 = vsel %vm4765_vm6, %v12449_v35, %v8751_v23 }
 0x36c   :  { %v4893_v31 = vmax.f32 %v17705_v8, %v4829_v21  ;;  %v4957_v50 = vadd.f32 %v4829_v21, %v17705_v8  ;;  %v4600_v62 = vpop.permute.xlu1 %4599  ;;  %v17714_v21 = vld [vmem:[#allocation65_spill] sm:$0xff] }
 0x36d   :  { %v13087_v38 = vsel %vm397_vm10, %v4894_v28, %v4958_v17  ;;  %vm4768_vm8 = vcmp.eq.s32.totalorder %v4600_v62, 1  ;;  %v4597_v46 = vpop.permute.xlu0 %4596  ;;  %v4956_v17 = vadd.f32 %v13061_v52, %v17704_v24 }
 0x36e   :  { %v13091_v57 = vsel %vm397_vm10, %v4893_v31, %v4957_v50  ;;  %v4832_v44 = vsel %vm4768_vm8, %v17712_v3, %v8751_v23  ;;  %vm4767_vm14 = vcmp.eq.s32.totalorder %v4597_v46, 1  ;;  %vm5078_vm9 = vcmp.eq.f32.partialorder %v13087_v38, %v13049_v6 }
 0x36f   :  { %v4896_v8 = vmax.f32 %v12433_v37, %v4832_v44  ;;  %v4960_v7 = vadd.f32 %v4832_v44, %v12433_v37  ;;  %v4831_v40 = vsel %vm4767_vm14, %v17713_v20, %v8751_v23  ;;  %v5142_v28 = vsel %vm5078_vm9, 1, %v17161_v14 }
 0x370   :  { %v4895_v31 = vmax.f32 %v17714_v21, %v4831_v40  ;;  %v4959_v50 = vadd.f32 %v4831_v40, %v17714_v21  ;;  %5209 = vperm.xlu1 %8065, %v5142_v28   ;;  %v4606_v62 = vpop.permute.xlu1 %4605  ;;  %vm5077_vm1 = vcmp.eq.f32.partialorder %v13091_v57, %v13053_v9  ;;  %v4827_v37 = vsel %vm4763_vm7, %v17714_v21, %v8751_v23 }
 0x371   :  { %v13113_v46 = vsel %vm397_vm10, %v4896_v8, %v4960_v7  ;;  %vm4770_vm11 = vcmp.eq.s32.totalorder %v4606_v62, 1  ;;  %v5141_v24 = vsel %vm5077_vm1, 1, %v17161_v14  ;;  %v4603_v52 = vpop.permute.xlu0 %4602  ;;  %v4891_v21 = vmax.f32 %v17703_v12, %v4827_v37 }
 0x372   :  { %v13118_v44 = vsel %vm397_vm10, %v4895_v31, %v4959_v50  ;;  %v4834_v40 = vsel %vm4770_vm11, %v12499_v42, %v8751_v23  ;;  %5206 = vperm.xlu0 %8064, %v5141_v24   ;;  %vm4769_vm12 = vcmp.eq.s32.totalorder %v4603_v52, 1  ;;  %vm5080_vm13 = vcmp.eq.f32.partialorder %v13113_v46, %v13067_v48 }
 0x373   :  { %v4898_v11 = vmax.f32 %v12455_v36, %v4834_v40  ;;  %v4962_v8 = vadd.f32 %v4834_v40, %v12455_v36  ;;  %v4833_v7 = vsel %vm4769_vm12, %v12493_v41, %v8751_v23  ;;  %v5144_v28 = vsel %vm5080_vm13, 1, %v17161_v14 }
 0x374   :  { %v4897_v31 = vmax.f32 %v12449_v35, %v4833_v7  ;;  %v4961_v50 = vadd.f32 %v4833_v7, %v12449_v35  ;;  %5215 = vperm.xlu1 %8065, %v5144_v28   ;;  %v4612_v62 = vpop.permute.xlu1 %4611  ;;  %vm5079_vm15 = vcmp.eq.f32.partialorder %v13118_v44, %v13057_v18  ;;  %v4955_v24 = vadd.f32 %v4827_v37, %v17703_v12  ;;  %v17715_v35 = vld [vmem:[#allocation38_spill] sm:$0xff] }
 0x375   :  { %v13137_v36 = vsel %vm397_vm10, %v4898_v11, %v4962_v8  ;;  %vm4772_vm2 = vcmp.eq.s32.totalorder %v4612_v62, 1  ;;  %v5143_v52 = vsel %vm5079_vm15, 1, %v17161_v14  ;;  %v4609_v40 = vpop.permute.xlu0 %4608  ;;  %v17716_v11 = vld [vmem:[#allocation69_spill] sm:$0xff] }
 0x376   :  { %v13142_v48 = vsel %vm397_vm10, %v4897_v31, %v4961_v50  ;;  %v4836_v7 = vsel %vm4772_vm2, %v17715_v35, %v8751_v23  ;;  %5212 = vperm.xlu0 %8064, %v5143_v52   ;;  %vm4771_vm3 = vcmp.eq.s32.totalorder %v4609_v40, 1  ;;  %vm5082_vm4 = vcmp.eq.f32.partialorder %v13137_v36, %v13075_v19 }
 0x377   :  { %v4900_v12 = vmax.f32 %v17712_v3, %v4836_v7  ;;  %v4964_v37 = vadd.f32 %v4836_v7, %v17712_v3  ;;  %v4835_v8 = vsel %vm4771_vm3, %v17716_v11, %v8751_v23  ;;  %v5146_v28 = vsel %vm5082_vm4, 1, %v17161_v14 }
 0x378   :  { %v13155_v31 = vsel %vm397_vm10, %v4892_v32, %v4956_v17  ;;  %v4899_v50 = vmax.f32 %v17713_v20, %v4835_v8  ;;  %v4963_v62 = vadd.f32 %v4835_v8, %v17713_v20  ;;  %5221 = vperm.xlu1 %8065, %v5146_v28   ;;  %v4618_v52 = vpop.permute.xlu1 %4617  ;;  %vm5081_vm5 = vcmp.eq.f32.partialorder %v13142_v48, %v13079_v51 }
 0x379   :  { %17717 = vst [vmem:[#allocation47_spill] sm:$0xff] %v13155_v31  ;;  %v13163_v3 = vsel %vm397_vm10, %v4891_v21, %v4955_v24  ;;  %v13167_v40 = vsel %vm397_vm10, %v4900_v12, %v4964_v37  ;;  %vm4774_vm6 = vcmp.eq.s32.totalorder %v4618_v52, 1  ;;  %v5145_v32 = vsel %vm5081_vm5, 1, %v17161_v14  ;;  %v4615_v17 = vpop.permute.xlu0 %4614  ;;  %v17721_v12 = vld [vmem:[#allocation36_spill] sm:$0xff] }
 0x37a   :  { %17718 = vst [vmem:[#allocation45_spill] sm:$0xff] %v13163_v3  ;;  %17719 = vst [vmem:[#allocation49_spill] sm:$0xff] %v13167_v40  ;;  %v13172_v20 = vsel %vm397_vm10, %v4899_v50, %v4963_v62  ;;  %v4838_v7 = vsel %vm4774_vm6, %v12543_v60, %v8751_v23  ;;  %5218 = vperm.xlu0 %8064, %v5145_v32   ;;  %vm4773_vm7 = vcmp.eq.s32.totalorder %v4615_v17, 1 }
 0x37b   :  { %17720 = vst [vmem:[#allocation78_spill] sm:$0xff] %v13172_v20  ;;  %vm5084_vm8 = vcmp.eq.f32.partialorder %v13167_v40, %v13155_v31  ;;  %v4902_v21 = vmax.f32 %v12499_v42, %v4838_v7  ;;  %v4966_v24 = vadd.f32 %v4838_v7, %v12499_v42  ;;  %v4837_v37 = vsel %vm4773_vm7, %v17721_v12, %v8751_v23 }
 0x37c   :  { %v5148_v8 = vsel %vm5084_vm8, 1, %v17161_v14  ;;  %v4901_v28 = vmax.f32 %v12493_v41, %v4837_v37  ;;  %v4965_v50 = vadd.f32 %v4837_v37, %v12493_v41  ;;  %v4624_v62 = vpop.permute.xlu1 %4623  ;;  %vm5083_vm14 = vcmp.eq.f32.partialorder %v13172_v20, %v13163_v3 }
 0x37d   :  { %5227 = vperm.xlu1 %8065, %v5148_v8   ;;  %v13189_v52 = vsel %vm397_vm10, %v4902_v21, %v4966_v24  ;;  %vm4776_vm9 = vcmp.eq.s32.totalorder %v4624_v62, 1  ;;  %v5147_v42 = vsel %vm5083_vm14, 1, %v17161_v14  ;;  %v4621_v32 = vpop.permute.xlu0 %4620 }
 0x37e   :  { %v13194_v17 = vsel %vm397_vm10, %v4901_v28, %v4965_v50  ;;  %v4840_v41 = vsel %vm4776_vm9, %v12565_v29, %v8751_v23  ;;  %5224 = vperm.xlu0 %8064, %v5147_v42   ;;  %vm4775_vm1 = vcmp.eq.s32.totalorder %v4621_v32, 1  ;;  %vm5086_vm11 = vcmp.eq.f32.partialorder %v13189_v52, %v13087_v38 }
 0x37f   :  { %v4904_v7 = vmax.f32 %v17715_v35, %v4840_v41  ;;  %v4968_v21 = vadd.f32 %v4840_v41, %v17715_v35  ;;  %v4839_v24 = vsel %vm4775_vm1, %v12557_v0, %v8751_v23  ;;  %v5150_v37 = vsel %vm5086_vm11, 1, %v17161_v14 }
 0x380   :  { %v4903_v8 = vmax.f32 %v17716_v11, %v4839_v24  ;;  %v4967_v28 = vadd.f32 %v4839_v24, %v17716_v11  ;;  %v4630_v50 = vpop.permute.xlu1 %4629  ;;  %vm5085_vm12 = vcmp.eq.f32.partialorder %v13194_v17, %v13091_v57 }
 0x381   :  { %5233 = vperm.xlu1 %8065, %v5150_v37   ;;  %v13211_v62 = vsel %vm397_vm10, %v4904_v7, %v4968_v21  ;;  %vm4778_vm13 = vcmp.eq.s32.totalorder %v4630_v50, 1  ;;  %v5149_v35 = vsel %vm5085_vm12, 1, %v17161_v14  ;;  %v4627_v42 = vpop.permute.xlu0 %4626  ;;  %v17722_v21 = vld [vmem:[#allocation71_spill] sm:$0xff] }
 0x382   :  { %v13216_v32 = vsel %vm397_vm10, %v4903_v8, %v4967_v28  ;;  %v4842_v11 = vsel %vm4778_vm13, %v12585_v34, %v8751_v23  ;;  %5230 = vperm.xlu0 %8064, %v5149_v35   ;;  %vm4777_vm15 = vcmp.eq.s32.totalorder %v4627_v42, 1  ;;  %vm5088_vm2 = vcmp.eq.f32.partialorder %v13211_v62, %v13113_v46 }
 0x383   :  { %v4906_v41 = vmax.f32 %v12543_v60, %v4842_v11  ;;  %v4970_v7 = vadd.f32 %v4842_v11, %v12543_v60  ;;  %v4841_v24 = vsel %vm4777_vm15, %v17722_v21, %v8751_v23  ;;  %v5152_v37 = vsel %vm5088_vm2, 1, %v17161_v14 }
 0x384   :  { %v4905_v8 = vmax.f32 %v17721_v12, %v4841_v24  ;;  %v4969_v28 = vadd.f32 %v4841_v24, %v17721_v12  ;;  %v4636_v50 = vpop.permute.xlu1 %4635  ;;  %vm5087_vm3 = vcmp.eq.f32.partialorder %v13216_v32, %v13118_v44 }
 0x385   :  { %5239 = vperm.xlu1 %8065, %v5152_v37   ;;  %v13233_v35 = vsel %vm397_vm10, %v4906_v41, %v4970_v7  ;;  %vm4780_vm4 = vcmp.eq.s32.totalorder %v4636_v50, 1  ;;  %v5151_v60 = vsel %vm5087_vm3, 1, %v17161_v14  ;;  %v4633_v42 = vpop.permute.xlu0 %4632 }
 0x386   :  { %v13238_v11 = vsel %vm397_vm10, %v4905_v8, %v4969_v28  ;;  %v4844_v12 = vsel %vm4780_vm4, %v12607_v39, %v8751_v23  ;;  %5236 = vperm.xlu0 %8064, %v5151_v60   ;;  %vm4779_vm5 = vcmp.eq.s32.totalorder %v4633_v42, 1  ;;  %vm5090_vm6 = vcmp.eq.f32.partialorder %v13233_v35, %v13137_v36 }
 0x387   :  { %v4908_v24 = vmax.f32 %v12565_v29, %v4844_v12  ;;  %v4972_v41 = vadd.f32 %v4844_v12, %v12565_v29  ;;  %v4843_v7 = vsel %vm4779_vm5, %v12603_v13, %v8751_v23  ;;  %v5154_v37 = vsel %vm5090_vm6, 1, %v17161_v14 }
 0x388   :  { %v4907_v8 = vmax.f32 %v12557_v0, %v4843_v7  ;;  %v4971_v28 = vadd.f32 %v4843_v7, %v12557_v0  ;;  %vm5089_vm7 = vcmp.eq.f32.partialorder %v13238_v11, %v13142_v48 }
 0x389   :  { %5245 = vperm.xlu1 %8065, %v5154_v37   ;;  %v13255_v50 = vsel %vm397_vm10, %v4908_v24, %v4972_v41  ;;  %v4642_v60 = vpop.permute.xlu1 %4641  ;;  %v5153_v29 = vsel %vm5089_vm7, 1, %v17161_v14  ;;  %v4639_v42 = vpop.permute.xlu0 %4638 }
 0x38a   :  { %v13260_v12 = vsel %vm397_vm10, %v4907_v8, %v4971_v28  ;;  %vm4782_vm8 = vcmp.eq.s32.totalorder %v4642_v60, 1  ;;  %5242 = vperm.xlu0 %8064, %v5153_v29   ;;  %vm4781_vm14 = vcmp.eq.s32.totalorder %v4639_v42, 1  ;;  %vm5092_vm9 = vcmp.eq.f32.partialorder %v13255_v50, %v13167_v40 }
 0x38b   :  { %17723 = vst [vmem:[#allocation81_spill] sm:$0xff] %v13260_v12  ;;  %v4846_v0 = vsel %vm4782_vm8, %v12629_v30, %v8751_v23  ;;  %v4845_v24 = vsel %vm4781_vm14, %v12625_v61, %v8751_v23  ;;  %v5156_v41 = vsel %vm5092_vm9, 1, %v17161_v14  ;;  %vm5091_vm1 = vcmp.eq.f32.partialorder %v13260_v12, %v13172_v20 }
 0x38c   :  { %v4910_v7 = vmax.f32 %v12585_v34, %v4846_v0  ;;  %v4974_v37 = vadd.f32 %v4846_v0, %v12585_v34  ;;  %v4909_v8 = vmax.f32 %v17722_v21, %v4845_v24  ;;  %v4973_v28 = vadd.f32 %v4845_v24, %v17722_v21 }
 0x38d   :  { %5251 = vperm.xlu1 %8065, %v5156_v41   ;;  %v4648_v60 = vpop.permute.xlu1 %4647  ;;  %v5155_v29 = vsel %vm5091_vm1, 1, %v17161_v14  ;;  %v4645_v42 = vpop.permute.xlu0 %4644 }
 0x38e   :  { %v13278_v40 = vsel %vm397_vm10, %v4910_v7, %v4974_v37  ;;  %v13282_v20 = vsel %vm397_vm10, %v4909_v8, %v4973_v28  ;;  %vm4784_vm11 = vcmp.eq.s32.totalorder %v4648_v60, 1  ;;  %5248 = vperm.xlu0 %8064, %v5155_v29   ;;  %vm4783_vm12 = vcmp.eq.s32.totalorder %v4645_v42, 1 }
 0x38f   :  { %v4848_v34 = vsel %vm4784_vm11, %v12647_v27, %v8751_v23  ;;  %v4847_v21 = vsel %vm4783_vm12, %v12651_v47, %v8751_v23  ;;  %vm5094_vm13 = vcmp.eq.f32.partialorder %v13278_v40, %v13189_v52  ;;  %vm5093_vm15 = vcmp.eq.f32.partialorder %v13282_v20, %v13194_v17 }
 0x390   :  { %v4912_v0 = vmax.f32 %v12607_v39, %v4848_v34  ;;  %v4976_v24 = vadd.f32 %v4848_v34, %v12607_v39  ;;  %v4911_v41 = vmax.f32 %v12603_v13, %v4847_v21  ;;  %v4975_v7 = vadd.f32 %v4847_v21, %v12603_v13 }
 0x391   :  { %v5158_v37 = vsel %vm5094_vm13, 1, %v17161_v14  ;;  %v4654_v8 = vpop.permute.xlu1 %4653  ;;  %v5157_v28 = vsel %vm5093_vm15, 1, %v17161_v14  ;;  %v4651_v60 = vpop.permute.xlu0 %4650 }
 0x392   :  { %v13300_v29 = vsel %vm397_vm10, %v4912_v0, %v4976_v24  ;;  %v13304_v42 = vsel %vm397_vm10, %v4911_v41, %v4975_v7  ;;  %5257 = vperm.xlu1 %8065, %v5158_v37   ;;  %vm4786_vm2 = vcmp.eq.s32.totalorder %v4654_v8, 1  ;;  %5254 = vperm.xlu0 %8064, %v5157_v28   ;;  %vm4785_vm3 = vcmp.eq.s32.totalorder %v4651_v60, 1 }
 0x393   :  { %v4850_v13 = vsel %vm4786_vm2, %v12669_v58, %v8751_v23  ;;  %v4849_v39 = vsel %vm4785_vm3, %v12673_v33, %v8751_v23  ;;  %vm5096_vm4 = vcmp.eq.f32.partialorder %v13300_v29, %v13211_v62  ;;  %vm5095_vm5 = vcmp.eq.f32.partialorder %v13304_v42, %v13216_v32 }
 0x394   :  { %v4914_v34 = vmax.f32 %v12629_v30, %v4850_v13  ;;  %v4978_v21 = vadd.f32 %v4850_v13, %v12629_v30  ;;  %v4913_v0 = vmax.f32 %v12625_v61, %v4849_v39  ;;  %v4977_v24 = vadd.f32 %v4849_v39, %v12625_v61 }
 0x395   :  { %v5160_v41 = vsel %vm5096_vm4, 1, %v17161_v14  ;;  %v4660_v7 = vpop.permute.xlu1 %4659  ;;  %v5159_v37 = vsel %vm5095_vm5, 1, %v17161_v14  ;;  %v4657_v8 = vpop.permute.xlu0 %4656 }
 0x396   :  { %v13322_v28 = vsel %vm397_vm10, %v4914_v34, %v4978_v21  ;;  %v13326_v60 = vsel %vm397_vm10, %v4913_v0, %v4977_v24  ;;  %5263 = vperm.xlu1 %8065, %v5160_v41   ;;  %vm4788_vm6 = vcmp.eq.s32.totalorder %v4660_v7, 1  ;;  %5260 = vperm.xlu0 %8064, %v5159_v37   ;;  %vm4787_vm7 = vcmp.eq.s32.totalorder %v4657_v8, 1 }
 0x397   :  { %v4852_v61 = vsel %vm4788_vm6, %v12691_v63, %v8751_v23  ;;  %v4851_v30 = vsel %vm4787_vm7, %v12695_v26, %v8751_v23  ;;  %vm5098_vm8 = vcmp.eq.f32.partialorder %v13322_v28, %v13233_v35  ;;  %vm5097_vm14 = vcmp.eq.f32.partialorder %v13326_v60, %v13238_v11 }
 0x398   :  { %v4916_v13 = vmax.f32 %v12647_v27, %v4852_v61  ;;  %v4980_v39 = vadd.f32 %v4852_v61, %v12647_v27  ;;  %v4915_v34 = vmax.f32 %v12651_v47, %v4851_v30  ;;  %v4979_v21 = vadd.f32 %v4851_v30, %v12651_v47 }
 0x399   :  { %v5162_v0 = vsel %vm5098_vm8, 1, %v17161_v14  ;;  %v4666_v24 = vpop.permute.xlu1 %4665  ;;  %v5161_v41 = vsel %vm5097_vm14, 1, %v17161_v14  ;;  %v4663_v7 = vpop.permute.xlu0 %4662 }
 0x39a   :  { %v13344_v37 = vsel %vm397_vm10, %v4916_v13, %v4980_v39  ;;  %v13348_v8 = vsel %vm397_vm10, %v4915_v34, %v4979_v21  ;;  %5269 = vperm.xlu1 %8065, %v5162_v0   ;;  %vm4790_vm9 = vcmp.eq.s32.totalorder %v4666_v24, 1  ;;  %5266 = vperm.xlu0 %8064, %v5161_v41   ;;  %vm4789_vm1 = vcmp.eq.s32.totalorder %v4663_v7, 1 }
 0x39b   :  { %v4854_v47 = vsel %vm4790_vm9, %v12713_v4, %v8751_v23  ;;  %v4853_v27 = vsel %vm4789_vm1, %v12717_v43, %v8751_v23  ;;  %vm5100_vm11 = vcmp.eq.f32.partialorder %v13344_v37, %v13255_v50  ;;  %vm5099_vm12 = vcmp.eq.f32.partialorder %v13348_v8, %v13260_v12 }
 0x39c   :  { %v4918_v61 = vmax.f32 %v12669_v58, %v4854_v47  ;;  %v4982_v30 = vadd.f32 %v4854_v47, %v12669_v58  ;;  %v4917_v13 = vmax.f32 %v12673_v33, %v4853_v27  ;;  %v4981_v39 = vadd.f32 %v4853_v27, %v12673_v33  ;;  %v17724_v33 = vld [vmem:[#allocation67_spill] sm:$0xff] }
 0x39d   :  { %v5164_v34 = vsel %vm5100_vm11, 1, %v17161_v14  ;;  %v4672_v21 = vpop.permute.xlu1 %4671  ;;  %v5163_v0 = vsel %vm5099_vm12, 1, %v17161_v14  ;;  %v4669_v24 = vpop.permute.xlu0 %4668 }
 0x39e   :  { %v13366_v41 = vsel %vm397_vm10, %v4918_v61, %v4982_v30  ;;  %v13370_v7 = vsel %vm397_vm10, %v4917_v13, %v4981_v39  ;;  %5275 = vperm.xlu1 %8065, %v5164_v34   ;;  %vm4792_vm13 = vcmp.eq.s32.totalorder %v4672_v21, 1  ;;  %5272 = vperm.xlu0 %8064, %v5163_v0   ;;  %vm4791_vm15 = vcmp.eq.s32.totalorder %v4669_v24, 1 }
 0x39f   :  { %v4856_v58 = vsel %vm4792_vm13, %v12735_v16, %v8751_v23  ;;  %v4855_v47 = vsel %vm4791_vm15, %v17724_v33, %v8751_v23  ;;  %vm5102_vm2 = vcmp.eq.f32.partialorder %v13366_v41, %v13278_v40  ;;  %vm5101_vm3 = vcmp.eq.f32.partialorder %v13370_v7, %v13282_v20 }
 0x3a0   :  { %v4920_v27 = vmax.f32 %v12691_v63, %v4856_v58  ;;  %v4984_v61 = vadd.f32 %v4856_v58, %v12691_v63  ;;  %v4919_v30 = vmax.f32 %v12695_v26, %v4855_v47  ;;  %v4983_v13 = vadd.f32 %v4855_v47, %v12695_v26 }
 0x3a1   :  { %v5166_v39 = vsel %vm5102_vm2, 1, %v17161_v14  ;;  %v4678_v34 = vpop.permute.xlu1 %4677  ;;  %v5165_v21 = vsel %vm5101_vm3, 1, %v17161_v14  ;;  %v4675_v0 = vpop.permute.xlu0 %4674 }
 0x3a2   :  { %v13388_v24 = vsel %vm397_vm10, %v4920_v27, %v4984_v61  ;;  %v13392_v12 = vsel %vm397_vm10, %v4919_v30, %v4983_v13  ;;  %5281 = vperm.xlu1 %8065, %v5166_v39   ;;  %vm4794_vm4 = vcmp.eq.s32.totalorder %v4678_v34, 1  ;;  %5278 = vperm.xlu0 %8064, %v5165_v21   ;;  %vm4793_vm5 = vcmp.eq.s32.totalorder %v4675_v0, 1 }
 0x3a3   :  { %17725 = vst [vmem:[#allocation51_spill] sm:$0xff] %v13388_v24  ;;  %v4858_v63 = vsel %vm4794_vm4, %v12761_v2, %v8751_v23  ;;  %v4857_v26 = vsel %vm4793_vm5, %v12757_v5, %v8751_v23  ;;  %vm5104_vm6 = vcmp.eq.f32.partialorder %v13388_v24, %v13300_v29  ;;  %vm5103_vm7 = vcmp.eq.f32.partialorder %v13392_v12, %v13304_v42 }
 0x3a4   :  { %v4922_v58 = vmax.f32 %v12713_v4, %v4858_v63  ;;  %v4986_v47 = vadd.f32 %v4858_v63, %v12713_v4  ;;  %v4921_v27 = vmax.f32 %v12717_v43, %v4857_v26  ;;  %v4985_v61 = vadd.f32 %v4857_v26, %v12717_v43 }
 0x3a5   :  { %v5168_v30 = vsel %vm5104_vm6, 1, %v17161_v14  ;;  %v4684_v13 = vpop.permute.xlu1 %4683  ;;  %v5167_v39 = vsel %vm5103_vm7, 1, %v17161_v14  ;;  %v4681_v34 = vpop.permute.xlu0 %4680 }
 0x3a6   :  { %v13410_v21 = vsel %vm397_vm10, %v4922_v58, %v4986_v47  ;;  %v13414_v0 = vsel %vm397_vm10, %v4921_v27, %v4985_v61  ;;  %5287 = vperm.xlu1 %8065, %v5168_v30   ;;  %vm4796_vm8 = vcmp.eq.s32.totalorder %v4684_v13, 1  ;;  %5284 = vperm.xlu0 %8064, %v5167_v39   ;;  %vm4795_vm14 = vcmp.eq.s32.totalorder %v4681_v34, 1 }
 0x3a7   :  { %17726 = vst [vmem:[#allocation85_spill] sm:$0xff] %v13410_v21  ;;  %17727 = vst [vmem:[#allocation50_spill] sm:$0xff] %v13414_v0  ;;  %v4860_v4 = vsel %vm4796_vm8, %v12783_v15, %v8751_v23  ;;  %v4859_v43 = vsel %vm4795_vm14, %v12779_v45, %v8751_v23  ;;  %vm5106_vm9 = vcmp.eq.f32.partialorder %v13410_v21, %v13322_v28 }
 0x3a8   :  { %vm5105_vm1 = vcmp.eq.f32.partialorder %v13414_v0, %v13326_v60  ;;  %v4924_v63 = vmax.f32 %v12735_v16, %v4860_v4  ;;  %v4988_v26 = vadd.f32 %v4860_v4, %v12735_v16  ;;  %v4923_v58 = vmax.f32 %v17724_v33, %v4859_v43 }
 0x3a9   :  { %v4987_v47 = vadd.f32 %v4859_v43, %v17724_v33  ;;  %v5170_v27 = vsel %vm5106_vm9, 1, %v17161_v14  ;;  %v5169_v61 = vsel %vm5105_vm1, 1, %v17161_v14 }
 0x3aa   :  { %v13432_v30 = vsel %vm397_vm10, %v4924_v63, %v4988_v26  ;;  %5293 = vperm.xlu1 %8065, %v5170_v27   ;;  %5290 = vperm.xlu0 %8064, %v5169_v61  }
 0x3ab   :  { %17728 = vst [vmem:[#allocation84_spill] sm:$0xff] %v13432_v30  ;;  %v13436_v13 = vsel %vm397_vm10, %v4923_v58, %v4987_v47  ;;  %vm5108_vm11 = vcmp.eq.f32.partialorder %v13432_v30, %v13344_v37 }
 0x3ac   :  { %17729 = vst [vmem:[#allocation87_spill] sm:$0xff] %v13436_v13  ;;  %vm5107_vm12 = vcmp.eq.f32.partialorder %v13436_v13, %v13348_v8  ;;  %v4690_v16 = vpop.permute.xlu1 %4689  ;;  %v4687_v33 = vpop.permute.xlu0 %4686  ;;  %v5172_v39 = vsel %vm5108_vm11, 1, %v17161_v14 }
 0x3ad   :  { %v5171_v34 = vsel %vm5107_vm12, 1, %v17161_v14  ;;  %vm4798_vm13 = vcmp.eq.s32.totalorder %v4690_v16, 1  ;;  %vm4797_vm15 = vcmp.eq.s32.totalorder %v4687_v33, 1 }
 0x3ae   :  { %v4862_v4 = vsel %vm4798_vm13, %v12801_v49, %v8751_v23  ;;  %v4861_v43 = vsel %vm4797_vm15, %v12805_v53, %v8751_v23  ;;  %5299 = vperm.xlu1 %8065, %v5172_v39   ;;  %5296 = vperm.xlu0 %8064, %v5171_v34  }
 0x3af   :  { %v4926_v63 = vmax.f32 %v12761_v2, %v4862_v4  ;;  %v4990_v26 = vadd.f32 %v4862_v4, %v12761_v2  ;;  %v4925_v58 = vmax.f32 %v12757_v5, %v4861_v43  ;;  %v4989_v47 = vadd.f32 %v4861_v43, %v12757_v5 }
 0x3b0   :  { %v4696_v27 = vpop.permute.xlu1 %4695  ;;  %v4693_v61 = vpop.permute.xlu0 %4692 }
 0x3b1   :  { %v13454_v16 = vsel %vm397_vm10, %v4926_v63, %v4990_v26  ;;  %v13458_v33 = vsel %vm397_vm10, %v4925_v58, %v4989_v47  ;;  %vm4800_vm2 = vcmp.eq.s32.totalorder %v4696_v27, 1  ;;  %vm4799_vm3 = vcmp.eq.s32.totalorder %v4693_v61, 1 }
 0x3b2   :  { %17730 = vst [vmem:[#allocation86_spill] sm:$0xff] %v13458_v33  ;;  %v4864_v39 = vsel %vm4800_vm2, %v12823_v55, %v8751_v23  ;;  %v4863_v2 = vsel %vm4799_vm3, %v12827_v56, %v8751_v23  ;;  %vm5110_vm4 = vcmp.eq.f32.partialorder %v13454_v16, %v13366_v41  ;;  %vm5109_vm5 = vcmp.eq.f32.partialorder %v13458_v33, %v13370_v7 }
 0x3b3   :  { %v4928_v5 = vmax.f32 %v12783_v15, %v4864_v39  ;;  %v4992_v34 = vadd.f32 %v4864_v39, %v12783_v15  ;;  %v4927_v4 = vmax.f32 %v12779_v45, %v4863_v2  ;;  %v4991_v43 = vadd.f32 %v4863_v2, %v12779_v45 }
 0x3b4   :  { %v5174_v63 = vsel %vm5110_vm4, 1, %v17161_v14  ;;  %v5173_v26 = vsel %vm5109_vm5, 1, %v17161_v14 }
 0x3b5   :  { %v13476_v58 = vsel %vm397_vm10, %v4928_v5, %v4992_v34  ;;  %v13480_v47 = vsel %vm397_vm10, %v4927_v4, %v4991_v43  ;;  %5305 = vperm.xlu1 %8065, %v5174_v63   ;;  %v4702_v27 = vpop.permute.xlu1 %4701  ;;  %5302 = vperm.xlu0 %8064, %v5173_v26   ;;  %v4699_v15 = vpop.permute.xlu0 %4698 }
 0x3b6   :  { %17731 = vst [vmem:[#allocation92_spill] sm:$0xff] %v13476_v58  ;;  %17732 = vst [vmem:[#allocation93_spill] sm:$0xff] %v13480_v47  ;;  %vm4802_vm6 = vcmp.eq.s32.totalorder %v4702_v27, 1  ;;  %vm4801_vm7 = vcmp.eq.s32.totalorder %v4699_v15, 1  ;;  %vm5112_vm8 = vcmp.eq.f32.partialorder %v13476_v58, %v13388_v24  ;;  %vm5111_vm14 = vcmp.eq.f32.partialorder %v13480_v47, %v13392_v12 }
 0x3b7   :  { %v4866_v45 = vsel %vm4802_vm6, %v12845_v59, %v8751_v23  ;;  %v4865_v61 = vsel %vm4801_vm7, %v12849_v10, %v8751_v23  ;;  %v5176_v39 = vsel %vm5112_vm8, 1, %v17161_v14  ;;  %v5175_v2 = vsel %vm5111_vm14, 1, %v17161_v14 }
 0x3b8   :  { %v4930_v5 = vmax.f32 %v12801_v49, %v4866_v45  ;;  %v4994_v34 = vadd.f32 %v4866_v45, %v12801_v49  ;;  %v4929_v4 = vmax.f32 %v12805_v53, %v4865_v61  ;;  %v4993_v43 = vadd.f32 %v4865_v61, %v12805_v53  ;;  %v17735_v45 = vld [vmem:[#allocation79_spill] sm:$0xff] }
 0x3b9   :  { %5311 = vperm.xlu1 %8065, %v5176_v39   ;;  %v4708_v63 = vpop.permute.xlu1 %4707  ;;  %5308 = vperm.xlu0 %8064, %v5175_v2   ;;  %v4705_v26 = vpop.permute.xlu0 %4704 }
 0x3ba   :  { %v13498_v27 = vsel %vm397_vm10, %v4930_v5, %v4994_v34  ;;  %v13502_v15 = vsel %vm397_vm10, %v4929_v4, %v4993_v43  ;;  %vm4804_vm9 = vcmp.eq.s32.totalorder %v4708_v63, 1  ;;  %vm4803_vm1 = vcmp.eq.s32.totalorder %v4705_v26, 1 }
 0x3bb   :  { %17733 = vst [vmem:[#allocation90_spill] sm:$0xff] %v13498_v27  ;;  %17734 = vst [vmem:[#allocation88_spill] sm:$0xff] %v13502_v15  ;;  %v4868_v49 = vsel %vm4804_vm9, %v12867_v22, %v8751_v23  ;;  %v4867_v53 = vsel %vm4803_vm1, %v17735_v45, %v8751_v23  ;;  %vm5114_vm11 = vcmp.eq.f32.partialorder %v13498_v27, %v13410_v21  ;;  %v17743_v21 = vld [vmem:[#allocation41_spill] sm:$0xff] }
 0x3bc   :  { %vm5113_vm12 = vcmp.eq.f32.partialorder %v13502_v15, %v13414_v0  ;;  %v4932_v61 = vmax.f32 %v12823_v55, %v4868_v49  ;;  %v4996_v39 = vadd.f32 %v4868_v49, %v12823_v55  ;;  %v4931_v2 = vmax.f32 %v12827_v56, %v4867_v53 }
 0x3bd   :  { %v4995_v5 = vadd.f32 %v4867_v53, %v12827_v56  ;;  %v5178_v34 = vsel %vm5114_vm11, 1, %v17161_v14  ;;  %v5177_v4 = vsel %vm5113_vm12, 1, %v17161_v14  ;;  %v17738_v56 = vld [vmem:[#allocation70_spill] sm:$0xff]  ;;  %v17739_v53 = vld [vmem:[#allocation35_spill] sm:$0xff] }
 0x3be   :  { %v13520_v43 = vsel %vm397_vm10, %v4932_v61, %v4996_v39  ;;  %5317 = vperm.xlu1 %8065, %v5178_v34   ;;  %v4714_v26 = vpop.permute.xlu1 %4713  ;;  %5314 = vperm.xlu0 %8064, %v5177_v4   ;;  %v4711_v55 = vpop.permute.xlu0 %4710 }
 0x3bf   :  { %17736 = vst [vmem:[#allocation54_spill] sm:$0xff] %v13520_v43  ;;  %v13524_v63 = vsel %vm397_vm10, %v4931_v2, %v4995_v5  ;;  %vm4806_vm13 = vcmp.eq.s32.totalorder %v4714_v26, 1  ;;  %vm4805_vm15 = vcmp.eq.s32.totalorder %v4711_v55, 1  ;;  %vm5116_vm2 = vcmp.eq.f32.partialorder %v13520_v43, %v13432_v30 }
 0x3c0   :  { %17737 = vst [vmem:[#allocation56_spill] sm:$0xff] %v13524_v63  ;;  %vm5115_vm3 = vcmp.eq.f32.partialorder %v13524_v63, %v13436_v13  ;;  %v4870_v49 = vsel %vm4806_vm13, %v17738_v56, %v8751_v23  ;;  %v4869_v61 = vsel %vm4805_vm15, %v17739_v53, %v8751_v23  ;;  %v5180_v39 = vsel %vm5116_vm2, 1, %v17161_v14 }
 0x3c1   :  { %v5179_v2 = vsel %vm5115_vm3, 1, %v17161_v14  ;;  %v4934_v5 = vmax.f32 %v12845_v59, %v4870_v49  ;;  %v4998_v34 = vadd.f32 %v4870_v49, %v12845_v59  ;;  %v4933_v4 = vmax.f32 %v12849_v10, %v4869_v61  ;;  %v17742_v59 = vld [vmem:[#allocation77_spill] sm:$0xff] }
 0x3c2   :  { %v4997_v26 = vadd.f32 %v4869_v61, %v12849_v10  ;;  %5323 = vperm.xlu1 %8065, %v5180_v39   ;;  %v4720_v55 = vpop.permute.xlu1 %4719  ;;  %5320 = vperm.xlu0 %8064, %v5179_v2   ;;  %v4717_v13 = vpop.permute.xlu0 %4716 }
 0x3c3   :  { %v13542_v30 = vsel %vm397_vm10, %v4934_v5, %v4998_v34  ;;  %vm4808_vm4 = vcmp.eq.s32.totalorder %v4720_v55, 1  ;;  %vm4807_vm5 = vcmp.eq.s32.totalorder %v4717_v13, 1 }
 0x3c4   :  { %17740 = vst [vmem:[#allocation53_spill] sm:$0xff] %v13542_v30  ;;  %v13546_v0 = vsel %vm397_vm10, %v4933_v4, %v4997_v26  ;;  %v4872_v49 = vsel %vm4808_vm4, %v17742_v59, %v8751_v23  ;;  %v4871_v10 = vsel %vm4807_vm5, %v17743_v21, %v8751_v23  ;;  %vm5118_vm6 = vcmp.eq.f32.partialorder %v13542_v30, %v13454_v16 }
 0x3c5   :  { %17741 = vst [vmem:[#allocation89_spill] sm:$0xff] %v13546_v0  ;;  %vm5117_vm7 = vcmp.eq.f32.partialorder %v13546_v0, %v13458_v33  ;;  %v4936_v61 = vmax.f32 %v12867_v22, %v4872_v49  ;;  %v5000_v39 = vadd.f32 %v4872_v49, %v12867_v22  ;;  %v4935_v2 = vmax.f32 %v17735_v45, %v4871_v10  ;;  %v17746_v22 = vld [vmem:[#allocation74_spill] sm:$0xff]  ;;  %v17747_v49 = vld [vmem:[#allocation39_spill] sm:$0xff] }
 0x3c6   :  { %v4999_v13 = vadd.f32 %v4871_v10, %v17735_v45  ;;  %v5182_v5 = vsel %vm5118_vm6, 1, %v17161_v14  ;;  %v4726_v34 = vpop.permute.xlu1 %4725  ;;  %v5181_v4 = vsel %vm5117_vm7, 1, %v17161_v14  ;;  %v4723_v26 = vpop.permute.xlu0 %4722 }
 0x3c7   :  { %v13564_v55 = vsel %vm397_vm10, %v4936_v61, %v5000_v39  ;;  %5329 = vperm.xlu1 %8065, %v5182_v5   ;;  %vm4810_vm8 = vcmp.eq.s32.totalorder %v4726_v34, 1  ;;  %5326 = vperm.xlu0 %8064, %v5181_v4   ;;  %vm4809_vm14 = vcmp.eq.s32.totalorder %v4723_v26, 1 }
 0x3c8   :  { %17744 = vst [vmem:[#allocation57_spill] sm:$0xff] %v13564_v55  ;;  %v13568_v33 = vsel %vm397_vm10, %v4935_v2, %v4999_v13  ;;  %v4874_v45 = vsel %vm4810_vm8, %v17746_v22, %v8751_v23  ;;  %v4873_v10 = vsel %vm4809_vm14, %v17747_v49, %v8751_v23  ;;  %vm5120_vm9 = vcmp.eq.f32.partialorder %v13564_v55, %v13476_v58 }
 0x3c9   :  { %17745 = vst [vmem:[#allocation52_spill] sm:$0xff] %v13568_v33  ;;  %vm5119_vm1 = vcmp.eq.f32.partialorder %v13568_v33, %v13480_v47  ;;  %v4938_v61 = vmax.f32 %v17738_v56, %v4874_v45  ;;  %v5002_v39 = vadd.f32 %v4874_v45, %v17738_v56  ;;  %v4937_v2 = vmax.f32 %v17739_v53, %v4873_v10  ;;  %v17750_v56 = vld [vmem:[#allocation43_spill] sm:$0xff]  ;;  %v17751_v45 = vld [vmem:[#allocation37_spill] sm:$0xff] }
 0x3ca   :  { %v5001_v13 = vadd.f32 %v4873_v10, %v17739_v53  ;;  %v5184_v5 = vsel %vm5120_vm9, 1, %v17161_v14  ;;  %v4732_v34 = vpop.permute.xlu1 %4731  ;;  %v5183_v4 = vsel %vm5119_vm1, 1, %v17161_v14  ;;  %v4729_v26 = vpop.permute.xlu0 %4728 }
 0x3cb   :  { %v13586_v58 = vsel %vm397_vm10, %v4938_v61, %v5002_v39  ;;  %5335 = vperm.xlu1 %8065, %v5184_v5   ;;  %vm4812_vm11 = vcmp.eq.s32.totalorder %v4732_v34, 1  ;;  %5332 = vperm.xlu0 %8064, %v5183_v4   ;;  %vm4811_vm12 = vcmp.eq.s32.totalorder %v4729_v26, 1 }
 0x3cc   :  { %17748 = vst [vmem:[#allocation12_spill] sm:$0xff] %v13586_v58  ;;  %v13590_v47 = vsel %vm397_vm10, %v4937_v2, %v5001_v13  ;;  %v4876_v53 = vsel %vm4812_vm11, %v17750_v56, %v8751_v23  ;;  %v4875_v10 = vsel %vm4811_vm12, %v17751_v45, %v8751_v23  ;;  %vm5122_vm13 = vcmp.eq.f32.partialorder %v13586_v58, %v13498_v27 }
 0x3cd   :  { %17749 = vst [vmem:[#allocation91_spill] sm:$0xff] %v13590_v47  ;;  %vm5121_vm15 = vcmp.eq.f32.partialorder %v13590_v47, %v13502_v15  ;;  %v4940_v61 = vmax.f32 %v17742_v59, %v4876_v53  ;;  %v5004_v39 = vadd.f32 %v4876_v53, %v17742_v59  ;;  %v4939_v2 = vmax.f32 %v17743_v21, %v4875_v10  ;;  %v17753_v53 = vld [vmem:[#allocation80_spill] sm:$0xff] }
 0x3ce   :  { %v5003_v13 = vadd.f32 %v4875_v10, %v17743_v21  ;;  %v5186_v5 = vsel %vm5122_vm13, 1, %v17161_v14  ;;  %v4738_v34 = vpop.permute.xlu1 %4737  ;;  %v5185_v4 = vsel %vm5121_vm15, 1, %v17161_v14  ;;  %v4735_v26 = vpop.permute.xlu0 %4734  ;;  %v17752_v21 = vld [vmem:[#allocation76_spill] sm:$0xff] }
 0x3cf   :  { %v13608_v27 = vsel %vm397_vm10, %v4940_v61, %v5004_v39  ;;  %5341 = vperm.xlu1 %8065, %v5186_v5   ;;  %vm4814_vm2 = vcmp.eq.s32.totalorder %v4738_v34, 1  ;;  %5338 = vperm.xlu0 %8064, %v5185_v4   ;;  %vm4813_vm3 = vcmp.eq.s32.totalorder %v4735_v26, 1 }
 0x3d0   :  { %v13612_v15 = vsel %vm397_vm10, %v4939_v2, %v5003_v13  ;;  %v4878_v59 = vsel %vm4814_vm2, %v17752_v21, %v8751_v23  ;;  %v4877_v10 = vsel %vm4813_vm3, %v17753_v53, %v8751_v23  ;;  %vm5124_vm4 = vcmp.eq.f32.partialorder %v13608_v27, %v13520_v43 }
 0x3d1   :  { %vm5123_vm5 = vcmp.eq.f32.partialorder %v13612_v15, %v13524_v63  ;;  %v4942_v61 = vmax.f32 %v17746_v22, %v4878_v59  ;;  %v5006_v39 = vadd.f32 %v4878_v59, %v17746_v22  ;;  %v4941_v2 = vmax.f32 %v17747_v49, %v4877_v10  ;;  %v17756_v22 = vld [vmem:[#allocation48_spill] sm:$0xff] }
 0x3d2   :  { %v5005_v13 = vadd.f32 %v4877_v10, %v17747_v49  ;;  %v5188_v5 = vsel %vm5124_vm4, 1, %v17161_v14  ;;  %v4744_v34 = vpop.permute.xlu1 %4743  ;;  %v5187_v4 = vsel %vm5123_vm5, 1, %v17161_v14  ;;  %v4741_v26 = vpop.permute.xlu0 %4740  ;;  %v17757_v59 = vld [vmem:[#allocation44_spill] sm:$0xff] }
 0x3d3   :  { %v13630_v43 = vsel %vm397_vm10, %v4942_v61, %v5006_v39  ;;  %5347 = vperm.xlu1 %8065, %v5188_v5   ;;  %vm4816_vm6 = vcmp.eq.s32.totalorder %v4744_v34, 1  ;;  %5344 = vperm.xlu0 %8064, %v5187_v4   ;;  %vm4815_vm7 = vcmp.eq.s32.totalorder %v4741_v26, 1 }
 0x3d4   :  { %17754 = vst [vmem:[#allocation61_spill] sm:$0xff] %v13630_v43  ;;  %v13634_v63 = vsel %vm397_vm10, %v4941_v2, %v5005_v13  ;;  %v4880_v49 = vsel %vm4816_vm6, %v17756_v22, %v8751_v23  ;;  %v4879_v10 = vsel %vm4815_vm7, %v17757_v59, %v8751_v23  ;;  %vm5126_vm8 = vcmp.eq.f32.partialorder %v13630_v43, %v13542_v30 }
 0x3d5   :  { %17755 = vst [vmem:[#allocation60_spill] sm:$0xff] %v13634_v63  ;;  %vm5125_vm14 = vcmp.eq.f32.partialorder %v13634_v63, %v13546_v0  ;;  %v4944_v61 = vmax.f32 %v17750_v56, %v4880_v49  ;;  %v5008_v39 = vadd.f32 %v4880_v49, %v17750_v56  ;;  %v4943_v2 = vmax.f32 %v17751_v45, %v4879_v10  ;;  %v17760_v56 = vld [vmem:[#allocation32_spill] sm:$0xff] }
 0x3d6   :  { %v5007_v13 = vadd.f32 %v4879_v10, %v17751_v45  ;;  %v5190_v5 = vsel %vm5126_vm8, 1, %v17161_v14  ;;  %v4750_v34 = vpop.permute.xlu1 %4749  ;;  %v5189_v4 = vsel %vm5125_vm14, 1, %v17161_v14  ;;  %v4747_v26 = vpop.permute.xlu0 %4746  ;;  %v17761_v49 = vld [vmem:[#allocation64_spill] sm:$0xff]  ;;  %vm5134_vm6 = vcmp.eq.f32.partialorder %v13049_v6, %v13630_v43 }
 0x3d7   :  { %v13652_v30 = vsel %vm397_vm10, %v4944_v61, %v5008_v39  ;;  %5353 = vperm.xlu1 %8065, %v5190_v5   ;;  %vm4818_vm9 = vcmp.eq.s32.totalorder %v4750_v34, 1  ;;  %5350 = vperm.xlu0 %8064, %v5189_v4   ;;  %vm4817_vm1 = vcmp.eq.s32.totalorder %v4747_v26, 1  ;;  %vm5133_vm7 = vcmp.eq.f32.partialorder %v13053_v9, %v13634_v63 }
 0x3d8   :  { %17758 = vst [vmem:[#allocation59_spill] sm:$0xff] %v13652_v30  ;;  %v13656_v0 = vsel %vm397_vm10, %v4943_v2, %v5007_v13  ;;  %v4882_v45 = vsel %vm4818_vm9, %v17760_v56, %v8751_v23  ;;  %v4881_v10 = vsel %vm4817_vm1, %v17761_v49, %v8751_v23  ;;  %vm5128_vm11 = vcmp.eq.f32.partialorder %v13652_v30, %v13564_v55 }
 0x3d9   :  { %17759 = vst [vmem:[#allocation13_spill] sm:$0xff] %v13656_v0  ;;  %vm5127_vm12 = vcmp.eq.f32.partialorder %v13656_v0, %v13568_v33  ;;  %v4946_v61 = vmax.f32 %v17752_v21, %v4882_v45  ;;  %v5010_v39 = vadd.f32 %v4882_v45, %v17752_v21  ;;  %v4945_v2 = vmax.f32 %v17753_v53, %v4881_v10 }
 0x3da   :  { %v5009_v13 = vadd.f32 %v4881_v10, %v17753_v53  ;;  %v5192_v5 = vsel %vm5128_vm11, 1, %v17161_v14  ;;  %v4756_v34 = vpop.permute.xlu1 %4755  ;;  %v5191_v4 = vsel %vm5127_vm12, 1, %v17161_v14  ;;  %v4753_v26 = vpop.permute.xlu0 %4752  ;;  %vm5135_vm14 = vcmp.eq.f32.partialorder %v13057_v18, %v13656_v0 }
 0x3db   :  { %v13674_v56 = vsel %vm397_vm10, %v4946_v61, %v5010_v39  ;;  %5359 = vperm.xlu1 %8065, %v5192_v5   ;;  %vm4820_vm13 = vcmp.eq.s32.totalorder %v4756_v34, 1  ;;  %5356 = vperm.xlu0 %8064, %v5191_v4   ;;  %vm4819_vm15 = vcmp.eq.s32.totalorder %v4753_v26, 1  ;;  %v5198_v5 = vsel %vm5134_vm6, 1, %v17161_v14  ;;  %v17766_v4 = vld [vmem:[#allocation46_spill] sm:$0xff] }
 0x3dc   :  { %17762 = vst [vmem:[#allocation58_spill] sm:$0xff] %v13674_v56  ;;  %v13678_v49 = vsel %vm397_vm10, %v4945_v2, %v5009_v13  ;;  %v4884_v21 = vsel %vm4820_vm13, %v12383_v54, %v8751_v23  ;;  %v4883_v53 = vsel %vm4819_vm15, %v17700_v25, %v8751_v23  ;;  %vm5130_vm2 = vcmp.eq.f32.partialorder %v13674_v56, %v13586_v58 }
 0x3dd   :  { %17763 = vst [vmem:[#allocation55_spill] sm:$0xff] %v13678_v49  ;;  %vm5129_vm3 = vcmp.eq.f32.partialorder %v13678_v49, %v13590_v47  ;;  %v4948_v45 = vmax.f32 %v17756_v22, %v4884_v21  ;;  %v5012_v10 = vadd.f32 %v4884_v21, %v17756_v22  ;;  %v4947_v61 = vmax.f32 %v17757_v59, %v4883_v53 }
 0x3de   :  { %v5011_v39 = vadd.f32 %v4883_v53, %v17757_v59  ;;  %v5194_v2 = vsel %vm5130_vm2, 1, %v17161_v14  ;;  %v5193_v54 = vsel %vm5129_vm3, 1, %v17161_v14  ;;  %v5197_v34 = vsel %vm5133_vm7, 1, %v17161_v14 }
 0x3df   :  { %v13696_v25 = vsel %vm397_vm10, %v4948_v45, %v5012_v10  ;;  %5365 = vperm.xlu1 %8065, %v5194_v2   ;;  %5362 = vperm.xlu0 %8064, %v5193_v54   ;;  %vm5136_vm8 = vcmp.eq.f32.partialorder %v17766_v4, %v13652_v30  ;;  %v5199_v21 = vsel %vm5135_vm14, 1, %v17161_v14  ;;  %vm5138_vm9 = vcmp.eq.f32.partialorder %v13075_v19, %v13674_v56 }
 0x3e0   :  { %17764 = vst [vmem:[#allocation11_spill] sm:$0xff] %v13696_v25  ;;  %v13700_v13 = vsel %vm397_vm10, %v4947_v61, %v5011_v39  ;;  %vm5132_vm4 = vcmp.eq.f32.partialorder %v13696_v25, %v13608_v27  ;;  %v5200_v26 = vsel %vm5136_vm8, 1, %v17161_v14  ;;  %vm5137_vm1 = vcmp.eq.f32.partialorder %v13079_v51, %v13678_v49 }
 0x3e1   :  { %17765 = vst [vmem:[#allocation8_spill] sm:$0xff] %v13700_v13  ;;  %vm5131_vm5 = vcmp.eq.f32.partialorder %v13700_v13, %v13612_v15  ;;  %v5196_v22 = vsel %vm5132_vm4, 1, %v17161_v14  ;;  %v5202_v10 = vsel %vm5138_vm9, 1, %v17161_v14  ;;  %v5201_v61 = vsel %vm5137_vm1, 1, %v17161_v14 }
 0x3e2   :  { %v5195_v59 = vsel %vm5131_vm5, 1, %v17161_v14  ;;  %vm5140_vm11 = vcmp.eq.f32.partialorder %v13155_v31, %v13696_v25  ;;  %vm5139_vm12 = vcmp.eq.f32.partialorder %v13163_v3, %v13700_v13 }
 0x3e3   :  { %5371 = vperm.xlu1 %8065, %v5196_v22   ;;  %5368 = vperm.xlu0 %8064, %v5195_v59   ;;  %v5204_v54 = vsel %vm5140_vm11, 1, %v17161_v14  ;;  %v5203_v22 = vsel %vm5139_vm12, 1, %v17161_v14 }
 0x3e7   :  { %5377 = vperm.xlu1 %8065, %v5198_v5   ;;  %5374 = vperm.xlu0 %8064, %v5197_v34  }
 0x3eb   :  { %5383 = vperm.xlu1 %8065, %v5200_v26   ;;  %5380 = vperm.xlu0 %8064, %v5199_v21   ;;  %v5210_v53 = vpop.permute.xlu1 %5209 }
 0x3ec   :  { %vm5398_vm13 = vcmp.eq.s32.totalorder %v5210_v53, 1 }
 0x3ed   :  { %v5207_v45 = vpop.permute.xlu0 %5206  ;;  %v5462_v21 = vsel %vm5398_vm13, %v13087_v38, %v8751_v23 }
 0x3ee   :  { %vm5397_vm15 = vcmp.eq.s32.totalorder %v5207_v45, 1  ;;  %v5526_v63 = vmax.f32 %v13049_v6, %v5462_v21  ;;  %v5590_v43 = vadd.f32 %v5462_v21, %v13049_v6  ;;  %v17768_v6 = vld [vmem:[#allocation49_spill] sm:$0xff] }
 0x3ef   :  { %5389 = vperm.xlu1 %8065, %v5202_v10   ;;  %5386 = vperm.xlu0 %8064, %v5201_v61   ;;  %v5216_v39 = vpop.permute.xlu1 %5215 }
 0x3f0   :  { %vm5400_vm2 = vcmp.eq.s32.totalorder %v5216_v39, 1  ;;  %v13742_v45 = vsel %vm397_vm10, %v5526_v63, %v5590_v43 }
 0x3f1   :  { %v5213_v2 = vpop.permute.xlu0 %5212  ;;  %v5464_v53 = vsel %vm5400_vm2, %v13113_v46, %v8751_v23  ;;  %17767 = vst [vmem:[#allocation17_spill] sm:$0xff] %v13742_v45 }
 0x3f2   :  { %vm5399_vm3 = vcmp.eq.s32.totalorder %v5213_v2, 1  ;;  %v5592_v63 = vadd.f32 %v5464_v53, %v17766_v4 }
 0x3f3   :  { %5395 = vperm.xlu1 %8065, %v5204_v54   ;;  %5392 = vperm.xlu0 %8064, %v5203_v22   ;;  %v5222_v59 = vpop.permute.xlu1 %5221  ;;  %v5461_v54 = vsel %vm5397_vm15, %v13091_v57, %v8751_v23  ;;  %v5463_v30 = vsel %vm5399_vm3, %v13118_v44, %v8751_v23 }
 0x3f4   :  { %vm5402_vm4 = vcmp.eq.s32.totalorder %v5222_v59, 1  ;;  %v5525_v39 = vmax.f32 %v13053_v9, %v5461_v54  ;;  %v5589_v21 = vadd.f32 %v5461_v54, %v13053_v9  ;;  %v17769_v54 = vld [vmem:[#allocation78_spill] sm:$0xff] }
 0x3f5   :  { %v5219_v5 = vpop.permute.xlu0 %5218  ;;  %v5466_v2 = vsel %vm5402_vm4, %v13137_v36, %v8751_v23 }
 0x3f6   :  { %vm5401_vm5 = vcmp.eq.s32.totalorder %v5219_v5, 1  ;;  %v5528_v5 = vmax.f32 %v17766_v4, %v5464_v53 }
 0x3f7   :  { %v5465_v43 = vsel %vm5401_vm5, %v13142_v48, %v8751_v23 }
 0x3f8   :  { %v5228_v34 = vpop.permute.xlu1 %5227  ;;  %v5529_v53 = vmax.f32 %v13079_v51, %v5465_v43 }
 0x3f9   :  { %v5225_v26 = vpop.permute.xlu0 %5224  ;;  %vm5404_vm6 = vcmp.eq.s32.totalorder %v5228_v34, 1  ;;  %v5527_v34 = vmax.f32 %v13057_v18, %v5463_v30 }
 0x3fa   :  { %vm5403_vm7 = vcmp.eq.s32.totalorder %v5225_v26, 1  ;;  %v5468_v33 = vsel %vm5404_vm6, %v17768_v6, %v8751_v23  ;;  %v5591_v26 = vadd.f32 %v5463_v30, %v13057_v18  ;;  %v5593_v30 = vadd.f32 %v5465_v43, %v13079_v51 }
 0x3fb   :  { %v5467_v9 = vsel %vm5403_vm7, %v17769_v54, %v8751_v23  ;;  %v5532_v18 = vmax.f32 %v13155_v31, %v5468_v33  ;;  %v5596_v56 = vadd.f32 %v5468_v33, %v13155_v31  ;;  %v13782_v43 = vsel %vm397_vm10, %v5525_v39, %v5589_v21 }
 0x3fc   :  { %v5234_v10 = vpop.permute.xlu1 %5233  ;;  %v5531_v13 = vmax.f32 %v13163_v3, %v5467_v9  ;;  %17770 = vst [vmem:[#allocation16_spill] sm:$0xff] %v13782_v43  ;;  %v13786_v33 = vsel %vm397_vm10, %v5528_v5, %v5592_v63  ;;  %v13804_v21 = vsel %vm397_vm10, %v5529_v53, %v5593_v30 }
 0x3fd   :  { %v5231_v61 = vpop.permute.xlu0 %5230  ;;  %vm5406_vm8 = vcmp.eq.s32.totalorder %v5234_v10, 1  ;;  %v5530_v10 = vmax.f32 %v13075_v19, %v5466_v2  ;;  %17771 = vst [vmem:[#allocation9_spill] sm:$0xff] %v13786_v33  ;;  %17774 = vst [vmem:[#allocation25_spill] sm:$0xff] %v13804_v21 }
 0x3fe   :  { %vm5405_vm14 = vcmp.eq.s32.totalorder %v5231_v61, 1  ;;  %v5470_v49 = vsel %vm5406_vm8, %v13189_v52, %v8751_v23  ;;  %v5594_v61 = vadd.f32 %v5466_v2, %v13075_v19  ;;  %v5595_v2 = vadd.f32 %v5467_v9, %v13163_v3 }
 0x3ff   :  { %v5469_v4 = vsel %vm5405_vm14, %v13194_v17, %v8751_v23  ;;  %v5534_v19 = vmax.f32 %v13087_v38, %v5470_v49  ;;  %v5598_v25 = vadd.f32 %v5470_v49, %v13087_v38  ;;  %v13796_v49 = vsel %vm397_vm10, %v5527_v34, %v5591_v26 }
 0x400   :  { %v5240_v0 = vpop.permute.xlu1 %5239  ;;  %v5533_v51 = vmax.f32 %v13091_v57, %v5469_v4  ;;  %v5597_v9 = vadd.f32 %v5469_v4, %v13091_v57  ;;  %17772 = vst [vmem:[#allocation15_spill] sm:$0xff] %v13796_v49  ;;  %v13800_v39 = vsel %vm397_vm10, %v5530_v10, %v5594_v61  ;;  %v13808_v57 = vsel %vm397_vm10, %v5532_v18, %v5596_v56 }
 0x401   :  { %v5237_v22 = vpop.permute.xlu0 %5236  ;;  %vm5408_vm9 = vcmp.eq.s32.totalorder %v5240_v0, 1  ;;  %17773 = vst [vmem:[#allocation19_spill] sm:$0xff] %v13800_v39  ;;  %17775 = vst [vmem:[#allocation10_spill] sm:$0xff] %v13808_v57 }
 0x402   :  { %vm5407_vm1 = vcmp.eq.s32.totalorder %v5237_v22, 1  ;;  %v5472_v47 = vsel %vm5408_vm9, %v13211_v62, %v8751_v23  ;;  %v13824_v18 = vsel %vm397_vm10, %v5533_v51, %v5597_v9 }
 0x403   :  { %v5471_v31 = vsel %vm5407_vm1, %v13216_v32, %v8751_v23  ;;  %v5536_v3 = vmax.f32 %v13113_v46, %v5472_v47  ;;  %v5600_v38 = vadd.f32 %v5472_v47, %v13113_v46  ;;  %v13812_v46 = vsel %vm397_vm10, %v5531_v13, %v5595_v2 }
 0x404   :  { %v5246_v59 = vpop.permute.xlu1 %5245  ;;  %17776 = vst [vmem:[#allocation21_spill] sm:$0xff] %v13812_v46  ;;  %v13816_v47 = vsel %vm397_vm10, %v5534_v19, %v5598_v25  ;;  %v5535_v4 = vmax.f32 %v13118_v44, %v5471_v31 }
 0x405   :  { %v5243_v55 = vpop.permute.xlu0 %5242  ;;  %vm5410_vm11 = vcmp.eq.s32.totalorder %v5246_v59, 1  ;;  %v5599_v59 = vadd.f32 %v5471_v31, %v13118_v44  ;;  %v13828_v19 = vsel %vm397_vm10, %v5536_v3, %v5600_v38 }
 0x406   :  { %v5474_v34 = vsel %vm5410_vm11, %v13233_v35, %v8751_v23  ;;  %vm5409_vm12 = vcmp.eq.s32.totalorder %v5243_v55, 1 }
 0x407   :  { %v13840_v51 = vsel %vm397_vm10, %v5535_v4, %v5599_v59  ;;  %v5538_v3 = vmax.f32 %v13137_v36, %v5474_v34  ;;  %v5602_v26 = vadd.f32 %v5474_v34, %v13137_v36  ;;  %v5473_v10 = vsel %vm5409_vm12, %v13238_v11, %v8751_v23 }
 0x408   :  { %v13767_v0 = vpop.permute.xlu1 %5251 }
 0x409   :  { %v13778_v22 = vpop.permute.xlu0 %5248  ;;  %v13868_v59 = vsel %vm397_vm10, %v5538_v3, %v5602_v26  ;;  %vm5412_vm9 = vcmp.eq.s32.totalorder %v13767_v0, 1 }
 0x40d   :  { %v5258_v5 = vpop.permute.xlu1 %5257  ;;  %v5255_v63 = vpop.permute.xlu0 %5254 }
 0x40e   :  { %vm5414_vm13 = vcmp.eq.s32.totalorder %v5258_v5, 1  ;;  %vm5413_vm15 = vcmp.eq.s32.totalorder %v5255_v63, 1  ;;  %v5537_v5 = vmax.f32 %v13142_v48, %v5473_v10 }
 0x40f   :  { %v5478_v56 = vsel %vm5414_vm13, %v13278_v40, %v8751_v23  ;;  %v5477_v44 = vsel %vm5413_vm15, %v13282_v20, %v8751_v23 }
 0x410   :  { %v5542_v31 = vmax.f32 %v13189_v52, %v5478_v56  ;;  %v5606_v55 = vadd.f32 %v5478_v56, %v13189_v52  ;;  %v5541_v25 = vmax.f32 %v13194_v17, %v5477_v44  ;;  %v5605_v13 = vadd.f32 %v5477_v44, %v13194_v17 }
 0x411   :  { %v5264_v61 = vpop.permute.xlu1 %5263  ;;  %v5261_v53 = vpop.permute.xlu0 %5260 }
 0x412   :  { %v13848_v52 = vsel %vm397_vm10, %v5542_v31, %v5606_v55  ;;  %v13852_v17 = vsel %vm397_vm10, %v5541_v25, %v5605_v13  ;;  %vm5416_vm2 = vcmp.eq.s32.totalorder %v5264_v61, 1  ;;  %vm5415_vm3 = vcmp.eq.s32.totalorder %v5261_v53, 1 }
 0x413   :  { %17777 = vst [vmem:[#allocation26_spill] sm:$0xff] %v13848_v52  ;;  %17778 = vst [vmem:[#allocation28_spill] sm:$0xff] %v13852_v17  ;;  %v5480_v30 = vsel %vm5416_vm2, %v13300_v29, %v8751_v23  ;;  %v5479_v36 = vsel %vm5415_vm3, %v13304_v42, %v8751_v23  ;;  %vm5718_vm4 = vcmp.eq.f32.partialorder %v13848_v52, %v13742_v45 }
 0x414   :  { %vm5717_vm5 = vcmp.eq.f32.partialorder %v13852_v17, %v13782_v43  ;;  %v5544_v2 = vmax.f32 %v13211_v62, %v5480_v30  ;;  %v5608_v9 = vadd.f32 %v5480_v30, %v13211_v62  ;;  %v5543_v38 = vmax.f32 %v13216_v32, %v5479_v36 }
 0x415   :  { %v5607_v4 = vadd.f32 %v5479_v36, %v13216_v32  ;;  %v5782_v63 = vsel %vm5718_vm4, 1, %v17161_v14  ;;  %v5270_v34 = vpop.permute.xlu1 %5269  ;;  %v5781_v56 = vsel %vm5717_vm5, 1, %v17161_v14  ;;  %v5267_v44 = vpop.permute.xlu0 %5266  ;;  %v5601_v61 = vadd.f32 %v5473_v10, %v13142_v48 }
 0x416   :  { %v13875_v31 = vsel %vm397_vm10, %v5544_v2, %v5608_v9  ;;  %5849 = vperm.xlu1 %8065, %v5782_v63   ;;  %vm5418_vm6 = vcmp.eq.s32.totalorder %v5270_v34, 1  ;;  %5846 = vperm.xlu0 %8064, %v5781_v56   ;;  %vm5417_vm7 = vcmp.eq.s32.totalorder %v5267_v44, 1  ;;  %v13925_v44 = vsel %vm5412_vm9, %v13255_v50, %v8751_v23 }
 0x417   :  { %17779 = vst [vmem:[#allocation14_spill] sm:$0xff] %v13875_v31  ;;  %v13879_v62 = vsel %vm397_vm10, %v5543_v38, %v5607_v4  ;;  %v5482_v32 = vsel %vm5418_vm6, %v13322_v28, %v8751_v23  ;;  %v5481_v55 = vsel %vm5417_vm7, %v13326_v60, %v8751_v23  ;;  %vm5720_vm8 = vcmp.eq.f32.partialorder %v13875_v31, %v13786_v33  ;;  %v17783_v4 = vld [vmem:[#allocation81_spill] sm:$0xff] }
 0x418   :  { %17780 = vst [vmem:[#allocation24_spill] sm:$0xff] %v13879_v62  ;;  %vm5719_vm14 = vcmp.eq.f32.partialorder %v13879_v62, %v13796_v49  ;;  %v5546_v25 = vmax.f32 %v13233_v35, %v5482_v32  ;;  %v5610_v13 = vadd.f32 %v5482_v32, %v13233_v35  ;;  %v5545_v3 = vmax.f32 %v13238_v11, %v5481_v55 }
 0x419   :  { %v5609_v26 = vadd.f32 %v5481_v55, %v13238_v11  ;;  %v5784_v53 = vsel %vm5720_vm8, 1, %v17161_v14  ;;  %v5276_v30 = vpop.permute.xlu1 %5275  ;;  %v5783_v36 = vsel %vm5719_vm14, 1, %v17161_v14  ;;  %v5273_v2 = vpop.permute.xlu0 %5272  ;;  %v13919_v56 = vsel %vm397_vm10, %v5537_v5, %v5601_v61 }
 0x41a   :  { %v13899_v9 = vsel %vm397_vm10, %v5546_v25, %v5610_v13  ;;  %5855 = vperm.xlu1 %8065, %v5784_v53   ;;  %vm5420_vm1 = vcmp.eq.s32.totalorder %v5276_v30, 1  ;;  %5852 = vperm.xlu0 %8064, %v5783_v36   ;;  %vm5419_vm11 = vcmp.eq.s32.totalorder %v5273_v2, 1  ;;  %17784 = vst [vmem:[#allocation20_spill] sm:$0xff] %v13919_v56  ;;  %v5540_v36 = vmax.f32 %v17768_v6, %v13925_v44 }
 0x41b   :  { %17781 = vst [vmem:[#allocation68_spill] sm:$0xff] %v13899_v9  ;;  %v13903_v35 = vsel %vm397_vm10, %v5545_v3, %v5609_v26  ;;  %v5484_v48 = vsel %vm5420_vm1, %v13344_v37, %v8751_v23  ;;  %v5483_v11 = vsel %vm5419_vm11, %v13348_v8, %v8751_v23  ;;  %vm5722_vm12 = vcmp.eq.f32.partialorder %v13899_v9, %v13800_v39 }
 0x41c   :  { %17782 = vst [vmem:[#allocation23_spill] sm:$0xff] %v13903_v35  ;;  %vm5721_vm13 = vcmp.eq.f32.partialorder %v13903_v35, %v13804_v21  ;;  %v5548_v10 = vmax.f32 %v13255_v50, %v5484_v48  ;;  %v5612_v38 = vadd.f32 %v5484_v48, %v13255_v50  ;;  %v5547_v63 = vmax.f32 %v17783_v4, %v5483_v11 }
 0x41d   :  { %v5611_v34 = vadd.f32 %v5483_v11, %v17783_v4  ;;  %v5786_v32 = vsel %vm5722_vm12, 1, %v17161_v14  ;;  %v5282_v55 = vpop.permute.xlu1 %5281  ;;  %v5785_v25 = vsel %vm5721_vm13, 1, %v17161_v14  ;;  %v5279_v13 = vpop.permute.xlu0 %5278  ;;  %vm5411_vm5 = vcmp.eq.s32.totalorder %v13778_v22, 1 }
 0x41e   :  { %v13931_v3 = vsel %vm397_vm10, %v5548_v10, %v5612_v38  ;;  %5861 = vperm.xlu1 %8065, %v5786_v32   ;;  %vm5422_vm15 = vcmp.eq.s32.totalorder %v5282_v55, 1  ;;  %5858 = vperm.xlu0 %8064, %v5785_v25   ;;  %vm5421_vm2 = vcmp.eq.s32.totalorder %v5279_v13, 1  ;;  %v5604_v13 = vadd.f32 %v13925_v44, %v17768_v6  ;;  %v17788_v6 = vld [vmem:[#allocation85_spill] sm:$0xff] }
 0x41f   :  { %v13935_v5 = vsel %vm397_vm10, %v5547_v63, %v5611_v34  ;;  %v5486_v50 = vsel %vm5422_vm15, %v13366_v41, %v8751_v23  ;;  %v5485_v0 = vsel %vm5421_vm2, %v13370_v7, %v8751_v23  ;;  %vm5724_vm3 = vcmp.eq.f32.partialorder %v13931_v3, %v13808_v57 }
 0x420   :  { %17785 = vst [vmem:[#allocation22_spill] sm:$0xff] %v13935_v5  ;;  %vm5723_vm4 = vcmp.eq.f32.partialorder %v13935_v5, %v13812_v46  ;;  %v5550_v26 = vmax.f32 %v13278_v40, %v5486_v50  ;;  %v5614_v61 = vadd.f32 %v5486_v50, %v13278_v40  ;;  %v5549_v53 = vmax.f32 %v13282_v20, %v5485_v0 }
 0x421   :  { %v5613_v30 = vadd.f32 %v5485_v0, %v13282_v20  ;;  %v5788_v2 = vsel %vm5724_vm3, 1, %v17161_v14  ;;  %v5288_v48 = vpop.permute.xlu1 %5287  ;;  %v5787_v11 = vsel %vm5723_vm4, 1, %v17161_v14  ;;  %v5285_v10 = vpop.permute.xlu0 %5284  ;;  %v5475_v50 = vsel %vm5411_vm5, %v17783_v4, %v8751_v23  ;;  %v17789_v4 = vld [vmem:[#allocation50_spill] sm:$0xff] }
 0x422   :  { %v13956_v38 = vsel %vm397_vm10, %v5550_v26, %v5614_v61  ;;  %5867 = vperm.xlu1 %8065, %v5788_v2   ;;  %vm5424_vm6 = vcmp.eq.s32.totalorder %v5288_v48, 1  ;;  %5864 = vperm.xlu0 %8064, %v5787_v11   ;;  %vm5423_vm7 = vcmp.eq.s32.totalorder %v5285_v10, 1  ;;  %v5539_v10 = vmax.f32 %v17769_v54, %v5475_v50 }
 0x423   :  { %17786 = vst [vmem:[#allocation62_spill] sm:$0xff] %v13956_v38  ;;  %v13960_v40 = vsel %vm397_vm10, %v5549_v53, %v5613_v30  ;;  %v5488_v20 = vsel %vm5424_vm6, %v13388_v24, %v8751_v23  ;;  %v5487_v63 = vsel %vm5423_vm7, %v13392_v12, %v8751_v23  ;;  %vm5726_vm8 = vcmp.eq.f32.partialorder %v13956_v38, %v13816_v47  ;;  %v17809_v24 = vld [vmem:[#allocation56_spill] sm:$0xff] }
 0x424   :  { %vm5725_vm14 = vcmp.eq.f32.partialorder %v13960_v40, %v13824_v18  ;;  %v5552_v34 = vmax.f32 %v13300_v29, %v5488_v20  ;;  %v5616_v32 = vadd.f32 %v5488_v20, %v13300_v29  ;;  %v5551_v55 = vmax.f32 %v13304_v42, %v5487_v63 }
 0x425   :  { %v5615_v25 = vadd.f32 %v5487_v63, %v13304_v42  ;;  %v5790_v0 = vsel %vm5726_vm8, 1, %v17161_v14  ;;  %v5294_v26 = vpop.permute.xlu1 %5293  ;;  %v5789_v61 = vsel %vm5725_vm14, 1, %v17161_v14  ;;  %v5291_v53 = vpop.permute.xlu0 %5290  ;;  %v5603_v20 = vadd.f32 %v5475_v50, %v17769_v54  ;;  %v17792_v50 = vld [vmem:[#allocation87_spill] sm:$0xff] }
 0x426   :  { %v13984_v29 = vsel %vm397_vm10, %v5552_v34, %v5616_v32  ;;  %5873 = vperm.xlu1 %8065, %v5790_v0   ;;  %vm5426_vm9 = vcmp.eq.s32.totalorder %v5294_v26, 1  ;;  %5870 = vperm.xlu0 %8064, %v5789_v61   ;;  %vm5425_vm1 = vcmp.eq.s32.totalorder %v5291_v53, 1 }
 0x427   :  { %17787 = vst [vmem:[#allocation31_spill] sm:$0xff] %v13984_v29  ;;  %v13988_v42 = vsel %vm397_vm10, %v5551_v55, %v5615_v25  ;;  %v5490_v22 = vsel %vm5426_vm9, %v17788_v6, %v8751_v23  ;;  %v5489_v44 = vsel %vm5425_vm1, %v17789_v4, %v8751_v23  ;;  %vm5728_vm11 = vcmp.eq.f32.partialorder %v13984_v29, %v13828_v19  ;;  %v17814_v6 = vld [vmem:[#allocation90_spill] sm:$0xff] }
 0x428   :  { %vm5727_vm12 = vcmp.eq.f32.partialorder %v13988_v42, %v13840_v51  ;;  %v5554_v30 = vmax.f32 %v13322_v28, %v5490_v22  ;;  %v5618_v2 = vadd.f32 %v5490_v22, %v13322_v28  ;;  %v5553_v48 = vmax.f32 %v13326_v60, %v5489_v44 }
 0x429   :  { %v5617_v11 = vadd.f32 %v5489_v44, %v13326_v60  ;;  %v5792_v63 = vsel %vm5728_vm11, 1, %v17161_v14  ;;  %v5300_v34 = vpop.permute.xlu1 %5299  ;;  %v5791_v32 = vsel %vm5727_vm12, 1, %v17161_v14  ;;  %v5297_v55 = vpop.permute.xlu0 %5296  ;;  %v17791_v60 = vld [vmem:[#allocation84_spill] sm:$0xff]  ;;  %v14028_v44 = vsel %vm397_vm10, %v5540_v36, %v5604_v13 }
 0x42a   :  { %v14008_v25 = vsel %vm397_vm10, %v5554_v30, %v5618_v2  ;;  %5879 = vperm.xlu1 %8065, %v5792_v63   ;;  %vm5428_vm13 = vcmp.eq.s32.totalorder %v5300_v34, 1  ;;  %5876 = vperm.xlu0 %8064, %v5791_v32   ;;  %vm5427_vm15 = vcmp.eq.s32.totalorder %v5297_v55, 1  ;;  %v17796_v63 = vld [vmem:[#allocation86_spill] sm:$0xff] }
 0x42b   :  { %v14012_v28 = vsel %vm397_vm10, %v5553_v48, %v5617_v11  ;;  %v5492_v54 = vsel %vm5428_vm13, %v17791_v60, %v8751_v23  ;;  %v5491_v0 = vsel %vm5427_vm15, %v17792_v50, %v8751_v23  ;;  %vm5730_vm2 = vcmp.eq.f32.partialorder %v14008_v25, %v13868_v59 }
 0x42c   :  { %17790 = vst [vmem:[#allocation63_spill] sm:$0xff] %v14012_v28  ;;  %vm5729_vm3 = vcmp.eq.f32.partialorder %v14012_v28, %v13919_v56  ;;  %v5556_v26 = vmax.f32 %v13344_v37, %v5492_v54  ;;  %v5620_v61 = vadd.f32 %v5492_v54, %v13344_v37  ;;  %v5555_v53 = vmax.f32 %v13348_v8, %v5491_v0 }
 0x42d   :  { %v5619_v22 = vadd.f32 %v5491_v0, %v13348_v8  ;;  %v5794_v30 = vsel %vm5730_vm2, 1, %v17161_v14  ;;  %v5793_v2 = vsel %vm5729_vm3, 1, %v17161_v14  ;;  %v14034_v48 = vsel %vm397_vm10, %v5539_v10, %v5603_v20 }
 0x42e   :  { %17793 = vst [vmem:[#allocation18_spill] sm:$0xff] %v14034_v48  ;;  %v14038_v11 = vsel %vm397_vm10, %v5556_v26, %v5620_v61  ;;  %5885 = vperm.xlu1 %8065, %v5794_v30   ;;  %5882 = vperm.xlu0 %8064, %v5793_v2   ;;  %v17800_v30 = vld [vmem:[#allocation93_spill] sm:$0xff] }
 0x42f   :  { %17794 = vst [vmem:[#allocation27_spill] sm:$0xff] %v14038_v11  ;;  %v14042_v37 = vsel %vm397_vm10, %v5555_v53, %v5619_v22  ;;  %vm5732_vm4 = vcmp.eq.f32.partialorder %v14038_v11, %v14028_v44 }
 0x430   :  { %17795 = vst [vmem:[#allocation29_spill] sm:$0xff] %v14042_v37  ;;  %vm5731_vm5 = vcmp.eq.f32.partialorder %v14042_v37, %v14034_v48  ;;  %v5306_v8 = vpop.permute.xlu1 %5305  ;;  %v5303_v36 = vpop.permute.xlu0 %5302  ;;  %v5796_v13 = vsel %vm5732_vm4, 1, %v17161_v14 }
 0x431   :  { %v5795_v10 = vsel %vm5731_vm5, 1, %v17161_v14  ;;  %vm5430_vm6 = vcmp.eq.s32.totalorder %v5306_v8, 1  ;;  %vm5429_vm7 = vcmp.eq.s32.totalorder %v5303_v36, 1 }
 0x432   :  { %v5494_v20 = vsel %vm5430_vm6, %v13454_v16, %v8751_v23  ;;  %v5493_v34 = vsel %vm5429_vm7, %v17796_v63, %v8751_v23  ;;  %5891 = vperm.xlu1 %8065, %v5796_v13   ;;  %5888 = vperm.xlu0 %8064, %v5795_v10  }
 0x433   :  { %v5558_v32 = vmax.f32 %v13366_v41, %v5494_v20  ;;  %v5622_v55 = vadd.f32 %v5494_v20, %v13366_v41  ;;  %v5557_v54 = vmax.f32 %v13370_v7, %v5493_v34  ;;  %v5621_v0 = vadd.f32 %v5493_v34, %v13370_v7 }
 0x434   :  { %v14058_v26 = vpop.permute.xlu1 %5311  ;;  %v5309_v61 = vpop.permute.xlu0 %5308 }
 0x435   :  { %17797 = vst [vmem:[#allocation33_spill] sm:$0xff] %v14058_v26  ;;  %v14062_v53 = vsel %vm397_vm10, %v5558_v32, %v5622_v55  ;;  %v14066_v22 = vsel %vm397_vm10, %v5557_v54, %v5621_v0  ;;  %vm5431_vm8 = vcmp.eq.s32.totalorder %v5309_v61, 1  ;;  %v17812_v26 = vld [vmem:[#allocation11_spill] sm:$0xff] }
 0x436   :  { %17798 = vst [vmem:[#allocation30_spill] sm:$0xff] %v14062_v53  ;;  %17799 = vst [vmem:[#allocation34_spill] sm:$0xff] %v14066_v22  ;;  %v5495_v2 = vsel %vm5431_vm8, %v17800_v30, %v8751_v23  ;;  %vm5734_vm14 = vcmp.eq.f32.partialorder %v14062_v53, %v13848_v52  ;;  %vm5733_vm9 = vcmp.eq.f32.partialorder %v14066_v22, %v13852_v17  ;;  %v17803_v17 = vld [vmem:[#allocation54_spill] sm:$0xff] }
 0x437   :  { %v5559_v41 = vmax.f32 %v13392_v12, %v5495_v2  ;;  %v5623_v7 = vadd.f32 %v5495_v2, %v13392_v12  ;;  %v5798_v8 = vsel %vm5734_vm14, 1, %v17161_v14  ;;  %v5797_v36 = vsel %vm5733_vm9, 1, %v17161_v14 }
 0x438   :  { %5897 = vperm.xlu1 %8065, %v5798_v8   ;;  %5894 = vperm.xlu0 %8064, %v5797_v36  }
 0x439   :  { %v14080_v13 = vsel %vm397_vm10, %v5559_v41, %v5623_v7  ;;  %v14082_v10 = vpop.permute.xlu1 %5317  ;;  %v14084_v20 = vpop.permute.xlu0 %5314 }
 0x43a   :  { %17801 = vst [vmem:[#allocation66_spill] sm:$0xff] %v14080_v13  ;;  %17802 = vst [vmem:[#allocation40_spill] sm:$0xff] %v14084_v20  ;;  %vm5735_vm1 = vcmp.eq.f32.partialorder %v14080_v13, %v13879_v62 }
 0x43b   :  { %v5799_v34 = vsel %vm5735_vm1, 1, %v17161_v14 }
 0x43c   :  { %5900 = vperm.xlu0 %8064, %v5799_v34  }
 0x43d   :  { %v14089_v12 = vpop.permute.xlu1 %5323  ;;  %v14091_v32 = vpop.permute.xlu0 %5320 }
 0x442   :  { %v14093_v55 = vpop.permute.xlu1 %5329  ;;  %v14095_v54 = vpop.permute.xlu0 %5326 }
 0x446   :  { %v14097_v0 = vpop.permute.xlu1 %5335  ;;  %v14099_v61 = vpop.permute.xlu0 %5332 }
 0x447   :  { %vm5440_vm1 = vcmp.eq.s32.totalorder %v14097_v0, 1  ;;  %v17822_v0 = vld [vmem:[#allocation55_spill] sm:$0xff] }
 0x44a   :  { %v5342_v2 = vpop.permute.xlu1 %5341  ;;  %v5339_v41 = vpop.permute.xlu0 %5338 }
 0x44b   :  { %vm5442_vm15 = vcmp.eq.s32.totalorder %v5342_v2, 1  ;;  %v17811_v2 = vld [vmem:[#allocation45_spill] sm:$0xff]  ;;  %vm5441_vm5 = vcmp.eq.s32.totalorder %v5339_v41, 1 }
 0x44c   :  { %v5506_v35 = vsel %vm5442_vm15, %v13586_v58, %v8751_v23  ;;  %v17813_v58 = vld [vmem:[#allocation8_spill] sm:$0xff] }
 0x44d   :  { %v5570_v57 = vmax.f32 %v17814_v6, %v5506_v35 }
 0x44e   :  { %v5348_v7 = vpop.permute.xlu1 %5347  ;;  %v5345_v8 = vpop.permute.xlu0 %5344 }
 0x44f   :  { %vm5444_vm11 = vcmp.eq.s32.totalorder %v5348_v7, 1  ;;  %vm5443_vm13 = vcmp.eq.s32.totalorder %v5345_v8, 1  ;;  %v17810_v8 = vld [vmem:[#allocation47_spill] sm:$0xff] }
 0x450   :  { %v5508_v36 = vsel %vm5444_vm11, %v13608_v27, %v8751_v23 }
 0x451   :  { %v5572_v34 = vmax.f32 %v17803_v17, %v5508_v36  ;;  %v5636_v52 = vadd.f32 %v5508_v36, %v17803_v17 }
 0x452   :  { %v14105_v62 = vpop.permute.xlu1 %5353  ;;  %v14107_v43 = vpop.permute.xlu0 %5350 }
 0x453   :  { %17804 = vst [vmem:[#allocation72_spill] sm:$0xff] %v14105_v62  ;;  %17805 = vst [vmem:[#allocation65_spill] sm:$0xff] %v14107_v43  ;;  %v14111_v22 = vsel %vm397_vm10, %v5572_v34, %v5636_v52 }
 0x454   :  { %vm5748_vm12 = vcmp.eq.f32.partialorder %v14111_v22, %v14038_v11 }
 0x455   :  { %v5812_v7 = vsel %vm5748_vm12, 1, %v17161_v14 }
 0x456   :  { %v14116_v45 = vpop.permute.xlu1 %5359  ;;  %v14118_v53 = vpop.permute.xlu0 %5356  ;;  %5939 = vperm.xlu1 %8065, %v5812_v7   ;;  %v5507_v7 = vsel %vm5443_vm13, %v13612_v15, %v8751_v23 }
 0x457   :  { %17806 = vst [vmem:[#allocation38_spill] sm:$0xff] %v14116_v45  ;;  %17807 = vst [vmem:[#allocation69_spill] sm:$0xff] %v14118_v53  ;;  %v5571_v39 = vmax.f32 %v17809_v24, %v5507_v7  ;;  %v5635_v45 = vadd.f32 %v5507_v7, %v17809_v24 }
 0x45a   :  { %v14120_v49 = vpop.permute.xlu1 %5365  ;;  %v14122_v36 = vpop.permute.xlu0 %5362 }
 0x45b   :  { %17808 = vst [vmem:[#allocation36_spill] sm:$0xff] %v14122_v36 }
 0x45e   :  { %v14124_v13 = vpop.permute.xlu1 %5371  ;;  %v14126_v33 = vpop.permute.xlu0 %5368 }
 0x462   :  { %v14128_v52 = vpop.permute.xlu1 %5377  ;;  %v14130_v34 = vpop.permute.xlu0 %5374 }
 0x466   :  { %v14132_v11 = vpop.permute.xlu1 %5383  ;;  %v14134_v43 = vpop.permute.xlu0 %5380 }
 0x467   :  { %vm5456_vm13 = vcmp.eq.s32.totalorder %v14132_v11, 1 }
 0x46a   :  { %v5390_v31 = vpop.permute.xlu1 %5389  ;;  %v5387_v62 = vpop.permute.xlu0 %5386 }
 0x46b   :  { %vm5458_vm4 = vcmp.eq.s32.totalorder %v5390_v31, 1  ;;  %v14154_v31 = vsel %vm397_vm10, %v5571_v39, %v5635_v45  ;;  %vm5457_vm8 = vcmp.eq.s32.totalorder %v5387_v62, 1  ;;  %v17818_v62 = vld [vmem:[#allocation58_spill] sm:$0xff] }
 0x46c   :  { %vm5747_vm14 = vcmp.eq.f32.partialorder %v14154_v31, %v14042_v37 }
 0x46e   :  { %v5396_v21 = vpop.permute.xlu1 %5395  ;;  %v5393_v53 = vpop.permute.xlu0 %5392 }
 0x46f   :  { %vm5460_vm2 = vcmp.eq.s32.totalorder %v5396_v21, 1  ;;  %vm5459_vm3 = vcmp.eq.s32.totalorder %v5393_v53, 1  ;;  %v5634_v21 = vadd.f32 %v5506_v35, %v17814_v6  ;;  %v17817_v35 = vld [vmem:[#allocation91_spill] sm:$0xff] }
 0x470   :  { %v5524_v9 = vsel %vm5460_vm2, %v17810_v8, %v8751_v23  ;;  %v5523_v4 = vsel %vm5459_vm3, %v17811_v2, %v8751_v23  ;;  %v5811_v2 = vsel %vm5747_vm14, 1, %v17161_v14  ;;  %vm5439_vm3 = vcmp.eq.s32.totalorder %v14099_v61, 1 }
 0x471   :  { %v5588_v5 = vmax.f32 %v17812_v26, %v5524_v9  ;;  %v5652_v46 = vadd.f32 %v5524_v9, %v17812_v26  ;;  %v5587_v36 = vmax.f32 %v17813_v58, %v5523_v4  ;;  %v5651_v20 = vadd.f32 %v5523_v4, %v17813_v58  ;;  %v17815_v9 = vld [vmem:[#allocation83_spill] sm:$0xff] }
 0x472   :  { %v5522_v4 = vsel %vm5458_vm4, %v17815_v9, %v8751_v23  ;;  %vm5455_vm4 = vcmp.eq.s32.totalorder %v14134_v43, 1  ;;  %v17827_v43 = vld [vmem:[#allocation59_spill] sm:$0xff] }
 0x473   :  { %v14158_v53 = vsel %vm397_vm10, %v5588_v5, %v5652_v46  ;;  %v14162_v7 = vsel %vm397_vm10, %v5587_v36, %v5651_v20  ;;  %v14178_v46 = vsel %vm397_vm10, %v5570_v57, %v5634_v21  ;;  %v5505_v5 = vsel %vm5441_vm5, %v17817_v35, %v8751_v23  ;;  %v17819_v36 = vld [vmem:[#allocation82_spill] sm:$0xff] }
 0x474   :  { %vm5764_vm6 = vcmp.eq.f32.partialorder %v14158_v53, %v14111_v22  ;;  %vm5780_vm7 = vcmp.eq.f32.partialorder %v14028_v44, %v14158_v53  ;;  %vm5779_vm9 = vcmp.eq.f32.partialorder %v14034_v48, %v14162_v7  ;;  %17816 = vst [vmem:[#allocation71_spill] sm:$0xff] %v14178_v46  ;;  %v5586_v20 = vmax.f32 %v17818_v62, %v5522_v4  ;;  %v17823_v48 = vld [vmem:[#allocation57_spill] sm:$0xff] }
 0x475   :  { %v5828_v45 = vsel %vm5764_vm6, 1, %v17161_v14  ;;  %v5844_v39 = vsel %vm5780_vm7, 1, %v17161_v14  ;;  %v5650_v41 = vadd.f32 %v5522_v4, %v17818_v62  ;;  %v5521_v8 = vsel %vm5457_vm8, %v17819_v36, %v8751_v23 }
 0x476   :  { %5987 = vperm.xlu1 %8065, %v5828_v45   ;;  %6035 = vperm.xlu0 %8064, %v5844_v39   ;;  %v5843_v9 = vsel %vm5779_vm9, 1, %v17161_v14  ;;  %v17820_v45 = vld [vmem:[#allocation88_spill] sm:$0xff]  ;;  %vm5746_vm11 = vcmp.eq.f32.partialorder %v14178_v46, %v14008_v25  ;;  %vm5763_vm12 = vcmp.eq.f32.partialorder %v14162_v7, %v14154_v31  ;;  %v5585_v4 = vmax.f32 %v17822_v0, %v5521_v8 }
 0x477   :  { %v5569_v39 = vmax.f32 %v17820_v45, %v5505_v5  ;;  %v5633_v57 = vadd.f32 %v5505_v5, %v17820_v45  ;;  %v14197_v21 = vsel %vm397_vm10, %v5586_v20, %v5650_v41  ;;  %v5649_v36 = vadd.f32 %v5521_v8, %v17822_v0  ;;  %v17824_v5 = vld [vmem:[#allocation92_spill] sm:$0xff] }
 0x478   :  { %17821 = vst [vmem:[#allocation67_spill] sm:$0xff] %v14197_v21  ;;  %v5827_v37 = vsel %vm5763_vm12, 1, %v17161_v14  ;;  %vm5762_vm15 = vcmp.eq.f32.partialorder %v14197_v21, %v14178_v46  ;;  %vm5778_vm2 = vcmp.eq.f32.partialorder %v13868_v59, %v14197_v21  ;;  %vm5438_vm7 = vcmp.eq.s32.totalorder %v14093_v55, 1  ;;  %v17829_v55 = vld [vmem:[#allocation13_spill] sm:$0xff] }
 0x479   :  { %v14214_v8 = vsel %vm397_vm10, %v5569_v39, %v5633_v57  ;;  %v14218_v11 = vsel %vm397_vm10, %v5585_v4, %v5649_v36  ;;  %v5826_v21 = vsel %vm5762_vm15, 1, %v17161_v14  ;;  %v5842_v46 = vsel %vm5778_vm2, 1, %v17161_v14  ;;  %v17826_v39 = vld [vmem:[#allocation52_spill] sm:$0xff] }
 0x47a   :  { %5936 = vperm.xlu0 %8064, %v5811_v2   ;;  %6032 = vperm.xlu1 %8065, %v5843_v9   ;;  %v5504_v2 = vsel %vm5440_vm1, %v17823_v48, %v8751_v23  ;;  %v5810_v9 = vsel %vm5746_vm11, 1, %v17161_v14  ;;  %vm5777_vm5 = vcmp.eq.f32.partialorder %v13919_v56, %v14218_v11  ;;  %vm5745_vm6 = vcmp.eq.f32.partialorder %v14214_v8, %v14012_v28  ;;  %v17830_v56 = vld [vmem:[#allocation53_spill] sm:$0xff] }
 0x47b   :  { %v5568_v20 = vmax.f32 %v17824_v5, %v5504_v2  ;;  %v5632_v41 = vadd.f32 %v5504_v2, %v17824_v5  ;;  %v5503_v57 = vsel %vm5439_vm3, %v17826_v39, %v8751_v23  ;;  %v5841_v2 = vsel %vm5777_vm5, 1, %v17161_v14 }
 0x47c   :  { %v5567_v28 = vmax.f32 %v17800_v30, %v5503_v57  ;;  %vm5761_vm14 = vcmp.eq.f32.partialorder %v14218_v11, %v14214_v8  ;;  %vm5454_vm9 = vcmp.eq.s32.totalorder %v14128_v52, 1  ;;  %vm5437_vm12 = vcmp.eq.s32.totalorder %v14095_v54, 1 }
 0x47d   :  { %v14232_v61 = vsel %vm397_vm10, %v5568_v20, %v5632_v41  ;;  %v5631_v20 = vadd.f32 %v5503_v57, %v17800_v30  ;;  %vm5436_vm3 = vcmp.eq.s32.totalorder %v14089_v12, 1  ;;  %v17835_v12 = vld [vmem:[#allocation60_spill] sm:$0xff] }
 0x47e   :  { %5933 = vperm.xlu1 %8065, %v5810_v9   ;;  %5984 = vperm.xlu0 %8064, %v5827_v37   ;;  %v17825_v37 = vld [vmem:[#allocation46_spill] sm:$0xff]  ;;  %vm5744_vm8 = vcmp.eq.f32.partialorder %v14232_v61, %v13984_v29  ;;  %v5825_v29 = vsel %vm5761_vm14, 1, %v17161_v14  ;;  %vm5435_vm14 = vcmp.eq.s32.totalorder %v14091_v32, 1 }
 0x47f   :  { %v5520_v9 = vsel %vm5456_vm13, %v17825_v37, %v8751_v23  ;;  %v5809_v37 = vsel %vm5745_vm6, 1, %v17161_v14  ;;  %vm5453_vm13 = vcmp.eq.s32.totalorder %v14130_v34, 1  ;;  %v17833_v34 = vld [vmem:[#allocation61_spill] sm:$0xff]  ;;  %vm5452_vm6 = vcmp.eq.s32.totalorder %v14124_v13, 1 }
 0x480   :  { %v5584_v4 = vmax.f32 %v17827_v43, %v5520_v9  ;;  %v5648_v36 = vadd.f32 %v5520_v9, %v17827_v43 }
 0x482   :  { %5981 = vperm.xlu1 %8065, %v5826_v21   ;;  %6029 = vperm.xlu0 %8064, %v5842_v46   ;;  %v17828_v21 = vld [vmem:[#allocation75_spill] sm:$0xff]  ;;  %v14251_v41 = vsel %vm397_vm10, %v5584_v4, %v5648_v36  ;;  %v14268_v4 = vsel %vm397_vm10, %v5567_v28, %v5631_v20  ;;  %v17832_v28 = vld [vmem:[#allocation89_spill] sm:$0xff] }
 0x483   :  { %v5519_v46 = vsel %vm5455_vm4, %v17828_v21, %v8751_v23  ;;  %vm5760_vm1 = vcmp.eq.f32.partialorder %v14251_v41, %v14232_v61  ;;  %vm5776_vm11 = vcmp.eq.f32.partialorder %v13828_v19, %v14251_v41  ;;  %vm5743_vm2 = vcmp.eq.f32.partialorder %v14268_v4, %v13988_v42 }
 0x484   :  { %v5583_v9 = vmax.f32 %v17829_v55, %v5519_v46  ;;  %v5647_v21 = vadd.f32 %v5519_v46, %v17829_v55  ;;  %v5824_v46 = vsel %vm5760_vm1, 1, %v17161_v14  ;;  %v5501_v54 = vsel %vm5437_vm12, %v17832_v28, %v8751_v23 }
 0x485   :  { %vm5434_vm12 = vcmp.eq.s32.totalorder %v14082_v10, 1 }
 0x486   :  { %6026 = vperm.xlu1 %8065, %v5841_v2   ;;  %5930 = vperm.xlu0 %8064, %v5809_v37   ;;  %v5502_v2 = vsel %vm5438_vm7, %v17830_v56, %v8751_v23  ;;  %v5808_v37 = vsel %vm5744_vm8, 1, %v17161_v14  ;;  %v14272_v52 = vsel %vm397_vm10, %v5583_v9, %v5647_v21  ;;  %v17834_v21 = vld [vmem:[#allocation42_spill] sm:$0xff] }
 0x487   :  { %v5566_v30 = vmax.f32 %v13454_v16, %v5502_v2  ;;  %v5630_v57 = vadd.f32 %v5502_v2, %v13454_v16  ;;  %vm5775_vm15 = vcmp.eq.f32.partialorder %v13840_v51, %v14272_v52  ;;  %v5517_v2 = vsel %vm5453_vm13, %v17834_v21, %v8751_v23 }
 0x488   :  { %vm5759_vm5 = vcmp.eq.f32.partialorder %v14272_v52, %v14268_v4  ;;  %v5645_v21 = vadd.f32 %v5517_v2, %v17835_v12 }
 0x489   :  { %v14286_v16 = vsel %vm397_vm10, %v5566_v30, %v5630_v57  ;;  %v5629_v30 = vadd.f32 %v5501_v54, %v17796_v63 }
 0x48a   :  { %5927 = vperm.xlu1 %8065, %v5808_v37   ;;  %5978 = vperm.xlu0 %8064, %v5825_v29   ;;  %v17831_v29 = vld [vmem:[#allocation73_spill] sm:$0xff]  ;;  %v5840_v37 = vsel %vm5776_vm11, 1, %v17161_v14  ;;  %vm5742_vm4 = vcmp.eq.f32.partialorder %v14286_v16, %v13956_v38  ;;  %v5823_v38 = vsel %vm5759_vm5, 1, %v17161_v14 }
 0x48b   :  { %v5518_v36 = vsel %vm5454_vm9, %v17831_v29, %v8751_v23  ;;  %v5839_v29 = vsel %vm5775_vm15, 1, %v17161_v14  ;;  %vm5451_vm9 = vcmp.eq.s32.totalorder %v14126_v33, 1 }
 0x48c   :  { %v5582_v20 = vmax.f32 %v17833_v34, %v5518_v36  ;;  %v5646_v9 = vadd.f32 %v5518_v36, %v17833_v34  ;;  %v5581_v36 = vmax.f32 %v17835_v12, %v5517_v2  ;;  %v5515_v2 = vsel %vm5451_vm9, %v17813_v58, %v8751_v23 }
 0x48d   :  { %v5643_v10 = vadd.f32 %v5515_v2, %v13612_v15 }
 0x48e   :  { %5975 = vperm.xlu1 %8065, %v5824_v46   ;;  %6023 = vperm.xlu0 %8064, %v5840_v37   ;;  %v5807_v46 = vsel %vm5743_vm2, 1, %v17161_v14  ;;  %v5565_v37 = vmax.f32 %v17796_v63, %v5501_v54  ;;  %v14305_v57 = vsel %vm397_vm10, %v5582_v20, %v5646_v9  ;;  %v14326_v13 = vsel %vm397_vm10, %v5581_v36, %v5645_v21 }
 0x48f   :  { %vm5758_vm7 = vcmp.eq.f32.partialorder %v14305_v57, %v14286_v16  ;;  %vm5774_vm8 = vcmp.eq.f32.partialorder %v13816_v47, %v14305_v57  ;;  %vm5773_vm1 = vcmp.eq.f32.partialorder %v13824_v18, %v14326_v13  ;;  %v5498_v21 = vsel %vm5434_vm12, %v17814_v6, %v8751_v23 }
 0x490   :  { %v5822_v20 = vsel %vm5758_vm7, 1, %v17161_v14  ;;  %v5838_v9 = vsel %vm5774_vm8, 1, %v17161_v14  ;;  %vm5450_vm2 = vcmp.eq.s32.totalorder %v14120_v49, 1 }
 0x492   :  { %6020 = vperm.xlu1 %8065, %v5839_v29   ;;  %5924 = vperm.xlu0 %8064, %v5807_v46   ;;  %v5500_v29 = vsel %vm5436_vm3, %v17803_v17, %v8751_v23  ;;  %v5806_v46 = vsel %vm5742_vm4, 1, %v17161_v14  ;;  %v14322_v17 = vsel %vm397_vm10, %v5565_v37, %v5629_v30  ;;  %v5837_v37 = vsel %vm5773_vm1, 1, %v17161_v14 }
 0x493   :  { %v5564_v63 = vmax.f32 %v17791_v60, %v5500_v29  ;;  %v5628_v54 = vadd.f32 %v5500_v29, %v17791_v60  ;;  %vm5741_vm11 = vcmp.eq.f32.partialorder %v14322_v17, %v13960_v40  ;;  %vm5757_vm15 = vcmp.eq.f32.partialorder %v14326_v13, %v14322_v17 }
 0x494   :  { %v5805_v30 = vsel %vm5741_vm11, 1, %v17161_v14 }
 0x495   :  { %v14340_v60 = vsel %vm397_vm10, %v5564_v63, %v5628_v54  ;;  %v17837_v63 = vld [vmem:[#allocation85_spill] sm:$0xff] }
 0x496   :  { %5921 = vperm.xlu1 %8065, %v5806_v46   ;;  %5972 = vperm.xlu0 %8064, %v5823_v38   ;;  %v5516_v38 = vsel %vm5452_vm6, %v17812_v26, %v8751_v23  ;;  %v5499_v26 = vsel %vm5435_vm14, %v17809_v24, %v8751_v23  ;;  %vm5740_vm13 = vcmp.eq.f32.partialorder %v14340_v60, %v13931_v3  ;;  %v5821_v46 = vsel %vm5757_vm15, 1, %v17161_v14 }
 0x497   :  { %v5580_v33 = vmax.f32 %v13608_v27, %v5516_v38  ;;  %v5644_v32 = vadd.f32 %v5516_v38, %v13608_v27  ;;  %v5563_v36 = vmax.f32 %v17792_v50, %v5499_v26  ;;  %v5627_v24 = vadd.f32 %v5499_v26, %v17792_v50  ;;  %v17836_v50 = vld [vmem:[#allocation10_spill] sm:$0xff]  ;;  %v17838_v38 = vld [vmem:[#allocation40_spill] sm:$0xff] }
 0x498   :  { %v5579_v27 = vmax.f32 %v13612_v15, %v5515_v2  ;;  %v5804_v29 = vsel %vm5740_vm13, 1, %v17161_v14  ;;  %v5562_v54 = vmax.f32 %v17837_v63, %v5498_v21  ;;  %v5626_v15 = vadd.f32 %v5498_v21, %v17837_v63  ;;  %v17841_v2 = vld [vmem:[#allocation22_spill] sm:$0xff] }
 0x499   :  { %v14359_v58 = vsel %vm397_vm10, %v5580_v33, %v5644_v32  ;;  %v14376_v6 = vsel %vm397_vm10, %v5563_v36, %v5627_v24  ;;  %vm5433_vm5 = vcmp.eq.s32.totalorder %v17838_v38, 1  ;;  %v17840_v32 = vld [vmem:[#allocation21_spill] sm:$0xff] }
 0x49a   :  { %5969 = vperm.xlu1 %8065, %v5822_v20   ;;  %6017 = vperm.xlu0 %8064, %v5838_v9   ;;  %vm5756_vm3 = vcmp.eq.f32.partialorder %v14359_v58, %v14340_v60  ;;  %vm5772_vm4 = vcmp.eq.f32.partialorder %v17836_v50, %v14359_v58  ;;  %v14380_v49 = vsel %vm397_vm10, %v5579_v27, %v5643_v10  ;;  %v17839_v9 = vld [vmem:[#allocation36_spill] sm:$0xff]  ;;  %v17843_v10 = vld [vmem:[#allocation33_spill] sm:$0xff] }
 0x49b   :  { %v5514_v20 = vsel %vm5450_vm2, %v17818_v62, %v8751_v23  ;;  %vm5449_vm6 = vcmp.eq.s32.totalorder %v17839_v9, 1  ;;  %v5820_v26 = vsel %vm5756_vm3, 1, %v17161_v14  ;;  %v5836_v33 = vsel %vm5772_vm4, 1, %v17161_v14  ;;  %v17846_v9 = vld [vmem:[#allocation38_spill] sm:$0xff] }
 0x49c   :  { %vm5771_vm7 = vcmp.eq.f32.partialorder %v17840_v32, %v14380_v49  ;;  %vm5739_vm8 = vcmp.eq.f32.partialorder %v14376_v6, %v17841_v2  ;;  %v5497_v62 = vsel %vm5433_vm5, %v17820_v45, %v8751_v23  ;;  %v5513_v27 = vsel %vm5449_vm6, %v17822_v0, %v8751_v23 }
 0x49d   :  { %vm5432_vm14 = vcmp.eq.s32.totalorder %v17843_v10, 1  ;;  %v5835_v21 = vsel %vm5771_vm7, 1, %v17161_v14  ;;  %vm5755_vm1 = vcmp.eq.f32.partialorder %v14380_v49, %v14376_v6  ;;  %v5641_v38 = vadd.f32 %v5513_v27, %v17817_v35  ;;  %v17851_v10 = vld [vmem:[#allocation69_spill] sm:$0xff] }
 0x49e   :  { %6014 = vperm.xlu1 %8065, %v5837_v37   ;;  %5918 = vperm.xlu0 %8064, %v5805_v30   ;;  %v14394_v37 = vsel %vm397_vm10, %v5562_v54, %v5626_v15  ;;  %v17842_v30 = vld [vmem:[#allocation12_spill] sm:$0xff]  ;;  %v5577_v15 = vmax.f32 %v17817_v35, %v5513_v27  ;;  %vm5448_vm11 = vcmp.eq.s32.totalorder %v17846_v9, 1  ;;  %vm5447_vm15 = vcmp.eq.s32.totalorder %v17851_v10, 1  ;;  %v17860_v10 = vld [vmem:[#allocation65_spill] sm:$0xff] }
 0x49f   :  { %v5578_v36 = vmax.f32 %v17842_v30, %v5514_v20  ;;  %v5642_v24 = vadd.f32 %v5514_v20, %v17842_v30  ;;  %v17845_v54 = vld [vmem:[#allocation68_spill] sm:$0xff]  ;;  %v5496_v20 = vsel %vm5432_vm14, %v17824_v5, %v8751_v23  ;;  %v17848_v30 = vld [vmem:[#allocation51_spill] sm:$0xff]  ;;  %v5512_v27 = vsel %vm5448_vm11, %v17827_v43, %v8751_v23 }
 0x4a0   :  { %vm5738_vm9 = vcmp.eq.f32.partialorder %v14394_v37, %v17845_v54  ;;  %v5624_v35 = vadd.f32 %v5496_v20, %v17848_v30  ;;  %v5576_v43 = vmax.f32 %v17823_v48, %v5512_v27  ;;  %v17856_v9 = vld [vmem:[#allocation72_spill] sm:$0xff]  ;;  %vm5445_vm7 = vcmp.eq.s32.totalorder %v17860_v10, 1 }
 0x4a1   :  { %v14413_v0 = vsel %vm397_vm10, %v5578_v36, %v5642_v24  ;;  %v5560_v36 = vmax.f32 %v17848_v30, %v5496_v20  ;;  %v14434_v24 = vsel %vm397_vm10, %v5577_v15, %v5641_v38  ;;  %v5640_v15 = vadd.f32 %v5512_v27, %v17823_v48  ;;  %v14453_v20 = vpop.permute.xlu1 %5849  ;;  %v17857_v30 = vld [vmem:[#allocation14_spill] sm:$0xff] }
 0x4a2   :  { %5915 = vperm.xlu1 %8065, %v5804_v29   ;;  %5966 = vperm.xlu0 %8064, %v5821_v46   ;;  %v5803_v29 = vsel %vm5739_vm8, 1, %v17161_v14  ;;  %v17844_v46 = vld [vmem:[#allocation50_spill] sm:$0xff]  ;;  %vm5754_vm12 = vcmp.eq.f32.partialorder %v14413_v0, %v14394_v37  ;;  %17850 = vst [vmem:[#allocation70_spill] sm:$0xff] %v14434_v24  ;;  %v5511_v38 = vsel %vm5447_vm15, %v17829_v55, %v8751_v23  ;;  %17855 = vst [vmem:[#allocation77_spill] sm:$0xff] %v14453_v20 }
 0x4a3   :  { %v5561_v63 = vmax.f32 %v17844_v46, %v5497_v62  ;;  %v5625_v45 = vadd.f32 %v5497_v62, %v17844_v46  ;;  %v17847_v62 = vld [vmem:[#allocation19_spill] sm:$0xff]  ;;  %v17852_v46 = vld [vmem:[#allocation25_spill] sm:$0xff]  ;;  %vm5446_vm4 = vcmp.eq.s32.totalorder %v17856_v9, 1  ;;  %v14464_v48 = vsel %vm397_vm10, %v5576_v43, %v5640_v15 }
 0x4a4   :  { %vm5770_vm13 = vcmp.eq.f32.partialorder %v17847_v62, %v14413_v0  ;;  %vm5769_vm2 = vcmp.eq.f32.partialorder %v17852_v46, %v14434_v24  ;;  %17858 = vst [vmem:[#allocation41_spill] sm:$0xff] %v14464_v48  ;;  %v5575_v55 = vmax.f32 %v17826_v39, %v5511_v38  ;;  %v5510_v27 = vsel %vm5446_vm4, %v17833_v34, %v8751_v23 }
 0x4a5   :  { %v14430_v5 = vsel %vm397_vm10, %v5561_v63, %v5625_v45  ;;  %v17853_v63 = vld [vmem:[#allocation23_spill] sm:$0xff]  ;;  %v14447_v45 = vsel %vm397_vm10, %v5560_v36, %v5624_v35  ;;  %v5639_v36 = vadd.f32 %v5511_v38, %v17826_v39  ;;  %v14468_v35 = vpop.permute.xlu0 %5846  ;;  %v14475_v9 = vpop.permute.xlu1 %5855  ;;  %v17862_v39 = vld [vmem:[#allocation9_spill] sm:$0xff]  ;;  %v5574_v43 = vmax.f32 %v17830_v56, %v5510_v27 }
 0x4a6   :  { %5963 = vperm.xlu1 %8065, %v5820_v26   ;;  %6011 = vperm.xlu0 %8064, %v5836_v33   ;;  %v5802_v26 = vsel %vm5738_vm9, 1, %v17161_v14  ;;  %v5819_v33 = vsel %vm5755_vm1, 1, %v17161_v14  ;;  %17849 = vst [vmem:[#allocation79_spill] sm:$0xff] %v14430_v5  ;;  %vm5737_vm3 = vcmp.eq.f32.partialorder %v14430_v5, %v17853_v63  ;;  %17854 = vst [vmem:[#allocation35_spill] sm:$0xff] %v14447_v45 }
 0x4a7   :  { %vm5736_vm5 = vcmp.eq.f32.partialorder %v14447_v45, %v17857_v30  ;;  %vm5753_vm6 = vcmp.eq.f32.partialorder %v14434_v24, %v14430_v5  ;;  %17859 = vst [vmem:[#allocation74_spill] sm:$0xff] %v14468_v35  ;;  %17861 = vst [vmem:[#allocation39_spill] sm:$0xff] %v14475_v9  ;;  %vm5752_vm8 = vcmp.eq.f32.partialorder %v14464_v48, %v14447_v45  ;;  %v17869_v35 = vld [vmem:[#allocation17_spill] sm:$0xff] }
 0x4a8   :  { %vm5768_vm14 = vcmp.eq.f32.partialorder %v17862_v39, %v14464_v48  ;;  %v5638_v34 = vadd.f32 %v5510_v27, %v17830_v56  ;;  %v14485_v15 = vsel %vm397_vm10, %v5575_v55, %v5639_v36  ;;  %v5509_v38 = vsel %vm5445_vm7, %v17835_v12, %v8751_v23  ;;  %v17866_v56 = vld [vmem:[#allocation15_spill] sm:$0xff] }
 0x4a9   :  { %17863 = vst [vmem:[#allocation43_spill] sm:$0xff] %v14485_v15  ;;  %v5832_v10 = vsel %vm5768_vm14, 1, %v17161_v14  ;;  %vm5767_vm1 = vcmp.eq.f32.partialorder %v17866_v56, %v14485_v15  ;;  %v5573_v12 = vmax.f32 %v17832_v28, %v5509_v38  ;;  %v5637_v36 = vadd.f32 %v5509_v38, %v17832_v28  ;;  %v14503_v27 = vpop.permute.xlu1 %5861  ;;  %v17876_v48 = vld [vmem:[#allocation27_spill] sm:$0xff] }
 0x4aa   :  { %6008 = vperm.xlu1 %8065, %v5835_v21   ;;  %5912 = vperm.xlu0 %8064, %v5803_v29   ;;  %v5818_v21 = vsel %vm5754_vm12, 1, %v17161_v14  ;;  %v5834_v29 = vsel %vm5770_vm13, 1, %v17161_v14  ;;  %v14499_v55 = vsel %vm397_vm10, %v5574_v43, %v5638_v34 }
 0x4ab   :  { %17867 = vst [vmem:[#allocation76_spill] sm:$0xff] %v14499_v55  ;;  %vm5766_vm12 = vcmp.eq.f32.partialorder %v17869_v35, %v14499_v55  ;;  %v14513_v43 = vsel %vm397_vm10, %v5573_v12, %v5637_v36 }
 0x4ac   :  { %17870 = vst [vmem:[#allocation80_spill] sm:$0xff] %v14513_v43  ;;  %v5830_v38 = vsel %vm5766_vm12, 1, %v17161_v14 }
 0x4ad   :  { %v14519_v20 = vpop.permute.xlu1 %5867 }
 0x4ae   :  { %5909 = vperm.xlu1 %8065, %v5802_v26   ;;  %5960 = vperm.xlu0 %8064, %v5819_v33   ;;  %v5833_v26 = vsel %vm5769_vm2, 1, %v17161_v14  ;;  %v5801_v33 = vsel %vm5737_vm3, 1, %v17161_v14 }
 0x4b1   :  { %v14529_v35 = vpop.permute.xlu1 %5873 }
 0x4b2   :  { %5957 = vperm.xlu1 %8065, %v5818_v21   ;;  %6005 = vperm.xlu0 %8064, %v5834_v29   ;;  %v5800_v21 = vsel %vm5736_vm5, 1, %v17161_v14  ;;  %v5817_v29 = vsel %vm5753_vm6, 1, %v17161_v14 }
 0x4b6   :  { %6002 = vperm.xlu1 %8065, %v5833_v26   ;;  %5906 = vperm.xlu0 %8064, %v5801_v33   ;;  %v14489_v26 = vpop.permute.xlu0 %5852  ;;  %v5816_v33 = vsel %vm5752_vm8, 1, %v17161_v14 }
 0x4b7   :  { %17864 = vst [vmem:[#allocation37_spill] sm:$0xff] %v14489_v26 }
 0x4ba   :  { %5903 = vperm.xlu1 %8065, %v5800_v21   ;;  %5954 = vperm.xlu0 %8064, %v5817_v29   ;;  %v17865_v21 = vld [vmem:[#allocation66_spill] sm:$0xff]  ;;  %v14515_v34 = vpop.permute.xlu0 %5858 }
 0x4bb   :  { %vm5751_vm9 = vcmp.eq.f32.partialorder %v14485_v15, %v17865_v21 }
 0x4bc   :  { %v5815_v29 = vsel %vm5751_vm9, 1, %v17161_v14 }
 0x4be   :  { %5951 = vperm.xlu1 %8065, %v5816_v33   ;;  %5999 = vperm.xlu0 %8064, %v5832_v10   ;;  %v5831_v33 = vsel %vm5767_vm1, 1, %v17161_v14  ;;  %v17868_v10 = vld [vmem:[#allocation30_spill] sm:$0xff] }
 0x4bf   :  { %vm5750_vm11 = vcmp.eq.f32.partialorder %v14499_v55, %v17868_v10  ;;  %v14525_v55 = vpop.permute.xlu0 %5864 }
 0x4c0   :  { %v5814_v28 = vsel %vm5750_vm11, 1, %v17161_v14 }
 0x4c2   :  { %5948 = vperm.xlu1 %8065, %v5815_v29   ;;  %5996 = vperm.xlu0 %8064, %v5831_v33   ;;  %v17871_v29 = vld [vmem:[#allocation34_spill] sm:$0xff]  ;;  %v17872_v33 = vld [vmem:[#allocation16_spill] sm:$0xff] }
 0x4c3   :  { %vm5749_vm13 = vcmp.eq.f32.partialorder %v14513_v43, %v17871_v29  ;;  %vm5765_vm15 = vcmp.eq.f32.partialorder %v17872_v33, %v14513_v43  ;;  %v14531_v10 = vpop.permute.xlu0 %5870 }
 0x4c4   :  { %v5813_v12 = vsel %vm5749_vm13, 1, %v17161_v14  ;;  %v5829_v36 = vsel %vm5765_vm15, 1, %v17161_v14 }
 0x4c6   :  { %5945 = vperm.xlu1 %8065, %v5814_v28   ;;  %5993 = vperm.xlu0 %8064, %v5830_v38   ;;  %v14533_v28 = vpop.permute.xlu1 %5879 }
 0x4c7   :  { %v14535_v38 = vpop.permute.xlu0 %5876 }
 0x4ca   :  { %5942 = vperm.xlu1 %8065, %v5813_v12   ;;  %5990 = vperm.xlu0 %8064, %v5829_v36   ;;  %v5886_v29 = vpop.permute.xlu1 %5885 }
 0x4cb   :  { %v14537_v15 = vpop.permute.xlu0 %5882  ;;  %vm6050_vm4 = vcmp.eq.s32.totalorder %v5886_v29, 1 }
 0x4ce   :  { %v5892_v43 = vpop.permute.xlu1 %5891 }
 0x4cf   :  { %v5889_v33 = vpop.permute.xlu0 %5888  ;;  %vm6052_vm3 = vcmp.eq.s32.totalorder %v5892_v43, 1 }
 0x4d0   :  { %vm6051_vm5 = vcmp.eq.s32.totalorder %v5889_v33, 1  ;;  %v17877_v33 = vld [vmem:[#allocation29_spill] sm:$0xff] }
 0x4d1   :  { %v6115_v63 = vsel %vm6051_vm5, %v17877_v33, %v8751_v23 }
 0x4d2   :  { %v14539_v56 = vpop.permute.xlu1 %5897 }
 0x4d3   :  { %17873 = vst [vmem:[#allocation48_spill] sm:$0xff] %v14539_v56  ;;  %v14541_v21 = vpop.permute.xlu0 %5894  ;;  %v6116_v56 = vsel %vm6052_vm3, %v17876_v48, %v8751_v23 }
 0x4d4   :  { %17874 = vst [vmem:[#allocation44_spill] sm:$0xff] %v14541_v21 }
 0x4d6   :  { %v5940_v26 = vpop.permute.xlu1 %5939 }
 0x4d7   :  { %vm6068_vm2 = vcmp.eq.s32.totalorder %v5940_v26, 1  ;;  %v14543_v12 = vpop.permute.xlu0 %5900  ;;  %v14553_v26 = vsel %vm6050_vm4, %v14008_v25, %v8751_v23 }
 0x4d8   :  { %17875 = vst [vmem:[#allocation32_spill] sm:$0xff] %v14543_v12  ;;  %v6132_v36 = vsel %vm6068_vm2, %v14111_v22, %v8751_v23  ;;  %vm6049_vm2 = vcmp.eq.s32.totalorder %v14537_v15, 1 }
 0x4d9   :  { %v6196_v30 = vmax.f32 %v17876_v48, %v6132_v36  ;;  %v6260_v45 = vadd.f32 %v6132_v36, %v17876_v48 }
 0x4db   :  { %v14569_v24 = vsel %vm397_vm10, %v6196_v30, %v6260_v45 }
 0x4f1   :  { %v5988_v39 = vpop.permute.xlu1 %5987  ;;  %v6036_v9 = vpop.permute.xlu0 %6035 }
 0x4f2   :  { %vm6084_vm6 = vcmp.eq.s32.totalorder %v5988_v39, 1  ;;  %vm6100_vm7 = vcmp.eq.s32.totalorder %v6036_v9, 1  ;;  %v6180_v9 = vmax.f32 %v14028_v44, %v6116_v56  ;;  %v6244_v39 = vadd.f32 %v6116_v56, %v14028_v44 }
 0x4f3   :  { %v6148_v43 = vsel %vm6084_vm6, %v14158_v53, %v8751_v23  ;;  %v6164_v29 = vsel %vm6100_vm7, %v14028_v44, %v8751_v23  ;;  %v17879_v44 = vld [vmem:[#allocation18_spill] sm:$0xff] }
 0x4f4   :  { %v6212_v36 = vmax.f32 %v14111_v22, %v6148_v43  ;;  %v6276_v21 = vadd.f32 %v6148_v43, %v14111_v22  ;;  %v6228_v12 = vmax.f32 %v14158_v53, %v6164_v29  ;;  %v6292_v48 = vadd.f32 %v6164_v29, %v14158_v53 }
 0x4f5   :  { %v6033_v5 = vpop.permute.xlu1 %6032  ;;  %v5937_v46 = vpop.permute.xlu0 %5936 }
 0x4f6   :  { %v14573_v22 = vsel %vm397_vm10, %v6212_v36, %v6276_v21  ;;  %v14577_v53 = vsel %vm397_vm10, %v6228_v12, %v6292_v48  ;;  %vm6099_vm8 = vcmp.eq.s32.totalorder %v6033_v5, 1  ;;  %vm6067_vm14 = vcmp.eq.s32.totalorder %v5937_v46, 1 }
 0x4f7   :  { %17878 = vst [vmem:[#allocation64_spill] sm:$0xff] %v14577_v53  ;;  %v6163_v56 = vsel %vm6099_vm8, %v17879_v44, %v8751_v23  ;;  %v6131_v43 = vsel %vm6067_vm14, %v14154_v31, %v8751_v23  ;;  %vm6420_vm9 = vcmp.eq.f32.partialorder %v14569_v24, %v14577_v53  ;;  %vm6388_vm1 = vcmp.eq.f32.partialorder %v14577_v53, %v14569_v24 }
 0x4f8   :  { %v6227_v45 = vmax.f32 %v14162_v7, %v6163_v56  ;;  %v6291_v30 = vadd.f32 %v6163_v56, %v14162_v7  ;;  %v6195_v21 = vmax.f32 %v17877_v33, %v6131_v43  ;;  %v6259_v5 = vadd.f32 %v6131_v43, %v17877_v33 }
 0x4f9   :  { %v14593_v46 = vsel %vm397_vm10, %v6180_v9, %v6244_v39  ;;  %v6179_v12 = vmax.f32 %v17879_v44, %v6115_v63  ;;  %v5934_v29 = vpop.permute.xlu1 %5933  ;;  %v6484_v36 = vsel %vm6420_vm9, 1, %v17161_v14  ;;  %v6452_v48 = vsel %vm6388_vm1, 1, %v17161_v14  ;;  %v5985_v53 = vpop.permute.xlu0 %5984 }
 0x4fa   :  { %vm6066_vm11 = vcmp.eq.s32.totalorder %v5934_v29, 1  ;;  %6675 = vperm.xlu1 %8065, %v6484_v36   ;;  %6579 = vperm.xlu0 %8064, %v6452_v48   ;;  %vm6083_vm12 = vcmp.eq.s32.totalorder %v5985_v53, 1  ;;  %vm6404_vm13 = vcmp.eq.f32.partialorder %v14593_v46, %v14573_v22  ;;  %vm6372_vm15 = vcmp.eq.f32.partialorder %v14573_v22, %v14593_v46  ;;  %v17883_v36 = vld [vmem:[#allocation67_spill] sm:$0xff] }
 0x4fb   :  { %v6243_v9 = vadd.f32 %v6115_v63, %v17879_v44  ;;  %v14605_v39 = vsel %vm397_vm10, %v6227_v45, %v6291_v30  ;;  %v14609_v33 = vsel %vm397_vm10, %v6195_v21, %v6259_v5  ;;  %v6147_v56 = vsel %vm6083_vm12, %v14162_v7, %v8751_v23  ;;  %v17882_v45 = vld [vmem:[#allocation71_spill] sm:$0xff] }
 0x4fc   :  { %17880 = vst [vmem:[#allocation49_spill] sm:$0xff] %v14605_v39  ;;  %17881 = vst [vmem:[#allocation78_spill] sm:$0xff] %v14609_v33  ;;  %v6178_v53 = vmax.f32 %v13868_v59, %v14553_v26  ;;  %v6211_v43 = vmax.f32 %v14154_v31, %v6147_v56  ;;  %v6275_v63 = vadd.f32 %v6147_v56, %v14154_v31  ;;  %v6468_v5 = vsel %vm6404_vm13, 1, %v17161_v14 }
 0x4fd   :  { %v6242_v44 = vadd.f32 %v14553_v26, %v13868_v59  ;;  %v6130_v30 = vsel %vm6066_vm11, %v17882_v45, %v8751_v23  ;;  %v5982_v21 = vpop.permute.xlu1 %5981  ;;  %v6436_v7 = vsel %vm6372_vm15, 1, %v17161_v14  ;;  %v6030_v29 = vpop.permute.xlu0 %6029  ;;  %vm6419_vm5 = vcmp.eq.f32.partialorder %v14609_v33, %v14605_v39 }
 0x4fe   :  { %vm6082_vm3 = vcmp.eq.s32.totalorder %v5982_v21, 1  ;;  %6627 = vperm.xlu1 %8065, %v6468_v5   ;;  %6531 = vperm.xlu0 %8064, %v6436_v7   ;;  %vm6098_vm4 = vcmp.eq.s32.totalorder %v6030_v29, 1  ;;  %vm6387_vm6 = vcmp.eq.f32.partialorder %v14605_v39, %v14609_v33  ;;  %v14630_v31 = vsel %vm397_vm10, %v6179_v12, %v6243_v9 }
 0x4ff   :  { %v14634_v26 = vsel %vm397_vm10, %v6211_v43, %v6275_v63  ;;  %v6146_v48 = vsel %vm6082_vm3, %v17883_v36, %v8751_v23  ;;  %v6162_v56 = vsel %vm6098_vm4, %v13868_v59, %v8751_v23  ;;  %v6194_v21 = vmax.f32 %v14008_v25, %v6130_v30 }
 0x500   :  { %v6258_v5 = vadd.f32 %v6130_v30, %v14008_v25  ;;  %v6226_v7 = vmax.f32 %v17883_v36, %v6162_v56  ;;  %v6290_v29 = vadd.f32 %v6162_v56, %v17883_v36  ;;  %v6210_v12 = vmax.f32 %v17882_v45, %v6146_v48  ;;  %v17885_v25 = vld [vmem:[#allocation20_spill] sm:$0xff] }
 0x501   :  { %v6274_v9 = vadd.f32 %v6146_v48, %v17882_v45  ;;  %v6027_v43 = vpop.permute.xlu1 %6026  ;;  %v6483_v63 = vsel %vm6419_vm5, 1, %v17161_v14  ;;  %v6451_v39 = vsel %vm6387_vm6, 1, %v17161_v14  ;;  %v5931_v33 = vpop.permute.xlu0 %5930  ;;  %vm6403_vm14 = vcmp.eq.f32.partialorder %v14630_v31, %v14634_v26 }
 0x502   :  { %vm6097_vm7 = vcmp.eq.s32.totalorder %v6027_v43, 1  ;;  %6672 = vperm.xlu1 %8065, %v6483_v63   ;;  %6576 = vperm.xlu0 %8064, %v6451_v39   ;;  %vm6065_vm8 = vcmp.eq.s32.totalorder %v5931_v33, 1  ;;  %vm6371_vm9 = vcmp.eq.f32.partialorder %v14634_v26, %v14630_v31  ;;  %v14654_v59 = vsel %vm397_vm10, %v6226_v7, %v6290_v29  ;;  %v17886_v39 = vld [vmem:[#allocation63_spill] sm:$0xff] }
 0x503   :  { %17884 = vst [vmem:[#allocation81_spill] sm:$0xff] %v14654_v59  ;;  %v6161_v45 = vsel %vm6097_vm7, %v17885_v25, %v8751_v23  ;;  %v14660_v30 = vsel %vm397_vm10, %v6178_v53, %v6242_v44  ;;  %v6113_v33 = vsel %vm6049_vm2, %v17886_v39, %v8751_v23  ;;  %v6129_v36 = vsel %vm6065_vm8, %v14214_v8, %v8751_v23 }
 0x504   :  { %v14670_v48 = vsel %vm397_vm10, %v6194_v21, %v6258_v5  ;;  %v14674_v56 = vsel %vm397_vm10, %v6210_v12, %v6274_v9  ;;  %v6467_v53 = vsel %vm6403_vm14, 1, %v17161_v14  ;;  %v6435_v44 = vsel %vm6371_vm9, 1, %v17161_v14 }
 0x505   :  { %v5928_v7 = vpop.permute.xlu1 %5927  ;;  %v5979_v29 = vpop.permute.xlu0 %5978  ;;  %v6225_v15 = vmax.f32 %v14218_v11, %v6161_v45  ;;  %vm6418_vm11 = vcmp.eq.f32.partialorder %v14670_v48, %v14654_v59  ;;  %vm6386_vm12 = vcmp.eq.f32.partialorder %v14654_v59, %v14670_v48  ;;  %v6289_v21 = vadd.f32 %v6161_v45, %v14218_v11 }
 0x506   :  { %6624 = vperm.xlu1 %8065, %v6467_v53   ;;  %6528 = vperm.xlu0 %8064, %v6435_v44   ;;  %vm6081_vm1 = vcmp.eq.s32.totalorder %v5979_v29, 1  ;;  %v6193_v5 = vmax.f32 %v17886_v39, %v6129_v36  ;;  %v6257_v12 = vadd.f32 %v6129_v36, %v17886_v39  ;;  %vm6048_vm13 = vcmp.eq.s32.totalorder %v14533_v28, 1  ;;  %v17888_v36 = vld [vmem:[#allocation31_spill] sm:$0xff] }
 0x507   :  { %v6145_v9 = vsel %vm6081_vm1, %v14218_v11, %v8751_v23  ;;  %v6177_v43 = vmax.f32 %v17885_v25, %v6113_v33  ;;  %v6241_v63 = vadd.f32 %v6113_v33, %v17885_v25  ;;  %vm6402_vm15 = vcmp.eq.f32.partialorder %v14660_v30, %v14674_v56 }
 0x508   :  { %vm6064_vm2 = vcmp.eq.s32.totalorder %v5928_v7, 1  ;;  %v6482_v45 = vsel %vm6418_vm11, 1, %v17161_v14  ;;  %v6450_v44 = vsel %vm6386_vm12, 1, %v17161_v14  ;;  %vm6370_vm3 = vcmp.eq.f32.partialorder %v14674_v56, %v14660_v30 }
 0x509   :  { %v5976_v53 = vpop.permute.xlu1 %5975  ;;  %v6024_v29 = vpop.permute.xlu0 %6023  ;;  %v6209_v11 = vmax.f32 %v14214_v8, %v6145_v9  ;;  %v6273_v39 = vadd.f32 %v6145_v9, %v14214_v8  ;;  %v14701_v25 = vsel %vm397_vm10, %v6225_v15, %v6289_v21  ;;  %v14705_v33 = vsel %vm397_vm10, %v6193_v5, %v6257_v12 }
 0x50a   :  { %vm6080_vm4 = vcmp.eq.s32.totalorder %v5976_v53, 1  ;;  %6669 = vperm.xlu1 %8065, %v6482_v45   ;;  %6573 = vperm.xlu0 %8064, %v6450_v44   ;;  %vm6096_vm5 = vcmp.eq.s32.totalorder %v6024_v29, 1  ;;  %17887 = vst [vmem:[#allocation84_spill] sm:$0xff] %v14701_v25  ;;  %v6112_v59 = vsel %vm6048_vm13, %v17888_v36, %v8751_v23  ;;  %v14713_v8 = vsel %vm397_vm10, %v6177_v43, %v6241_v63 }
 0x50b   :  { %v6160_v9 = vsel %vm6096_vm5, %v13828_v19, %v8751_v23  ;;  %v6128_v15 = vsel %vm6064_vm2, %v14232_v61, %v8751_v23  ;;  %v6144_v21 = vsel %vm6080_vm4, %v14251_v41, %v8751_v23  ;;  %v6466_v28 = vsel %vm6402_vm15, 1, %v17161_v14 }
 0x50c   :  { %v6434_v12 = vsel %vm6370_vm3, 1, %v17161_v14  ;;  %vm6047_vm6 = vcmp.eq.s32.totalorder %v14535_v38, 1  ;;  %v14733_v7 = vsel %vm397_vm10, %v6209_v11, %v6273_v39  ;;  %vm6417_vm7 = vcmp.eq.f32.partialorder %v14705_v33, %v14701_v25 }
 0x50d   :  { %v6021_v5 = vpop.permute.xlu1 %6020  ;;  %v5925_v43 = vpop.permute.xlu0 %5924  ;;  %vm6385_vm8 = vcmp.eq.f32.partialorder %v14701_v25, %v14705_v33  ;;  %v6224_v63 = vmax.f32 %v14251_v41, %v6160_v9  ;;  %v6288_v53 = vadd.f32 %v6160_v9, %v14251_v41  ;;  %v6192_v45 = vmax.f32 %v17888_v36, %v6128_v15 }
 0x50e   :  { %6621 = vperm.xlu1 %8065, %v6466_v28   ;;  %6525 = vperm.xlu0 %8064, %v6434_v12   ;;  %vm6095_vm14 = vcmp.eq.s32.totalorder %v6021_v5, 1  ;;  %vm6063_vm9 = vcmp.eq.s32.totalorder %v5925_v43, 1  ;;  %v6256_v44 = vadd.f32 %v6128_v15, %v17888_v36  ;;  %v6208_v29 = vmax.f32 %v14232_v61, %v6144_v21 }
 0x50f   :  { %v6272_v11 = vadd.f32 %v6144_v21, %v14232_v61  ;;  %v6481_v28 = vsel %vm6417_vm7, 1, %v17161_v14  ;;  %v6449_v12 = vsel %vm6385_vm8, 1, %v17161_v14  ;;  %vm6401_vm1 = vcmp.eq.f32.partialorder %v14713_v8, %v14733_v7 }
 0x510   :  { %vm6369_vm11 = vcmp.eq.f32.partialorder %v14733_v7, %v14713_v8  ;;  %vm6046_vm12 = vcmp.eq.s32.totalorder %v14529_v35, 1  ;;  %v6159_v41 = vsel %vm6095_vm14, %v13840_v51, %v8751_v23  ;;  %v6127_v61 = vsel %vm6063_vm9, %v14268_v4, %v8751_v23 }
 0x511   :  { %v5922_v39 = vpop.permute.xlu1 %5921  ;;  %v5973_v25 = vpop.permute.xlu0 %5972  ;;  %v6176_v36 = vmax.f32 %v13828_v19, %v6112_v59  ;;  %v6240_v9 = vadd.f32 %v6112_v59, %v13828_v19  ;;  %v6111_v15 = vsel %vm6047_vm6, %v13988_v42, %v8751_v23  ;;  %v14764_v21 = vsel %vm397_vm10, %v6224_v63, %v6288_v53 }
 0x512   :  { %6666 = vperm.xlu1 %8065, %v6481_v28   ;;  %6570 = vperm.xlu0 %8064, %v6449_v12   ;;  %17889 = vst [vmem:[#allocation87_spill] sm:$0xff] %v14764_v21  ;;  %v14768_v5 = vsel %vm397_vm10, %v6192_v45, %v6256_v44  ;;  %v14772_v43 = vsel %vm397_vm10, %v6208_v29, %v6272_v11  ;;  %v6465_v28 = vsel %vm6401_vm1, 1, %v17161_v14  ;;  %v6433_v19 = vsel %vm6369_vm11, 1, %v17161_v14  ;;  %v17890_v44 = vld [vmem:[#allocation62_spill] sm:$0xff] }
 0x513   :  { %v6223_v59 = vmax.f32 %v14272_v52, %v6159_v41  ;;  %v6287_v38 = vadd.f32 %v6159_v41, %v14272_v52  ;;  %v6191_v12 = vmax.f32 %v13988_v42, %v6127_v61  ;;  %vm6079_vm13 = vcmp.eq.s32.totalorder %v5973_v25, 1 }
 0x514   :  { %v6255_v45 = vadd.f32 %v6127_v61, %v13988_v42  ;;  %vm6416_vm15 = vcmp.eq.f32.partialorder %v14768_v5, %v14764_v21  ;;  %vm6384_vm2 = vcmp.eq.f32.partialorder %v14764_v21, %v14768_v5  ;;  %v6110_v29 = vsel %vm6046_vm12, %v17890_v44, %v8751_v23 }
 0x515   :  { %v5970_v63 = vpop.permute.xlu1 %5969  ;;  %v6018_v53 = vpop.permute.xlu0 %6017  ;;  %v14790_v25 = vsel %vm397_vm10, %v6176_v36, %v6240_v9  ;;  %v6175_v11 = vmax.f32 %v13840_v51, %v6111_v15  ;;  %v6143_v42 = vsel %vm6079_vm13, %v14272_v52, %v8751_v23  ;;  %v6480_v41 = vsel %vm6416_vm15, 1, %v17161_v14 }
 0x516   :  { %6618 = vperm.xlu1 %8065, %v6465_v28   ;;  %6522 = vperm.xlu0 %8064, %v6433_v19   ;;  %vm6094_vm3 = vcmp.eq.s32.totalorder %v6018_v53, 1  ;;  %v6448_v61 = vsel %vm6384_vm2, 1, %v17161_v14  ;;  %vm6400_vm4 = vcmp.eq.f32.partialorder %v14790_v25, %v14772_v43  ;;  %v14801_v35 = vsel %vm397_vm10, %v6223_v59, %v6287_v38 }
 0x517   :  { %v14805_v36 = vsel %vm397_vm10, %v6191_v12, %v6255_v45  ;;  %vm6062_vm5 = vcmp.eq.s32.totalorder %v5922_v39, 1  ;;  %vm6368_vm6 = vcmp.eq.f32.partialorder %v14772_v43, %v14790_v25  ;;  %v6239_v52 = vadd.f32 %v6111_v15, %v13840_v51 }
 0x518   :  { %v6207_v19 = vmax.f32 %v14268_v4, %v6143_v42  ;;  %v6271_v21 = vadd.f32 %v6143_v42, %v14268_v4  ;;  %vm6078_vm7 = vcmp.eq.s32.totalorder %v5970_v63, 1  ;;  %v6174_v59 = vmax.f32 %v13816_v47, %v6110_v29 }
 0x519   :  { %v5919_v28 = vpop.permute.xlu0 %5918  ;;  %v6015_v9 = vpop.permute.xlu1 %6014  ;;  %v6158_v38 = vsel %vm6094_vm3, %v13816_v47, %v8751_v23  ;;  %v6126_v39 = vsel %vm6062_vm5, %v14286_v16, %v8751_v23  ;;  %v6464_v12 = vsel %vm6400_vm4, 1, %v17161_v14  ;;  %v6432_v45 = vsel %vm6368_vm6, 1, %v17161_v14 }
 0x51a   :  { %6663 = vperm.xlu1 %8065, %v6480_v41   ;;  %6567 = vperm.xlu0 %8064, %v6448_v61   ;;  %vm6415_vm8 = vcmp.eq.f32.partialorder %v14805_v36, %v14801_v35  ;;  %v6238_v51 = vadd.f32 %v6110_v29, %v13816_v47  ;;  %vm6045_vm14 = vcmp.eq.s32.totalorder %v14531_v10, 1  ;;  %v6142_v4 = vsel %vm6078_vm7, %v14305_v57, %v8751_v23 }
 0x51b   :  { %vm6383_vm9 = vcmp.eq.f32.partialorder %v14801_v35, %v14805_v36  ;;  %v14830_v15 = vsel %vm397_vm10, %v6175_v11, %v6239_v52  ;;  %v14834_v63 = vsel %vm397_vm10, %v6207_v19, %v6271_v21  ;;  %v6222_v47 = vmax.f32 %v14305_v57, %v6158_v38 }
 0x51c   :  { %v6286_v53 = vadd.f32 %v6158_v38, %v14305_v57  ;;  %v6190_v29 = vmax.f32 %v17890_v44, %v6126_v39  ;;  %v6254_v42 = vadd.f32 %v6126_v39, %v17890_v44  ;;  %vm6093_vm1 = vcmp.eq.s32.totalorder %v6015_v9, 1 }
 0x51d   :  { %v5967_v41 = vpop.permute.xlu0 %5966  ;;  %v5916_v61 = vpop.permute.xlu1 %5915  ;;  %v6270_v11 = vadd.f32 %v6142_v4, %v14286_v16  ;;  %vm6061_vm11 = vcmp.eq.s32.totalorder %v5919_v28, 1  ;;  %v6447_v21 = vsel %vm6383_vm9, 1, %v17161_v14  ;;  %vm6399_vm12 = vcmp.eq.f32.partialorder %v14830_v15, %v14834_v63 }
 0x51e   :  { %6615 = vperm.xlu1 %8065, %v6464_v12   ;;  %6519 = vperm.xlu0 %8064, %v6432_v45   ;;  %v6479_v12 = vsel %vm6415_vm8, 1, %v17161_v14  ;;  %v6206_v45 = vmax.f32 %v14286_v16, %v6142_v4  ;;  %vm6367_vm13 = vcmp.eq.f32.partialorder %v14834_v63, %v14830_v15  ;;  %v14850_v57 = vsel %vm397_vm10, %v6222_v47, %v6286_v53 }
 0x51f   :  { %v6157_v44 = vsel %vm6093_vm1, %v13824_v18, %v8751_v23  ;;  %v14856_v16 = vsel %vm397_vm10, %v6174_v59, %v6238_v51  ;;  %v6109_v28 = vsel %vm6045_vm14, %v13960_v40, %v8751_v23  ;;  %v6125_v9 = vsel %vm6061_vm11, %v14322_v17, %v8751_v23 }
 0x520   :  { %vm6077_vm15 = vcmp.eq.s32.totalorder %v5967_v41, 1  ;;  %v14866_v19 = vsel %vm397_vm10, %v6190_v29, %v6254_v42  ;;  %v14870_v38 = vsel %vm397_vm10, %v6206_v45, %v6270_v11  ;;  %v6463_v59 = vsel %vm6399_vm12, 1, %v17161_v14 }
 0x521   :  { %v6012_v52 = vpop.permute.xlu0 %6011  ;;  %v6431_v39 = vsel %vm6367_vm13, 1, %v17161_v14  ;;  %v6221_v51 = vmax.f32 %v14326_v13, %v6157_v44  ;;  %v5964_v10 = vpop.permute.xlu1 %5963  ;;  %vm6414_vm2 = vcmp.eq.f32.partialorder %v14866_v19, %v14850_v57  ;;  %vm6382_vm3 = vcmp.eq.f32.partialorder %v14850_v57, %v14866_v19 }
 0x522   :  { %6660 = vperm.xlu1 %8065, %v6479_v12   ;;  %6564 = vperm.xlu0 %8064, %v6447_v21   ;;  %v6285_v41 = vadd.f32 %v6157_v44, %v14326_v13  ;;  %v6189_v4 = vmax.f32 %v13960_v40, %v6125_v9  ;;  %v6253_v47 = vadd.f32 %v6125_v9, %v13960_v40  ;;  %vm6044_vm4 = vcmp.eq.s32.totalorder %v14519_v20, 1 }
 0x523   :  { %v6141_v53 = vsel %vm6077_vm15, %v14326_v13, %v8751_v23  ;;  %v6173_v29 = vmax.f32 %v13824_v18, %v6109_v28  ;;  %v6237_v42 = vadd.f32 %v6109_v28, %v13824_v18  ;;  %vm6398_vm5 = vcmp.eq.f32.partialorder %v14856_v16, %v14870_v38 }
 0x524   :  { %vm6092_vm6 = vcmp.eq.s32.totalorder %v6012_v52, 1  ;;  %v6478_v45 = vsel %vm6414_vm2, 1, %v17161_v14  ;;  %v6446_v11 = vsel %vm6382_vm3, 1, %v17161_v14  ;;  %vm6366_vm7 = vcmp.eq.f32.partialorder %v14870_v38, %v14856_v16 }
 0x525   :  { %v5913_v12 = vpop.permute.xlu0 %5912  ;;  %vm6060_vm8 = vcmp.eq.s32.totalorder %v5916_v61, 1  ;;  %v6205_v40 = vmax.f32 %v14322_v17, %v6141_v53  ;;  %v6269_v13 = vadd.f32 %v6141_v53, %v14322_v17  ;;  %vm6076_vm14 = vcmp.eq.s32.totalorder %v5964_v10, 1  ;;  %v6009_v44 = vpop.permute.xlu1 %6008 }
 0x526   :  { %6612 = vperm.xlu1 %8065, %v6463_v59   ;;  %6516 = vperm.xlu0 %8064, %v6431_v39   ;;  %v14897_v18 = vsel %vm397_vm10, %v6221_v51, %v6285_v41  ;;  %v14901_v21 = vsel %vm397_vm10, %v6189_v4, %v6253_v47  ;;  %v6108_v61 = vsel %vm6044_vm4, %v13931_v3, %v8751_v23  ;;  %v6462_v20 = vsel %vm6398_vm5, 1, %v17161_v14 }
 0x527   :  { %v14909_v52 = vsel %vm397_vm10, %v6173_v29, %v6237_v42  ;;  %v6156_v17 = vsel %vm6092_vm6, %v17836_v50, %v8751_v23  ;;  %v6124_v28 = vsel %vm6060_vm8, %v14340_v60, %v8751_v23  ;;  %v6140_v9 = vsel %vm6076_vm14, %v14359_v58, %v8751_v23 }
 0x528   :  { %v6430_v59 = vsel %vm6366_vm7, 1, %v17161_v14  ;;  %v14927_v39 = vsel %vm397_vm10, %v6205_v40, %v6269_v13  ;;  %vm6413_vm9 = vcmp.eq.f32.partialorder %v14901_v21, %v14897_v18  ;;  %vm6381_vm1 = vcmp.eq.f32.partialorder %v14897_v18, %v14901_v21 }
 0x529   :  { %v5961_v51 = vpop.permute.xlu0 %5960  ;;  %v6220_v10 = vmax.f32 %v14359_v58, %v6156_v17  ;;  %v6284_v41 = vadd.f32 %v6156_v17, %v14359_v58  ;;  %vm6091_vm11 = vcmp.eq.s32.totalorder %v6009_v44, 1  ;;  %vm6059_vm12 = vcmp.eq.s32.totalorder %v5913_v12, 1  ;;  %v5910_v12 = vpop.permute.xlu1 %5909 }
 0x52a   :  { %6657 = vperm.xlu1 %8065, %v6478_v45   ;;  %6561 = vperm.xlu0 %8064, %v6446_v11   ;;  %v6188_v4 = vmax.f32 %v13931_v3, %v6124_v28  ;;  %v6252_v47 = vadd.f32 %v6124_v28, %v13931_v3  ;;  %v6204_v53 = vmax.f32 %v14340_v60, %v6140_v9  ;;  %v6477_v42 = vsel %vm6413_vm9, 1, %v17161_v14 }
 0x52b   :  { %v6268_v29 = vadd.f32 %v6140_v9, %v14340_v60  ;;  %v6445_v45 = vsel %vm6381_vm1, 1, %v17161_v14  ;;  %vm6397_vm13 = vcmp.eq.f32.partialorder %v14909_v52, %v14927_v39  ;;  %vm6365_vm15 = vcmp.eq.f32.partialorder %v14927_v39, %v14909_v52 }
 0x52c   :  { %v6155_v58 = vsel %vm6091_vm11, %v17840_v32, %v8751_v23  ;;  %v6123_v3 = vsel %vm6059_vm12, %v14376_v6, %v8751_v23  ;;  %v6172_v60 = vmax.f32 %v17836_v50, %v6108_v61  ;;  %v6236_v11 = vadd.f32 %v6108_v61, %v17836_v50 }
 0x52d   :  { %vm6043_vm2 = vcmp.eq.s32.totalorder %v14525_v55, 1  ;;  %v14954_v40 = vsel %vm397_vm10, %v6220_v10, %v6284_v41  ;;  %v14958_v13 = vsel %vm397_vm10, %v6188_v4, %v6252_v47  ;;  %v14962_v17 = vsel %vm397_vm10, %v6204_v53, %v6268_v29  ;;  %v6006_v44 = vpop.permute.xlu0 %6005  ;;  %v5958_v4 = vpop.permute.xlu1 %5957 }
 0x52e   :  { %6609 = vperm.xlu1 %8065, %v6462_v20   ;;  %6513 = vperm.xlu0 %8064, %v6430_v59   ;;  %v6461_v28 = vsel %vm6397_vm13, 1, %v17161_v14  ;;  %v6429_v9 = vsel %vm6365_vm15, 1, %v17161_v14  ;;  %v6219_v50 = vmax.f32 %v14380_v49, %v6155_v58  ;;  %v6283_v61 = vadd.f32 %v6155_v58, %v14380_v49 }
 0x52f   :  { %v6187_v20 = vmax.f32 %v17841_v2, %v6123_v3  ;;  %vm6075_vm3 = vcmp.eq.s32.totalorder %v5961_v51, 1  ;;  %v6251_v59 = vadd.f32 %v6123_v3, %v17841_v2  ;;  %vm6412_vm4 = vcmp.eq.f32.partialorder %v14958_v13, %v14954_v40 }
 0x530   :  { %vm6380_vm5 = vcmp.eq.f32.partialorder %v14954_v40, %v14958_v13  ;;  %v14976_v10 = vsel %vm397_vm10, %v6172_v60, %v6236_v11  ;;  %v6107_v41 = vsel %vm6043_vm2, %v17841_v2, %v8751_v23  ;;  %v6139_v51 = vsel %vm6075_vm3, %v14380_v49, %v8751_v23 }
 0x531   :  { %vm6090_vm6 = vcmp.eq.s32.totalorder %v6006_v44, 1  ;;  %v6476_v47 = vsel %vm6412_vm4, 1, %v17161_v14  ;;  %v6444_v53 = vsel %vm6380_vm5, 1, %v17161_v14  ;;  %vm6396_vm7 = vcmp.eq.f32.partialorder %v14976_v10, %v14962_v17  ;;  %v5907_v2 = vpop.permute.xlu0 %5906 }
 0x532   :  { %6654 = vperm.xlu1 %8065, %v6477_v42   ;;  %6558 = vperm.xlu0 %8064, %v6445_v45   ;;  %v14990_v29 = vsel %vm397_vm10, %v6219_v50, %v6283_v61  ;;  %v14994_v55 = vsel %vm397_vm10, %v6187_v20, %v6251_v59  ;;  %vm6058_vm8 = vcmp.eq.s32.totalorder %v5910_v12, 1  ;;  %vm6364_vm14 = vcmp.eq.f32.partialorder %v14962_v17, %v14976_v10 }
 0x533   :  { %v6203_v49 = vmax.f32 %v14376_v6, %v6139_v51  ;;  %v6267_v42 = vadd.f32 %v6139_v51, %v14376_v6  ;;  %vm6074_vm9 = vcmp.eq.s32.totalorder %v5958_v4, 1  ;;  %vm6042_vm1 = vcmp.eq.s32.totalorder %v14503_v27, 1  ;;  %v6003_v27 = vpop.permute.xlu1 %6002 }
 0x534   :  { %v6171_v45 = vmax.f32 %v17840_v32, %v6107_v41  ;;  %v6235_v58 = vadd.f32 %v6107_v41, %v17840_v32  ;;  %v6154_v3 = vsel %vm6090_vm6, %v17847_v62, %v8751_v23  ;;  %v6122_v12 = vsel %vm6058_vm8, %v14394_v37, %v8751_v23 }
 0x535   :  { %v6460_v60 = vsel %vm6396_vm7, 1, %v17161_v14  ;;  %v6428_v6 = vsel %vm6364_vm14, 1, %v17161_v14  ;;  %vm6411_vm11 = vcmp.eq.f32.partialorder %v14994_v55, %v14990_v29  ;;  %v6138_v32 = vsel %vm6074_vm9, %v14413_v0, %v8751_v23  ;;  %v5955_v59 = vpop.permute.xlu0 %5954 }
 0x536   :  { %6606 = vperm.xlu1 %8065, %v6461_v28   ;;  %6510 = vperm.xlu0 %8064, %v6429_v9   ;;  %vm6379_vm12 = vcmp.eq.f32.partialorder %v14990_v29, %v14994_v55  ;;  %v6106_v11 = vsel %vm6042_vm1, %v17845_v54, %v8751_v23  ;;  %v15023_v44 = vsel %vm397_vm10, %v6203_v49, %v6267_v42  ;;  %v6475_v41 = vsel %vm6411_vm11, 1, %v17161_v14  ;;  %v17892_v49 = vld [vmem:[#allocation79_spill] sm:$0xff] }
 0x537   :  { %v6218_v28 = vmax.f32 %v14413_v0, %v6154_v3  ;;  %v6282_v9 = vadd.f32 %v6154_v3, %v14413_v0  ;;  %v15029_v50 = vsel %vm397_vm10, %v6171_v45, %v6235_v58  ;;  %v6186_v61 = vmax.f32 %v17845_v54, %v6122_v12  ;;  %v5904_v45 = vpop.permute.xlu1 %5903 }
 0x538   :  { %v6250_v20 = vadd.f32 %v6122_v12, %v17845_v54  ;;  %v6202_v51 = vmax.f32 %v14394_v37, %v6138_v32  ;;  %vm6089_vm13 = vcmp.eq.s32.totalorder %v6003_v27, 1  ;;  %vm6057_vm15 = vcmp.eq.s32.totalorder %v5907_v2, 1 }
 0x539   :  { %v6443_v4 = vsel %vm6379_vm12, 1, %v17161_v14  ;;  %vm6395_vm2 = vcmp.eq.f32.partialorder %v15029_v50, %v15023_v44  ;;  %vm6363_vm3 = vcmp.eq.f32.partialorder %v15023_v44, %v15029_v50  ;;  %vm6041_vm4 = vcmp.eq.s32.totalorder %v14515_v34, 1 }
 0x53a   :  { %6651 = vperm.xlu1 %8065, %v6476_v47   ;;  %6555 = vperm.xlu0 %8064, %v6444_v53   ;;  %v6266_v47 = vadd.f32 %v6138_v32, %v14394_v37  ;;  %v15044_v54 = vsel %vm397_vm10, %v6218_v28, %v6282_v9  ;;  %v6170_v0 = vmax.f32 %v17847_v62, %v6106_v11  ;;  %v17891_v37 = vld [vmem:[#allocation25_spill] sm:$0xff]  ;;  %vm6073_vm5 = vcmp.eq.s32.totalorder %v5955_v59, 1 }
 0x53b   :  { %v6234_v53 = vadd.f32 %v6106_v11, %v17847_v62  ;;  %v6153_v2 = vsel %vm6089_vm13, %v17891_v37, %v8751_v23  ;;  %v6121_v42 = vsel %vm6057_vm15, %v17892_v49, %v8751_v23  ;;  %v15054_v58 = vsel %vm397_vm10, %v6186_v61, %v6250_v20  ;;  %v6000_v62 = vpop.permute.xlu0 %5999  ;;  %v17894_v11 = vld [vmem:[#allocation23_spill] sm:$0xff] }
 0x53c   :  { %v6459_v3 = vsel %vm6395_vm2, 1, %v17161_v14  ;;  %v6427_v12 = vsel %vm6363_vm3, 1, %v17161_v14  ;;  %vm6410_vm6 = vcmp.eq.f32.partialorder %v15054_v58, %v15044_v54  ;;  %vm6378_vm7 = vcmp.eq.f32.partialorder %v15044_v54, %v15054_v58 }
 0x53d   :  { %v6185_v28 = vmax.f32 %v17894_v11, %v6121_v42  ;;  %v6249_v9 = vadd.f32 %v6121_v42, %v17894_v11  ;;  %v6105_v61 = vsel %vm6041_vm4, %v17894_v11, %v8751_v23  ;;  %v15078_v59 = vsel %vm397_vm10, %v6170_v0, %v6234_v53 }
 0x53e   :  { %6603 = vperm.xlu1 %8065, %v6460_v60   ;;  %6507 = vperm.xlu0 %8064, %v6428_v6   ;;  %v15060_v60 = vsel %vm397_vm10, %v6202_v51, %v6266_v47  ;;  %v17893_v6 = vld [vmem:[#allocation70_spill] sm:$0xff]  ;;  %vm6088_vm8 = vcmp.eq.s32.totalorder %v6000_v62, 1  ;;  %v6442_v51 = vsel %vm6378_vm7, 1, %v17161_v14  ;;  %vm6056_vm14 = vcmp.eq.s32.totalorder %v5904_v45, 1 }
 0x53f   :  { %v6217_v32 = vmax.f32 %v17893_v6, %v6153_v2  ;;  %v6281_v27 = vadd.f32 %v6153_v2, %v17893_v6  ;;  %v6137_v20 = vsel %vm6073_vm5, %v17893_v6, %v8751_v23  ;;  %vm6394_vm9 = vcmp.eq.f32.partialorder %v15078_v59, %v15060_v60  ;;  %v17895_v2 = vld [vmem:[#allocation39_spill] sm:$0xff] }
 0x540   :  { %vm6362_vm1 = vcmp.eq.f32.partialorder %v15060_v60, %v15078_v59  ;;  %v15092_v47 = vsel %vm397_vm10, %v6185_v28, %v6249_v9  ;;  %v6201_v0 = vmax.f32 %v17892_v49, %v6137_v20  ;;  %v6265_v53 = vadd.f32 %v6137_v20, %v17892_v49  ;;  %v17897_v6 = vld [vmem:[#allocation35_spill] sm:$0xff]  ;;  %v5997_v28 = vpop.permute.xlu0 %5996  ;;  %v17900_v9 = vld [vmem:[#allocation41_spill] sm:$0xff] }
 0x541   :  { %v15088_v34 = vsel %vm397_vm10, %v6217_v32, %v6281_v27  ;;  %vm6040_vm11 = vcmp.eq.s32.totalorder %v17895_v2, 1  ;;  %v6169_v42 = vmax.f32 %v17891_v37, %v6105_v61  ;;  %v6233_v45 = vadd.f32 %v6105_v61, %v17891_v37  ;;  %v17898_v37 = vld [vmem:[#allocation14_spill] sm:$0xff] }
 0x542   :  { %6648 = vperm.xlu1 %8065, %v6475_v41   ;;  %6552 = vperm.xlu0 %8064, %v6443_v4   ;;  %v6474_v41 = vsel %vm6410_vm6, 1, %v17161_v14  ;;  %v5952_v4 = vpop.permute.xlu1 %5951  ;;  %v6120_v32 = vsel %vm6056_vm14, %v17897_v6, %v8751_v23  ;;  %v6458_v27 = vsel %vm6394_vm9, 1, %v17161_v14  ;;  %v6426_v11 = vsel %vm6362_vm1, 1, %v17161_v14 }
 0x543   :  { %vm6072_vm12 = vcmp.eq.s32.totalorder %v5952_v4, 1  ;;  %vm6409_vm13 = vcmp.eq.f32.partialorder %v15092_v47, %v15088_v34  ;;  %vm6377_vm15 = vcmp.eq.f32.partialorder %v15088_v34, %v15092_v47  ;;  %v6104_v49 = vsel %vm6040_vm11, %v17898_v37, %v8751_v23 }
 0x544   :  { %v15114_v62 = vsel %vm397_vm10, %v6201_v0, %v6265_v53  ;;  %v6184_v4 = vmax.f32 %v17898_v37, %v6120_v32  ;;  %v6136_v2 = vsel %vm6072_vm12, %v17900_v9, %v8751_v23  ;;  %vm6087_vm3 = vcmp.eq.s32.totalorder %v5997_v28, 1 }
 0x545   :  { %17899 = vst [vmem:[#allocation86_spill] sm:$0xff] %v15114_v62  ;;  %v6473_v0 = vsel %vm6409_vm13, 1, %v17161_v14  ;;  %v6441_v53 = vsel %vm6377_vm15, 1, %v17161_v14 }
 0x546   :  { %6600 = vperm.xlu1 %8065, %v6459_v3   ;;  %6504 = vperm.xlu0 %8064, %v6427_v12   ;;  %v17896_v3 = vld [vmem:[#allocation9_spill] sm:$0xff] }
 0x547   :  { %v6152_v12 = vsel %vm6088_vm8, %v17896_v3, %v8751_v23  ;;  %v6168_v28 = vmax.f32 %v17896_v3, %v6104_v49 }
 0x548   :  { %v6216_v61 = vmax.f32 %v17900_v9, %v6152_v12  ;;  %v6280_v20 = vadd.f32 %v6152_v12, %v17900_v9  ;;  %v6264_v12 = vadd.f32 %v6136_v2, %v17897_v6  ;;  %v17905_v9 = vld [vmem:[#allocation66_spill] sm:$0xff] }
 0x54a   :  { %6645 = vperm.xlu1 %8065, %v6474_v41   ;;  %6549 = vperm.xlu0 %8064, %v6442_v51   ;;  %v15120_v41 = vsel %vm397_vm10, %v6169_v42, %v6233_v45  ;;  %v17902_v51 = vld [vmem:[#allocation32_spill] sm:$0xff]  ;;  %v17903_v42 = vld [vmem:[#allocation37_spill] sm:$0xff]  ;;  %v6200_v45 = vmax.f32 %v17897_v6, %v6136_v2 }
 0x54b   :  { %17901 = vst [vmem:[#allocation93_spill] sm:$0xff] %v15120_v41  ;;  %vm6055_vm2 = vcmp.eq.s32.totalorder %v17902_v51, 1  ;;  %vm6393_vm4 = vcmp.eq.f32.partialorder %v15120_v41, %v15114_v62  ;;  %vm6361_vm5 = vcmp.eq.f32.partialorder %v15114_v62, %v15120_v41  ;;  %vm6039_vm6 = vcmp.eq.s32.totalorder %v17903_v42, 1 }
 0x54c   :  { %v6457_v6 = vsel %vm6393_vm4, 1, %v17161_v14  ;;  %v15164_v51 = vsel %vm397_vm10, %v6200_v45, %v6264_v12 }
 0x54d   :  { %17909 = vst [vmem:[#allocation47_spill] sm:$0xff] %v15164_v51 }
 0x54e   :  { %6597 = vperm.xlu1 %8065, %v6458_v27   ;;  %6501 = vperm.xlu0 %8064, %v6426_v11   ;;  %v6248_v27 = vadd.f32 %v6120_v32, %v17898_v37  ;;  %v5949_v11 = vpop.permute.xlu1 %5948  ;;  %v15138_v32 = vsel %vm397_vm10, %v6216_v61, %v6280_v20  ;;  %v6232_v37 = vadd.f32 %v6104_v49, %v17896_v3  ;;  %v6425_v61 = vsel %vm6361_vm5, 1, %v17161_v14  ;;  %v5994_v20 = vpop.permute.xlu0 %5993  ;;  %v17908_v3 = vld [vmem:[#allocation24_spill] sm:$0xff] }
 0x54f   :  { %17904 = vst [vmem:[#allocation54_spill] sm:$0xff] %v15138_v32  ;;  %vm6071_vm7 = vcmp.eq.s32.totalorder %v5949_v11, 1  ;;  %v6103_v49 = vsel %vm6039_vm6, %v17908_v3, %v8751_v23  ;;  %vm6086_vm1 = vcmp.eq.s32.totalorder %v5994_v20, 1 }
 0x550   :  { %v15150_v41 = vsel %vm397_vm10, %v6184_v4, %v6248_v27  ;;  %v17910_v4 = vld [vmem:[#allocation43_spill] sm:$0xff]  ;;  %v15170_v11 = vsel %vm397_vm10, %v6168_v28, %v6232_v37 }
 0x551   :  { %17907 = vst [vmem:[#allocation56_spill] sm:$0xff] %v15150_v41  ;;  %vm6408_vm8 = vcmp.eq.f32.partialorder %v15150_v41, %v15138_v32  ;;  %vm6376_vm14 = vcmp.eq.f32.partialorder %v15138_v32, %v15150_v41  ;;  %17911 = vst [vmem:[#allocation45_spill] sm:$0xff] %v15170_v11  ;;  %v6135_v42 = vsel %vm6071_vm7, %v17910_v4, %v8751_v23 }
 0x552   :  { %6642 = vperm.xlu1 %8065, %v6473_v0   ;;  %6546 = vperm.xlu0 %8064, %v6441_v53   ;;  %v6119_v0 = vsel %vm6055_vm2, %v17905_v9, %v8751_v23  ;;  %v17906_v53 = vld [vmem:[#allocation15_spill] sm:$0xff]  ;;  %v6472_v45 = vsel %vm6408_vm8, 1, %v17161_v14  ;;  %v6440_v12 = vsel %vm6376_vm14, 1, %v17161_v14  ;;  %v5946_v41 = vpop.permute.xlu1 %5945  ;;  %vm6392_vm11 = vcmp.eq.f32.partialorder %v15170_v11, %v15164_v51 }
 0x553   :  { %v6151_v62 = vsel %vm6087_vm3, %v17906_v53, %v8751_v23  ;;  %v6247_v32 = vadd.f32 %v6119_v0, %v17908_v3  ;;  %vm6360_vm12 = vcmp.eq.f32.partialorder %v15164_v51, %v15170_v11  ;;  %v6199_v28 = vmax.f32 %v17905_v9, %v6135_v42 }
 0x554   :  { %v6215_v2 = vmax.f32 %v17910_v4, %v6151_v62  ;;  %v6279_v27 = vadd.f32 %v6151_v62, %v17910_v4  ;;  %v17913_v62 = vld [vmem:[#allocation77_spill] sm:$0xff]  ;;  %v6263_v37 = vadd.f32 %v6135_v42, %v17905_v9  ;;  %v6167_v20 = vmax.f32 %v17906_v53, %v6103_v49  ;;  %v17915_v4 = vld [vmem:[#allocation30_spill] sm:$0xff] }
 0x555   :  { %vm6038_vm13 = vcmp.eq.s32.totalorder %v17913_v62, 1  ;;  %vm6070_vm15 = vcmp.eq.s32.totalorder %v5946_v41, 1  ;;  %v6456_v9 = vsel %vm6392_vm11, 1, %v17161_v14  ;;  %v17920_v62 = vld [vmem:[#allocation44_spill] sm:$0xff] }
 0x556   :  { %6594 = vperm.xlu1 %8065, %v6457_v6   ;;  %6498 = vperm.xlu0 %8064, %v6425_v61   ;;  %v17912_v6 = vld [vmem:[#allocation48_spill] sm:$0xff]  ;;  %v6183_v61 = vmax.f32 %v17908_v3, %v6119_v0  ;;  %v15188_v0 = vsel %vm397_vm10, %v6215_v2, %v6279_v27  ;;  %v6231_v3 = vadd.f32 %v6103_v49, %v17906_v53  ;;  %v6424_v2 = vsel %vm6360_vm12, 1, %v17161_v14  ;;  %v5991_v27 = vpop.permute.xlu0 %5990 }
 0x557   :  { %vm6054_vm9 = vcmp.eq.s32.totalorder %v17912_v6, 1  ;;  %17914 = vst [vmem:[#allocation11_spill] sm:$0xff] %v15188_v0  ;;  %v15210_v53 = vsel %vm397_vm10, %v6199_v28, %v6263_v37  ;;  %v17919_v6 = vld [vmem:[#allocation26_spill] sm:$0xff]  ;;  %vm6085_vm4 = vcmp.eq.s32.totalorder %v5991_v27, 1  ;;  %vm6053_vm7 = vcmp.eq.s32.totalorder %v17920_v62, 1 }
 0x558   :  { %v15200_v11 = vsel %vm397_vm10, %v6183_v61, %v6247_v32  ;;  %17917 = vst [vmem:[#allocation8_spill] sm:$0xff] %v15210_v53  ;;  %v17918_v32 = vld [vmem:[#allocation76_spill] sm:$0xff]  ;;  %v6102_v61 = vsel %vm6038_vm13, %v17919_v6, %v8751_v23  ;;  %v15220_v42 = vsel %vm397_vm10, %v6167_v20, %v6231_v3 }
 0x559   :  { %vm6407_vm2 = vcmp.eq.f32.partialorder %v15200_v11, %v15188_v0  ;;  %vm6375_vm3 = vcmp.eq.f32.partialorder %v15188_v0, %v15200_v11  ;;  %v5943_v0 = vpop.permute.xlu1 %5942  ;;  %vm6391_vm5 = vcmp.eq.f32.partialorder %v15220_v42, %v15210_v53  ;;  %vm6359_vm6 = vcmp.eq.f32.partialorder %v15210_v53, %v15220_v42 }
 0x55a   :  { %6639 = vperm.xlu1 %8065, %v6472_v45   ;;  %6543 = vperm.xlu0 %8064, %v6440_v12   ;;  %v6118_v45 = vsel %vm6054_vm9, %v17915_v4, %v8751_v23  ;;  %v17916_v12 = vld [vmem:[#allocation17_spill] sm:$0xff]  ;;  %v6471_v37 = vsel %vm6407_vm2, 1, %v17161_v14  ;;  %vm6069_vm14 = vcmp.eq.s32.totalorder %v5943_v0, 1  ;;  %v17927_v0 = vld [vmem:[#allocation80_spill] sm:$0xff] }
 0x55b   :  { %v6150_v51 = vsel %vm6086_vm1, %v17916_v12, %v8751_v23  ;;  %v6246_v28 = vadd.f32 %v6118_v45, %v17919_v6  ;;  %v6166_v27 = vmax.f32 %v17916_v12, %v6102_v61 }
 0x55c   :  { %v6214_v49 = vmax.f32 %v17918_v32, %v6150_v51  ;;  %v6278_v41 = vadd.f32 %v6150_v51, %v17918_v32  ;;  %v6439_v51 = vsel %vm6375_vm3, 1, %v17161_v14 }
 0x55e   :  { %6591 = vperm.xlu1 %8065, %v6456_v9   ;;  %6495 = vperm.xlu0 %8064, %v6424_v2   ;;  %v6182_v9 = vmax.f32 %v17919_v6, %v6118_v45  ;;  %v6134_v2 = vsel %vm6070_vm15, %v17918_v32, %v8751_v23  ;;  %v15237_v45 = vsel %vm397_vm10, %v6214_v49, %v6278_v41  ;;  %v17922_v6 = vld [vmem:[#allocation74_spill] sm:$0xff] }
 0x55f   :  { %v6198_v20 = vmax.f32 %v17915_v4, %v6134_v2  ;;  %v6262_v3 = vadd.f32 %v6134_v2, %v17915_v4  ;;  %17921 = vst [vmem:[#allocation90_spill] sm:$0xff] %v15237_v45  ;;  %v6230_v32 = vadd.f32 %v6102_v61, %v17916_v12  ;;  %vm6037_vm8 = vcmp.eq.s32.totalorder %v17922_v6, 1  ;;  %v17925_v49 = vld [vmem:[#allocation34_spill] sm:$0xff]  ;;  %v17929_v6 = vld [vmem:[#allocation28_spill] sm:$0xff] }
 0x560   :  { %v15246_v62 = vsel %vm397_vm10, %v6182_v9, %v6246_v28  ;;  %v6455_v4 = vsel %vm6391_vm5, 1, %v17161_v14  ;;  %v6423_v2 = vsel %vm6359_vm6, 1, %v17161_v14  ;;  %v6117_v41 = vsel %vm6053_vm7, %v17925_v49, %v8751_v23 }
 0x561   :  { %17924 = vst [vmem:[#allocation83_spill] sm:$0xff] %v15246_v62  ;;  %vm6406_vm9 = vcmp.eq.f32.partialorder %v15246_v62, %v15237_v45  ;;  %vm6374_vm1 = vcmp.eq.f32.partialorder %v15237_v45, %v15246_v62  ;;  %v15258_v12 = vsel %vm397_vm10, %v6198_v20, %v6262_v3  ;;  %v15264_v28 = vsel %vm397_vm10, %v6166_v27, %v6230_v32 }
 0x562   :  { %6636 = vperm.xlu1 %8065, %v6471_v37   ;;  %6540 = vperm.xlu0 %8064, %v6439_v51   ;;  %v17923_v37 = vld [vmem:[#allocation16_spill] sm:$0xff]  ;;  %17926 = vst [vmem:[#allocation91_spill] sm:$0xff] %v15258_v12  ;;  %17928 = vst [vmem:[#allocation58_spill] sm:$0xff] %v15264_v28  ;;  %v6181_v45 = vmax.f32 %v17929_v6, %v6117_v41  ;;  %v6245_v62 = vadd.f32 %v6117_v41, %v17929_v6  ;;  %v6470_v20 = vsel %vm6406_vm9, 1, %v17161_v14 }
 0x563   :  { %v6149_v51 = vsel %vm6085_vm4, %v17923_v37, %v8751_v23  ;;  %v6438_v3 = vsel %vm6374_vm1, 1, %v17161_v14  ;;  %vm6390_vm11 = vcmp.eq.f32.partialorder %v15264_v28, %v15258_v12  ;;  %vm6358_vm12 = vcmp.eq.f32.partialorder %v15258_v12, %v15264_v28  ;;  %v17939_v12 = vld [vmem:[#allocation49_spill] sm:$0xff] }
 0x564   :  { %v6213_v61 = vmax.f32 %v17927_v0, %v6149_v51  ;;  %v6277_v9 = vadd.f32 %v6149_v51, %v17927_v0  ;;  %v17940_v28 = vmov 0.0  }
 0x566   :  { %6588 = vperm.xlu1 %8065, %v6455_v4   ;;  %6492 = vperm.xlu0 %8064, %v6423_v2   ;;  %v6101_v4 = vsel %vm6037_vm8, %v17929_v6, %v8751_v23  ;;  %v6133_v2 = vsel %vm6069_vm14, %v17927_v0, %v8751_v23  ;;  %v15282_v51 = vsel %vm397_vm10, %v6213_v61, %v6277_v9 }
 0x567   :  { %v6197_v27 = vmax.f32 %v17925_v49, %v6133_v2  ;;  %v6261_v32 = vadd.f32 %v6133_v2, %v17925_v49  ;;  %17930 = vst [vmem:[#allocation82_spill] sm:$0xff] %v15282_v51  ;;  %v6165_v41 = vmax.f32 %v17923_v37, %v6101_v4  ;;  %v6229_v0 = vadd.f32 %v6101_v4, %v17923_v37 }
 0x568   :  { %v15288_v6 = vsel %vm397_vm10, %v6181_v45, %v6245_v62 }
 0x569   :  { %17931 = vst [vmem:[#allocation88_spill] sm:$0xff] %v15288_v6  ;;  %vm6405_vm13 = vcmp.eq.f32.partialorder %v15288_v6, %v15282_v51  ;;  %vm6373_vm15 = vcmp.eq.f32.partialorder %v15282_v51, %v15288_v6  ;;  %v15298_v49 = vsel %vm397_vm10, %v6197_v27, %v6261_v32  ;;  %v15302_v45 = vsel %vm397_vm10, %v6165_v41, %v6229_v0  ;;  %v17934_v32 = vld [vmem:[#allocation64_spill] sm:$0xff] }
 0x56a   :  { %6633 = vperm.xlu1 %8065, %v6470_v20   ;;  %6537 = vperm.xlu0 %8064, %v6438_v3   ;;  %v6454_v20 = vsel %vm6390_vm11, 1, %v17161_v14  ;;  %v6422_v3 = vsel %vm6358_vm12, 1, %v17161_v14  ;;  %17932 = vst [vmem:[#allocation55_spill] sm:$0xff] %v15298_v49  ;;  %17933 = vst [vmem:[#allocation57_spill] sm:$0xff] %v15302_v45  ;;  %v6469_v37 = vsel %vm6405_vm13, 1, %v17161_v14  ;;  %v6437_v62 = vsel %vm6373_vm15, 1, %v17161_v14 }
 0x56b   :  { %vm6389_vm2 = vcmp.eq.f32.partialorder %v15302_v45, %v15298_v49  ;;  %vm6357_vm3 = vcmp.eq.f32.partialorder %v15298_v49, %v15302_v45  ;;  %v17935_v0 = vlaneseq }
 0x56c   :  { %v6453_v4 = vsel %vm6389_vm2, 1, %v17161_v14  ;;  %v6421_v2 = vsel %vm6357_vm3, 1, %v17161_v14 }
 0x56e   :  { %6585 = vperm.xlu1 %8065, %v6454_v20   ;;  %6489 = vperm.xlu0 %8064, %v6422_v3   ;;  %v15317_v20 = vshrl.u32 %v17935_v0, 7 }
 0x570   :  { %v195_v14 = vsub.s32 1, %v15317_v20  ;;  %v203_v0 = vsub.s32 3, %v15317_v20  ;;  %v199_v53 = vsub.s32 2, %v15317_v20 }
 0x572   :  { %6630 = vperm.xlu1 %8065, %v6469_v37   ;;  %6534 = vperm.xlu0 %8064, %v6437_v62  }
 0x575   :  { %v6676_v61 = vpop.permute.xlu1 %6675  ;;  %v6580_v9 = vpop.permute.xlu0 %6579 }
 0x576   :  { %vm6740_vm4 = vcmp.eq.s32.totalorder %v6676_v61, 1  ;;  %vm6708_vm5 = vcmp.eq.s32.totalorder %v6580_v9, 1  ;;  %6582 = vperm.xlu1 %8065, %v6453_v4   ;;  %6486 = vperm.xlu0 %8064, %v6421_v2   ;;  %v15328_v9 = vld [vmem:[%s91_s27] sm:$0xf] }
 0x577   :  { %v6804_v27 = vsel %vm6740_vm4, %v14569_v24, %v8751_v23  ;;  %v6772_v41 = vsel %vm6708_vm5, %v17934_v32, %v8751_v23 }
 0x578   :  { %v6868_v3 = vmax.f32 %v17934_v32, %v6804_v27  ;;  %v6932_v37 = vadd.f32 %v6804_v27, %v17934_v32  ;;  %v6836_v62 = vmax.f32 %v14569_v24, %v6772_v41  ;;  %v6900_v61 = vadd.f32 %v6772_v41, %v14569_v24  ;;  %v6997_v32 = vld [vmem:[%s104_s30] sm:$0xf] }
 0x579   :  { %v6628_v4 = vpop.permute.xlu1 %6627  ;;  %v6532_v2 = vpop.permute.xlu0 %6531  ;;  %v15360_v6 = vrot.slane %v6997_v32, %v203_v0 }
 0x57a   :  { %vm6724_vm6 = vcmp.eq.s32.totalorder %v6628_v4, 1  ;;  %vm6692_vm7 = vcmp.eq.s32.totalorder %v6532_v2, 1  ;;  %v6964_v27 = vsel %vm397_vm10, %v6836_v62, %v6900_v61  ;;  %v6996_v24 = vsel %vm397_vm10, %v6868_v3, %v6932_v37 }
 0x57b   :  { %v6788_v41 = vsel %vm6724_vm6, %v14593_v46, %v8751_v23  ;;  %v6756_v49 = vsel %vm6692_vm7, %v14573_v22, %v8751_v23  ;;  %7895 = vmatprep.subr.mxu0 %v6964_v27  ;;  %7975 = vmatprep.subr.mxu1 %v6996_v24  ;;  %v15346_v4 = vrot.slane %v15328_v9, %v195_v14  ;;  %v191_v62 = vsub.s32 0, %v15317_v20 }
 0x57c   :  { %v6852_v3 = vmax.f32 %v14573_v22, %v6788_v41  ;;  %v6916_v37 = vadd.f32 %v6788_v41, %v14573_v22  ;;  %v6820_v61 = vmax.f32 %v14593_v46, %v6756_v49  ;;  %v6884_v2 = vadd.f32 %v6756_v49, %v14593_v46  ;;  %v17938_v49 = vld [vmem:[#allocation78_spill] sm:$0xff] }
 0x57d   :  { %17936 = vst [vmem:[#allocation92_spill] sm:$0xff] %v15346_v4  ;;  %v6673_v45 = vpop.permute.xlu1 %6672  ;;  %v6577_v51 = vpop.permute.xlu0 %6576  ;;  %vm206_vm8 = vcmp.eq.s32.totalorder %v15346_v4, %v15317_v20  ;;  %v15355_v27 = vrot.slane %v6997_v32, %v195_v14  ;;  %v15358_v24 = vrot.slane %v15328_v9, %v203_v0 }
 0x57e   :  { %vm6739_vm14 = vcmp.eq.s32.totalorder %v6673_v45, 1  ;;  %vm6707_vm9 = vcmp.eq.s32.totalorder %v6577_v51, 1  ;;  %v6948_v22 = vsel %vm397_vm10, %v6820_v61, %v6884_v2  ;;  %v6980_v46 = vsel %vm397_vm10, %v6852_v3, %v6916_v37 }
 0x57f   :  { %17937 = vst [vmem:[#allocation46_spill] sm:$0xff] %v15355_v27  ;;  %v6803_v41 = vsel %vm6739_vm14, %v17938_v49, %v8751_v23  ;;  %v6771_v14 = vsel %vm6707_vm9, %v17939_v12, %v8751_v23  ;;  %7896 = vmatpush3.msra.mxu0 %v6948_v22  ;;  %7976 = vmatpush3.msra.mxu1 %v6980_v46  ;;  %v7832_v4 = vsel %vm206_vm8, 1.0, %v17940_v28 }
 0x580   :  { %vm208_vm1 = vcmp.eq.s32.totalorder %v15358_v24, %v15317_v20  ;;  %v6867_v51 = vmax.f32 %v17939_v12, %v6803_v41  ;;  %v6931_v45 = vadd.f32 %v6803_v41, %v17939_v12  ;;  %v6835_v0 = vmax.f32 %v17938_v49, %v6771_v14 }
 0x581   :  { %v6899_v3 = vadd.f32 %v6771_v14, %v17938_v49  ;;  %v6625_v37 = vpop.permute.xlu1 %6624  ;;  %v6529_v61 = vpop.permute.xlu0 %6528  ;;  %v7020_v2 = vmul.f32 %v7832_v4, %v15355_v27  ;;  %v7834_v22 = vsel %vm208_vm1, 1.0, %v17940_v28  ;;  %v15380_v46 = vrot.slane %v15328_v9, %v191_v62 }
 0x582   :  { %vm6723_vm11 = vcmp.eq.s32.totalorder %v6625_v37, 1  ;;  %vm6691_vm12 = vcmp.eq.s32.totalorder %v6529_v61, 1  ;;  %v6995_v41 = vsel %vm397_vm10, %v6867_v51, %v6931_v45  ;;  %v7022_v14 = vmul.f32 %v7834_v22, %v15360_v6 }
 0x583   :  { %v6963_v12 = vsel %vm397_vm10, %v6835_v0, %v6899_v3  ;;  %v6787_v49 = vsel %vm6723_vm11, %v14630_v31, %v8751_v23  ;;  %v6755_v4 = vsel %vm6691_vm12, %v14634_v26, %v8751_v23  ;;  %7977 = vmatprep.subr.mxu1 %v6995_v41  ;;  %7147 = vmatprep.mubr.f32.mxu0 %v7020_v2  ;;  %v17941_v41 = vld [vmem:[#allocation81_spill] sm:$0xff] }
 0x584   :  { %7897 = vmatprep.subr.mxu0 %v6963_v12  ;;  %v6851_v27 = vmax.f32 %v14634_v26, %v6787_v49  ;;  %v6915_v37 = vadd.f32 %v6787_v49, %v14634_v26  ;;  %v6819_v61 = vmax.f32 %v14630_v31, %v6755_v4  ;;  %v6883_v0 = vadd.f32 %v6755_v4, %v14630_v31 }
 0x585   :  { %v6670_v51 = vpop.permute.xlu1 %6669  ;;  %v6574_v45 = vpop.permute.xlu0 %6573  ;;  %7292 = vmatprep.mubr.f32.mxu1 %v7022_v14  ;;  %vm205_vm13 = vcmp.eq.s32.totalorder %v15380_v46, %v15317_v20  ;;  %v15398_v3 = vrot.slane %v6997_v32, %v191_v62  ;;  %v15401_v12 = vrot.slane %v15328_v9, %v199_v53  ;;  %v15403_v22 = vrot.slane %v6997_v32, %v199_v53 }
 0x586   :  { %vm6738_vm15 = vcmp.eq.s32.totalorder %v6670_v51, 1  ;;  %vm6706_vm2 = vcmp.eq.s32.totalorder %v6574_v45, 1  ;;  %v6947_v26 = vsel %vm397_vm10, %v6819_v61, %v6883_v0  ;;  %v6979_v31 = vsel %vm397_vm10, %v6851_v27, %v6915_v37 }
 0x587   :  { %v6802_v2 = vsel %vm6738_vm15, %v14670_v48, %v8751_v23  ;;  %v6770_v62 = vsel %vm6706_vm2, %v17941_v41, %v8751_v23  ;;  %7898 = vmatpush3.msra.mxu0 %v6947_v26  ;;  %7978 = vmatpush3.msra.mxu1 %v6979_v31  ;;  %v7831_v9 = vsel %vm205_vm13, 1.0, %v17940_v28  ;;  %vm207_vm3 = vcmp.eq.s32.totalorder %v15401_v12, %v15317_v20 }
 0x588   :  { %v6866_v53 = vmax.f32 %v17941_v41, %v6802_v2  ;;  %v6930_v32 = vadd.f32 %v6802_v2, %v17941_v41  ;;  %v6834_v49 = vmax.f32 %v14670_v48, %v6770_v62  ;;  %v6898_v27 = vadd.f32 %v6770_v62, %v14670_v48 }
 0x589   :  { %v6622_v4 = vpop.permute.xlu1 %6621  ;;  %v6526_v14 = vpop.permute.xlu0 %6525  ;;  %v15421_v37 = vmul.f32 %v7831_v9, %v15398_v3  ;;  %v7833_v61 = vsel %vm207_vm3, 1.0, %v17940_v28  ;;  %v15425_v0 = vadd.s32 8, %v15317_v20 }
 0x58a   :  { %vm6722_vm4 = vcmp.eq.s32.totalorder %v6622_v4, 1  ;;  %vm6690_vm5 = vcmp.eq.s32.totalorder %v6526_v14, 1  ;;  %v6962_v51 = vsel %vm397_vm10, %v6834_v49, %v6898_v27  ;;  %v6994_v45 = vsel %vm397_vm10, %v6866_v53, %v6930_v32 }
 0x58b   :  { %v6786_v48 = vsel %vm6722_vm4, %v14660_v30, %v8751_v23  ;;  %v6754_v26 = vsel %vm6690_vm5, %v14674_v56, %v8751_v23  ;;  %7899 = vmatprep.subr.mxu0 %v6962_v51  ;;  %7979 = vmatprep.subr.mxu1 %v6994_v45  ;;  %v15436_v31 = vmul.f32 %v7833_v61, %v15403_v22 }
 0x58c   :  { %v6850_v2 = vmax.f32 %v14674_v56, %v6786_v48  ;;  %v6914_v41 = vadd.f32 %v6786_v48, %v14674_v56  ;;  %v6818_v62 = vmax.f32 %v14660_v30, %v6754_v26  ;;  %v6882_v9 = vadd.f32 %v6754_v26, %v14660_v30  ;;  %v17942_v30 = vld [vmem:[#allocation84_spill] sm:$0xff] }
 0x58d   :  { %v6667_v53 = vpop.permute.xlu1 %6666  ;;  %v6571_v32 = vpop.permute.xlu0 %6570  ;;  %vm209_vm6 = vcmp.eq.s32.totalorder %v15380_v46, %v15425_v0  ;;  %vm211_vm7 = vcmp.eq.s32.totalorder %v15401_v12, %v15425_v0 }
 0x58e   :  { %vm6737_vm8 = vcmp.eq.s32.totalorder %v6667_v53, 1  ;;  %vm6705_vm14 = vcmp.eq.s32.totalorder %v6571_v32, 1  ;;  %v6946_v49 = vsel %vm397_vm10, %v6818_v62, %v6882_v9  ;;  %v6978_v56 = vsel %vm397_vm10, %v6850_v2, %v6914_v41 }
 0x58f   :  { %v6801_v27 = vsel %vm6737_vm8, %v14705_v33, %v8751_v23  ;;  %v6769_v4 = vsel %vm6705_vm14, %v17942_v30, %v8751_v23  ;;  %7900 = vmatpush3.msra.mxu0 %v6946_v49  ;;  %7980 = vmatpush3.msra.mxu1 %v6978_v56  ;;  %v7835_v14 = vsel %vm209_vm6, 1.0, %v17940_v28  ;;  %v7837_v61 = vsel %vm211_vm7, 1.0, %v17940_v28 }
 0x590   :  { %v6865_v51 = vmax.f32 %v17942_v30, %v6801_v27  ;;  %v6929_v45 = vadd.f32 %v6801_v27, %v17942_v30  ;;  %v6833_v48 = vmax.f32 %v14705_v33, %v6769_v4  ;;  %v6897_v26 = vadd.f32 %v6769_v4, %v14705_v33 }
 0x591   :  { %v6619_v2 = vpop.permute.xlu1 %6618  ;;  %v6523_v41 = vpop.permute.xlu0 %6522  ;;  %v15461_v62 = vmul.f32 %v7835_v14, %v15398_v3  ;;  %v15464_v9 = vmul.f32 %v7837_v61, %v15403_v22  ;;  %v15467_v53 = vadd.s32 16, %v15317_v20 }
 0x592   :  { %vm6721_vm9 = vcmp.eq.s32.totalorder %v6619_v2, 1  ;;  %vm6689_vm1 = vcmp.eq.s32.totalorder %v6523_v41, 1  ;;  %v6961_v32 = vsel %vm397_vm10, %v6833_v48, %v6897_v26  ;;  %v6993_v49 = vsel %vm397_vm10, %v6865_v51, %v6929_v45 }
 0x593   :  { %v6785_v33 = vsel %vm6721_vm9, %v14713_v8, %v8751_v23  ;;  %v6753_v56 = vsel %vm6689_vm1, %v14733_v7, %v8751_v23  ;;  %7901 = vmatprep.subr.mxu0 %v6961_v32  ;;  %7981 = vmatprep.subr.mxu1 %v6993_v49  ;;  %vm213_vm11 = vcmp.eq.s32.totalorder %v15380_v46, %v15467_v53 }
 0x594   :  { %v6849_v27 = vmax.f32 %v14733_v7, %v6785_v33  ;;  %v6913_v30 = vadd.f32 %v6785_v33, %v14733_v7  ;;  %v6817_v4 = vmax.f32 %v14713_v8, %v6753_v56  ;;  %v6881_v14 = vadd.f32 %v6753_v56, %v14713_v8  ;;  %v17943_v8 = vld [vmem:[#allocation87_spill] sm:$0xff] }
 0x595   :  { %v6664_v61 = vpop.permute.xlu1 %6663  ;;  %v6568_v48 = vpop.permute.xlu0 %6567  ;;  %vm215_vm12 = vcmp.eq.s32.totalorder %v15401_v12, %v15467_v53  ;;  %v7839_v2 = vsel %vm213_vm11, 1.0, %v17940_v28 }
 0x596   :  { %vm6736_vm13 = vcmp.eq.s32.totalorder %v6664_v61, 1  ;;  %vm6704_vm15 = vcmp.eq.s32.totalorder %v6568_v48, 1  ;;  %v6945_v51 = vsel %vm397_vm10, %v6817_v4, %v6881_v14  ;;  %v6977_v7 = vsel %vm397_vm10, %v6849_v27, %v6913_v30 }
 0x597   :  { %v6800_v45 = vsel %vm6736_vm13, %v14768_v5, %v8751_v23  ;;  %v6768_v26 = vsel %vm6704_vm15, %v17943_v8, %v8751_v23  ;;  %7902 = vmatpush3.msra.mxu0 %v6945_v51  ;;  %7982 = vmatpush3.msra.mxu1 %v6977_v7  ;;  %v7841_v41 = vsel %vm215_vm12, 1.0, %v17940_v28  ;;  %v15500_v4 = vmul.f32 %v7839_v2, %v15398_v3 }
 0x598   :  { %v6864_v32 = vmax.f32 %v17943_v8, %v6800_v45  ;;  %v6928_v49 = vadd.f32 %v6800_v45, %v17943_v8  ;;  %v6832_v33 = vmax.f32 %v14768_v5, %v6768_v26  ;;  %v6896_v56 = vadd.f32 %v6768_v26, %v14768_v5 }
 0x599   :  { %v6616_v27 = vpop.permute.xlu1 %6615  ;;  %v6520_v30 = vpop.permute.xlu0 %6519  ;;  %v15503_v14 = vmul.f32 %v7841_v41, %v15403_v22  ;;  %v15506_v61 = vadd.s32 24, %v15317_v20 }
 0x59a   :  { %vm6720_vm2 = vcmp.eq.s32.totalorder %v6616_v27, 1  ;;  %vm6688_vm3 = vcmp.eq.s32.totalorder %v6520_v30, 1  ;;  %v6960_v48 = vsel %vm397_vm10, %v6832_v33, %v6896_v56  ;;  %v6992_v51 = vsel %vm397_vm10, %v6864_v32, %v6928_v49 }
 0x59b   :  { %v6784_v5 = vsel %vm6720_vm2, %v14790_v25, %v8751_v23  ;;  %v6752_v7 = vsel %vm6688_vm3, %v14772_v43, %v8751_v23  ;;  %7903 = vmatprep.subr.mxu0 %v6960_v48  ;;  %7983 = vmatprep.subr.mxu1 %v6992_v51  ;;  %vm217_vm4 = vcmp.eq.s32.totalorder %v15380_v46, %v15506_v61 }
 0x59c   :  { %v6848_v45 = vmax.f32 %v14772_v43, %v6784_v5  ;;  %v6912_v8 = vadd.f32 %v6784_v5, %v14772_v43  ;;  %v6816_v26 = vmax.f32 %v14790_v25, %v6752_v7  ;;  %v6880_v2 = vadd.f32 %v6752_v7, %v14790_v25 }
 0x59d   :  { %v6661_v41 = vpop.permute.xlu1 %6660  ;;  %v6565_v33 = vpop.permute.xlu0 %6564  ;;  %vm219_vm5 = vcmp.eq.s32.totalorder %v15401_v12, %v15506_v61  ;;  %v7843_v7 = vsel %vm217_vm4, 1.0, %v17940_v28 }
 0x59e   :  { %vm6735_vm6 = vcmp.eq.s32.totalorder %v6661_v41, 1  ;;  %vm6703_vm7 = vcmp.eq.s32.totalorder %v6565_v33, 1  ;;  %v6944_v32 = vsel %vm397_vm10, %v6816_v26, %v6880_v2  ;;  %v6976_v43 = vsel %vm397_vm10, %v6848_v45, %v6912_v8 }
 0x59f   :  { %v6799_v49 = vsel %vm6735_vm6, %v14805_v36, %v8751_v23  ;;  %v6767_v25 = vsel %vm6703_vm7, %v14801_v35, %v8751_v23  ;;  %7904 = vmatpush3.msra.mxu0 %v6944_v32  ;;  %7984 = vmatpush3.msra.mxu1 %v6976_v43  ;;  %v7845_v45 = vsel %vm219_vm5, 1.0, %v17940_v28  ;;  %v15545_v8 = vadd.s32 32, %v15317_v20 }
 0x5a0   :  { %v6863_v56 = vmax.f32 %v14801_v35, %v6799_v49  ;;  %v6927_v27 = vadd.f32 %v6799_v49, %v14801_v35  ;;  %v6831_v30 = vmax.f32 %v14805_v36, %v6767_v25  ;;  %v6895_v48 = vadd.f32 %v6767_v25, %v14805_v36 }
 0x5a1   :  { %v6613_v51 = vpop.permute.xlu1 %6612  ;;  %v6517_v5 = vpop.permute.xlu0 %6516  ;;  %v15556_v41 = vmul.f32 %v7843_v7, %v15398_v3  ;;  %vm221_vm9 = vcmp.eq.s32.totalorder %v15380_v46, %v15545_v8  ;;  %vm223_vm12 = vcmp.eq.s32.totalorder %v15401_v12, %v15545_v8 }
 0x5a2   :  { %vm6719_vm8 = vcmp.eq.s32.totalorder %v6613_v51, 1  ;;  %vm6687_vm14 = vcmp.eq.s32.totalorder %v6517_v5, 1  ;;  %v6959_v35 = vsel %vm397_vm10, %v6831_v30, %v6895_v48  ;;  %v6991_v36 = vsel %vm397_vm10, %v6863_v56, %v6927_v27 }
 0x5a3   :  { %v6783_v26 = vsel %vm6719_vm8, %v14830_v15, %v8751_v23  ;;  %v6751_v2 = vsel %vm6687_vm14, %v14834_v63, %v8751_v23  ;;  %7905 = vmatprep.subr.mxu0 %v6959_v35  ;;  %7985 = vmatprep.subr.mxu1 %v6991_v36  ;;  %v15563_v27 = vmul.f32 %v7845_v45, %v15403_v22  ;;  %v7847_v51 = vsel %vm221_vm9, 1.0, %v17940_v28 }
 0x5a4   :  { %v6847_v33 = vmax.f32 %v14834_v63, %v6783_v26  ;;  %v6911_v32 = vadd.f32 %v6783_v26, %v14834_v63  ;;  %v6815_v43 = vmax.f32 %v14830_v15, %v6751_v2  ;;  %v6879_v49 = vadd.f32 %v6751_v2, %v14830_v15 }
 0x5a5   :  { %v6658_v25 = vpop.permute.xlu1 %6657  ;;  %v6562_v56 = vpop.permute.xlu0 %6561  ;;  %v15581_v2 = vmul.f32 %v7847_v51, %v15398_v3 }
 0x5a6   :  { %vm6734_vm1 = vcmp.eq.s32.totalorder %v6658_v25, 1  ;;  %vm6702_vm11 = vcmp.eq.s32.totalorder %v6562_v56, 1  ;;  %v6943_v30 = vsel %vm397_vm10, %v6815_v43, %v6879_v49  ;;  %v6975_v63 = vsel %vm397_vm10, %v6847_v33, %v6911_v32 }
 0x5a7   :  { %v6798_v48 = vsel %vm6734_vm1, %v14866_v19, %v8751_v23  ;;  %v6766_v15 = vsel %vm6702_vm11, %v14850_v57, %v8751_v23  ;;  %7906 = vmatpush3.msra.mxu0 %v6943_v30  ;;  %7986 = vmatpush3.msra.mxu1 %v6975_v63  ;;  %v15586_v33 = vadd.s32 40, %v15317_v20  ;;  %v7849_v49 = vsel %vm223_vm12, 1.0, %v17940_v28 }
 0x5a8   :  { %v6862_v5 = vmax.f32 %v14850_v57, %v6798_v48  ;;  %v6926_v7 = vadd.f32 %v6798_v48, %v14850_v57  ;;  %v6830_v45 = vmax.f32 %v14866_v19, %v6766_v15  ;;  %v6894_v35 = vadd.f32 %v6766_v15, %v14866_v19 }
 0x5a9   :  { %v6610_v36 = vpop.permute.xlu1 %6609  ;;  %v6514_v26 = vpop.permute.xlu0 %6513  ;;  %v15602_v51 = vmul.f32 %v7849_v49, %v15403_v22  ;;  %vm225_vm2 = vcmp.eq.s32.totalorder %v15380_v46, %v15586_v33  ;;  %vm227_vm5 = vcmp.eq.s32.totalorder %v15401_v12, %v15586_v33  ;;  %v15625_v49 = vadd.s32 48, %v15317_v20 }
 0x5aa   :  { %vm6718_vm13 = vcmp.eq.s32.totalorder %v6610_v36, 1  ;;  %vm6686_vm15 = vcmp.eq.s32.totalorder %v6514_v26, 1  ;;  %v6958_v57 = vsel %vm397_vm10, %v6830_v45, %v6894_v35  ;;  %v6990_v32 = vsel %vm397_vm10, %v6862_v5, %v6926_v7 }
 0x5ab   :  { %v6782_v19 = vsel %vm6718_vm13, %v14856_v16, %v8751_v23  ;;  %v6750_v43 = vsel %vm6686_vm15, %v14870_v38, %v8751_v23  ;;  %7907 = vmatprep.subr.mxu0 %v6958_v57  ;;  %7987 = vmatprep.subr.mxu1 %v6990_v32  ;;  %v7851_v45 = vsel %vm225_vm2, 1.0, %v17940_v28  ;;  %vm229_vm8 = vcmp.eq.s32.totalorder %v15380_v46, %v15625_v49 }
 0x5ac   :  { %v6846_v25 = vmax.f32 %v14870_v38, %v6782_v19  ;;  %v6910_v56 = vadd.f32 %v6782_v19, %v14870_v38  ;;  %v6814_v30 = vmax.f32 %v14856_v16, %v6750_v43  ;;  %v6878_v63 = vadd.f32 %v6750_v43, %v14856_v16 }
 0x5ad   :  { %v6655_v48 = vpop.permute.xlu1 %6654  ;;  %v6559_v15 = vpop.permute.xlu0 %6558  ;;  %v15620_v43 = vmul.f32 %v7851_v45, %v15398_v3  ;;  %vm231_vm1 = vcmp.eq.s32.totalorder %v15401_v12, %v15625_v49 }
 0x5ae   :  { %vm6733_vm3 = vcmp.eq.s32.totalorder %v6655_v48, 1  ;;  %vm6701_vm4 = vcmp.eq.s32.totalorder %v6559_v15, 1  ;;  %v6942_v5 = vsel %vm397_vm10, %v6814_v30, %v6878_v63  ;;  %v6974_v38 = vsel %vm397_vm10, %v6846_v25, %v6910_v56 }
 0x5af   :  { %v6797_v7 = vsel %vm6733_vm3, %v14901_v21, %v8751_v23  ;;  %v6765_v16 = vsel %vm6701_vm4, %v14897_v18, %v8751_v23  ;;  %7908 = vmatpush3.msra.mxu0 %v6942_v5  ;;  %7988 = vmatpush3.msra.mxu1 %v6974_v38  ;;  %v7853_v30 = vsel %vm227_vm5, 1.0, %v17940_v28 }
 0x5b0   :  { %v6861_v35 = vmax.f32 %v14897_v18, %v6797_v7  ;;  %v6925_v36 = vadd.f32 %v6797_v7, %v14897_v18  ;;  %v6829_v26 = vmax.f32 %v14901_v21, %v6765_v16  ;;  %v6893_v57 = vadd.f32 %v6765_v16, %v14901_v21 }
 0x5b1   :  { %v6607_v32 = vpop.permute.xlu1 %6606  ;;  %v6511_v19 = vpop.permute.xlu0 %6510  ;;  %v15641_v16 = vmul.f32 %v7853_v30, %v15403_v22 }
 0x5b2   :  { %vm6717_vm6 = vcmp.eq.s32.totalorder %v6607_v32, 1  ;;  %vm6685_vm7 = vcmp.eq.s32.totalorder %v6511_v19, 1  ;;  %v6957_v18 = vsel %vm397_vm10, %v6829_v26, %v6893_v57  ;;  %v6989_v25 = vsel %vm397_vm10, %v6861_v35, %v6925_v36 }
 0x5b3   :  { %v6781_v21 = vsel %vm6717_vm6, %v14909_v52, %v8751_v23  ;;  %v6749_v56 = vsel %vm6685_vm7, %v14927_v39, %v8751_v23  ;;  %7909 = vmatprep.subr.mxu0 %v6957_v18  ;;  %7989 = vmatprep.subr.mxu1 %v6989_v25  ;;  %v7855_v25 = vsel %vm229_vm8, 1.0, %v17940_v28 }
 0x5b4   :  { %v6845_v63 = vmax.f32 %v14927_v39, %v6781_v21  ;;  %v6909_v48 = vadd.f32 %v6781_v21, %v14927_v39  ;;  %v6813_v15 = vmax.f32 %v14909_v52, %v6749_v56  ;;  %v6877_v5 = vadd.f32 %v6749_v56, %v14909_v52 }
 0x5b5   :  { %v6652_v38 = vpop.permute.xlu1 %6651  ;;  %v6556_v7 = vpop.permute.xlu0 %6555  ;;  %v15661_v21 = vadd.s32 56, %v15317_v20 }
 0x5b6   :  { %vm6732_vm14 = vcmp.eq.s32.totalorder %v6652_v38, 1  ;;  %vm6700_vm9 = vcmp.eq.s32.totalorder %v6556_v7, 1  ;;  %v6941_v45 = vsel %vm397_vm10, %v6813_v15, %v6877_v5  ;;  %v6973_v39 = vsel %vm397_vm10, %v6845_v63, %v6909_v48 }
 0x5b7   :  { %v6796_v35 = vsel %vm6732_vm14, %v14958_v13, %v8751_v23  ;;  %v6764_v52 = vsel %vm6700_vm9, %v14954_v40, %v8751_v23  ;;  %7910 = vmatpush3.msra.mxu0 %v6941_v45  ;;  %7990 = vmatpush3.msra.mxu1 %v6973_v39  ;;  %v15672_v63 = vmul.f32 %v7855_v25, %v15398_v3  ;;  %v7857_v48 = vsel %vm231_vm1, 1.0, %v17940_v28 }
 0x5b8   :  { %v6860_v36 = vmax.f32 %v14954_v40, %v6796_v35  ;;  %v6924_v26 = vadd.f32 %v6796_v35, %v14954_v40  ;;  %v6828_v57 = vmax.f32 %v14958_v13, %v6764_v52  ;;  %v6892_v32 = vadd.f32 %v6764_v52, %v14958_v13 }
 0x5b9   :  { %v6604_v19 = vpop.permute.xlu1 %6603  ;;  %v6508_v18 = vpop.permute.xlu0 %6507  ;;  %v15680_v35 = vmul.f32 %v7857_v48, %v15403_v22  ;;  %vm233_vm13 = vcmp.eq.s32.totalorder %v15380_v46, %v15661_v21  ;;  %vm235_vm3 = vcmp.eq.s32.totalorder %v15401_v12, %v15661_v21 }
 0x5ba   :  { %vm6716_vm11 = vcmp.eq.s32.totalorder %v6604_v19, 1  ;;  %vm6684_vm12 = vcmp.eq.s32.totalorder %v6508_v18, 1  ;;  %v6956_v56 = vsel %vm397_vm10, %v6828_v57, %v6892_v32  ;;  %v6988_v40 = vsel %vm397_vm10, %v6860_v36, %v6924_v26 }
 0x5bb   :  { %v6780_v13 = vsel %vm6716_vm11, %v14976_v10, %v8751_v23  ;;  %v6748_v30 = vsel %vm6684_vm12, %v14962_v17, %v8751_v23  ;;  %7911 = vmatprep.subr.mxu0 %v6956_v56  ;;  %7991 = vmatprep.subr.mxu1 %v6988_v40  ;;  %v7859_v56 = vsel %vm233_vm13, 1.0, %v17940_v28  ;;  %v7861_v48 = vsel %vm235_vm3, 1.0, %v17940_v28 }
 0x5bc   :  { %v6844_v15 = vmax.f32 %v14962_v17, %v6780_v13  ;;  %v6908_v5 = vadd.f32 %v6780_v13, %v14962_v17  ;;  %v6812_v38 = vmax.f32 %v14976_v10, %v6748_v30  ;;  %v6876_v7 = vadd.f32 %v6748_v30, %v14976_v10 }
 0x5bd   :  { %v6649_v45 = vpop.permute.xlu1 %6648  ;;  %v6553_v39 = vpop.permute.xlu0 %6552  ;;  %v15708_v30 = vmul.f32 %v7859_v56, %v15398_v3 }
 0x5be   :  { %vm6731_vm15 = vcmp.eq.s32.totalorder %v6649_v45, 1  ;;  %vm6699_vm2 = vcmp.eq.s32.totalorder %v6553_v39, 1  ;;  %v6940_v52 = vsel %vm397_vm10, %v6812_v38, %v6876_v7  ;;  %v6972_v17 = vsel %vm397_vm10, %v6844_v15, %v6908_v5 }
 0x5bf   :  { %v6795_v36 = vsel %vm6731_vm15, %v14994_v55, %v8751_v23  ;;  %v6763_v10 = vsel %vm6699_vm2, %v14990_v29, %v8751_v23  ;;  %7912 = vmatpush3.msra.mxu0 %v6940_v52  ;;  %7992 = vmatpush3.msra.mxu1 %v6972_v17  ;;  %v15716_v52 = vmul.f32 %v7861_v48, %v15403_v22  ;;  %v15719_v17 = vadd.s32 64, %v15317_v20 }
 0x5c0   :  { %v6859_v26 = vmax.f32 %v14990_v29, %v6795_v36  ;;  %v6923_v57 = vadd.f32 %v6795_v36, %v14990_v29  ;;  %v6827_v32 = vmax.f32 %v14994_v55, %v6763_v10  ;;  %v6891_v19 = vadd.f32 %v6763_v10, %v14994_v55 }
 0x5c1   :  { %v6601_v18 = vpop.permute.xlu1 %6600  ;;  %v6505_v25 = vpop.permute.xlu0 %6504  ;;  %vm237_vm8 = vcmp.eq.s32.totalorder %v15380_v46, %v15719_v17  ;;  %vm239_vm14 = vcmp.eq.s32.totalorder %v15401_v12, %v15719_v17 }
 0x5c2   :  { %vm6715_vm4 = vcmp.eq.s32.totalorder %v6601_v18, 1  ;;  %vm6683_vm5 = vcmp.eq.s32.totalorder %v6505_v25, 1  ;;  %v6955_v40 = vsel %vm397_vm10, %v6827_v32, %v6891_v19  ;;  %v6987_v13 = vsel %vm397_vm10, %v6859_v26, %v6923_v57 }
 0x5c3   :  { %v6779_v29 = vsel %vm6715_vm4, %v15029_v50, %v8751_v23  ;;  %v6747_v55 = vsel %vm6683_vm5, %v15023_v44, %v8751_v23  ;;  %7913 = vmatprep.subr.mxu0 %v6955_v40  ;;  %7993 = vmatprep.subr.mxu1 %v6987_v13 }
 0x5c4   :  { %v6843_v15 = vmax.f32 %v15023_v44, %v6779_v29  ;;  %v6907_v5 = vadd.f32 %v6779_v29, %v15023_v44  ;;  %v6811_v38 = vmax.f32 %v15029_v50, %v6747_v55  ;;  %v6875_v7 = vadd.f32 %v6747_v55, %v15029_v50 }
 0x5c5   :  { %v6646_v45 = vpop.permute.xlu1 %6645  ;;  %v6550_v39 = vpop.permute.xlu0 %6549 }
 0x5c6   :  { %vm6730_vm6 = vcmp.eq.s32.totalorder %v6646_v45, 1  ;;  %vm6698_vm7 = vcmp.eq.s32.totalorder %v6550_v39, 1  ;;  %v6939_v36 = vsel %vm397_vm10, %v6811_v38, %v6875_v7  ;;  %v6971_v44 = vsel %vm397_vm10, %v6843_v15, %v6907_v5 }
 0x5c7   :  { %v6794_v10 = vsel %vm6730_vm6, %v15054_v58, %v8751_v23  ;;  %v6762_v50 = vsel %vm6698_vm7, %v15044_v54, %v8751_v23  ;;  %7914 = vmatpush3.msra.mxu0 %v6939_v36  ;;  %7994 = vmatpush3.msra.mxu1 %v6971_v44  ;;  %v7863_v38 = vsel %vm237_vm8, 1.0, %v17940_v28  ;;  %v7865_v7 = vsel %vm239_vm14, 1.0, %v17940_v28 }
 0x5c8   :  { %v6858_v26 = vmax.f32 %v15044_v54, %v6794_v10  ;;  %v6922_v57 = vadd.f32 %v6794_v10, %v15044_v54  ;;  %v6826_v32 = vmax.f32 %v15054_v58, %v6762_v50  ;;  %v6890_v19 = vadd.f32 %v6762_v50, %v15054_v58 }
 0x5c9   :  { %v6598_v18 = vpop.permute.xlu1 %6597  ;;  %v6502_v25 = vpop.permute.xlu0 %6501  ;;  %v15758_v45 = vadd.s32 72, %v15317_v20  ;;  %v15769_v44 = vmul.f32 %v7863_v38, %v15398_v3 }
 0x5ca   :  { %vm6714_vm9 = vcmp.eq.s32.totalorder %v6598_v18, 1  ;;  %vm6682_vm1 = vcmp.eq.s32.totalorder %v6502_v25, 1  ;;  %v6954_v56 = vsel %vm397_vm10, %v6826_v32, %v6890_v19  ;;  %v6986_v54 = vsel %vm397_vm10, %v6858_v26, %v6922_v57 }
 0x5cb   :  { %v6778_v40 = vsel %vm6714_vm9, %v15078_v59, %v8751_v23  ;;  %v6746_v58 = vsel %vm6682_vm1, %v15060_v60, %v8751_v23  ;;  %7915 = vmatprep.subr.mxu0 %v6954_v56  ;;  %7995 = vmatprep.subr.mxu1 %v6986_v54  ;;  %v15776_v18 = vmul.f32 %v7865_v7, %v15403_v22  ;;  %v17944_v56 = vld [vmem:[#allocation93_spill] sm:$0xff]  ;;  %v15799_v7 = vadd.s32 80, %v15317_v20 }
 0x5cc   :  { %v6842_v13 = vmax.f32 %v15060_v60, %v6778_v40  ;;  %v6906_v29 = vadd.f32 %v6778_v40, %v15060_v60  ;;  %v6810_v55 = vmax.f32 %v15078_v59, %v6746_v58  ;;  %v6874_v48 = vadd.f32 %v6746_v58, %v15078_v59 }
 0x5cd   :  { %v6643_v15 = vpop.permute.xlu1 %6642  ;;  %v6547_v5 = vpop.permute.xlu0 %6546  ;;  %vm241_vm13 = vcmp.eq.s32.totalorder %v15380_v46, %v15758_v45  ;;  %vm243_vm3 = vcmp.eq.s32.totalorder %v15401_v12, %v15758_v45  ;;  %vm245_vm6 = vcmp.eq.s32.totalorder %v15380_v46, %v15799_v7  ;;  %vm247_vm14 = vcmp.eq.s32.totalorder %v15401_v12, %v15799_v7 }
 0x5ce   :  { %vm6729_vm11 = vcmp.eq.s32.totalorder %v6643_v15, 1  ;;  %vm6697_vm12 = vcmp.eq.s32.totalorder %v6547_v5, 1  ;;  %v6938_v60 = vsel %vm397_vm10, %v6810_v55, %v6874_v48  ;;  %v6970_v59 = vsel %vm397_vm10, %v6842_v13, %v6906_v29 }
 0x5cf   :  { %v6793_v39 = vsel %vm6729_vm11, %v15092_v47, %v8751_v23  ;;  %v6761_v36 = vsel %vm6697_vm12, %v15088_v34, %v8751_v23  ;;  %7916 = vmatpush3.msra.mxu0 %v6938_v60  ;;  %7996 = vmatpush3.msra.mxu1 %v6970_v59  ;;  %v7867_v58 = vsel %vm241_vm13, 1.0, %v17940_v28 }
 0x5d0   :  { %v6857_v10 = vmax.f32 %v15088_v34, %v6793_v39  ;;  %v6921_v50 = vadd.f32 %v6793_v39, %v15088_v34  ;;  %v6825_v26 = vmax.f32 %v15092_v47, %v6761_v36  ;;  %v6889_v57 = vadd.f32 %v6761_v36, %v15092_v47  ;;  %v17945_v47 = vld [vmem:[#allocation86_spill] sm:$0xff]  ;;  %v17946_v39 = vld [vmem:[#allocation56_spill] sm:$0xff] }
 0x5d1   :  { %v6595_v32 = vpop.permute.xlu1 %6594  ;;  %v6499_v19 = vpop.permute.xlu0 %6498  ;;  %v15794_v38 = vmul.f32 %v7867_v58, %v15398_v3  ;;  %v17948_v58 = vld [vmem:[#allocation45_spill] sm:$0xff] }
 0x5d2   :  { %vm6713_vm15 = vcmp.eq.s32.totalorder %v6595_v32, 1  ;;  %vm6681_vm2 = vcmp.eq.s32.totalorder %v6499_v19, 1  ;;  %v6953_v25 = vsel %vm397_vm10, %v6825_v26, %v6889_v57  ;;  %v6985_v34 = vsel %vm397_vm10, %v6857_v10, %v6921_v50  ;;  %v17947_v10 = vld [vmem:[#allocation54_spill] sm:$0xff] }
 0x5d3   :  { %v6777_v54 = vsel %vm6713_vm15, %v17944_v56, %v8751_v23  ;;  %v6745_v40 = vsel %vm6681_vm2, %v17945_v47, %v8751_v23  ;;  %7917 = vmatprep.subr.mxu0 %v6953_v25  ;;  %7997 = vmatprep.subr.mxu1 %v6985_v34  ;;  %v7869_v26 = vsel %vm243_vm3, 1.0, %v17940_v28 }
 0x5d4   :  { %v6841_v13 = vmax.f32 %v17945_v47, %v6777_v54  ;;  %v6905_v29 = vadd.f32 %v6777_v54, %v17945_v47  ;;  %v6809_v55 = vmax.f32 %v17944_v56, %v6745_v40  ;;  %v6873_v48 = vadd.f32 %v6745_v40, %v17944_v56 }
 0x5d5   :  { %v6640_v15 = vpop.permute.xlu1 %6639  ;;  %v6544_v5 = vpop.permute.xlu0 %6543  ;;  %v15815_v54 = vmul.f32 %v7869_v26, %v15403_v22 }
 0x5d6   :  { %vm6728_vm4 = vcmp.eq.s32.totalorder %v6640_v15, 1  ;;  %vm6696_vm5 = vcmp.eq.s32.totalorder %v6544_v5, 1  ;;  %v6937_v60 = vsel %vm397_vm10, %v6809_v55, %v6873_v48  ;;  %v6969_v59 = vsel %vm397_vm10, %v6841_v13, %v6905_v29  ;;  %v17949_v29 = vld [vmem:[#allocation47_spill] sm:$0xff] }
 0x5d7   :  { %v6792_v36 = vsel %vm6728_vm4, %v17946_v39, %v8751_v23  ;;  %v6760_v50 = vsel %vm6696_vm5, %v17947_v10, %v8751_v23  ;;  %7918 = vmatpush3.msra.mxu0 %v6937_v60  ;;  %7998 = vmatpush3.msra.mxu1 %v6969_v59  ;;  %v7871_v48 = vsel %vm245_vm6, 1.0, %v17940_v28  ;;  %vm212_vm5 = vcmp.eq.s32.totalorder %v15358_v24, %v15425_v0 }
 0x5d8   :  { %v6856_v57 = vmax.f32 %v17947_v10, %v6792_v36  ;;  %v6920_v32 = vadd.f32 %v6792_v36, %v17947_v10  ;;  %v6824_v19 = vmax.f32 %v17946_v39, %v6760_v50  ;;  %v6888_v25 = vadd.f32 %v6760_v50, %v17946_v39 }
 0x5d9   :  { %v6592_v34 = vpop.permute.xlu1 %6591  ;;  %v6496_v56 = vpop.permute.xlu0 %6495  ;;  %v15833_v10 = vmul.f32 %v7871_v48, %v15398_v3  ;;  %v15838_v50 = vadd.s32 88, %v15317_v20 }
 0x5da   :  { %vm6712_vm7 = vcmp.eq.s32.totalorder %v6592_v34, 1  ;;  %vm6680_vm8 = vcmp.eq.s32.totalorder %v6496_v56, 1  ;;  %v6952_v47 = vsel %vm397_vm10, %v6824_v19, %v6888_v25  ;;  %v6984_v40 = vsel %vm397_vm10, %v6856_v57, %v6920_v32  ;;  %v17950_v19 = vld [vmem:[#allocation11_spill] sm:$0xff] }
 0x5db   :  { %v6776_v13 = vsel %vm6712_vm7, %v17948_v58, %v8751_v23  ;;  %v6744_v55 = vsel %vm6680_vm8, %v17949_v29, %v8751_v23  ;;  %7919 = vmatprep.subr.mxu0 %v6952_v47  ;;  %7999 = vmatprep.subr.mxu1 %v6984_v40  ;;  %v7873_v34 = vsel %vm247_vm14, 1.0, %v17940_v28  ;;  %vm249_vm11 = vcmp.eq.s32.totalorder %v15380_v46, %v15838_v50 }
 0x5dc   :  { %v6840_v15 = vmax.f32 %v17949_v29, %v6776_v13  ;;  %v6904_v5 = vadd.f32 %v6776_v13, %v17949_v29  ;;  %v6808_v60 = vmax.f32 %v17948_v58, %v6744_v55  ;;  %v6872_v59 = vadd.f32 %v6744_v55, %v17948_v58 }
 0x5dd   :  { %v6637_v39 = vpop.permute.xlu1 %6636  ;;  %v6541_v36 = vpop.permute.xlu0 %6540  ;;  %v15854_v55 = vmul.f32 %v7873_v34, %v15403_v22  ;;  %vm251_vm2 = vcmp.eq.s32.totalorder %v15401_v12, %v15838_v50 }
 0x5de   :  { %vm6727_vm9 = vcmp.eq.s32.totalorder %v6637_v39, 1  ;;  %vm6695_vm1 = vcmp.eq.s32.totalorder %v6541_v36, 1  ;;  %v6936_v26 = vsel %vm397_vm10, %v6808_v60, %v6872_v59  ;;  %v6968_v57 = vsel %vm397_vm10, %v6840_v15, %v6904_v5 }
 0x5df   :  { %v6791_v32 = vsel %vm6727_vm9, %v15200_v11, %v8751_v23  ;;  %v6759_v25 = vsel %vm6695_vm1, %v17950_v19, %v8751_v23  ;;  %7920 = vmatpush3.msra.mxu0 %v6936_v26  ;;  %8000 = vmatpush3.msra.mxu1 %v6968_v57  ;;  %v7875_v59 = vsel %vm249_vm11, 1.0, %v17940_v28 }
 0x5e0   :  { %v6855_v56 = vmax.f32 %v17950_v19, %v6791_v32  ;;  %v6919_v47 = vadd.f32 %v6791_v32, %v17950_v19  ;;  %v6823_v40 = vmax.f32 %v15200_v11, %v6759_v25  ;;  %v6887_v58 = vadd.f32 %v6759_v25, %v15200_v11  ;;  %v17951_v11 = vld [vmem:[#allocation8_spill] sm:$0xff] }
 0x5e1   :  { %v6589_v13 = vpop.permute.xlu1 %6588  ;;  %v6493_v29 = vpop.permute.xlu0 %6492  ;;  %v17952_v25 = vld [vmem:[#allocation92_spill] sm:$0xff]  ;;  %v15874_v34 = vmul.f32 %v7875_v59, %v15398_v3 }
 0x5e2   :  { %vm6711_vm12 = vcmp.eq.s32.totalorder %v6589_v13, 1  ;;  %vm6679_vm13 = vcmp.eq.s32.totalorder %v6493_v29, 1  ;;  %v6951_v48 = vsel %vm397_vm10, %v6823_v40, %v6887_v58  ;;  %v6983_v15 = vsel %vm397_vm10, %v6855_v56, %v6919_v47  ;;  %v17954_v40 = vld [vmem:[#allocation83_spill] sm:$0xff]  ;;  %v17955_v13 = vld [vmem:[#allocation90_spill] sm:$0xff] }
 0x5e3   :  { %v6775_v5 = vsel %vm6711_vm12, %v15220_v42, %v8751_v23  ;;  %v6743_v60 = vsel %vm6679_vm13, %v17951_v11, %v8751_v23  ;;  %7921 = vmatprep.subr.mxu0 %v6951_v48  ;;  %8001 = vmatprep.subr.mxu1 %v6983_v15  ;;  %vm210_vm15 = vcmp.eq.s32.totalorder %v17952_v25, %v15425_v0  ;;  %v15879_v56 = vadd.s32 96, %v15317_v20 }
 0x5e4   :  { %v6839_v39 = vmax.f32 %v17951_v11, %v6775_v5  ;;  %v6903_v36 = vadd.f32 %v6775_v5, %v17951_v11  ;;  %v6807_v26 = vmax.f32 %v15220_v42, %v6743_v60  ;;  %v6871_v57 = vadd.f32 %v6743_v60, %v15220_v42  ;;  %17953 = vst [vmem:[#allocation52_spill] sm:$0xff] %v15874_v34 }
 0x5e5   :  { %v6634_v32 = vpop.permute.xlu1 %6633  ;;  %v6538_v19 = vpop.permute.xlu0 %6537  ;;  %v7877_v48 = vsel %vm251_vm2, 1.0, %v17940_v28  ;;  %vm253_vm6 = vcmp.eq.s32.totalorder %v15380_v46, %v15879_v56  ;;  %vm214_vm14 = vcmp.eq.s32.totalorder %v17952_v25, %v15467_v53  ;;  %vm255_vm9 = vcmp.eq.s32.totalorder %v15401_v12, %v15879_v56 }
 0x5e6   :  { %vm6726_vm3 = vcmp.eq.s32.totalorder %v6634_v32, 1  ;;  %vm6694_vm4 = vcmp.eq.s32.totalorder %v6538_v19, 1  ;;  %v6935_v47 = vsel %vm397_vm10, %v6807_v26, %v6871_v57  ;;  %v6967_v42 = vsel %vm397_vm10, %v6839_v39, %v6903_v36  ;;  %v17957_v32 = vld [vmem:[#allocation58_spill] sm:$0xff] }
 0x5e7   :  { %v6790_v58 = vsel %vm6726_vm3, %v17954_v40, %v8751_v23  ;;  %v6758_v29 = vsel %vm6694_vm4, %v17955_v13, %v8751_v23  ;;  %7922 = vmatpush3.msra.mxu0 %v6935_v47  ;;  %8002 = vmatpush3.msra.mxu1 %v6967_v42  ;;  %v15897_v36 = vmul.f32 %v7877_v48, %v15403_v22  ;;  %v17958_v47 = vld [vmem:[#allocation91_spill] sm:$0xff]  ;;  %v15930_v0 = vadd.s32 104, %v15317_v20 }
 0x5e8   :  { %v6854_v15 = vmax.f32 %v17955_v13, %v6790_v58  ;;  %v6918_v5 = vadd.f32 %v6790_v58, %v17955_v13  ;;  %v6822_v11 = vmax.f32 %v17954_v40, %v6758_v29  ;;  %v6886_v60 = vadd.f32 %v6758_v29, %v17954_v40 }
 0x5e9   :  { %v6586_v59 = vpop.permute.xlu1 %6585  ;;  %v6490_v39 = vpop.permute.xlu0 %6489  ;;  %17956 = vst [vmem:[#allocation59_spill] sm:$0xff] %v15897_v36  ;;  %v7836_v40 = vsel %vm210_vm15, 1.0, %v17940_v28  ;;  %v7838_v58 = vsel %vm212_vm5, 1.0, %v17940_v28  ;;  %v17961_v36 = vld [vmem:[#allocation46_spill] sm:$0xff]  ;;  %vm216_vm12 = vcmp.eq.s32.totalorder %v15358_v24, %v15467_v53  ;;  %vm257_vm13 = vcmp.eq.s32.totalorder %v15380_v46, %v15930_v0 }
 0x5ea   :  { %vm6710_vm7 = vcmp.eq.s32.totalorder %v6586_v59, 1  ;;  %vm6678_vm8 = vcmp.eq.s32.totalorder %v6490_v39, 1  ;;  %v6950_v26 = vsel %vm397_vm10, %v6822_v11, %v6886_v60  ;;  %v6982_v57 = vsel %vm397_vm10, %v6854_v15, %v6918_v5 }
 0x5eb   :  { %v6774_v19 = vsel %vm6710_vm7, %v17957_v32, %v8751_v23  ;;  %v6742_v42 = vsel %vm6678_vm8, %v17958_v47, %v8751_v23  ;;  %7923 = vmatprep.subr.mxu0 %v6950_v26  ;;  %8003 = vmatprep.subr.mxu1 %v6982_v57  ;;  %v7879_v60 = vsel %vm253_vm6, 1.0, %v17940_v28  ;;  %v17959_v26 = vld [vmem:[#allocation88_spill] sm:$0xff]  ;;  %v7024_v34 = vmul.f32 %v7836_v40, %v17961_v36 }
 0x5ec   :  { %v6838_v13 = vmax.f32 %v17958_v47, %v6774_v19  ;;  %v6902_v29 = vadd.f32 %v6774_v19, %v17958_v47  ;;  %v6806_v48 = vmax.f32 %v17957_v32, %v6742_v42  ;;  %v6870_v15 = vadd.f32 %v6742_v42, %v17957_v32  ;;  %v17960_v32 = vld [vmem:[#allocation82_spill] sm:$0xff] }
 0x5ed   :  { %v6631_v5 = vpop.permute.xlu1 %6630  ;;  %v6535_v11 = vpop.permute.xlu0 %6534  ;;  %v15941_v47 = vmul.f32 %v7879_v60, %v15398_v3  ;;  %v7881_v42 = vsel %vm255_vm9, 1.0, %v17940_v28  ;;  %vm218_vm3 = vcmp.eq.s32.totalorder %v17952_v25, %v15506_v61  ;;  %vm259_vm4 = vcmp.eq.s32.totalorder %v15401_v12, %v15930_v0 }
 0x5ee   :  { %vm6725_vm1 = vcmp.eq.s32.totalorder %v6631_v5, 1  ;;  %vm6693_vm11 = vcmp.eq.s32.totalorder %v6535_v11, 1  ;;  %v6934_v59 = vsel %vm397_vm10, %v6806_v48, %v6870_v15  ;;  %v6966_v39 = vsel %vm397_vm10, %v6838_v13, %v6902_v29 }
 0x5ef   :  { %v6789_v57 = vsel %vm6725_vm1, %v17959_v26, %v8751_v23  ;;  %v6757_v19 = vsel %vm6693_vm11, %v17960_v32, %v8751_v23  ;;  %7924 = vmatpush3.msra.mxu0 %v6934_v59  ;;  %8004 = vmatpush3.msra.mxu1 %v6966_v39  ;;  %v15952_v60 = vmul.f32 %v7881_v42, %v15403_v22  ;;  %v7840_v42 = vsel %vm214_vm14, 1.0, %v17940_v28 }
 0x5f0   :  { %v6853_v5 = vmax.f32 %v17960_v32, %v6789_v57  ;;  %v6917_v48 = vadd.f32 %v6789_v57, %v17960_v32  ;;  %v6821_v15 = vmax.f32 %v17959_v26, %v6757_v19  ;;  %v6885_v13 = vadd.f32 %v6757_v19, %v17959_v26  ;;  %v17962_v26 = vld [vmem:[#allocation57_spill] sm:$0xff]  ;;  %v17963_v57 = vld [vmem:[#allocation55_spill] sm:$0xff] }
 0x5f1   :  { %v6583_v29 = vpop.permute.xlu1 %6582  ;;  %v6487_v11 = vpop.permute.xlu0 %6486  ;;  %v7026_v19 = vmul.f32 %v7838_v58, %v15360_v6  ;;  %v7883_v58 = vsel %vm257_vm13, 1.0, %v17940_v28  ;;  %vm220_vm5 = vcmp.eq.s32.totalorder %v15358_v24, %v15506_v61  ;;  %vm222_vm7 = vcmp.eq.s32.totalorder %v17952_v25, %v15545_v8 }
 0x5f2   :  { %vm6709_vm15 = vcmp.eq.s32.totalorder %v6583_v29, 1  ;;  %vm6677_vm2 = vcmp.eq.s32.totalorder %v6487_v11, 1  ;;  %v6949_v59 = vsel %vm397_vm10, %v6821_v15, %v6885_v13  ;;  %v6981_v39 = vsel %vm397_vm10, %v6853_v5, %v6917_v48 }
 0x5f3   :  { %v6773_v40 = vsel %vm6709_vm15, %v17962_v26, %v8751_v23  ;;  %v6741_v32 = vsel %vm6677_vm2, %v17963_v57, %v8751_v23  ;;  %7925 = vmatprep.subr.mxu0 %v6949_v59  ;;  %8005 = vmatprep.subr.mxu1 %v6981_v39  ;;  %v7842_v23 = vsel %vm216_vm12, 1.0, %v17940_v28  ;;  %v15990_v53 = vmul.f32 %v7883_v58, %v15398_v3 }
 0x5f4   :  { %v6837_v15 = vmax.f32 %v17963_v57, %v6773_v40  ;;  %v6901_v13 = vadd.f32 %v6773_v40, %v17963_v57  ;;  %v6805_v5 = vmax.f32 %v17962_v26, %v6741_v32  ;;  %v6869_v48 = vadd.f32 %v6741_v32, %v17962_v26 }
 0x5f5   :  { %v7885_v59 = vsel %vm259_vm4, 1.0, %v17940_v28  ;;  %v15999_v26 = vadd.s32 112, %v15317_v20  ;;  %v7028_v40 = vmul.f32 %v7840_v42, %v17961_v36  ;;  %v7030_v57 = vmul.f32 %v7842_v23, %v15360_v6 }
 0x5f6   :  { %v6933_v29 = vsel %vm397_vm10, %v6805_v5, %v6869_v48  ;;  %v6965_v11 = vsel %vm397_vm10, %v6837_v15, %v6901_v13  ;;  %v15996_v39 = vmul.f32 %v7885_v59, %v15403_v22  ;;  %v7844_v32 = vsel %vm218_vm3, 1.0, %v17940_v28 }
 0x5f7   :  { %7926 = vmatpush3.msra.mxu0 %v6933_v29  ;;  %8006 = vmatpush3.msra.mxu1 %v6965_v11  ;;  %vm261_vm10 = vcmp.eq.s32.totalorder %v15380_v46, %v15999_v26  ;;  %v16012_v15 = vadd.s32 120, %v15317_v20  ;;  %vm263_vm6 = vcmp.eq.s32.totalorder %v15401_v12, %v15999_v26  ;;  %vm224_vm8 = vcmp.eq.s32.totalorder %v15358_v24, %v15545_v8 }
 0x5f8   :  { %7148 = vmatmul.mubr.f32.vlgmr.msra.gmra.mxu0 %v15421_v37  ;;  %7293 = vmatmul.mubr.f32.vlgmr.msra.gmra.mxu1 %v15436_v31  ;;  %v7846_v37 = vsel %vm220_vm5, 1.0, %v17940_v28  ;;  %v7887_v31 = vsel %vm261_vm10, 1.0, %v17940_v28  ;;  %v7032_v20 = vmul.f32 %v7844_v32, %v17961_v36  ;;  %v7848_v8 = vsel %vm222_vm7, 1.0, %v17940_v28 }
 0x5f9   :  { %7152 = vmatprep.mubr.f32.mxu0 %v7024_v34  ;;  %7297 = vmatprep.mubr.f32.mxu1 %v7026_v19  ;;  %v16023_v61 = vmul.f32 %v7887_v31, %v15398_v3  ;;  %v7889_v34 = vsel %vm263_vm6, 1.0, %v17940_v28  ;;  %v7034_v42 = vmul.f32 %v7846_v37, %v15360_v6  ;;  %vm265_vm14 = vcmp.eq.s32.totalorder %v15380_v46, %v16012_v15 }
 0x5fa   :  { %v16030_v19 = vmul.f32 %v7889_v34, %v15403_v22  ;;  %vm267_vm9 = vcmp.eq.s32.totalorder %v15401_v12, %v16012_v15  ;;  %vm226_vm1 = vcmp.eq.s32.totalorder %v17952_v25, %v15586_v33  ;;  %vm228_vm11 = vcmp.eq.s32.totalorder %v15358_v24, %v15586_v33 }
 0x5fb   :  { %v7893_v13 = vsel %vm267_vm9, 1.0, %v17940_v28  ;;  %v7036_v12 = vmul.f32 %v7848_v8, %v17961_v36  ;;  %v7852_v23 = vsel %vm226_vm1, 1.0, %v17940_v28  ;;  %v7854_v33 = vsel %vm228_vm11, 1.0, %v17940_v28 }
 0x5fc   :  { %7153 = vmatmul.mubr.f32.gmra.mxu0 %v15461_v62  ;;  %7298 = vmatmul.mubr.f32.gmra.mxu1 %v15464_v9  ;;  %v7850_v62 = vsel %vm224_vm8, 1.0, %v17940_v28  ;;  %v7891_v9 = vsel %vm265_vm14, 1.0, %v17940_v28  ;;  %v16049_v46 = vmul.f32 %v7893_v13, %v15403_v22  ;;  %vm230_vm12 = vcmp.eq.s32.totalorder %v17952_v25, %v15625_v49 }
 0x5fd   :  { %7157 = vmatprep.mubr.f32.mxu0 %v7028_v40  ;;  %7302 = vmatprep.mubr.f32.mxu1 %v7030_v57  ;;  %v16046_v5 = vmul.f32 %v7891_v9, %v15398_v3  ;;  %v7038_v48 = vmul.f32 %v7850_v62, %v15360_v6  ;;  %vm232_vm13 = vcmp.eq.s32.totalorder %v15358_v24, %v15625_v49 }
 0x5fe   :  { %v7040_v3 = vmul.f32 %v7852_v23, %v17961_v36  ;;  %v7042_v22 = vmul.f32 %v7854_v33, %v15360_v6  ;;  %vm234_vm15 = vcmp.eq.s32.totalorder %v17952_v25, %v15661_v21  ;;  %vm236_vm2 = vcmp.eq.s32.totalorder %v15358_v24, %v15661_v21 }
 0x5ff   :  { %v7860_v49 = vsel %vm234_vm15, 1.0, %v17940_v28  ;;  %v7862_v58 = vsel %vm236_vm2, 1.0, %v17940_v28  ;;  %vm238_vm3 = vcmp.eq.s32.totalorder %v17952_v25, %v15719_v17  ;;  %vm240_vm4 = vcmp.eq.s32.totalorder %v15358_v24, %v15719_v17 }
 0x600   :  { %7158 = vmatmul.mubr.f32.gmra.mxu0 %v15500_v4  ;;  %7303 = vmatmul.mubr.f32.gmra.mxu1 %v15503_v14  ;;  %v7856_v4 = vsel %vm230_vm12, 1.0, %v17940_v28  ;;  %v7858_v14 = vsel %vm232_vm13, 1.0, %v17940_v28  ;;  %v7864_v21 = vsel %vm238_vm3, 1.0, %v17940_v28  ;;  %v7866_v29 = vsel %vm240_vm4, 1.0, %v17940_v28 }
 0x601   :  { %7162 = vmatprep.mubr.f32.mxu0 %v7032_v20  ;;  %7307 = vmatprep.mubr.f32.mxu1 %v7034_v42  ;;  %vm242_vm5 = vcmp.eq.s32.totalorder %v17952_v25, %v15758_v45  ;;  %vm244_vm10 = vcmp.eq.s32.totalorder %v15358_v24, %v15758_v45  ;;  %vm246_vm6 = vcmp.eq.s32.totalorder %v17952_v25, %v15799_v7 }
 0x602   :  { %v7868_v17 = vsel %vm242_vm5, 1.0, %v17940_v28  ;;  %v7870_v11 = vsel %vm244_vm10, 1.0, %v17940_v28  ;;  %vm248_vm7 = vcmp.eq.s32.totalorder %v15358_v24, %v15799_v7  ;;  %v7872_v45 = vsel %vm246_vm6, 1.0, %v17940_v28 }
 0x603   :  { %v7874_v59 = vsel %vm248_vm7, 1.0, %v17940_v28  ;;  %vm250_vm8 = vcmp.eq.s32.totalorder %v17952_v25, %v15838_v50  ;;  %vm252_vm14 = vcmp.eq.s32.totalorder %v15358_v24, %v15838_v50  ;;  %vm254_vm9 = vcmp.eq.s32.totalorder %v17952_v25, %v15879_v56 }
 0x604   :  { %7163 = vmatmul.mubr.f32.gmra.mxu0 %v15556_v41  ;;  %7308 = vmatmul.mubr.f32.gmra.mxu1 %v15563_v27  ;;  %v7044_v41 = vmul.f32 %v7856_v4, %v17961_v36  ;;  %v7046_v27 = vmul.f32 %v7858_v14, %v15360_v6  ;;  %v7876_v7 = vsel %vm250_vm8, 1.0, %v17940_v28  ;;  %v7878_v40 = vsel %vm252_vm14, 1.0, %v17940_v28 }
 0x605   :  { %7167 = vmatprep.mubr.f32.mxu0 %v7036_v12  ;;  %7312 = vmatprep.mubr.f32.mxu1 %v7038_v48  ;;  %vm256_vm1 = vcmp.eq.s32.totalorder %v15358_v24, %v15879_v56  ;;  %v7880_v50 = vsel %vm254_vm9, 1.0, %v17940_v28  ;;  %vm258_vm11 = vcmp.eq.s32.totalorder %v17952_v25, %v15930_v0  ;;  %vm260_vm12 = vcmp.eq.s32.totalorder %v15358_v24, %v15930_v0  ;;  %v17964_v0 = vld [vmem:[#allocation52_spill] sm:$0xff] }
 0x606   :  { %v7882_v57 = vsel %vm256_vm1, 1.0, %v17940_v28  ;;  %v7884_v56 = vsel %vm258_vm11, 1.0, %v17940_v28  ;;  %v7886_v32 = vsel %vm260_vm12, 1.0, %v17940_v28  ;;  %vm262_vm13 = vcmp.eq.s32.totalorder %v17952_v25, %v15999_v26 }
 0x607   :  { %vm264_vm15 = vcmp.eq.s32.totalorder %v15358_v24, %v15999_v26  ;;  %v7074_v37 = vmul.f32 %v7886_v32, %v15360_v6  ;;  %v7888_v31 = vsel %vm262_vm13, 1.0, %v17940_v28  ;;  %vm266_vm2 = vcmp.eq.s32.totalorder %v17952_v25, %v16012_v15 }
 0x608   :  { %7168 = vmatmul.mubr.f32.gmra.mxu0 %v15581_v2  ;;  %7313 = vmatmul.mubr.f32.gmra.mxu1 %v15602_v51  ;;  %v7048_v2 = vmul.f32 %v7860_v49, %v17961_v36  ;;  %v7050_v51 = vmul.f32 %v7862_v58, %v15360_v6  ;;  %v7890_v34 = vsel %vm264_vm15, 1.0, %v17940_v28  ;;  %vm268_vm3 = vcmp.eq.s32.totalorder %v15358_v24, %v16012_v15 }
 0x609   :  { %7172 = vmatprep.mubr.f32.mxu0 %v7040_v3  ;;  %7317 = vmatprep.mubr.f32.mxu1 %v7042_v22  ;;  %v7076_v26 = vmul.f32 %v7888_v31, %v17961_v36  ;;  %v7078_v20 = vmul.f32 %v7890_v34, %v15360_v6  ;;  %v7892_v42 = vsel %vm266_vm2, 1.0, %v17940_v28  ;;  %v7894_v8 = vsel %vm268_vm3, 1.0, %v17940_v28 }
 0x60a   :  { %v7080_v24 = vmul.f32 %v7892_v42, %v17961_v36  ;;  %v7082_v25 = vmul.f32 %v7894_v8, %v15360_v6  ;;  %v8166_v28 = vmov 20   ;;  %v17966_v48 = vmov 0  }
 0x60b   :  { %8066 = vset.pattern.permute.xlu0 %v8166_v28  ;;  %8067 = vset.pattern.permute.xlu1 %v8166_v28 }
 0x60c   :  { %7173 = vmatmul.mubr.f32.gmra.mxu0 %v15620_v43  ;;  %7318 = vmatmul.mubr.f32.gmra.mxu1 %v15641_v16  ;;  %v7052_v43 = vmul.f32 %v7864_v21, %v17961_v36  ;;  %v7054_v16 = vmul.f32 %v7866_v29, %v15360_v6 }
 0x60d   :  { %7177 = vmatprep.mubr.f32.mxu0 %v7044_v41  ;;  %7322 = vmatprep.mubr.f32.mxu1 %v7046_v27 }
 0x610   :  { %7178 = vmatmul.mubr.f32.gmra.mxu0 %v15672_v63  ;;  %7323 = vmatmul.mubr.f32.gmra.mxu1 %v15680_v35  ;;  %v7056_v63 = vmul.f32 %v7868_v17, %v17961_v36  ;;  %v7058_v35 = vmul.f32 %v7870_v11, %v15360_v6 }
 0x611   :  { %7182 = vmatprep.mubr.f32.mxu0 %v7048_v2  ;;  %7327 = vmatprep.mubr.f32.mxu1 %v7050_v51 }
 0x614   :  { %7183 = vmatmul.mubr.f32.gmra.mxu0 %v15708_v30  ;;  %7328 = vmatmul.mubr.f32.gmra.mxu1 %v15716_v52  ;;  %v7060_v30 = vmul.f32 %v7872_v45, %v17961_v36  ;;  %v7062_v52 = vmul.f32 %v7874_v59, %v15360_v6 }
 0x615   :  { %7187 = vmatprep.mubr.f32.mxu0 %v7052_v43  ;;  %7332 = vmatprep.mubr.f32.mxu1 %v7054_v16 }
 0x618   :  { %7188 = vmatmul.mubr.f32.gmra.mxu0 %v15769_v44  ;;  %7333 = vmatmul.mubr.f32.gmra.mxu1 %v15776_v18  ;;  %v7064_v44 = vmul.f32 %v7876_v7, %v17961_v36  ;;  %v7066_v18 = vmul.f32 %v7878_v40, %v15360_v6 }
 0x619   :  { %7192 = vmatprep.mubr.f32.mxu0 %v7056_v63  ;;  %7337 = vmatprep.mubr.f32.mxu1 %v7058_v35 }
 0x61c   :  { %7193 = vmatmul.mubr.f32.gmra.mxu0 %v15794_v38  ;;  %7338 = vmatmul.mubr.f32.gmra.mxu1 %v15815_v54  ;;  %v7068_v38 = vmul.f32 %v7880_v50, %v17961_v36  ;;  %v7070_v54 = vmul.f32 %v7882_v57, %v15360_v6 }
 0x61d   :  { %7197 = vmatprep.mubr.f32.mxu0 %v7060_v30  ;;  %7342 = vmatprep.mubr.f32.mxu1 %v7062_v52 }
 0x620   :  { %7198 = vmatmul.mubr.f32.gmra.mxu0 %v15833_v10  ;;  %7343 = vmatmul.mubr.f32.gmra.mxu1 %v15854_v55  ;;  %v17965_v10 = vld [vmem:[#allocation59_spill] sm:$0xff]  ;;  %v7072_v55 = vmul.f32 %v7884_v56, %v17961_v36 }
 0x621   :  { %7202 = vmatprep.mubr.f32.mxu0 %v7064_v44  ;;  %7347 = vmatprep.mubr.f32.mxu1 %v7066_v18 }
 0x624   :  { %7203 = vmatmul.mubr.f32.gmra.mxu0 %v17964_v0  ;;  %7348 = vmatmul.mubr.f32.gmra.mxu1 %v17965_v10 }
 0x625   :  { %7207 = vmatprep.mubr.f32.mxu0 %v7068_v38  ;;  %7352 = vmatprep.mubr.f32.mxu1 %v7070_v54 }
 0x628   :  { %7208 = vmatmul.mubr.f32.gmra.mxu0 %v15941_v47  ;;  %7353 = vmatmul.mubr.f32.gmra.mxu1 %v15952_v60 }
 0x629   :  { %7212 = vmatprep.mubr.f32.mxu0 %v7072_v55  ;;  %7357 = vmatprep.mubr.f32.mxu1 %v7074_v37 }
 0x62c   :  { %7213 = vmatmul.mubr.f32.gmra.mxu0 %v15990_v53  ;;  %7358 = vmatmul.mubr.f32.gmra.mxu1 %v15996_v39 }
 0x62d   :  { %7217 = vmatprep.mubr.f32.mxu0 %v7076_v26  ;;  %7362 = vmatprep.mubr.f32.mxu1 %v7078_v20 }
 0x630   :  { %7218 = vmatmul.mubr.f32.gmra.mxu0 %v16023_v61  ;;  %7363 = vmatmul.mubr.f32.gmra.mxu1 %v16030_v19 }
 0x631   :  { %7222 = vmatprep.mubr.f32.mxu0 %v7080_v24  ;;  %7367 = vmatprep.mubr.f32.mxu1 %v7082_v25 }
 0x634   :  { %7223 = vmatmul.mubr.f32.gmra.mxu0 %v16046_v5  ;;  %7368 = vmatmul.mubr.f32.gmra.mxu1 %v16049_v46 }
 0x6b8   :  { %v7927_v47 = vpop.f32.mrf.mxu0  ;;  %v8007_v60 = vpop.f32.mrf.mxu1 }
 0x6ba   :  { %v7928_v53 = vpop.f32.mrf.mxu0  ;;  %v8008_v39 = vpop.f32.mrf.mxu1 }
 0x6bb   :  { %v7929_v36 = vadd.f32 %v7928_v53, %v7927_v47  ;;  %v8009_v15 = vadd.f32 %v8008_v39, %v8007_v60 }
 0x6bc   :  { %v7930_v6 = vpop.f32.mrf.mxu0  ;;  %v8010_v62 = vpop.f32.mrf.mxu1 }
 0x6bd   :  { %v16165_v61 = vadd.f32 %v8009_v15, %v7929_v36 }
 0x6be   :  { %v7931_v19 = vpop.f32.mrf.mxu0  ;;  %v8011_v9 = vpop.f32.mrf.mxu1 }
 0x6bf   :  { %v7932_v13 = vadd.f32 %v7931_v19, %v7930_v6  ;;  %v8012_v12 = vadd.f32 %v8011_v9, %v8010_v62  ;;  %vm7373_vm4 = vcmp.gt.f32.partialorder %v16165_v61, 0.0 }
 0x6c0   :  { %v7933_v5 = vpop.f32.mrf.mxu0  ;;  %v8013_v46 = vpop.f32.mrf.mxu1  ;;  %v7389_v23 = vsel %vm7373_vm4, 1, %v17966_v48 }
 0x6c1   :  { %v16169_v33 = vadd.f32 %v8012_v12, %v7932_v13  ;;  %7406 = vperm.xlu0 %8066, %v7389_v23  }
 0x6c2   :  { %v7934_v3 = vpop.f32.mrf.mxu0  ;;  %v8014_v22 = vpop.f32.mrf.mxu1 }
 0x6c3   :  { %v7935_v4 = vadd.f32 %v7934_v3, %v7933_v5  ;;  %v8015_v14 = vadd.f32 %v8014_v22, %v8013_v46  ;;  %vm7374_vm5 = vcmp.gt.f32.partialorder %v16169_v33, 0.0 }
 0x6c4   :  { %v7936_v41 = vpop.f32.mrf.mxu0  ;;  %v8016_v27 = vpop.f32.mrf.mxu1  ;;  %v7390_v49 = vsel %vm7374_vm5, 1, %v17966_v48  ;;  %vm7501_vm5 = vcmp.eq.s32.totalorder %v8208_v1, 16 }
 0x6c5   :  { %v16173_v58 = vadd.f32 %v8015_v14, %v7935_v4  ;;  %7409 = vperm.xlu1 %8067, %v7390_v49  }
 0x6c6   :  { %v7937_v2 = vpop.f32.mrf.mxu0  ;;  %v8017_v51 = vpop.f32.mrf.mxu1 }
 0x6c7   :  { %v7938_v21 = vadd.f32 %v7937_v2, %v7936_v41  ;;  %v8018_v29 = vadd.f32 %v8017_v51, %v8016_v27  ;;  %vm7375_vm10 = vcmp.gt.f32.partialorder %v16173_v58, 0.0 }
 0x6c8   :  { %v7939_v43 = vpop.f32.mrf.mxu0  ;;  %v8019_v16 = vpop.f32.mrf.mxu1  ;;  %v7391_v17 = vsel %vm7375_vm10, 1, %v17966_v48 }
 0x6c9   :  { %v16177_v11 = vadd.f32 %v8018_v29, %v7938_v21  ;;  %7412 = vperm.xlu1 %8067, %v7391_v17  }
 0x6ca   :  { %v7940_v63 = vpop.f32.mrf.mxu0  ;;  %v8020_v35 = vpop.f32.mrf.mxu1 }
 0x6cb   :  { %v7941_v45 = vadd.f32 %v7940_v63, %v7939_v43  ;;  %v8021_v59 = vadd.f32 %v8020_v35, %v8019_v16  ;;  %vm7376_vm6 = vcmp.gt.f32.partialorder %v16177_v11, 0.0 }
 0x6cc   :  { %v7942_v30 = vpop.f32.mrf.mxu0  ;;  %v8022_v52 = vpop.f32.mrf.mxu1  ;;  %v7392_v7 = vsel %vm7376_vm6, 1, %v17966_v48  ;;  %vm7518_vm6 = vcmask 171008  }
 0x6cd   :  { %v16181_v40 = vadd.f32 %v8021_v59, %v7941_v45  ;;  %7415 = vperm.xlu0 %8066, %v7392_v7  }
 0x6ce   :  { %v7943_v44 = vpop.f32.mrf.mxu0  ;;  %v8023_v18 = vpop.f32.mrf.mxu1 }
 0x6cf   :  { %v7944_v50 = vadd.f32 %v7943_v44, %v7942_v30  ;;  %v8024_v57 = vadd.f32 %v8023_v18, %v8022_v52  ;;  %vm7377_vm7 = vcmp.gt.f32.partialorder %v16181_v40, 0.0 }
 0x6d0   :  { %v7945_v38 = vpop.f32.mrf.mxu0  ;;  %v8025_v54 = vpop.f32.mrf.mxu1  ;;  %v7393_v56 = vsel %vm7377_vm7, 1, %v17966_v48 }
 0x6d1   :  { %v16185_v32 = vadd.f32 %v8024_v57, %v7944_v50  ;;  %7418 = vperm.xlu1 %8067, %v7393_v56  }
 0x6d2   :  { %v7946_v0 = vpop.f32.mrf.mxu0  ;;  %v8026_v10 = vpop.f32.mrf.mxu1 }
 0x6d3   :  { %v7947_v55 = vadd.f32 %v7946_v0, %v7945_v38  ;;  %v8027_v37 = vadd.f32 %v8026_v10, %v8025_v54  ;;  %vm7378_vm8 = vcmp.gt.f32.partialorder %v16185_v32, 0.0 }
 0x6d4   :  { %v7948_v31 = vpop.f32.mrf.mxu0  ;;  %v8028_v34 = vpop.f32.mrf.mxu1  ;;  %v7394_v26 = vsel %vm7378_vm8, 1, %v17966_v48 }
 0x6d5   :  { %v16189_v20 = vadd.f32 %v8027_v37, %v7947_v55  ;;  %7421 = vperm.xlu0 %8066, %v7394_v26  }
 0x6d6   :  { %v7949_v42 = vpop.f32.mrf.mxu0  ;;  %v8029_v8 = vpop.f32.mrf.mxu1 }
 0x6d7   :  { %v7950_v24 = vadd.f32 %v7949_v42, %v7948_v31  ;;  %v8030_v25 = vadd.f32 %v8029_v8, %v8028_v34  ;;  %vm7379_vm14 = vcmp.gt.f32.partialorder %v16189_v20, 0.0 }
 0x6d8   :  { %v7951_v28 = vpop.f32.mrf.mxu0  ;;  %v8031_v47 = vpop.f32.mrf.mxu1  ;;  %v7395_v60 = vsel %vm7379_vm14, 1, %v17966_v48 }
 0x6d9   :  { %v16193_v53 = vadd.f32 %v8030_v25, %v7950_v24  ;;  %7424 = vperm.xlu1 %8067, %v7395_v60  }
 0x6da   :  { %v7952_v39 = vpop.f32.mrf.mxu0  ;;  %v8032_v36 = vpop.f32.mrf.mxu1 }
 0x6db   :  { %v7953_v15 = vadd.f32 %v7952_v39, %v7951_v28  ;;  %v8033_v6 = vadd.f32 %v8032_v36, %v8031_v47  ;;  %vm7380_vm9 = vcmp.gt.f32.partialorder %v16193_v53, 0.0 }
 0x6dc   :  { %v7954_v62 = vpop.f32.mrf.mxu0  ;;  %v8034_v19 = vpop.f32.mrf.mxu1  ;;  %v7396_v9 = vsel %vm7380_vm9, 1, %v17966_v48 }
 0x6dd   :  { %v16197_v13 = vadd.f32 %v8033_v6, %v7953_v15  ;;  %7427 = vperm.xlu0 %8066, %v7396_v9  }
 0x6de   :  { %v7955_v12 = vpop.f32.mrf.mxu0  ;;  %v8035_v5 = vpop.f32.mrf.mxu1 }
 0x6df   :  { %v7956_v46 = vadd.f32 %v7955_v12, %v7954_v62  ;;  %v8036_v23 = vadd.f32 %v8035_v5, %v8034_v19  ;;  %vm7381_vm1 = vcmp.gt.f32.partialorder %v16197_v13, 0.0 }
 0x6e0   :  { %v7957_v3 = vpop.f32.mrf.mxu0  ;;  %v8037_v22 = vpop.f32.mrf.mxu1  ;;  %v7397_v4 = vsel %vm7381_vm1, 1, %v17966_v48 }
 0x6e1   :  { %v16201_v14 = vadd.f32 %v8036_v23, %v7956_v46  ;;  %7430 = vperm.xlu1 %8067, %v7397_v4  }
 0x6e2   :  { %v7958_v41 = vpop.f32.mrf.mxu0  ;;  %v8038_v27 = vpop.f32.mrf.mxu1 }
 0x6e3   :  { %v7959_v49 = vadd.f32 %v7958_v41, %v7957_v3  ;;  %v8039_v2 = vadd.f32 %v8038_v27, %v8037_v22  ;;  %vm7382_vm11 = vcmp.gt.f32.partialorder %v16201_v14, 0.0  ;;  %v7535_v3 = vld [vmem:[#allocation5] sm:$0xff] }
 0x6e4   :  { %v7960_v51 = vpop.f32.mrf.mxu0  ;;  %v8040_v21 = vpop.f32.mrf.mxu1  ;;  %v7398_v29 = vsel %vm7382_vm11, 1, %v17966_v48 }
 0x6e5   :  { %v16205_v43 = vadd.f32 %v8039_v2, %v7959_v49  ;;  %7433 = vperm.xlu0 %8066, %v7398_v29  }
 0x6e6   :  { %v7961_v16 = vpop.f32.mrf.mxu0  ;;  %v8041_v17 = vpop.f32.mrf.mxu1 }
 0x6e7   :  { %v7962_v63 = vadd.f32 %v7961_v16, %v7960_v51  ;;  %v8042_v35 = vadd.f32 %v8041_v17, %v8040_v21  ;;  %vm7383_vm12 = vcmp.gt.f32.partialorder %v16205_v43, 0.0  ;;  %v7536_v51 = vld [vmem:[#allocation5 + $0x8] sm:$0xff] }
 0x6e8   :  { %v7963_v45 = vpop.f32.mrf.mxu0  ;;  %v8043_v59 = vpop.f32.mrf.mxu1  ;;  %v7399_v30 = vsel %vm7383_vm12, 1, %v17966_v48 }
 0x6e9   :  { %v16209_v52 = vadd.f32 %v8042_v35, %v7962_v63  ;;  %7436 = vperm.xlu1 %8067, %v7399_v30  }
 0x6ea   :  { %v7964_v7 = vpop.f32.mrf.mxu0  ;;  %v8044_v44 = vpop.f32.mrf.mxu1 }
 0x6eb   :  { %v7965_v18 = vadd.f32 %v7964_v7, %v7963_v45  ;;  %v8045_v50 = vadd.f32 %v8044_v44, %v8043_v59  ;;  %vm7384_vm13 = vcmp.gt.f32.partialorder %v16209_v52, 0.0  ;;  %v7537_v59 = vld [vmem:[#allocation5 + $0x10] sm:$0xff] }
 0x6ec   :  { %v7966_v57 = vpop.f32.mrf.mxu0  ;;  %v8046_v38 = vpop.f32.mrf.mxu1  ;;  %v7400_v54 = vsel %vm7384_vm13, 1, %v17966_v48 }
 0x6ed   :  { %v16213_v56 = vadd.f32 %v8045_v50, %v7965_v18  ;;  %7439 = vperm.xlu0 %8066, %v7400_v54   ;;  %v7538_v54 = vld [vmem:[#allocation5 + $0x18] sm:$0xff] }
 0x6ee   :  { %v7967_v0 = vpop.f32.mrf.mxu0  ;;  %v8047_v10 = vpop.f32.mrf.mxu1 }
 0x6ef   :  { %v7968_v55 = vadd.f32 %v7967_v0, %v7966_v57  ;;  %v8048_v37 = vadd.f32 %v8047_v10, %v8046_v38  ;;  %vm7385_vm15 = vcmp.gt.f32.partialorder %v16213_v56, 0.0 }
 0x6f0   :  { %v7969_v31 = vpop.f32.mrf.mxu0  ;;  %v8049_v34 = vpop.f32.mrf.mxu1  ;;  %v7401_v26 = vsel %vm7385_vm15, 1, %v17966_v48 }
 0x6f1   :  { %v16217_v42 = vadd.f32 %v8048_v37, %v7968_v55  ;;  %7442 = vperm.xlu1 %8067, %v7401_v26  }
 0x6f2   :  { %v7970_v8 = vpop.f32.mrf.mxu0  ;;  %v8050_v24 = vpop.f32.mrf.mxu1 }
 0x6f3   :  { %v7971_v25 = vadd.f32 %v7970_v8, %v7969_v31  ;;  %v8051_v28 = vadd.f32 %v8050_v24, %v8049_v34  ;;  %vm7386_vm2 = vcmp.gt.f32.partialorder %v16217_v42, 0.0  ;;  %v7539_v8 = vld [vmem:[#allocation5 + $0x20] sm:$0xff] }
 0x6f4   :  { %v7972_v47 = vpop.f32.mrf.mxu0  ;;  %v8052_v60 = vpop.f32.mrf.mxu1  ;;  %v7402_v39 = vsel %vm7386_vm2, 1, %v17966_v48 }
 0x6f5   :  { %v16221_v36 = vadd.f32 %v8051_v28, %v7971_v25  ;;  %7445 = vperm.xlu0 %8066, %v7402_v39  }
 0x6f6   :  { %v7973_v15 = vpop.f32.mrf.mxu0  ;;  %v8053_v6 = vpop.f32.mrf.mxu1 }
 0x6f7   :  { %v7974_v62 = vadd.f32 %v7973_v15, %v7972_v47  ;;  %v8054_v19 = vadd.f32 %v8053_v6, %v8052_v60  ;;  %vm7387_vm3 = vcmp.gt.f32.partialorder %v16221_v36, 0.0  ;;  %v7540_v6 = vld [vmem:[#allocation5 + $0x28] sm:$0xff] }
 0x6f8   :  { %v7403_v9 = vsel %vm7387_vm3, 1, %v17966_v48 }
 0x6f9   :  { %v16225_v12 = vadd.f32 %v8054_v19, %v7974_v62  ;;  %7448 = vperm.xlu1 %8067, %v7403_v9  }
 0x6fb   :  { %vm7388_vm4 = vcmp.gt.f32.partialorder %v16225_v12, 0.0 }
 0x6fc   :  { %v7404_v5 = vsel %vm7388_vm4, 1, %v17966_v48 }
 0x6fd   :  { %7451 = vperm.xlu0 %8066, %v7404_v5  }
 0x73c   :  { %v7407_v46 = vpop.permute.xlu0 %7406 }
 0x73d   :  { %vm7453_vm10 = vcmp.eq.s32.totalorder %v7407_v46, 1 }
 0x73e   :  { %v7469_v23 = vsel %vm7453_vm10, %v16165_v61, -3.4028235e+38 }
 0x73f   :  { %v7485_v22 = vsel %vm126_vm0, %v7469_v23, %v16165_v61 }
 0x740   :  { %v7502_v4 = vsel %vm7501_vm5, 0.0, %v7485_v22  ;;  %v7410_v41 = vpop.permute.xlu1 %7409  ;;  %v7541_v22 = vld [vmem:[#allocation5 + $0x30] sm:$0xff] }
 0x741   :  { %v7519_v27 = vsel %vm7518_vm6, %v7502_v4, 0.0  ;;  %vm7454_vm7 = vcmp.eq.s32.totalorder %v7410_v41, 1 }
 0x742   :  { %v7551_v48 = vmax.f32 %v7535_v3, %v7519_v27  ;;  %v7567_v49 = vadd.f32 %v7535_v3, %v7519_v27  ;;  %v7470_v2 = vsel %vm7454_vm7, %v16169_v33, -3.4028235e+38 }
 0x743   :  { %v7486_v21 = vsel %vm126_vm0, %v7470_v2, %v16169_v33 }
 0x744   :  { %v7583_v29 = vsel %vm126_vm0, %v7551_v48, %v7567_v49  ;;  %v7503_v61 = vsel %vm7501_vm5, 0.0, %v7486_v21  ;;  %v7413_v16 = vpop.permute.xlu1 %7412  ;;  %v7542_v21 = vld [vmem:[#allocation5 + $0x38] sm:$0xff] }
 0x745   :  { %7599 = vst [vmem:[#allocation5] sm:$0xff] %v7583_v29  ;;  %v7520_v17 = vsel %vm7518_vm6, %v7503_v61, 0.0  ;;  %vm7455_vm8 = vcmp.eq.s32.totalorder %v7413_v16, 1 }
 0x746   :  { %v7552_v63 = vmax.f32 %v7536_v51, %v7520_v17  ;;  %v7568_v35 = vadd.f32 %v7536_v51, %v7520_v17  ;;  %v7471_v45 = vsel %vm7455_vm8, %v16173_v58, -3.4028235e+38 }
 0x747   :  { %v7487_v33 = vsel %vm126_vm0, %v7471_v45, %v16173_v58 }
 0x748   :  { %v7584_v30 = vsel %vm126_vm0, %v7552_v63, %v7568_v35  ;;  %v7504_v7 = vsel %vm7501_vm5, 0.0, %v7487_v33  ;;  %v7416_v44 = vpop.permute.xlu0 %7415 }
 0x749   :  { %7600 = vst [vmem:[#allocation5 + $0x8] sm:$0xff] %v7584_v30  ;;  %v7521_v18 = vsel %vm7518_vm6, %v7504_v7, 0.0  ;;  %vm7456_vm14 = vcmp.eq.s32.totalorder %v7416_v44, 1 }
 0x74a   :  { %v7553_v50 = vmax.f32 %v7537_v59, %v7521_v18  ;;  %v7569_v57 = vadd.f32 %v7537_v59, %v7521_v18  ;;  %v7472_v38 = vsel %vm7456_vm14, %v16177_v11, -3.4028235e+38  ;;  %v7543_v59 = vld [vmem:[#allocation5 + $0x40] sm:$0xff] }
 0x74b   :  { %v7488_v58 = vsel %vm126_vm0, %v7472_v38, %v16177_v11  ;;  %v7544_v38 = vld [vmem:[#allocation5 + $0x48] sm:$0xff] }
 0x74c   :  { %v7585_v0 = vsel %vm126_vm0, %v7553_v50, %v7569_v57  ;;  %v7505_v10 = vsel %vm7501_vm5, 0.0, %v7488_v58  ;;  %v7419_v55 = vpop.permute.xlu1 %7418 }
 0x74d   :  { %7601 = vst [vmem:[#allocation5 + $0x10] sm:$0xff] %v7585_v0  ;;  %v7522_v37 = vsel %vm7518_vm6, %v7505_v10, 0.0  ;;  %vm7457_vm9 = vcmp.eq.s32.totalorder %v7419_v55, 1 }
 0x74e   :  { %v7554_v31 = vmax.f32 %v7538_v54, %v7522_v37  ;;  %v7570_v34 = vadd.f32 %v7538_v54, %v7522_v37  ;;  %v7473_v26 = vsel %vm7457_vm9, %v16181_v40, -3.4028235e+38 }
 0x74f   :  { %v7489_v11 = vsel %vm126_vm0, %v7473_v26, %v16181_v40 }
 0x750   :  { %v7586_v24 = vsel %vm126_vm0, %v7554_v31, %v7570_v34  ;;  %v7506_v25 = vsel %vm7501_vm5, 0.0, %v7489_v11  ;;  %v7422_v28 = vpop.permute.xlu0 %7421  ;;  %v7545_v34 = vld [vmem:[#allocation5 + $0x50] sm:$0xff] }
 0x751   :  { %7602 = vst [vmem:[#allocation5 + $0x18] sm:$0xff] %v7586_v24  ;;  %v7523_v47 = vsel %vm7518_vm6, %v7506_v25, 0.0  ;;  %vm7458_vm1 = vcmp.eq.s32.totalorder %v7422_v28, 1 }
 0x752   :  { %v7555_v60 = vmax.f32 %v7539_v8, %v7523_v47  ;;  %v7571_v39 = vadd.f32 %v7539_v8, %v7523_v47  ;;  %v7474_v15 = vsel %vm7458_vm1, %v16185_v32, -3.4028235e+38 }
 0x753   :  { %v7490_v40 = vsel %vm126_vm0, %v7474_v15, %v16185_v32 }
 0x754   :  { %v7587_v62 = vsel %vm126_vm0, %v7555_v60, %v7571_v39  ;;  %v7507_v19 = vsel %vm7501_vm5, 0.0, %v7490_v40  ;;  %v7425_v9 = vpop.permute.xlu1 %7424  ;;  %v7546_v60 = vld [vmem:[#allocation5 + $0x58] sm:$0xff] }
 0x755   :  { %7603 = vst [vmem:[#allocation5 + $0x20] sm:$0xff] %v7587_v62  ;;  %v7524_v5 = vsel %vm7518_vm6, %v7507_v19, 0.0  ;;  %vm7459_vm11 = vcmp.eq.s32.totalorder %v7425_v9, 1 }
 0x756   :  { %v7556_v46 = vmax.f32 %v7540_v6, %v7524_v5  ;;  %v7572_v23 = vadd.f32 %v7540_v6, %v7524_v5  ;;  %v7475_v3 = vsel %vm7459_vm11, %v16189_v20, -3.4028235e+38  ;;  %v7547_v5 = vld [vmem:[#allocation5 + $0x60] sm:$0xff] }
 0x757   :  { %v7491_v32 = vsel %vm126_vm0, %v7475_v3, %v16189_v20 }
 0x758   :  { %v7588_v4 = vsel %vm126_vm0, %v7556_v46, %v7572_v23  ;;  %v7508_v41 = vsel %vm7501_vm5, 0.0, %v7491_v32  ;;  %v7428_v27 = vpop.permute.xlu0 %7427 }
 0x759   :  { %7604 = vst [vmem:[#allocation5 + $0x28] sm:$0xff] %v7588_v4  ;;  %v7525_v48 = vsel %vm7518_vm6, %v7508_v41, 0.0  ;;  %vm7460_vm12 = vcmp.eq.s32.totalorder %v7428_v27, 1  ;;  %v7548_v27 = vld [vmem:[#allocation5 + $0x68] sm:$0xff] }
 0x75a   :  { %v7557_v49 = vmax.f32 %v7541_v22, %v7525_v48  ;;  %v7573_v2 = vadd.f32 %v7541_v22, %v7525_v48  ;;  %v7476_v51 = vsel %vm7460_vm12, %v16193_v53, -3.4028235e+38 }
 0x75b   :  { %v7492_v20 = vsel %vm126_vm0, %v7476_v51, %v16193_v53 }
 0x75c   :  { %v7589_v29 = vsel %vm126_vm0, %v7557_v49, %v7573_v2  ;;  %v7509_v61 = vsel %vm7501_vm5, 0.0, %v7492_v20  ;;  %v7431_v16 = vpop.permute.xlu1 %7430 }
 0x75d   :  { %7605 = vst [vmem:[#allocation5 + $0x30] sm:$0xff] %v7589_v29  ;;  %v7526_v17 = vsel %vm7518_vm6, %v7509_v61, 0.0  ;;  %vm7461_vm13 = vcmp.eq.s32.totalorder %v7431_v16, 1  ;;  %v7549_v61 = vld [vmem:[#allocation5 + $0x70] sm:$0xff] }
 0x75e   :  { %v7558_v63 = vmax.f32 %v7542_v21, %v7526_v17  ;;  %v7574_v35 = vadd.f32 %v7542_v21, %v7526_v17  ;;  %v7477_v45 = vsel %vm7461_vm13, %v16197_v13, -3.4028235e+38 }
 0x75f   :  { %v7493_v53 = vsel %vm126_vm0, %v7477_v45, %v16197_v13 }
 0x760   :  { %v7590_v33 = vsel %vm126_vm0, %v7558_v63, %v7574_v35  ;;  %v7510_v30 = vsel %vm7501_vm5, 0.0, %v7493_v53  ;;  %v7434_v7 = vpop.permute.xlu0 %7433 }
 0x761   :  { %7606 = vst [vmem:[#allocation5 + $0x38] sm:$0xff] %v7590_v33  ;;  %v7527_v44 = vsel %vm7518_vm6, %v7510_v30, 0.0  ;;  %vm7462_vm15 = vcmp.eq.s32.totalorder %v7434_v7, 1  ;;  %v7550_v33 = vld [vmem:[#allocation5 + $0x78] sm:$0xff] }
 0x762   :  { %v7559_v18 = vmax.f32 %v7543_v59, %v7527_v44  ;;  %v7575_v50 = vadd.f32 %v7543_v59, %v7527_v44  ;;  %v7478_v57 = vsel %vm7462_vm15, %v16201_v14, -3.4028235e+38 }
 0x763   :  { %v7494_v13 = vsel %vm126_vm0, %v7478_v57, %v16201_v14 }
 0x764   :  { %v7591_v54 = vsel %vm126_vm0, %v7559_v18, %v7575_v50  ;;  %v7511_v58 = vsel %vm7501_vm5, 0.0, %v7494_v13  ;;  %v7437_v0 = vpop.permute.xlu1 %7436 }
 0x765   :  { %7607 = vst [vmem:[#allocation5 + $0x40] sm:$0xff] %v7591_v54  ;;  %v7528_v10 = vsel %vm7518_vm6, %v7511_v58, 0.0  ;;  %vm7463_vm2 = vcmp.eq.s32.totalorder %v7437_v0, 1 }
 0x766   :  { %v7560_v55 = vmax.f32 %v7544_v38, %v7528_v10  ;;  %v7576_v37 = vadd.f32 %v7544_v38, %v7528_v10  ;;  %v7479_v31 = vsel %vm7463_vm2, %v16205_v43, -3.4028235e+38 }
 0x767   :  { %v7495_v14 = vsel %vm126_vm0, %v7479_v31, %v16205_v43 }
 0x768   :  { %v7592_v26 = vsel %vm126_vm0, %v7560_v55, %v7576_v37  ;;  %v7512_v8 = vsel %vm7501_vm5, 0.0, %v7495_v14  ;;  %v7440_v11 = vpop.permute.xlu0 %7439 }
 0x769   :  { %7608 = vst [vmem:[#allocation5 + $0x48] sm:$0xff] %v7592_v26  ;;  %v7529_v24 = vsel %vm7518_vm6, %v7512_v8, 0.0  ;;  %vm7464_vm3 = vcmp.eq.s32.totalorder %v7440_v11, 1 }
 0x76a   :  { %v7561_v25 = vmax.f32 %v7545_v34, %v7529_v24  ;;  %v7577_v28 = vadd.f32 %v7545_v34, %v7529_v24  ;;  %v7480_v47 = vsel %vm7464_vm3, %v16209_v52, -3.4028235e+38 }
 0x76b   :  { %v7496_v43 = vsel %vm126_vm0, %v7480_v47, %v16209_v52 }
 0x76c   :  { %v7593_v39 = vsel %vm126_vm0, %v7561_v25, %v7577_v28  ;;  %v7513_v15 = vsel %vm7501_vm5, 0.0, %v7496_v43  ;;  %v7443_v6 = vpop.permute.xlu1 %7442 }
 0x76d   :  { %7609 = vst [vmem:[#allocation5 + $0x50] sm:$0xff] %v7593_v39  ;;  %v7530_v40 = vsel %vm7518_vm6, %v7513_v15, 0.0  ;;  %vm7465_vm4 = vcmp.eq.s32.totalorder %v7443_v6, 1 }
 0x76e   :  { %v7562_v62 = vmax.f32 %v7546_v60, %v7530_v40  ;;  %v7578_v19 = vadd.f32 %v7546_v60, %v7530_v40  ;;  %v7481_v9 = vsel %vm7465_vm4, %v16213_v56, -3.4028235e+38 }
 0x76f   :  { %v7497_v52 = vsel %vm126_vm0, %v7481_v9, %v16213_v56 }
 0x770   :  { %v7594_v46 = vsel %vm126_vm0, %v7562_v62, %v7578_v19  ;;  %v7514_v23 = vsel %vm7501_vm5, 0.0, %v7497_v52  ;;  %v7446_v3 = vpop.permute.xlu0 %7445 }
 0x771   :  { %7610 = vst [vmem:[#allocation5 + $0x58] sm:$0xff] %v7594_v46  ;;  %v7531_v22 = vsel %vm7518_vm6, %v7514_v23, 0.0  ;;  %vm7466_vm10 = vcmp.eq.s32.totalorder %v7446_v3, 1 }
 0x772   :  { %v7563_v32 = vmax.f32 %v7547_v5, %v7531_v22  ;;  %v7579_v4 = vadd.f32 %v7547_v5, %v7531_v22  ;;  %v7482_v41 = vsel %vm7466_vm10, %v16217_v42, -3.4028235e+38 }
 0x773   :  { %v7498_v56 = vsel %vm126_vm0, %v7482_v41, %v16217_v42 }
 0x774   :  { %v7595_v48 = vsel %vm126_vm0, %v7563_v32, %v7579_v4  ;;  %v7515_v49 = vsel %vm7501_vm5, 0.0, %v7498_v56  ;;  %v7449_v2 = vpop.permute.xlu1 %7448 }
 0x775   :  { %7611 = vst [vmem:[#allocation5 + $0x60] sm:$0xff] %v7595_v48  ;;  %v7532_v51 = vsel %vm7518_vm6, %v7515_v49, 0.0  ;;  %vm7467_vm7 = vcmp.eq.s32.totalorder %v7449_v2, 1 }
 0x776   :  { %v7564_v21 = vmax.f32 %v7548_v27, %v7532_v51  ;;  %v7580_v20 = vadd.f32 %v7548_v27, %v7532_v51  ;;  %v7483_v29 = vsel %vm7467_vm7, %v16221_v36, -3.4028235e+38 }
 0x777   :  { %v7499_v42 = vsel %vm126_vm0, %v7483_v29, %v16221_v36 }
 0x778   :  { %v7596_v16 = vsel %vm126_vm0, %v7564_v21, %v7580_v20  ;;  %v7516_v17 = vsel %vm7501_vm5, 0.0, %v7499_v42  ;;  %v7452_v63 = vpop.permute.xlu0 %7451 }
 0x779   :  { %7612 = vst [vmem:[#allocation5 + $0x68] sm:$0xff] %v7596_v16  ;;  %v7533_v35 = vsel %vm7518_vm6, %v7516_v17, 0.0  ;;  %vm7468_vm8 = vcmp.eq.s32.totalorder %v7452_v63, 1 }
 0x77a   :  { %v7565_v45 = vmax.f32 %v7549_v61, %v7533_v35  ;;  %v7581_v59 = vadd.f32 %v7549_v61, %v7533_v35  ;;  %v7484_v53 = vsel %vm7468_vm8, %v16225_v12, -3.4028235e+38 }
 0x77b   :  { %v7500_v36 = vsel %vm126_vm0, %v7484_v53, %v16225_v12 }
 0x77c   :  { %v7597_v30 = vsel %vm126_vm0, %v7565_v45, %v7581_v59  ;;  %v7517_v7 = vsel %vm7501_vm5, 0.0, %v7500_v36 }
 0x77d   :  { %7613 = vst [vmem:[#allocation5 + $0x70] sm:$0xff] %v7597_v30  ;;  %v7534_v44 = vsel %vm7518_vm6, %v7517_v7, 0.0 }
 0x77e   :  { %v7566_v18 = vmax.f32 %v7550_v33, %v7534_v44  ;;  %v7582_v50 = vadd.f32 %v7550_v33, %v7534_v44 }
 0x780   :  { %v7598_v57 = vsel %vm126_vm0, %v7566_v18, %v7582_v50 }
 0x781   :  { %7614 = vst [vmem:[#allocation5 + $0x78] sm:$0xff] %v7598_v57 }
 0x782 PF:  { %v16374_v38 = vld [vmem:[#allocation5 + $0x10] sm:$0xff]  ;;  %v16376_v13 = vld [vmem:[#allocation5] sm:$0xff]  ;;  %v16378_v12 = vld [vmem:[#allocation5 + $0x18] sm:$0xff]  ;;  %v8167_v54 = vmov 20   ;;  %vm7666_vm0 = vcmp.gt.s32.totalorder %v8208_v1, 16  ;;  %vm7667_vm5 = vcmp.lt.s32.totalorder %v8208_v1, 20 }
 0x783   :  { %8107 = vset.pattern.permute.xlu1 %v8167_v54  ;;  %8106 = vset.pattern.permute.xlu0 %v8167_v54  ;;  %v7636_v58 = vmax.f32 %v16374_v38, 1.0  ;;  %v7634_v0 = vmax.f32 %v16376_v13, 1.0  ;;  %v7637_v10 = vmax.f32 %v16378_v12, 1.0  ;;  %v16383_v55 = vld [vmem:[#allocation5 + $0x8] sm:$0xff]  ;;  %v16388_v34 = vld [vmem:[#allocation5 + $0x20] sm:$0xff]  ;;  %vm16424_vm6 = vmand %vm7666_vm0, %vm7667_vm5  ;;  %s8168_s2 = smov [#allocation5]  }
 0x784   :  { %v7635_v37 = vmax.f32 %v16383_v55, 1.0  ;;  %v16386_v31 = vld [vmem:[#allocation5 + $0x28] sm:$0xff]  ;;  %v7638_v26 = vmax.f32 %v16388_v34, 1.0  ;;  %v16392_v8 = vld [vmem:[#allocation5 + $0x38] sm:$0xff]  ;;  %v16394_v11 = vld [vmem:[#allocation5 + $0x30] sm:$0xff]  ;;  %s7802_s3 = sshll.u32 %s8168_s2, 4  ;;  %s7803_s3 = int_to_ptr.vmem [resolvable:$true] %s7802_s3 }
 0x785   :  { %8108 = vrcp.f32 %v7636_v58  ;;  %v7639_v14 = vmax.f32 %v16386_v31, 1.0  ;;  %v7641_v24 = vmax.f32 %v16392_v8, 1.0  ;;  %v7640_v25 = vmax.f32 %v16394_v11, 1.0  ;;  %v16398_v28 = vld [vmem:[#allocation5 + $0x48] sm:$0xff]  ;;  %v16400_v47 = vld [vmem:[#allocation5 + $0x40] sm:$0xff]  ;;  %s8140_s14 = scalar_lea.vmem %s7803_s3, 2048  ;;  %p8145_p5 = scmp.lt.s32.totalorder %s7803_s3, %s7803_s3 }
 0x786   :  { %8110 = vrcp.f32 %v7634_v0  ;;  %v7643_v60 = vmax.f32 %v16398_v28, 1.0  ;;  %v7642_v43 = vmax.f32 %v16400_v47, 1.0  ;;  %v16404_v39 = vld [vmem:[#allocation5 + $0x58] sm:$0xff]  ;;  %v16406_v15 = vld [vmem:[#allocation5 + $0x50] sm:$0xff]  ;;  %p8141_p4 = scmp.ne.s32.totalorder %s7803_s3, %s8140_s14  ;;  %p8146_p6 = scmp.lt.s32.totalorder %s8140_s14, %s8140_s14 }
 0x787   :  { %8112 = vrcp.f32 %v7637_v10  ;;  %v7645_v62 = vmax.f32 %v16404_v39, 1.0  ;;  %v7644_v9 = vmax.f32 %v16406_v15, 1.0  ;;  %v16410_v5 = vld [vmem:[#allocation5 + $0x68] sm:$0xff]  ;;  %v16412_v46 = vld [vmem:[#allocation5 + $0x60] sm:$0xff] }
 0x788   :  { %8114 = vrcp.f32 %v7635_v37  ;;  %v7647_v23 = vmax.f32 %v16410_v5, 1.0  ;;  %v7646_v22 = vmax.f32 %v16412_v46, 1.0  ;;  %v16416_v32 = vld [vmem:[#allocation5 + $0x78] sm:$0xff]  ;;  %v16418_v41 = vld [vmem:[#allocation5 + $0x70] sm:$0xff]  ;;  %p8147_p7 = por %p8146_p6, %p8145_p5 }
 0x789   :  { %8116 = vrcp.f32 %v7639_v14  ;;  %v7649_v27 = vmax.f32 %v16416_v32, 1.0  ;;  %v7648_v48 = vmax.f32 %v16418_v41, 1.0 }
 0x78a   :  { %8118 = vrcp.f32 %v7638_v26  ;;  %p8148_p8 = pnand %p8147_p7, %p8141_p4 }
 0x78b   :  { %8120 = vrcp.f32 %v7641_v24 }
 0x78c   :  { %8122 = vrcp.f32 %v7640_v25 }
 0x78d   :  { %8124 = vrcp.f32 %v7643_v60 }
 0x78e   :  { %8126 = vrcp.f32 %v7642_v43 }
 0x78f   :  { %8128 = vrcp.f32 %v7645_v62 }
 0x790   :  { %8130 = vrcp.f32 %v7644_v9 }
 0x791   :  { %8132 = vrcp.f32 %v7647_v23 }
 0x792   :  { %v8109_v6 = vpop.eup %8108  ;;  %8134 = vrcp.f32 %v7646_v22 }
 0x793   :  { %v8111_v40 = vpop.eup %8110  ;;  %7681 = vperm.xlu1 %8107, %v8109_v6   ;;  %8136 = vrcp.f32 %v7649_v27 }
 0x794   :  { %v8113_v19 = vpop.eup %8112  ;;  %7671 = vperm.xlu0 %8106, %v8111_v40   ;;  %8138 = vrcp.f32 %v7648_v48 }
 0x795   :  { %v8115_v52 = vpop.eup %8114 }
 0x796   :  { %v8117_v3 = vpop.eup %8116 }
 0x797   :  { %7686 = vperm.xlu1 %8107, %v8113_v19   ;;  %v8119_v4 = vpop.eup %8118 }
 0x798   :  { %7676 = vperm.xlu0 %8106, %v8115_v52   ;;  %v8121_v56 = vpop.eup %8120 }
 0x799   :  { %v8123_v49 = vpop.eup %8122 }
 0x79a   :  { %v8125_v2 = vpop.eup %8124 }
 0x79b   :  { %7696 = vperm.xlu1 %8107, %v8117_v3   ;;  %v8127_v51 = vpop.eup %8126 }
 0x79c   :  { %7691 = vperm.xlu0 %8106, %v8119_v4   ;;  %v8129_v21 = vpop.eup %8128 }
 0x79d   :  { %v8131_v20 = vpop.eup %8130 }
 0x79e   :  { %v8133_v29 = vpop.eup %8132 }
 0x79f   :  { %7706 = vperm.xlu1 %8107, %v8121_v56   ;;  %v8135_v61 = vpop.eup %8134 }
 0x7a0   :  { %7701 = vperm.xlu0 %8106, %v8123_v49   ;;  %v8137_v42 = vpop.eup %8136 }
 0x7a1   :  { %v8139_v16 = vpop.eup %8138 }
 0x7a3   :  { %7716 = vperm.xlu1 %8107, %v8125_v2  }
 0x7a4   :  { %7711 = vperm.xlu0 %8106, %v8127_v51  }
 0x7a7   :  { %7726 = vperm.xlu1 %8107, %v8129_v21  }
 0x7a8   :  { %7721 = vperm.xlu0 %8106, %v8131_v20  }
 0x7ab   :  { %7736 = vperm.xlu1 %8107, %v8133_v29  }
 0x7ac   :  { %7731 = vperm.xlu0 %8106, %v8135_v61  }
 0x7af   :  { %7746 = vperm.xlu1 %8107, %v8137_v42  }
 0x7b0   :  { %7741 = vperm.xlu0 %8106, %v8139_v16  }
 0x80e   :  { %v7682_v63 = vpop.permute.xlu1 %7681 }
 0x80f   :  { %v7751_v35 = vmul.f32 %v7682_v63, %v16374_v38  ;;  %v7672_v45 = vpop.permute.xlu0 %7671 }
 0x810   :  { %v7749_v59 = vmul.f32 %v7672_v45, %v16376_v13 }
 0x811   :  { %v7767_v53 = vsel %vm16424_vm6, %v7751_v35, %v16374_v38 }
 0x812   :  { %7783 = vst [vmem:[#allocation5 + $0x10] sm:$0xff] %v7767_v53  ;;  %v7765_v33 = vsel %vm16424_vm6, %v7749_v59, %v16376_v13  ;;  %v7687_v1 = vpop.permute.xlu1 %7686 }
 0x813   :  { %7781 = vst [vmem:[#allocation5] sm:$0xff] %v7765_v33  ;;  %v7752_v36 = vmul.f32 %v7687_v1, %v16378_v12  ;;  %v7677_v30 = vpop.permute.xlu0 %7676 }
 0x814   :  { %v7750_v7 = vmul.f32 %v7677_v30, %v16383_v55 }
 0x815   :  { %v7768_v44 = vsel %vm16424_vm6, %v7752_v36, %v16378_v12 }
 0x816   :  { %7784 = vst [vmem:[#allocation5 + $0x18] sm:$0xff] %v7768_v44  ;;  %v7766_v18 = vsel %vm16424_vm6, %v7750_v7, %v16383_v55  ;;  %v7697_v50 = vpop.permute.xlu1 %7696 }
 0x817   :  { %7782 = vst [vmem:[#allocation5 + $0x8] sm:$0xff] %v7766_v18  ;;  %v7754_v57 = vmul.f32 %v7697_v50, %v16386_v31  ;;  %v7692_v38 = vpop.permute.xlu0 %7691 }
 0x818   :  { %v7753_v13 = vmul.f32 %v7692_v38, %v16388_v34 }
 0x819   :  { %v7770_v54 = vsel %vm16424_vm6, %v7754_v57, %v16386_v31 }
 0x81a   :  { %7786 = vst [vmem:[#allocation5 + $0x28] sm:$0xff] %v7770_v54  ;;  %v7769_v12 = vsel %vm16424_vm6, %v7753_v13, %v16388_v34  ;;  %v7707_v58 = vpop.permute.xlu1 %7706 }
 0x81b   :  { %7785 = vst [vmem:[#allocation5 + $0x20] sm:$0xff] %v7769_v12  ;;  %v7756_v0 = vmul.f32 %v7707_v58, %v16392_v8  ;;  %v7702_v10 = vpop.permute.xlu0 %7701 }
 0x81c   :  { %v7755_v55 = vmul.f32 %v7702_v10, %v16394_v11 }
 0x81d   :  { %v7772_v37 = vsel %vm16424_vm6, %v7756_v0, %v16392_v8 }
 0x81e   :  { %7788 = vst [vmem:[#allocation5 + $0x38] sm:$0xff] %v7772_v37  ;;  %v7771_v31 = vsel %vm16424_vm6, %v7755_v55, %v16394_v11  ;;  %v7717_v14 = vpop.permute.xlu1 %7716 }
 0x81f   :  { %7787 = vst [vmem:[#allocation5 + $0x30] sm:$0xff] %v7771_v31  ;;  %v7758_v34 = vmul.f32 %v7717_v14, %v16398_v28  ;;  %v7712_v26 = vpop.permute.xlu0 %7711 }
 0x820   :  { %v7757_v24 = vmul.f32 %v7712_v26, %v16400_v47 }
 0x821   :  { %v7774_v25 = vsel %vm16424_vm6, %v7758_v34, %v16398_v28 }
 0x822   :  { %7790 = vst [vmem:[#allocation5 + $0x48] sm:$0xff] %v7774_v25  ;;  %v7773_v8 = vsel %vm16424_vm6, %v7757_v24, %v16400_v47  ;;  %v7727_v60 = vpop.permute.xlu1 %7726 }
 0x823   :  { %7789 = vst [vmem:[#allocation5 + $0x40] sm:$0xff] %v7773_v8  ;;  %v7760_v11 = vmul.f32 %v7727_v60, %v16404_v39  ;;  %v7722_v43 = vpop.permute.xlu0 %7721 }
 0x824   :  { %v7759_v6 = vmul.f32 %v7722_v43, %v16406_v15 }
 0x825   :  { %v7776_v40 = vsel %vm16424_vm6, %v7760_v11, %v16404_v39 }
 0x826   :  { %7792 = vst [vmem:[#allocation5 + $0x58] sm:$0xff] %v7776_v40  ;;  %v7775_v28 = vsel %vm16424_vm6, %v7759_v6, %v16406_v15  ;;  %v7737_v62 = vpop.permute.xlu1 %7736 }
 0x827   :  { %7791 = vst [vmem:[#allocation5 + $0x50] sm:$0xff] %v7775_v28  ;;  %v7762_v47 = vmul.f32 %v7737_v62, %v16410_v5  ;;  %v7732_v19 = vpop.permute.xlu0 %7731 }
 0x828   :  { %v7761_v9 = vmul.f32 %v7732_v19, %v16412_v46 }
 0x829   :  { %v7778_v52 = vsel %vm16424_vm6, %v7762_v47, %v16410_v5 }
 0x82a   :  { %7794 = vst [vmem:[#allocation5 + $0x68] sm:$0xff] %v7778_v52  ;;  %v7777_v39 = vsel %vm16424_vm6, %v7761_v9, %v16412_v46  ;;  %v7747_v23 = vpop.permute.xlu1 %7746 }
 0x82b   :  { %7793 = vst [vmem:[#allocation5 + $0x60] sm:$0xff] %v7777_v39  ;;  %v7764_v15 = vmul.f32 %v7747_v23, %v16416_v32  ;;  %v7742_v3 = vpop.permute.xlu0 %7741 }
 0x82c   :  { %v7763_v22 = vmul.f32 %v7742_v3, %v16418_v41 }
 0x82d   :  { %v7780_v4 = vsel %vm16424_vm6, %v7764_v15, %v16416_v32 }
 0x82e   :  { %7796 = vst [vmem:[#allocation5 + $0x78] sm:$0xff] %v7780_v4  ;;  %v7779_v5 = vsel %vm16424_vm6, %v7763_v22, %v16418_v41 }
 0x82f   :  { %7795 = vst [vmem:[#allocation5 + $0x70] sm:$0xff] %v7779_v5 }
 0x830   :  { %8151 = shalt.err (!%p8148_p8)
}
 0x831   :  { %s8169_s15 = smov 128   ;;  %s8170_s16 = smov 8  }
 0x832   :  { %7808 = dma.vmem_to_hbm [thread:$0]  %s7803_s3, 2048, %s16500_s5, [#allocation6], %s8169_s15, %s8169_s15, %s8170_s16  }
 0x833   :  { %8160 = dma.done.wait [#allocation6], 2048  }
 0x834   :  { %8161 = vsyncadd [#allocation6], 4294965248 }
 0x835   :  { %7812 = vsyncpa [#allocation6], 1 }

</bundles_post_ra>
